<compile_context>
chip_gen: v6e
topology: v6e:2x2x1
jax: 0.10.0
libtpu: 0.0.40
codegen_flags: <defaults>
</compile_context>

<pallas_src>
import functools

import jax
import jax.numpy as jnp
from jax import lax
from jax.experimental import pallas as pl
from jax.experimental.pallas import tpu as pltpu


def _round_up(x, m):
    return ((x + m - 1) // m) * m


def _bigru_kernel(x_ref, wih_ref, whh_ref, bgx_ref, bhn_ref,
                  out_ref, hn_ref, gx_ref, *, T, B, H):
    """Bidirectional GRU, whole sequence resident in VMEM.

    Shapes (all padded: B = Bp multiple of 8, H = Hp multiple of 128):
      x_ref   : (T*B, D)        time-major flattened embedded input
      wih_ref : (D, 6H)         [W_ih_fwd | W_ih_bwd], each gate-stacked [r|z|n]
      whh_ref : (2H, 6H)        block-diagonal: fwd rows -> cols [0:3H],
                                bwd rows -> cols [3H:6H]
      bgx_ref : (1, 6H)         b_ih + b_hh(r,z gates only), both directions
      bhn_ref : (1, 6H)         b_hh for n gates only (zero elsewhere)
      out_ref : (T, B, 2H)      fused output: fwd in [:, :, :H], bwd in [:, :, H:]
      hn_ref  : (2, B, H)       final hidden state (fwd, bwd)
      gx_ref  : (T*B, 6H)       VMEM scratch: hoisted input projections

    PyTorch GRU cell (per direction, gate order [r|z|n]):
        r = sigmoid(x W_ir^T + b_ir + h W_hr^T + b_hr)
        z = sigmoid(x W_iz^T + b_iz + h W_hz^T + b_hz)
        n = tanh  (x W_in^T + b_in + r * (h W_hn^T + b_hn))
        h' = (1 - z) * n + z * h
    """
    # ---- Hoisted input projection: one matmul covers all T steps, both dirs.
    gx_ref[...] = (
        jnp.dot(x_ref[...], wih_ref[...], preferred_element_type=jnp.float32)
        + bgx_ref[...])

    whh = whh_ref[...]   # (2H, 6H) block-diagonal hidden weights
    bhn = bhn_ref[...]   # (1, 6H)  n-gate hidden bias only

    # init_hidden() in the PyTorch module: all ones (both directions).
    h0 = jnp.ones((B, 2 * H), jnp.float32)

    def body(i, h):
        tf = pl.multiple_of(i * B, B)              # fwd timestep row offset
        tb = pl.multiple_of((T - 1 - i) * B, B)    # bwd timestep row offset

        # One MXU matmul per step covers both directions' hidden projections.
        gh = jnp.dot(h, whh, preferred_element_type=jnp.float32) + bhn

        gxf = gx_ref[pl.ds(tf, B), :]   # (B, 6H); fwd gates in cols [0:3H]
        gxb = gx_ref[pl.ds(tb, B), :]   # (B, 6H); bwd gates in cols [3H:6H]

        h_f = h[:, 0 * H:1 * H]
        h_b = h[:, 1 * H:2 * H]

        # Forward direction (lane-aligned 128-wide gate slices).
        r_f = jax.nn.sigmoid(gxf[:, 0 * H:1 * H] + gh[:, 0 * H:1 * H])
        z_f = jax.nn.sigmoid(gxf[:, 1 * H:2 * H] + gh[:, 1 * H:2 * H])
        n_f = jnp.tanh(gxf[:, 2 * H:3 * H] + r_f * gh[:, 2 * H:3 * H])
        h_f_new = (1.0 - z_f) * n_f + z_f * h_f

        # Backward direction (processes timestep T-1-i).
        r_b = jax.nn.sigmoid(gxb[:, 3 * H:4 * H] + gh[:, 3 * H:4 * H])
        z_b = jax.nn.sigmoid(gxb[:, 4 * H:5 * H] + gh[:, 4 * H:5 * H])
        n_b = jnp.tanh(gxb[:, 5 * H:6 * H] + r_b * gh[:, 5 * H:6 * H])
        h_b_new = (1.0 - z_b) * n_b + z_b * h_b

        out_ref[i, :, 0 * H:1 * H] = h_f_new
        out_ref[T - 1 - i, :, 1 * H:2 * H] = h_b_new
        return jnp.concatenate([h_f_new, h_b_new], axis=-1)

    h_final = lax.fori_loop(0, T, body, h0, unroll=True)
    hn_ref[0] = h_final[:, 0 * H:1 * H]
    hn_ref[1] = h_final[:, 1 * H:2 * H]


def _pad_gate_matrix(w, in_dim_p, h_p):
    """PyTorch (3H, in_dim) [r|z|n] -> (in_dim_p, 3*h_p), each gate lane-aligned."""
    three_h, in_dim = w.shape
    H = three_h // 3
    wt = w.T.astype(jnp.float32)  # (in_dim, 3H)
    blocks = []
    for g in range(3):
        blk = wt[:, g * H:(g + 1) * H]
        blocks.append(jnp.pad(blk, ((0, in_dim_p - in_dim), (0, h_p - H))))
    return jnp.concatenate(blocks, axis=1)


def _pad_gate_bias(b, h_p):
    H = b.shape[0] // 3
    return jnp.concatenate(
        [jnp.pad(b[g * H:(g + 1) * H].astype(jnp.float32), (0, h_p - H))
         for g in range(3)])


@functools.partial(jax.jit, static_argnames=("hidden_size",))
def gru_encoder_forward(token_ids, params, hidden_size):
    """Replicates GRUEncoder.forward.

    token_ids: (B, T) int32
    returns (output (B, T, 2H) f32, hidden (2, B, H) f32)
    """
    H = hidden_size
    embedded = jnp.take(params["embedding"], token_ids, axis=0)  # (B, T, D)
    B, T, D = embedded.shape

    Hp = _round_up(H, 128)   # lane-aligned gates
    Dp = _round_up(D, 128)
    Bp = _round_up(B, 8)     # full sublanes

    # Time-major, pad batch (sublanes) and feature (lanes), flatten to 2-D.
    x_tm = jnp.transpose(embedded, (1, 0, 2)).astype(jnp.float32)   # (T, B, D)
    x_pad = jnp.pad(x_tm, ((0, 0), (0, Bp - B), (0, Dp - D)))
    x2d = x_pad.reshape(T * Bp, Dp)

    def prep_dir(w_ih, w_hh, b_ih, b_hh):
        wih = _pad_gate_matrix(w_ih, Dp, Hp)    # (Dp, 3Hp)
        whh = _pad_gate_matrix(w_hh, Hp, Hp)    # (Hp, 3Hp)
        bih = _pad_gate_bias(b_ih, Hp)          # (3Hp,)
        bhh = _pad_gate_bias(b_hh, Hp)          # (3Hp,)
        # Fold b_hh for r,z into the hoisted input projection; the n-gate
        # hidden bias must stay in the loop (it is scaled by r).
        rz = jnp.concatenate([jnp.ones((2 * Hp,), jnp.float32),
                              jnp.zeros((Hp,), jnp.float32)])
        bgx = bih + bhh * rz
        bhn = bhh * (1.0 - rz)
        return wih, whh, bgx, bhn

    wih_f, whh_f, bgx_f, bhn_f = prep_dir(params["w_ih_f"], params["w_hh_f"],
                                          params["b_ih_f"], params["b_hh_f"])
    wih_b, whh_b, bgx_b, bhn_b = prep_dir(params["w_ih_b"], params["w_hh_b"],
                                          params["b_ih_b"], params["b_hh_b"])

    wih_cat = jnp.concatenate([wih_f, wih_b], axis=1)              # (Dp, 6Hp)
    whh_bd = jnp.zeros((2 * Hp, 6 * Hp), jnp.float32)
    whh_bd = whh_bd.at[:Hp, :3 * Hp].set(whh_f)
    whh_bd = whh_bd.at[Hp:, 3 * Hp:].set(whh_b)                    # (2Hp, 6Hp)
    bgx_cat = jnp.concatenate([bgx_f, bgx_b]).reshape(1, 6 * Hp)
    bhn_cat = jnp.concatenate([bhn_f, bhn_b]).reshape(1, 6 * Hp)

    out_pad, hn_pad = pl.pallas_call(
        functools.partial(_bigru_kernel, T=T, B=Bp, H=Hp),
        out_shape=(jax.ShapeDtypeStruct((T, Bp, 2 * Hp), jnp.float32),
                   jax.ShapeDtypeStruct((2, Bp, Hp), jnp.float32)),
        # Whole problem is VMEM-resident at these sizes (< 2 MiB total).
        # TODO(synk): for large T*B, stream time chunks via a grid with
        #             BlockSpec pipelining instead of whole-array residency.
        in_specs=[pl.BlockSpec(memory_space=pltpu.VMEM)] * 5,
        out_specs=(pl.BlockSpec(memory_space=pltpu.VMEM),
                   pl.BlockSpec(memory_space=pltpu.VMEM)),
        scratch_shapes=[pltpu.VMEM((T * Bp, 6 * Hp), jnp.float32)],
    )(x2d, wih_cat, whh_bd, bgx_cat, bhn_cat)

    # Un-pad and assemble PyTorch-style (batch_first) outputs.
    out_f = out_pad[:, :B, :H]                 # (T, B, H)
    out_b = out_pad[:, :B, Hp:Hp + H]          # (T, B, H)
    output = jnp.transpose(jnp.concatenate([out_f, out_b], axis=-1), (1, 0, 2))
    hidden = hn_pad[:, :B, :H]                 # (2, B, H)
    return output, hidden


def _reference_forward(token_ids, params, hidden_size):
    """Pure-JAX reference (lax.scan) for correctness checking."""
    H = hidden_size
    emb = jnp.take(params["embedding"], token_ids, axis=0).astype(jnp.float32)
    B = emb.shape[0]

    def run_dir(x_tm, w_ih, w_hh, b_ih, b_hh):
        wih, whh = w_ih.T, w_hh.T
        bih, bhh = b_ih.reshape(1, -1), b_hh.reshape(1, -1)

        def step(h, x_t):
            gx = x_t @ wih + bih
            gh = h @ whh + bhh
            r = jax.nn.sigmoid(gx[:, :H] + gh[:, :H])
            z = jax.nn.sigmoid(gx[:, H:2 * H] + gh[:, H:2 * H])
            n = jnp.tanh(gx[:, 2 * H:] + r * gh[:, 2 * H:])
            h_new = (1.0 - z) * n + z * h
            return h_new, h_new

        h0 = jnp.ones((B, H), jnp.float32)
        return lax.scan(step, h0, x_tm)

    x_tm = jnp.transpose(emb, (1, 0, 2))
    hf, ys_f = run_dir(x_tm, params["w_ih_f"], params["w_hh_f"],
                       params["b_ih_f"], params["b_hh_f"])
    hb, ys_b_rev = run_dir(x_tm[::-1], params["w_ih_b"], params["w_hh_b"],
                           params["b_ih_b"], params["b_hh_b"])
    ys_b = ys_b_rev[::-1]
    output = jnp.transpose(jnp.concatenate([ys_f, ys_b], axis=-1), (1, 0, 2))
    hidden = jnp.stack([hf, hb], axis=0)
    return output, hidden


def init_params(key, input_size, hidden_size, voc_size, voc_dim):
    ks = jax.random.split(key, 9)
    H = hidden_size
    bound = 1.0 / jnp.sqrt(H)

    def u(k, shape):
        return jax.random.uniform(k, shape, jnp.float32, -bound, bound)

    return {
        "embedding": jax.random.normal(ks[0], (voc_size, voc_dim), jnp.float32),
        "w_ih_f": u(ks[1], (3 * H, input_size)),
        "w_hh_f": u(ks[2], (3 * H, H)),
        "b_ih_f": u(ks[3], (3 * H,)),
        "b_hh_f": u(ks[4], (3 * H,)),
        "w_ih_b": u(ks[5], (3 * H, input_size)),
        "w_hh_b": u(ks[6], (3 * H, H)),
        "b_ih_b": u(ks[7], (3 * H,)),
        "b_hh_b": u(ks[8], (3 * H,)),
    }


if __name__ == "__main__":
    # Small shapes: batch=4, seq=8, voc_size=16, voc_dim=input_size=32, hidden=32
    B, T = 4, 8
    VOC_SIZE, VOC_DIM = 16, 32
    INPUT_SIZE, HIDDEN = VOC_DIM, 32

    key = jax.random.PRNGKey(0)
    k_par, k_tok = jax.random.split(key)
    params = init_params(k_par, INPUT_SIZE, HIDDEN, VOC_SIZE, VOC_DIM)
    token_ids = jax.random.randint(k_tok, (B, T), 0, VOC_SIZE, dtype=jnp.int32)

    output, hidden = gru_encoder_forward(token_ids, params, HIDDEN)
    output = jax.block_until_ready(output)
    hidden = jax.block_until_ready(hidden)

    assert output.shape == (B, T, 2 * HIDDEN)
    assert hidden.shape == (2, B, HIDDEN)

    ref_out, ref_hid = _reference_forward(token_ids, params, HIDDEN)
    assert jnp.allclose(output, ref_out, rtol=1e-3, atol=1e-3)
    assert jnp.allclose(hidden, ref_hid, rtol=1e-3, atol=1e-3)

    print("KERNEL_OK")
</pallas_src>

<mosaic_0001>
module attributes {stable_mosaic.version = 11 : i64} {
  func.func @_bigru_kernel(%arg0: memref<64x128xf32, #tpu.memory_space<vmem>>, %arg1: memref<128x768xf32, #tpu.memory_space<vmem>>, %arg2: memref<256x768xf32, #tpu.memory_space<vmem>>, %arg3: memref<1x768xf32, #tpu.memory_space<vmem>>, %arg4: memref<1x768xf32, #tpu.memory_space<vmem>>, %arg5: memref<8x8x256xf32, #tpu.memory_space<vmem>>, %arg6: memref<2x8x128xf32, #tpu.memory_space<vmem>>, %arg7: memref<64x768xf32, #tpu.memory_space<vmem>>) attributes {dimension_semantics = [], scalar_prefetch = 0 : i64, scratch_operands = 1 : i64, tpu.core_type = #tpu.core_type<tc>} {
    %c0 = arith.constant 0 : index
    %c0_0 = arith.constant 0 : index
    %0 = vector.load %arg0[%c0, %c0_0] : memref<64x128xf32, #tpu.memory_space<vmem>>, vector<64x128xf32>
    %c0_1 = arith.constant 0 : index
    %c0_2 = arith.constant 0 : index
    %1 = vector.load %arg1[%c0_1, %c0_2] : memref<128x768xf32, #tpu.memory_space<vmem>>, vector<128x768xf32>
    %cst = arith.constant dense<0.000000e+00> : vector<64x768xf32>
    %2 = tpu.matmul %0, %1, %cst {dimension_numbers = #tpu.dot_dimension_numbers<[1], [0], [0], [1], [0, 0, 1, 1], [], []>} : vector<64x128xf32>, vector<128x768xf32>, vector<64x768xf32> -> vector<64x768xf32>
    %c0_3 = arith.constant 0 : index
    %c0_4 = arith.constant 0 : index
    %3 = vector.load %arg3[%c0_3, %c0_4] : memref<1x768xf32, #tpu.memory_space<vmem>>, vector<1x768xf32>
    %4 = vector.broadcast %3 : vector<1x768xf32> to vector<64x768xf32>
    %5 = arith.addf %2, %4 : vector<64x768xf32>
    %c0_5 = arith.constant 0 : index
    %c0_6 = arith.constant 0 : index
    %6 = vector.load %arg7[%c0_5, %c0_6] : memref<64x768xf32, #tpu.memory_space<vmem>>, vector<64x768xf32>
    tpu.vector_store %arg7[%c0_5, %c0_6], %5 {strides = array<i32>} : memref<64x768xf32, #tpu.memory_space<vmem>>, vector<64x768xf32>,
    %c0_7 = arith.constant 0 : index
    %c0_8 = arith.constant 0 : index
    %7 = vector.load %arg2[%c0_7, %c0_8] : memref<256x768xf32, #tpu.memory_space<vmem>>, vector<256x768xf32>
    %c0_9 = arith.constant 0 : index
    %c0_10 = arith.constant 0 : index
    %8 = vector.load %arg4[%c0_9, %c0_10] : memref<1x768xf32, #tpu.memory_space<vmem>>, vector<1x768xf32>
    %cst_11 = arith.constant 1.000000e+00 : f32
    %9 = vector.broadcast %cst_11 : f32 to vector<8x256xf32>
    %c0_i32 = arith.constant 0 : i32
    %c8_i32 = arith.constant 8 : i32
    %10 = arith.muli %c0_i32, %c8_i32 : i32
    %11 = tpu.assume_multiple %10, 8 : i32
    %c7_i32 = arith.constant 7 : i32
    %12 = arith.subi %c7_i32, %c0_i32 : i32
    %c8_i32_12 = arith.constant 8 : i32
    %13 = arith.muli %12, %c8_i32_12 : i32
    %14 = tpu.assume_multiple %13, 8 : i32
    %cst_13 = arith.constant dense<0.000000e+00> : vector<8x768xf32>
    %15 = tpu.matmul %9, %7, %cst_13 {dimension_numbers = #tpu.dot_dimension_numbers<[1], [0], [0], [1], [0, 0, 1, 1], [], []>} : vector<8x256xf32>, vector<256x768xf32>, vector<8x768xf32> -> vector<8x768xf32>
    %16 = vector.broadcast %8 : vector<1x768xf32> to vector<8x768xf32>
    %17 = arith.addf %15, %16 : vector<8x768xf32>
    %18 = arith.index_cast %11 : i32 to index
    %c0_14 = arith.constant 0 : index
    %19 = vector.load %arg7[%18, %c0_14] : memref<64x768xf32, #tpu.memory_space<vmem>>, vector<8x768xf32>
    %20 = arith.index_cast %14 : i32 to index
    %c0_15 = arith.constant 0 : index
    %21 = vector.load %arg7[%20, %c0_15] : memref<64x768xf32, #tpu.memory_space<vmem>>, vector<8x768xf32>
    %22 = vector.extract_strided_slice %9 {offsets = [0, 0], sizes = [8, 128], strides = [1, 1]} : vector<8x256xf32> to vector<8x128xf32>
    %23 = vector.extract_strided_slice %9 {offsets = [0, 128], sizes = [8, 128], strides = [1, 1]} : vector<8x256xf32> to vector<8x128xf32>
    %24 = vector.extract_strided_slice %19 {offsets = [0, 0], sizes = [8, 128], strides = [1, 1]} : vector<8x768xf32> to vector<8x128xf32>
    %25 = vector.extract_strided_slice %17 {offsets = [0, 0], sizes = [8, 128], strides = [1, 1]} : vector<8x768xf32> to vector<8x128xf32>
    %26 = arith.addf %24, %25 : vector<8x128xf32>
    %27 = arith.negf %26 : vector<8x128xf32>
    %28 = math.exp %27 : vector<8x128xf32>
    %cst_16 = arith.constant 1.000000e+00 : f32
    %29 = vector.broadcast %cst_16 : f32 to vector<8x128xf32>
    %30 = arith.addf %29, %28 : vector<8x128xf32>
    %31 = arith.divf %29, %30 : vector<8x128xf32>
    %32 = vector.extract_strided_slice %19 {offsets = [0, 128], sizes = [8, 128], strides = [1, 1]} : vector<8x768xf32> to vector<8x128xf32>
    %33 = vector.extract_strided_slice %17 {offsets = [0, 128], sizes = [8, 128], strides = [1, 1]} : vector<8x768xf32> to vector<8x128xf32>
    %34 = arith.addf %32, %33 : vector<8x128xf32>
    %35 = arith.negf %34 : vector<8x128xf32>
    %36 = math.exp %35 : vector<8x128xf32>
    %cst_17 = arith.constant 1.000000e+00 : f32
    %37 = vector.broadcast %cst_17 : f32 to vector<8x128xf32>
    %38 = arith.addf %37, %36 : vector<8x128xf32>
    %39 = arith.divf %37, %38 : vector<8x128xf32>
    %40 = vector.extract_strided_slice %19 {offsets = [0, 256], sizes = [8, 128], strides = [1, 1]} : vector<8x768xf32> to vector<8x128xf32>
    %41 = vector.extract_strided_slice %17 {offsets = [0, 256], sizes = [8, 128], strides = [1, 1]} : vector<8x768xf32> to vector<8x128xf32>
    %42 = arith.mulf %31, %41 : vector<8x128xf32>
    %43 = arith.addf %40, %42 : vector<8x128xf32>
    %44 = math.tanh %43 : vector<8x128xf32>
    %cst_18 = arith.constant 1.000000e+00 : f32
    %45 = vector.broadcast %cst_18 : f32 to vector<8x128xf32>
    %46 = arith.subf %45, %39 : vector<8x128xf32>
    %47 = arith.mulf %46, %44 : vector<8x128xf32>
    %48 = arith.mulf %39, %22 : vector<8x128xf32>
    %49 = arith.addf %47, %48 : vector<8x128xf32>
    %50 = vector.extract_strided_slice %21 {offsets = [0, 384], sizes = [8, 128], strides = [1, 1]} : vector<8x768xf32> to vector<8x128xf32>
    %51 = vector.extract_strided_slice %17 {offsets = [0, 384], sizes = [8, 128], strides = [1, 1]} : vector<8x768xf32> to vector<8x128xf32>
    %52 = arith.addf %50, %51 : vector<8x128xf32>
    %53 = arith.negf %52 : vector<8x128xf32>
    %54 = math.exp %53 : vector<8x128xf32>
    %cst_19 = arith.constant 1.000000e+00 : f32
    %55 = vector.broadcast %cst_19 : f32 to vector<8x128xf32>
    %56 = arith.addf %55, %54 : vector<8x128xf32>
    %57 = arith.divf %55, %56 : vector<8x128xf32>
    %58 = vector.extract_strided_slice %21 {offsets = [0, 512], sizes = [8, 128], strides = [1, 1]} : vector<8x768xf32> to vector<8x128xf32>
    %59 = vector.extract_strided_slice %17 {offsets = [0, 512], sizes = [8, 128], strides = [1, 1]} : vector<8x768xf32> to vector<8x128xf32>
    %60 = arith.addf %58, %59 : vector<8x128xf32>
    %61 = arith.negf %60 : vector<8x128xf32>
    %62 = math.exp %61 : vector<8x128xf32>
    %cst_20 = arith.constant 1.000000e+00 : f32
    %63 = vector.broadcast %cst_20 : f32 to vector<8x128xf32>
    %64 = arith.addf %63, %62 : vector<8x128xf32>
    %65 = arith.divf %63, %64 : vector<8x128xf32>
    %66 = vector.extract_strided_slice %21 {offsets = [0, 640], sizes = [8, 128], strides = [1, 1]} : vector<8x768xf32> to vector<8x128xf32>
    %67 = vector.extract_strided_slice %17 {offsets = [0, 640], sizes = [8, 128], strides = [1, 1]} : vector<8x768xf32> to vector<8x128xf32>
    %68 = arith.mulf %57, %67 : vector<8x128xf32>
    %69 = arith.addf %66, %68 : vector<8x128xf32>
    %70 = math.tanh %69 : vector<8x128xf32>
    %cst_21 = arith.constant 1.000000e+00 : f32
    %71 = vector.broadcast %cst_21 : f32 to vector<8x128xf32>
    %72 = arith.subf %71, %65 : vector<8x128xf32>
    %73 = arith.mulf %72, %70 : vector<8x128xf32>
    %74 = arith.mulf %65, %23 : vector<8x128xf32>
    %75 = arith.addf %73, %74 : vector<8x128xf32>
    %76 = arith.index_cast %c0_i32 : i32 to index
    %c0_22 = arith.constant 0 : index
    %c0_23 = arith.constant 0 : index
    %77 = vector.load %arg5[%76, %c0_22, %c0_23] : memref<8x8x256xf32, #tpu.memory_space<vmem>>, vector<1x8x128xf32>
    %78 = vector.shape_cast %77 : vector<1x8x128xf32> to vector<8x128xf32>
    %79 = vector.shape_cast %49 : vector<8x128xf32> to vector<1x8x128xf32>
    tpu.vector_store %arg5[%76, %c0_22, %c0_23], %79 {strides = array<i32>} : memref<8x8x256xf32, #tpu.memory_space<vmem>>, vector<1x8x128xf32>,
    %c7_i32_24 = arith.constant 7 : i32
    %80 = arith.subi %c7_i32_24, %c0_i32 : i32
    %81 = arith.index_cast %80 : i32 to index
    %c0_25 = arith.constant 0 : index
    %c128 = arith.constant 128 : index
    %82 = vector.load %arg5[%81, %c0_25, %c128] : memref<8x8x256xf32, #tpu.memory_space<vmem>>, vector<1x8x128xf32>
    %83 = vector.shape_cast %82 : vector<1x8x128xf32> to vector<8x128xf32>
    %84 = vector.shape_cast %75 : vector<8x128xf32> to vector<1x8x128xf32>
    tpu.vector_store %arg5[%81, %c0_25, %c128], %84 {strides = array<i32>} : memref<8x8x256xf32, #tpu.memory_space<vmem>>, vector<1x8x128xf32>,
    %85 = tpu.concatenate %49, %75 in 1 : vector<8x128xf32>, vector<8x128xf32> -> vector<8x256xf32>
    %c1_i32 = arith.constant 1 : i32
    %c8_i32_26 = arith.constant 8 : i32
    %86 = arith.muli %c1_i32, %c8_i32_26 : i32
    %87 = tpu.assume_multiple %86, 8 : i32
    %c7_i32_27 = arith.constant 7 : i32
    %88 = arith.subi %c7_i32_27, %c1_i32 : i32
    %c8_i32_28 = arith.constant 8 : i32
    %89 = arith.muli %88, %c8_i32_28 : i32
    %90 = tpu.assume_multiple %89, 8 : i32
    %cst_29 = arith.constant dense<0.000000e+00> : vector<8x768xf32>
    %91 = tpu.matmul %85, %7, %cst_29 {dimension_numbers = #tpu.dot_dimension_numbers<[1], [0], [0], [1], [0, 0, 1, 1], [], []>} : vector<8x256xf32>, vector<256x768xf32>, vector<8x768xf32> -> vector<8x768xf32>
    %92 = vector.broadcast %8 : vector<1x768xf32> to vector<8x768xf32>
    %93 = arith.addf %91, %92 : vector<8x768xf32>
    %94 = arith.index_cast %87 : i32 to index
    %c0_30 = arith.constant 0 : index
    %95 = vector.load %arg7[%94, %c0_30] : memref<64x768xf32, #tpu.memory_space<vmem>>, vector<8x768xf32>
    %96 = arith.index_cast %90 : i32 to index
    %c0_31 = arith.constant 0 : index
    %97 = vector.load %arg7[%96, %c0_31] : memref<64x768xf32, #tpu.memory_space<vmem>>, vector<8x768xf32>
    %98 = vector.extract_strided_slice %85 {offsets = [0, 0], sizes = [8, 128], strides = [1, 1]} : vector<8x256xf32> to vector<8x128xf32>
    %99 = vector.extract_strided_slice %85 {offsets = [0, 128], sizes = [8, 128], strides = [1, 1]} : vector<8x256xf32> to vector<8x128xf32>
    %100 = vector.extract_strided_slice %95 {offsets = [0, 0], sizes = [8, 128], strides = [1, 1]} : vector<8x768xf32> to vector<8x128xf32>
    %101 = vector.extract_strided_slice %93 {offsets = [0, 0], sizes = [8, 128], strides = [1, 1]} : vector<8x768xf32> to vector<8x128xf32>
    %102 = arith.addf %100, %101 : vector<8x128xf32>
    %103 = arith.negf %102 : vector<8x128xf32>
    %104 = math.exp %103 : vector<8x128xf32>
    %cst_32 = arith.constant 1.000000e+00 : f32
    %105 = vector.broadcast %cst_32 : f32 to vector<8x128xf32>
    %106 = arith.addf %105, %104 : vector<8x128xf32>
    %107 = arith.divf %105, %106 : vector<8x128xf32>
    %108 = vector.extract_strided_slice %95 {offsets = [0, 128], sizes = [8, 128], strides = [1, 1]} : vector<8x768xf32> to vector<8x128xf32>
    %109 = vector.extract_strided_slice %93 {offsets = [0, 128], sizes = [8, 128], strides = [1, 1]} : vector<8x768xf32> to vector<8x128xf32>
    %110 = arith.addf %108, %109 : vector<8x128xf32>
    %111 = arith.negf %110 : vector<8x128xf32>
    %112 = math.exp %111 : vector<8x128xf32>
    %cst_33 = arith.constant 1.000000e+00 : f32
    %113 = vector.broadcast %cst_33 : f32 to vector<8x128xf32>
    %114 = arith.addf %113, %112 : vector<8x128xf32>
    %115 = arith.divf %113, %114 : vector<8x128xf32>
    %116 = vector.extract_strided_slice %95 {offsets = [0, 256], sizes = [8, 128], strides = [1, 1]} : vector<8x768xf32> to vector<8x128xf32>
    %117 = vector.extract_strided_slice %93 {offsets = [0, 256], sizes = [8, 128], strides = [1, 1]} : vector<8x768xf32> to vector<8x128xf32>
    %118 = arith.mulf %107, %117 : vector<8x128xf32>
    %119 = arith.addf %116, %118 : vector<8x128xf32>
    %120 = math.tanh %119 : vector<8x128xf32>
    %cst_34 = arith.constant 1.000000e+00 : f32
    %121 = vector.broadcast %cst_34 : f32 to vector<8x128xf32>
    %122 = arith.subf %121, %115 : vector<8x128xf32>
    %123 = arith.mulf %122, %120 : vector<8x128xf32>
    %124 = arith.mulf %115, %98 : vector<8x128xf32>
    %125 = arith.addf %123, %124 : vector<8x128xf32>
    %126 = vector.extract_strided_slice %97 {offsets = [0, 384], sizes = [8, 128], strides = [1, 1]} : vector<8x768xf32> to vector<8x128xf32>
    %127 = vector.extract_strided_slice %93 {offsets = [0, 384], sizes = [8, 128], strides = [1, 1]} : vector<8x768xf32> to vector<8x128xf32>
    %128 = arith.addf %126, %127 : vector<8x128xf32>
    %129 = arith.negf %128 : vector<8x128xf32>
    %130 = math.exp %129 : vector<8x128xf32>
    %cst_35 = arith.constant 1.000000e+00 : f32
    %131 = vector.broadcast %cst_35 : f32 to vector<8x128xf32>
    %132 = arith.addf %131, %130 : vector<8x128xf32>
    %133 = arith.divf %131, %132 : vector<8x128xf32>
    %134 = vector.extract_strided_slice %97 {offsets = [0, 512], sizes = [8, 128], strides = [1, 1]} : vector<8x768xf32> to vector<8x128xf32>
    %135 = vector.extract_strided_slice %93 {offsets = [0, 512], sizes = [8, 128], strides = [1, 1]} : vector<8x768xf32> to vector<8x128xf32>
    %136 = arith.addf %134, %135 : vector<8x128xf32>
    %137 = arith.negf %136 : vector<8x128xf32>
    %138 = math.exp %137 : vector<8x128xf32>
    %cst_36 = arith.constant 1.000000e+00 : f32
    %139 = vector.broadcast %cst_36 : f32 to vector<8x128xf32>
    %140 = arith.addf %139, %138 : vector<8x128xf32>
    %141 = arith.divf %139, %140 : vector<8x128xf32>
    %142 = vector.extract_strided_slice %97 {offsets = [0, 640], sizes = [8, 128], strides = [1, 1]} : vector<8x768xf32> to vector<8x128xf32>
    %143 = vector.extract_strided_slice %93 {offsets = [0, 640], sizes = [8, 128], strides = [1, 1]} : vector<8x768xf32> to vector<8x128xf32>
    %144 = arith.mulf %133, %143 : vector<8x128xf32>
    %145 = arith.addf %142, %144 : vector<8x128xf32>
    %146 = math.tanh %145 : vector<8x128xf32>
    %cst_37 = arith.constant 1.000000e+00 : f32
    %147 = vector.broadcast %cst_37 : f32 to vector<8x128xf32>
    %148 = arith.subf %147, %141 : vector<8x128xf32>
    %149 = arith.mulf %148, %146 : vector<8x128xf32>
    %150 = arith.mulf %141, %99 : vector<8x128xf32>
    %151 = arith.addf %149, %150 : vector<8x128xf32>
    %152 = arith.index_cast %c1_i32 : i32 to index
    %c0_38 = arith.constant 0 : index
    %c0_39 = arith.constant 0 : index
    %153 = vector.load %arg5[%152, %c0_38, %c0_39] : memref<8x8x256xf32, #tpu.memory_space<vmem>>, vector<1x8x128xf32>
    %154 = vector.shape_cast %153 : vector<1x8x128xf32> to vector<8x128xf32>
    %155 = vector.shape_cast %125 : vector<8x128xf32> to vector<1x8x128xf32>
    tpu.vector_store %arg5[%152, %c0_38, %c0_39], %155 {strides = array<i32>} : memref<8x8x256xf32, #tpu.memory_space<vmem>>, vector<1x8x128xf32>,
    %c7_i32_40 = arith.constant 7 : i32
    %156 = arith.subi %c7_i32_40, %c1_i32 : i32
    %157 = arith.index_cast %156 : i32 to index
    %c0_41 = arith.constant 0 : index
    %c128_42 = arith.constant 128 : index
    %158 = vector.load %arg5[%157, %c0_41, %c128_42] : memref<8x8x256xf32, #tpu.memory_space<vmem>>, vector<1x8x128xf32>
    %159 = vector.shape_cast %158 : vector<1x8x128xf32> to vector<8x128xf32>
    %160 = vector.shape_cast %151 : vector<8x128xf32> to vector<1x8x128xf32>
    tpu.vector_store %arg5[%157, %c0_41, %c128_42], %160 {strides = array<i32>} : memref<8x8x256xf32, #tpu.memory_space<vmem>>, vector<1x8x128xf32>,
    %161 = tpu.concatenate %125, %151 in 1 : vector<8x128xf32>, vector<8x128xf32> -> vector<8x256xf32>
    %c2_i32 = arith.constant 2 : i32
    %c8_i32_43 = arith.constant 8 : i32
    %162 = arith.muli %c2_i32, %c8_i32_43 : i32
    %163 = tpu.assume_multiple %162, 8 : i32
    %c7_i32_44 = arith.constant 7 : i32
    %164 = arith.subi %c7_i32_44, %c2_i32 : i32
    %c8_i32_45 = arith.constant 8 : i32
    %165 = arith.muli %164, %c8_i32_45 : i32
    %166 = tpu.assume_multiple %165, 8 : i32
    %cst_46 = arith.constant dense<0.000000e+00> : vector<8x768xf32>
    %167 = tpu.matmul %161, %7, %cst_46 {dimension_numbers = #tpu.dot_dimension_numbers<[1], [0], [0], [1], [0, 0, 1, 1], [], []>} : vector<8x256xf32>, vector<256x768xf32>, vector<8x768xf32> -> vector<8x768xf32>
    %168 = vector.broadcast %8 : vector<1x768xf32> to vector<8x768xf32>
    %169 = arith.addf %167, %168 : vector<8x768xf32>
    %170 = arith.index_cast %163 : i32 to index
    %c0_47 = arith.constant 0 : index
    %171 = vector.load %arg7[%170, %c0_47] : memref<64x768xf32, #tpu.memory_space<vmem>>, vector<8x768xf32>
    %172 = arith.index_cast %166 : i32 to index
    %c0_48 = arith.constant 0 : index
    %173 = vector.load %arg7[%172, %c0_48] : memref<64x768xf32, #tpu.memory_space<vmem>>, vector<8x768xf32>
    %174 = vector.extract_strided_slice %161 {offsets = [0, 0], sizes = [8, 128], strides = [1, 1]} : vector<8x256xf32> to vector<8x128xf32>
    %175 = vector.extract_strided_slice %161 {offsets = [0, 128], sizes = [8, 128], strides = [1, 1]} : vector<8x256xf32> to vector<8x128xf32>
    %176 = vector.extract_strided_slice %171 {offsets = [0, 0], sizes = [8, 128], strides = [1, 1]} : vector<8x768xf32> to vector<8x128xf32>
    %177 = vector.extract_strided_slice %169 {offsets = [0, 0], sizes = [8, 128], strides = [1, 1]} : vector<8x768xf32> to vector<8x128xf32>
    %178 = arith.addf %176, %177 : vector<8x128xf32>
    %179 = arith.negf %178 : vector<8x128xf32>
    %180 = math.exp %179 : vector<8x128xf32>
    %cst_49 = arith.constant 1.000000e+00 : f32
    %181 = vector.broadcast %cst_49 : f32 to vector<8x128xf32>
    %182 = arith.addf %181, %180 : vector<8x128xf32>
    %183 = arith.divf %181, %182 : vector<8x128xf32>
    %184 = vector.extract_strided_slice %171 {offsets = [0, 128], sizes = [8, 128], strides = [1, 1]} : vector<8x768xf32> to vector<8x128xf32>
    %185 = vector.extract_strided_slice %169 {offsets = [0, 128], sizes = [8, 128], strides = [1, 1]} : vector<8x768xf32> to vector<8x128xf32>
    %186 = arith.addf %184, %185 : vector<8x128xf32>
    %187 = arith.negf %186 : vector<8x128xf32>
    %188 = math.exp %187 : vector<8x128xf32>
    %cst_50 = arith.constant 1.000000e+00 : f32
    %189 = vector.broadcast %cst_50 : f32 to vector<8x128xf32>
    %190 = arith.addf %189, %188 : vector<8x128xf32>
    %191 = arith.divf %189, %190 : vector<8x128xf32>
    %192 = vector.extract_strided_slice %171 {offsets = [0, 256], sizes = [8, 128], strides = [1, 1]} : vector<8x768xf32> to vector<8x128xf32>
    %193 = vector.extract_strided_slice %169 {offsets = [0, 256], sizes = [8, 128], strides = [1, 1]} : vector<8x768xf32> to vector<8x128xf32>
    %194 = arith.mulf %183, %193 : vector<8x128xf32>
    %195 = arith.addf %192, %194 : vector<8x128xf32>
    %196 = math.tanh %195 : vector<8x128xf32>
    %cst_51 = arith.constant 1.000000e+00 : f32
    %197 = vector.broadcast %cst_51 : f32 to vector<8x128xf32>
    %198 = arith.subf %197, %191 : vector<8x128xf32>
    %199 = arith.mulf %198, %196 : vector<8x128xf32>
    %200 = arith.mulf %191, %174 : vector<8x128xf32>
    %201 = arith.addf %199, %200 : vector<8x128xf32>
    %202 = vector.extract_strided_slice %173 {offsets = [0, 384], sizes = [8, 128], strides = [1, 1]} : vector<8x768xf32> to vector<8x128xf32>
    %203 = vector.extract_strided_slice %169 {offsets = [0, 384], sizes = [8, 128], strides = [1, 1]} : vector<8x768xf32> to vector<8x128xf32>
    %204 = arith.addf %202, %203 : vector<8x128xf32>
    %205 = arith.negf %204 : vector<8x128xf32>
    %206 = math.exp %205 : vector<8x128xf32>
    %cst_52 = arith.constant 1.000000e+00 : f32
    %207 = vector.broadcast %cst_52 : f32 to vector<8x128xf32>
    %208 = arith.addf %207, %206 : vector<8x128xf32>
    %209 = arith.divf %207, %208 : vector<8x128xf32>
    %210 = vector.extract_strided_slice %173 {offsets = [0, 512], sizes = [8, 128], strides = [1, 1]} : vector<8x768xf32> to vector<8x128xf32>
    %211 = vector.extract_strided_slice %169 {offsets = [0, 512], sizes = [8, 128], strides = [1, 1]} : vector<8x768xf32> to vector<8x128xf32>
    %212 = arith.addf %210, %211 : vector<8x128xf32>
    %213 = arith.negf %212 : vector<8x128xf32>
    %214 = math.exp %213 : vector<8x128xf32>
    %cst_53 = arith.constant 1.000000e+00 : f32
    %215 = vector.broadcast %cst_53 : f32 to vector<8x128xf32>
    %216 = arith.addf %215, %214 : vector<8x128xf32>
    %217 = arith.divf %215, %216 : vector<8x128xf32>
    %218 = vector.extract_strided_slice %173 {offsets = [0, 640], sizes = [8, 128], strides = [1, 1]} : vector<8x768xf32> to vector<8x128xf32>
    %219 = vector.extract_strided_slice %169 {offsets = [0, 640], sizes = [8, 128], strides = [1, 1]} : vector<8x768xf32> to vector<8x128xf32>
    %220 = arith.mulf %209, %219 : vector<8x128xf32>
    %221 = arith.addf %218, %220 : vector<8x128xf32>
    %222 = math.tanh %221 : vector<8x128xf32>
    %cst_54 = arith.constant 1.000000e+00 : f32
    %223 = vector.broadcast %cst_54 : f32 to vector<8x128xf32>
    %224 = arith.subf %223, %217 : vector<8x128xf32>
    %225 = arith.mulf %224, %222 : vector<8x128xf32>
    %226 = arith.mulf %217, %175 : vector<8x128xf32>
    %227 = arith.addf %225, %226 : vector<8x128xf32>
    %228 = arith.index_cast %c2_i32 : i32 to index
    %c0_55 = arith.constant 0 : index
    %c0_56 = arith.constant 0 : index
    %229 = vector.load %arg5[%228, %c0_55, %c0_56] : memref<8x8x256xf32, #tpu.memory_space<vmem>>, vector<1x8x128xf32>
    %230 = vector.shape_cast %229 : vector<1x8x128xf32> to vector<8x128xf32>
    %231 = vector.shape_cast %201 : vector<8x128xf32> to vector<1x8x128xf32>
    tpu.vector_store %arg5[%228, %c0_55, %c0_56], %231 {strides = array<i32>} : memref<8x8x256xf32, #tpu.memory_space<vmem>>, vector<1x8x128xf32>,
    %c7_i32_57 = arith.constant 7 : i32
    %232 = arith.subi %c7_i32_57, %c2_i32 : i32
    %233 = arith.index_cast %232 : i32 to index
    %c0_58 = arith.constant 0 : index
    %c128_59 = arith.constant 128 : index
    %234 = vector.load %arg5[%233, %c0_58, %c128_59] : memref<8x8x256xf32, #tpu.memory_space<vmem>>, vector<1x8x128xf32>
    %235 = vector.shape_cast %234 : vector<1x8x128xf32> to vector<8x128xf32>
    %236 = vector.shape_cast %227 : vector<8x128xf32> to vector<1x8x128xf32>
    tpu.vector_store %arg5[%233, %c0_58, %c128_59], %236 {strides = array<i32>} : memref<8x8x256xf32, #tpu.memory_space<vmem>>, vector<1x8x128xf32>,
    %237 = tpu.concatenate %201, %227 in 1 : vector<8x128xf32>, vector<8x128xf32> -> vector<8x256xf32>
    %c3_i32 = arith.constant 3 : i32
    %c8_i32_60 = arith.constant 8 : i32
    %238 = arith.muli %c3_i32, %c8_i32_60 : i32
    %239 = tpu.assume_multiple %238, 8 : i32
    %c7_i32_61 = arith.constant 7 : i32
    %240 = arith.subi %c7_i32_61, %c3_i32 : i32
    %c8_i32_62 = arith.constant 8 : i32
    %241 = arith.muli %240, %c8_i32_62 : i32
    %242 = tpu.assume_multiple %241, 8 : i32
    %cst_63 = arith.constant dense<0.000000e+00> : vector<8x768xf32>
    %243 = tpu.matmul %237, %7, %cst_63 {dimension_numbers = #tpu.dot_dimension_numbers<[1], [0], [0], [1], [0, 0, 1, 1], [], []>} : vector<8x256xf32>, vector<256x768xf32>, vector<8x768xf32> -> vector<8x768xf32>
    %244 = vector.broadcast %8 : vector<1x768xf32> to vector<8x768xf32>
    %245 = arith.addf %243, %244 : vector<8x768xf32>
    %246 = arith.index_cast %239 : i32 to index
    %c0_64 = arith.constant 0 : index
    %247 = vector.load %arg7[%246, %c0_64] : memref<64x768xf32, #tpu.memory_space<vmem>>, vector<8x768xf32>
    %248 = arith.index_cast %242 : i32 to index
    %c0_65 = arith.constant 0 : index
    %249 = vector.load %arg7[%248, %c0_65] : memref<64x768xf32, #tpu.memory_space<vmem>>, vector<8x768xf32>
    %250 = vector.extract_strided_slice %237 {offsets = [0, 0], sizes = [8, 128], strides = [1, 1]} : vector<8x256xf32> to vector<8x128xf32>
    %251 = vector.extract_strided_slice %237 {offsets = [0, 128], sizes = [8, 128], strides = [1, 1]} : vector<8x256xf32> to vector<8x128xf32>
    %252 = vector.extract_strided_slice %247 {offsets = [0, 0], sizes = [8, 128], strides = [1, 1]} : vector<8x768xf32> to vector<8x128xf32>
    %253 = vector.extract_strided_slice %245 {offsets = [0, 0], sizes = [8, 128], strides = [1, 1]} : vector<8x768xf32> to vector<8x128xf32>
    %254 = arith.addf %252, %253 : vector<8x128xf32>
    %255 = arith.negf %254 : vector<8x128xf32>
    %256 = math.exp %255 : vector<8x128xf32>
    %cst_66 = arith.constant 1.000000e+00 : f32
    %257 = vector.broadcast %cst_66 : f32 to vector<8x128xf32>
    %258 = arith.addf %257, %256 : vector<8x128xf32>
    %259 = arith.divf %257, %258 : vector<8x128xf32>
    %260 = vector.extract_strided_slice %247 {offsets = [0, 128], sizes = [8, 128], strides = [1, 1]} : vector<8x768xf32> to vector<8x128xf32>
    %261 = vector.extract_strided_slice %245 {offsets = [0, 128], sizes = [8, 128], strides = [1, 1]} : vector<8x768xf32> to vector<8x128xf32>
    %262 = arith.addf %260, %261 : vector<8x128xf32>
    %263 = arith.negf %262 : vector<8x128xf32>
    %264 = math.exp %263 : vector<8x128xf32>
    %cst_67 = arith.constant 1.000000e+00 : f32
    %265 = vector.broadcast %cst_67 : f32 to vector<8x128xf32>
    %266 = arith.addf %265, %264 : vector<8x128xf32>
    %267 = arith.divf %265, %266 : vector<8x128xf32>
    %268 = vector.extract_strided_slice %247 {offsets = [0, 256], sizes = [8, 128], strides = [1, 1]} : vector<8x768xf32> to vector<8x128xf32>
    %269 = vector.extract_strided_slice %245 {offsets = [0, 256], sizes = [8, 128], strides = [1, 1]} : vector<8x768xf32> to vector<8x128xf32>
    %270 = arith.mulf %259, %269 : vector<8x128xf32>
    %271 = arith.addf %268, %270 : vector<8x128xf32>
    %272 = math.tanh %271 : vector<8x128xf32>
    %cst_68 = arith.constant 1.000000e+00 : f32
    %273 = vector.broadcast %cst_68 : f32 to vector<8x128xf32>
    %274 = arith.subf %273, %267 : vector<8x128xf32>
    %275 = arith.mulf %274, %272 : vector<8x128xf32>
    %276 = arith.mulf %267, %250 : vector<8x128xf32>
    %277 = arith.addf %275, %276 : vector<8x128xf32>
    %278 = vector.extract_strided_slice %249 {offsets = [0, 384], sizes = [8, 128], strides = [1, 1]} : vector<8x768xf32> to vector<8x128xf32>
    %279 = vector.extract_strided_slice %245 {offsets = [0, 384], sizes = [8, 128], strides = [1, 1]} : vector<8x768xf32> to vector<8x128xf32>
    %280 = arith.addf %278, %279 : vector<8x128xf32>
    %281 = arith.negf %280 : vector<8x128xf32>
    %282 = math.exp %281 : vector<8x128xf32>
    %cst_69 = arith.constant 1.000000e+00 : f32
    %283 = vector.broadcast %cst_69 : f32 to vector<8x128xf32>
    %284 = arith.addf %283, %282 : vector<8x128xf32>
    %285 = arith.divf %283, %284 : vector<8x128xf32>
    %286 = vector.extract_strided_slice %249 {offsets = [0, 512], sizes = [8, 128], strides = [1, 1]} : vector<8x768xf32> to vector<8x128xf32>
    %287 = vector.extract_strided_slice %245 {offsets = [0, 512], sizes = [8, 128], strides = [1, 1]} : vector<8x768xf32> to vector<8x128xf32>
    %288 = arith.addf %286, %287 : vector<8x128xf32>
    %289 = arith.negf %288 : vector<8x128xf32>
    %290 = math.exp %289 : vector<8x128xf32>
    %cst_70 = arith.constant 1.000000e+00 : f32
    %291 = vector.broadcast %cst_70 : f32 to vector<8x128xf32>
    %292 = arith.addf %291, %290 : vector<8x128xf32>
    %293 = arith.divf %291, %292 : vector<8x128xf32>
    %294 = vector.extract_strided_slice %249 {offsets = [0, 640], sizes = [8, 128], strides = [1, 1]} : vector<8x768xf32> to vector<8x128xf32>
    %295 = vector.extract_strided_slice %245 {offsets = [0, 640], sizes = [8, 128], strides = [1, 1]} : vector<8x768xf32> to vector<8x128xf32>
    %296 = arith.mulf %285, %295 : vector<8x128xf32>
    %297 = arith.addf %294, %296 : vector<8x128xf32>
    %298 = math.tanh %297 : vector<8x128xf32>
    %cst_71 = arith.constant 1.000000e+00 : f32
    %299 = vector.broadcast %cst_71 : f32 to vector<8x128xf32>
    %300 = arith.subf %299, %293 : vector<8x128xf32>
    %301 = arith.mulf %300, %298 : vector<8x128xf32>
    %302 = arith.mulf %293, %251 : vector<8x128xf32>
    %303 = arith.addf %301, %302 : vector<8x128xf32>
    %304 = arith.index_cast %c3_i32 : i32 to index
    %c0_72 = arith.constant 0 : index
    %c0_73 = arith.constant 0 : index
    %305 = vector.load %arg5[%304, %c0_72, %c0_73] : memref<8x8x256xf32, #tpu.memory_space<vmem>>, vector<1x8x128xf32>
    %306 = vector.shape_cast %305 : vector<1x8x128xf32> to vector<8x128xf32>
    %307 = vector.shape_cast %277 : vector<8x128xf32> to vector<1x8x128xf32>
    tpu.vector_store %arg5[%304, %c0_72, %c0_73], %307 {strides = array<i32>} : memref<8x8x256xf32, #tpu.memory_space<vmem>>, vector<1x8x128xf32>,
    %c7_i32_74 = arith.constant 7 : i32
    %308 = arith.subi %c7_i32_74, %c3_i32 : i32
    %309 = arith.index_cast %308 : i32 to index
    %c0_75 = arith.constant 0 : index
    %c128_76 = arith.constant 128 : index
    %310 = vector.load %arg5[%309, %c0_75, %c128_76] : memref<8x8x256xf32, #tpu.memory_space<vmem>>, vector<1x8x128xf32>
    %311 = vector.shape_cast %310 : vector<1x8x128xf32> to vector<8x128xf32>
    %312 = vector.shape_cast %303 : vector<8x128xf32> to vector<1x8x128xf32>
    tpu.vector_store %arg5[%309, %c0_75, %c128_76], %312 {strides = array<i32>} : memref<8x8x256xf32, #tpu.memory_space<vmem>>, vector<1x8x128xf32>,
    %313 = tpu.concatenate %277, %303 in 1 : vector<8x128xf32>, vector<8x128xf32> -> vector<8x256xf32>
    %c4_i32 = arith.constant 4 : i32
    %c8_i32_77 = arith.constant 8 : i32
    %314 = arith.muli %c4_i32, %c8_i32_77 : i32
    %315 = tpu.assume_multiple %314, 8 : i32
    %c7_i32_78 = arith.constant 7 : i32
    %316 = arith.subi %c7_i32_78, %c4_i32 : i32
    %c8_i32_79 = arith.constant 8 : i32
    %317 = arith.muli %316, %c8_i32_79 : i32
    %318 = tpu.assume_multiple %317, 8 : i32
    %cst_80 = arith.constant dense<0.000000e+00> : vector<8x768xf32>
    %319 = tpu.matmul %313, %7, %cst_80 {dimension_numbers = #tpu.dot_dimension_numbers<[1], [0], [0], [1], [0, 0, 1, 1], [], []>} : vector<8x256xf32>, vector<256x768xf32>, vector<8x768xf32> -> vector<8x768xf32>
    %320 = vector.broadcast %8 : vector<1x768xf32> to vector<8x768xf32>
    %321 = arith.addf %319, %320 : vector<8x768xf32>
    %322 = arith.index_cast %315 : i32 to index
    %c0_81 = arith.constant 0 : index
    %323 = vector.load %arg7[%322, %c0_81] : memref<64x768xf32, #tpu.memory_space<vmem>>, vector<8x768xf32>
    %324 = arith.index_cast %318 : i32 to index
    %c0_82 = arith.constant 0 : index
    %325 = vector.load %arg7[%324, %c0_82] : memref<64x768xf32, #tpu.memory_space<vmem>>, vector<8x768xf32>
    %326 = vector.extract_strided_slice %313 {offsets = [0, 0], sizes = [8, 128], strides = [1, 1]} : vector<8x256xf32> to vector<8x128xf32>
    %327 = vector.extract_strided_slice %313 {offsets = [0, 128], sizes = [8, 128], strides = [1, 1]} : vector<8x256xf32> to vector<8x128xf32>
    %328 = vector.extract_strided_slice %323 {offsets = [0, 0], sizes = [8, 128], strides = [1, 1]} : vector<8x768xf32> to vector<8x128xf32>
    %329 = vector.extract_strided_slice %321 {offsets = [0, 0], sizes = [8, 128], strides = [1, 1]} : vector<8x768xf32> to vector<8x128xf32>
    %330 = arith.addf %328, %329 : vector<8x128xf32>
    %331 = arith.negf %330 : vector<8x128xf32>
    %332 = math.exp %331 : vector<8x128xf32>
    %cst_83 = arith.constant 1.000000e+00 : f32
    %333 = vector.broadcast %cst_83 : f32 to vector<8x128xf32>
    %334 = arith.addf %333, %332 : vector<8x128xf32>
    %335 = arith.divf %333, %334 : vector<8x128xf32>
    %336 = vector.extract_strided_slice %323 {offsets = [0, 128], sizes = [8, 128], strides = [1, 1]} : vector<8x768xf32> to vector<8x128xf32>
    %337 = vector.extract_strided_slice %321 {offsets = [0, 128], sizes = [8, 128], strides = [1, 1]} : vector<8x768xf32> to vector<8x128xf32>
    %338 = arith.addf %336, %337 : vector<8x128xf32>
    %339 = arith.negf %338 : vector<8x128xf32>
    %340 = math.exp %339 : vector<8x128xf32>
    %cst_84 = arith.constant 1.000000e+00 : f32
    %341 = vector.broadcast %cst_84 : f32 to vector<8x128xf32>
    %342 = arith.addf %341, %340 : vector<8x128xf32>
    %343 = arith.divf %341, %342 : vector<8x128xf32>
    %344 = vector.extract_strided_slice %323 {offsets = [0, 256], sizes = [8, 128], strides = [1, 1]} : vector<8x768xf32> to vector<8x128xf32>
    %345 = vector.extract_strided_slice %321 {offsets = [0, 256], sizes = [8, 128], strides = [1, 1]} : vector<8x768xf32> to vector<8x128xf32>
    %346 = arith.mulf %335, %345 : vector<8x128xf32>
    %347 = arith.addf %344, %346 : vector<8x128xf32>
    %348 = math.tanh %347 : vector<8x128xf32>
    %cst_85 = arith.constant 1.000000e+00 : f32
    %349 = vector.broadcast %cst_85 : f32 to vector<8x128xf32>
    %350 = arith.subf %349, %343 : vector<8x128xf32>
    %351 = arith.mulf %350, %348 : vector<8x128xf32>
    %352 = arith.mulf %343, %326 : vector<8x128xf32>
    %353 = arith.addf %351, %352 : vector<8x128xf32>
    %354 = vector.extract_strided_slice %325 {offsets = [0, 384], sizes = [8, 128], strides = [1, 1]} : vector<8x768xf32> to vector<8x128xf32>
    %355 = vector.extract_strided_slice %321 {offsets = [0, 384], sizes = [8, 128], strides = [1, 1]} : vector<8x768xf32> to vector<8x128xf32>
    %356 = arith.addf %354, %355 : vector<8x128xf32>
    %357 = arith.negf %356 : vector<8x128xf32>
    %358 = math.exp %357 : vector<8x128xf32>
    %cst_86 = arith.constant 1.000000e+00 : f32
    %359 = vector.broadcast %cst_86 : f32 to vector<8x128xf32>
    %360 = arith.addf %359, %358 : vector<8x128xf32>
    %361 = arith.divf %359, %360 : vector<8x128xf32>
    %362 = vector.extract_strided_slice %325 {offsets = [0, 512], sizes = [8, 128], strides = [1, 1]} : vector<8x768xf32> to vector<8x128xf32>
    %363 = vector.extract_strided_slice %321 {offsets = [0, 512], sizes = [8, 128], strides = [1, 1]} : vector<8x768xf32> to vector<8x128xf32>
    %364 = arith.addf %362, %363 : vector<8x128xf32>
    %365 = arith.negf %364 : vector<8x128xf32>
    %366 = math.exp %365 : vector<8x128xf32>
    %cst_87 = arith.constant 1.000000e+00 : f32
    %367 = vector.broadcast %cst_87 : f32 to vector<8x128xf32>
    %368 = arith.addf %367, %366 : vector<8x128xf32>
    %369 = arith.divf %367, %368 : vector<8x128xf32>
    %370 = vector.extract_strided_slice %325 {offsets = [0, 640], sizes = [8, 128], strides = [1, 1]} : vector<8x768xf32> to vector<8x128xf32>
    %371 = vector.extract_strided_slice %321 {offsets = [0, 640], sizes = [8, 128], strides = [1, 1]} : vector<8x768xf32> to vector<8x128xf32>
    %372 = arith.mulf %361, %371 : vector<8x128xf32>
    %373 = arith.addf %370, %372 : vector<8x128xf32>
    %374 = math.tanh %373 : vector<8x128xf32>
    %cst_88 = arith.constant 1.000000e+00 : f32
    %375 = vector.broadcast %cst_88 : f32 to vector<8x128xf32>
    %376 = arith.subf %375, %369 : vector<8x128xf32>
    %377 = arith.mulf %376, %374 : vector<8x128xf32>
    %378 = arith.mulf %369, %327 : vector<8x128xf32>
    %379 = arith.addf %377, %378 : vector<8x128xf32>
    %380 = arith.index_cast %c4_i32 : i32 to index
    %c0_89 = arith.constant 0 : index
    %c0_90 = arith.constant 0 : index
    %381 = vector.load %arg5[%380, %c0_89, %c0_90] : memref<8x8x256xf32, #tpu.memory_space<vmem>>, vector<1x8x128xf32>
    %382 = vector.shape_cast %381 : vector<1x8x128xf32> to vector<8x128xf32>
    %383 = vector.shape_cast %353 : vector<8x128xf32> to vector<1x8x128xf32>
    tpu.vector_store %arg5[%380, %c0_89, %c0_90], %383 {strides = array<i32>} : memref<8x8x256xf32, #tpu.memory_space<vmem>>, vector<1x8x128xf32>,
    %c7_i32_91 = arith.constant 7 : i32
    %384 = arith.subi %c7_i32_91, %c4_i32 : i32
    %385 = arith.index_cast %384 : i32 to index
    %c0_92 = arith.constant 0 : index
    %c128_93 = arith.constant 128 : index
    %386 = vector.load %arg5[%385, %c0_92, %c128_93] : memref<8x8x256xf32, #tpu.memory_space<vmem>>, vector<1x8x128xf32>
    %387 = vector.shape_cast %386 : vector<1x8x128xf32> to vector<8x128xf32>
    %388 = vector.shape_cast %379 : vector<8x128xf32> to vector<1x8x128xf32>
    tpu.vector_store %arg5[%385, %c0_92, %c128_93], %388 {strides = array<i32>} : memref<8x8x256xf32, #tpu.memory_space<vmem>>, vector<1x8x128xf32>,
    %389 = tpu.concatenate %353, %379 in 1 : vector<8x128xf32>, vector<8x128xf32> -> vector<8x256xf32>
    %c5_i32 = arith.constant 5 : i32
    %c8_i32_94 = arith.constant 8 : i32
    %390 = arith.muli %c5_i32, %c8_i32_94 : i32
    %391 = tpu.assume_multiple %390, 8 : i32
    %c7_i32_95 = arith.constant 7 : i32
    %392 = arith.subi %c7_i32_95, %c5_i32 : i32
    %c8_i32_96 = arith.constant 8 : i32
    %393 = arith.muli %392, %c8_i32_96 : i32
    %394 = tpu.assume_multiple %393, 8 : i32
    %cst_97 = arith.constant dense<0.000000e+00> : vector<8x768xf32>
    %395 = tpu.matmul %389, %7, %cst_97 {dimension_numbers = #tpu.dot_dimension_numbers<[1], [0], [0], [1], [0, 0, 1, 1], [], []>} : vector<8x256xf32>, vector<256x768xf32>, vector<8x768xf32> -> vector<8x768xf32>
    %396 = vector.broadcast %8 : vector<1x768xf32> to vector<8x768xf32>
    %397 = arith.addf %395, %396 : vector<8x768xf32>
    %398 = arith.index_cast %391 : i32 to index
    %c0_98 = arith.constant 0 : index
    %399 = vector.load %arg7[%398, %c0_98] : memref<64x768xf32, #tpu.memory_space<vmem>>, vector<8x768xf32>
    %400 = arith.index_cast %394 : i32 to index
    %c0_99 = arith.constant 0 : index
    %401 = vector.load %arg7[%400, %c0_99] : memref<64x768xf32, #tpu.memory_space<vmem>>, vector<8x768xf32>
    %402 = vector.extract_strided_slice %389 {offsets = [0, 0], sizes = [8, 128], strides = [1, 1]} : vector<8x256xf32> to vector<8x128xf32>
    %403 = vector.extract_strided_slice %389 {offsets = [0, 128], sizes = [8, 128], strides = [1, 1]} : vector<8x256xf32> to vector<8x128xf32>
    %404 = vector.extract_strided_slice %399 {offsets = [0, 0], sizes = [8, 128], strides = [1, 1]} : vector<8x768xf32> to vector<8x128xf32>
    %405 = vector.extract_strided_slice %397 {offsets = [0, 0], sizes = [8, 128], strides = [1, 1]} : vector<8x768xf32> to vector<8x128xf32>
    %406 = arith.addf %404, %405 : vector<8x128xf32>
    %407 = arith.negf %406 : vector<8x128xf32>
    %408 = math.exp %407 : vector<8x128xf32>
    %cst_100 = arith.constant 1.000000e+00 : f32
    %409 = vector.broadcast %cst_100 : f32 to vector<8x128xf32>
    %410 = arith.addf %409, %408 : vector<8x128xf32>
    %411 = arith.divf %409, %410 : vector<8x128xf32>
    %412 = vector.extract_strided_slice %399 {offsets = [0, 128], sizes = [8, 128], strides = [1, 1]} : vector<8x768xf32> to vector<8x128xf32>
    %413 = vector.extract_strided_slice %397 {offsets = [0, 128], sizes = [8, 128], strides = [1, 1]} : vector<8x768xf32> to vector<8x128xf32>
    %414 = arith.addf %412, %413 : vector<8x128xf32>
    %415 = arith.negf %414 : vector<8x128xf32>
    %416 = math.exp %415 : vector<8x128xf32>
    %cst_101 = arith.constant 1.000000e+00 : f32
    %417 = vector.broadcast %cst_101 : f32 to vector<8x128xf32>
    %418 = arith.addf %417, %416 : vector<8x128xf32>
    %419 = arith.divf %417, %418 : vector<8x128xf32>
    %420 = vector.extract_strided_slice %399 {offsets = [0, 256], sizes = [8, 128], strides = [1, 1]} : vector<8x768xf32> to vector<8x128xf32>
    %421 = vector.extract_strided_slice %397 {offsets = [0, 256], sizes = [8, 128], strides = [1, 1]} : vector<8x768xf32> to vector<8x128xf32>
    %422 = arith.mulf %411, %421 : vector<8x128xf32>
    %423 = arith.addf %420, %422 : vector<8x128xf32>
    %424 = math.tanh %423 : vector<8x128xf32>
    %cst_102 = arith.constant 1.000000e+00 : f32
    %425 = vector.broadcast %cst_102 : f32 to vector<8x128xf32>
    %426 = arith.subf %425, %419 : vector<8x128xf32>
    %427 = arith.mulf %426, %424 : vector<8x128xf32>
    %428 = arith.mulf %419, %402 : vector<8x128xf32>
    %429 = arith.addf %427, %428 : vector<8x128xf32>
    %430 = vector.extract_strided_slice %401 {offsets = [0, 384], sizes = [8, 128], strides = [1, 1]} : vector<8x768xf32> to vector<8x128xf32>
    %431 = vector.extract_strided_slice %397 {offsets = [0, 384], sizes = [8, 128], strides = [1, 1]} : vector<8x768xf32> to vector<8x128xf32>
    %432 = arith.addf %430, %431 : vector<8x128xf32>
    %433 = arith.negf %432 : vector<8x128xf32>
    %434 = math.exp %433 : vector<8x128xf32>
    %cst_103 = arith.constant 1.000000e+00 : f32
    %435 = vector.broadcast %cst_103 : f32 to vector<8x128xf32>
    %436 = arith.addf %435, %434 : vector<8x128xf32>
    %437 = arith.divf %435, %436 : vector<8x128xf32>
    %438 = vector.extract_strided_slice %401 {offsets = [0, 512], sizes = [8, 128], strides = [1, 1]} : vector<8x768xf32> to vector<8x128xf32>
    %439 = vector.extract_strided_slice %397 {offsets = [0, 512], sizes = [8, 128], strides = [1, 1]} : vector<8x768xf32> to vector<8x128xf32>
    %440 = arith.addf %438, %439 : vector<8x128xf32>
    %441 = arith.negf %440 : vector<8x128xf32>
    %442 = math.exp %441 : vector<8x128xf32>
    %cst_104 = arith.constant 1.000000e+00 : f32
    %443 = vector.broadcast %cst_104 : f32 to vector<8x128xf32>
    %444 = arith.addf %443, %442 : vector<8x128xf32>
    %445 = arith.divf %443, %444 : vector<8x128xf32>
    %446 = vector.extract_strided_slice %401 {offsets = [0, 640], sizes = [8, 128], strides = [1, 1]} : vector<8x768xf32> to vector<8x128xf32>
    %447 = vector.extract_strided_slice %397 {offsets = [0, 640], sizes = [8, 128], strides = [1, 1]} : vector<8x768xf32> to vector<8x128xf32>
    %448 = arith.mulf %437, %447 : vector<8x128xf32>
    %449 = arith.addf %446, %448 : vector<8x128xf32>
    %450 = math.tanh %449 : vector<8x128xf32>
    %cst_105 = arith.constant 1.000000e+00 : f32
    %451 = vector.broadcast %cst_105 : f32 to vector<8x128xf32>
    %452 = arith.subf %451, %445 : vector<8x128xf32>
    %453 = arith.mulf %452, %450 : vector<8x128xf32>
    %454 = arith.mulf %445, %403 : vector<8x128xf32>
    %455 = arith.addf %453, %454 : vector<8x128xf32>
    %456 = arith.index_cast %c5_i32 : i32 to index
    %c0_106 = arith.constant 0 : index
    %c0_107 = arith.constant 0 : index
    %457 = vector.load %arg5[%456, %c0_106, %c0_107] : memref<8x8x256xf32, #tpu.memory_space<vmem>>, vector<1x8x128xf32>
    %458 = vector.shape_cast %457 : vector<1x8x128xf32> to vector<8x128xf32>
    %459 = vector.shape_cast %429 : vector<8x128xf32> to vector<1x8x128xf32>
    tpu.vector_store %arg5[%456, %c0_106, %c0_107], %459 {strides = array<i32>} : memref<8x8x256xf32, #tpu.memory_space<vmem>>, vector<1x8x128xf32>,
    %c7_i32_108 = arith.constant 7 : i32
    %460 = arith.subi %c7_i32_108, %c5_i32 : i32
    %461 = arith.index_cast %460 : i32 to index
    %c0_109 = arith.constant 0 : index
    %c128_110 = arith.constant 128 : index
    %462 = vector.load %arg5[%461, %c0_109, %c128_110] : memref<8x8x256xf32, #tpu.memory_space<vmem>>, vector<1x8x128xf32>
    %463 = vector.shape_cast %462 : vector<1x8x128xf32> to vector<8x128xf32>
    %464 = vector.shape_cast %455 : vector<8x128xf32> to vector<1x8x128xf32>
    tpu.vector_store %arg5[%461, %c0_109, %c128_110], %464 {strides = array<i32>} : memref<8x8x256xf32, #tpu.memory_space<vmem>>, vector<1x8x128xf32>,
    %465 = tpu.concatenate %429, %455 in 1 : vector<8x128xf32>, vector<8x128xf32> -> vector<8x256xf32>
    %c6_i32 = arith.constant 6 : i32
    %c8_i32_111 = arith.constant 8 : i32
    %466 = arith.muli %c6_i32, %c8_i32_111 : i32
    %467 = tpu.assume_multiple %466, 8 : i32
    %c7_i32_112 = arith.constant 7 : i32
    %468 = arith.subi %c7_i32_112, %c6_i32 : i32
    %c8_i32_113 = arith.constant 8 : i32
    %469 = arith.muli %468, %c8_i32_113 : i32
    %470 = tpu.assume_multiple %469, 8 : i32
    %cst_114 = arith.constant dense<0.000000e+00> : vector<8x768xf32>
    %471 = tpu.matmul %465, %7, %cst_114 {dimension_numbers = #tpu.dot_dimension_numbers<[1], [0], [0], [1], [0, 0, 1, 1], [], []>} : vector<8x256xf32>, vector<256x768xf32>, vector<8x768xf32> -> vector<8x768xf32>
    %472 = vector.broadcast %8 : vector<1x768xf32> to vector<8x768xf32>
    %473 = arith.addf %471, %472 : vector<8x768xf32>
    %474 = arith.index_cast %467 : i32 to index
    %c0_115 = arith.constant 0 : index
    %475 = vector.load %arg7[%474, %c0_115] : memref<64x768xf32, #tpu.memory_space<vmem>>, vector<8x768xf32>
    %476 = arith.index_cast %470 : i32 to index
    %c0_116 = arith.constant 0 : index
    %477 = vector.load %arg7[%476, %c0_116] : memref<64x768xf32, #tpu.memory_space<vmem>>, vector<8x768xf32>
    %478 = vector.extract_strided_slice %465 {offsets = [0, 0], sizes = [8, 128], strides = [1, 1]} : vector<8x256xf32> to vector<8x128xf32>
    %479 = vector.extract_strided_slice %465 {offsets = [0, 128], sizes = [8, 128], strides = [1, 1]} : vector<8x256xf32> to vector<8x128xf32>
    %480 = vector.extract_strided_slice %475 {offsets = [0, 0], sizes = [8, 128], strides = [1, 1]} : vector<8x768xf32> to vector<8x128xf32>
    %481 = vector.extract_strided_slice %473 {offsets = [0, 0], sizes = [8, 128], strides = [1, 1]} : vector<8x768xf32> to vector<8x128xf32>
    %482 = arith.addf %480, %481 : vector<8x128xf32>
    %483 = arith.negf %482 : vector<8x128xf32>
    %484 = math.exp %483 : vector<8x128xf32>
    %cst_117 = arith.constant 1.000000e+00 : f32
    %485 = vector.broadcast %cst_117 : f32 to vector<8x128xf32>
    %486 = arith.addf %485, %484 : vector<8x128xf32>
    %487 = arith.divf %485, %486 : vector<8x128xf32>
    %488 = vector.extract_strided_slice %475 {offsets = [0, 128], sizes = [8, 128], strides = [1, 1]} : vector<8x768xf32> to vector<8x128xf32>
    %489 = vector.extract_strided_slice %473 {offsets = [0, 128], sizes = [8, 128], strides = [1, 1]} : vector<8x768xf32> to vector<8x128xf32>
    %490 = arith.addf %488, %489 : vector<8x128xf32>
    %491 = arith.negf %490 : vector<8x128xf32>
    %492 = math.exp %491 : vector<8x128xf32>
    %cst_118 = arith.constant 1.000000e+00 : f32
    %493 = vector.broadcast %cst_118 : f32 to vector<8x128xf32>
    %494 = arith.addf %493, %492 : vector<8x128xf32>
    %495 = arith.divf %493, %494 : vector<8x128xf32>
    %496 = vector.extract_strided_slice %475 {offsets = [0, 256], sizes = [8, 128], strides = [1, 1]} : vector<8x768xf32> to vector<8x128xf32>
    %497 = vector.extract_strided_slice %473 {offsets = [0, 256], sizes = [8, 128], strides = [1, 1]} : vector<8x768xf32> to vector<8x128xf32>
    %498 = arith.mulf %487, %497 : vector<8x128xf32>
    %499 = arith.addf %496, %498 : vector<8x128xf32>
    %500 = math.tanh %499 : vector<8x128xf32>
    %cst_119 = arith.constant 1.000000e+00 : f32
    %501 = vector.broadcast %cst_119 : f32 to vector<8x128xf32>
    %502 = arith.subf %501, %495 : vector<8x128xf32>
    %503 = arith.mulf %502, %500 : vector<8x128xf32>
    %504 = arith.mulf %495, %478 : vector<8x128xf32>
    %505 = arith.addf %503, %504 : vector<8x128xf32>
    %506 = vector.extract_strided_slice %477 {offsets = [0, 384], sizes = [8, 128], strides = [1, 1]} : vector<8x768xf32> to vector<8x128xf32>
    %507 = vector.extract_strided_slice %473 {offsets = [0, 384], sizes = [8, 128], strides = [1, 1]} : vector<8x768xf32> to vector<8x128xf32>
    %508 = arith.addf %506, %507 : vector<8x128xf32>
    %509 = arith.negf %508 : vector<8x128xf32>
    %510 = math.exp %509 : vector<8x128xf32>
    %cst_120 = arith.constant 1.000000e+00 : f32
    %511 = vector.broadcast %cst_120 : f32 to vector<8x128xf32>
    %512 = arith.addf %511, %510 : vector<8x128xf32>
    %513 = arith.divf %511, %512 : vector<8x128xf32>
    %514 = vector.extract_strided_slice %477 {offsets = [0, 512], sizes = [8, 128], strides = [1, 1]} : vector<8x768xf32> to vector<8x128xf32>
    %515 = vector.extract_strided_slice %473 {offsets = [0, 512], sizes = [8, 128], strides = [1, 1]} : vector<8x768xf32> to vector<8x128xf32>
    %516 = arith.addf %514, %515 : vector<8x128xf32>
    %517 = arith.negf %516 : vector<8x128xf32>
    %518 = math.exp %517 : vector<8x128xf32>
    %cst_121 = arith.constant 1.000000e+00 : f32
    %519 = vector.broadcast %cst_121 : f32 to vector<8x128xf32>
    %520 = arith.addf %519, %518 : vector<8x128xf32>
    %521 = arith.divf %519, %520 : vector<8x128xf32>
    %522 = vector.extract_strided_slice %477 {offsets = [0, 640], sizes = [8, 128], strides = [1, 1]} : vector<8x768xf32> to vector<8x128xf32>
    %523 = vector.extract_strided_slice %473 {offsets = [0, 640], sizes = [8, 128], strides = [1, 1]} : vector<8x768xf32> to vector<8x128xf32>
    %524 = arith.mulf %513, %523 : vector<8x128xf32>
    %525 = arith.addf %522, %524 : vector<8x128xf32>
    %526 = math.tanh %525 : vector<8x128xf32>
    %cst_122 = arith.constant 1.000000e+00 : f32
    %527 = vector.broadcast %cst_122 : f32 to vector<8x128xf32>
    %528 = arith.subf %527, %521 : vector<8x128xf32>
    %529 = arith.mulf %528, %526 : vector<8x128xf32>
    %530 = arith.mulf %521, %479 : vector<8x128xf32>
    %531 = arith.addf %529, %530 : vector<8x128xf32>
    %532 = arith.index_cast %c6_i32 : i32 to index
    %c0_123 = arith.constant 0 : index
    %c0_124 = arith.constant 0 : index
    %533 = vector.load %arg5[%532, %c0_123, %c0_124] : memref<8x8x256xf32, #tpu.memory_space<vmem>>, vector<1x8x128xf32>
    %534 = vector.shape_cast %533 : vector<1x8x128xf32> to vector<8x128xf32>
    %535 = vector.shape_cast %505 : vector<8x128xf32> to vector<1x8x128xf32>
    tpu.vector_store %arg5[%532, %c0_123, %c0_124], %535 {strides = array<i32>} : memref<8x8x256xf32, #tpu.memory_space<vmem>>, vector<1x8x128xf32>,
    %c7_i32_125 = arith.constant 7 : i32
    %536 = arith.subi %c7_i32_125, %c6_i32 : i32
    %537 = arith.index_cast %536 : i32 to index
    %c0_126 = arith.constant 0 : index
    %c128_127 = arith.constant 128 : index
    %538 = vector.load %arg5[%537, %c0_126, %c128_127] : memref<8x8x256xf32, #tpu.memory_space<vmem>>, vector<1x8x128xf32>
    %539 = vector.shape_cast %538 : vector<1x8x128xf32> to vector<8x128xf32>
    %540 = vector.shape_cast %531 : vector<8x128xf32> to vector<1x8x128xf32>
    tpu.vector_store %arg5[%537, %c0_126, %c128_127], %540 {strides = array<i32>} : memref<8x8x256xf32, #tpu.memory_space<vmem>>, vector<1x8x128xf32>,
    %541 = tpu.concatenate %505, %531 in 1 : vector<8x128xf32>, vector<8x128xf32> -> vector<8x256xf32>
    %c7_i32_128 = arith.constant 7 : i32
    %c8_i32_129 = arith.constant 8 : i32
    %542 = arith.muli %c7_i32_128, %c8_i32_129 : i32
    %543 = tpu.assume_multiple %542, 8 : i32
    %c7_i32_130 = arith.constant 7 : i32
    %544 = arith.subi %c7_i32_130, %c7_i32_128 : i32
    %c8_i32_131 = arith.constant 8 : i32
    %545 = arith.muli %544, %c8_i32_131 : i32
    %546 = tpu.assume_multiple %545, 8 : i32
    %cst_132 = arith.constant dense<0.000000e+00> : vector<8x768xf32>
    %547 = tpu.matmul %541, %7, %cst_132 {dimension_numbers = #tpu.dot_dimension_numbers<[1], [0], [0], [1], [0, 0, 1, 1], [], []>} : vector<8x256xf32>, vector<256x768xf32>, vector<8x768xf32> -> vector<8x768xf32>
    %548 = vector.broadcast %8 : vector<1x768xf32> to vector<8x768xf32>
    %549 = arith.addf %547, %548 : vector<8x768xf32>
    %550 = arith.index_cast %543 : i32 to index
    %c0_133 = arith.constant 0 : index
    %551 = vector.load %arg7[%550, %c0_133] : memref<64x768xf32, #tpu.memory_space<vmem>>, vector<8x768xf32>
    %552 = arith.index_cast %546 : i32 to index
    %c0_134 = arith.constant 0 : index
    %553 = vector.load %arg7[%552, %c0_134] : memref<64x768xf32, #tpu.memory_space<vmem>>, vector<8x768xf32>
    %554 = vector.extract_strided_slice %541 {offsets = [0, 0], sizes = [8, 128], strides = [1, 1]} : vector<8x256xf32> to vector<8x128xf32>
    %555 = vector.extract_strided_slice %541 {offsets = [0, 128], sizes = [8, 128], strides = [1, 1]} : vector<8x256xf32> to vector<8x128xf32>
    %556 = vector.extract_strided_slice %551 {offsets = [0, 0], sizes = [8, 128], strides = [1, 1]} : vector<8x768xf32> to vector<8x128xf32>
    %557 = vector.extract_strided_slice %549 {offsets = [0, 0], sizes = [8, 128], strides = [1, 1]} : vector<8x768xf32> to vector<8x128xf32>
    %558 = arith.addf %556, %557 : vector<8x128xf32>
    %559 = arith.negf %558 : vector<8x128xf32>
    %560 = math.exp %559 : vector<8x128xf32>
    %cst_135 = arith.constant 1.000000e+00 : f32
    %561 = vector.broadcast %cst_135 : f32 to vector<8x128xf32>
    %562 = arith.addf %561, %560 : vector<8x128xf32>
    %563 = arith.divf %561, %562 : vector<8x128xf32>
    %564 = vector.extract_strided_slice %551 {offsets = [0, 128], sizes = [8, 128], strides = [1, 1]} : vector<8x768xf32> to vector<8x128xf32>
    %565 = vector.extract_strided_slice %549 {offsets = [0, 128], sizes = [8, 128], strides = [1, 1]} : vector<8x768xf32> to vector<8x128xf32>
    %566 = arith.addf %564, %565 : vector<8x128xf32>
    %567 = arith.negf %566 : vector<8x128xf32>
    %568 = math.exp %567 : vector<8x128xf32>
    %cst_136 = arith.constant 1.000000e+00 : f32
    %569 = vector.broadcast %cst_136 : f32 to vector<8x128xf32>
    %570 = arith.addf %569, %568 : vector<8x128xf32>
    %571 = arith.divf %569, %570 : vector<8x128xf32>
    %572 = vector.extract_strided_slice %551 {offsets = [0, 256], sizes = [8, 128], strides = [1, 1]} : vector<8x768xf32> to vector<8x128xf32>
    %573 = vector.extract_strided_slice %549 {offsets = [0, 256], sizes = [8, 128], strides = [1, 1]} : vector<8x768xf32> to vector<8x128xf32>
    %574 = arith.mulf %563, %573 : vector<8x128xf32>
    %575 = arith.addf %572, %574 : vector<8x128xf32>
    %576 = math.tanh %575 : vector<8x128xf32>
    %cst_137 = arith.constant 1.000000e+00 : f32
    %577 = vector.broadcast %cst_137 : f32 to vector<8x128xf32>
    %578 = arith.subf %577, %571 : vector<8x128xf32>
    %579 = arith.mulf %578, %576 : vector<8x128xf32>
    %580 = arith.mulf %571, %554 : vector<8x128xf32>
    %581 = arith.addf %579, %580 : vector<8x128xf32>
    %582 = vector.extract_strided_slice %553 {offsets = [0, 384], sizes = [8, 128], strides = [1, 1]} : vector<8x768xf32> to vector<8x128xf32>
    %583 = vector.extract_strided_slice %549 {offsets = [0, 384], sizes = [8, 128], strides = [1, 1]} : vector<8x768xf32> to vector<8x128xf32>
    %584 = arith.addf %582, %583 : vector<8x128xf32>
    %585 = arith.negf %584 : vector<8x128xf32>
    %586 = math.exp %585 : vector<8x128xf32>
    %cst_138 = arith.constant 1.000000e+00 : f32
    %587 = vector.broadcast %cst_138 : f32 to vector<8x128xf32>
    %588 = arith.addf %587, %586 : vector<8x128xf32>
    %589 = arith.divf %587, %588 : vector<8x128xf32>
    %590 = vector.extract_strided_slice %553 {offsets = [0, 512], sizes = [8, 128], strides = [1, 1]} : vector<8x768xf32> to vector<8x128xf32>
    %591 = vector.extract_strided_slice %549 {offsets = [0, 512], sizes = [8, 128], strides = [1, 1]} : vector<8x768xf32> to vector<8x128xf32>
    %592 = arith.addf %590, %591 : vector<8x128xf32>
    %593 = arith.negf %592 : vector<8x128xf32>
    %594 = math.exp %593 : vector<8x128xf32>
    %cst_139 = arith.constant 1.000000e+00 : f32
    %595 = vector.broadcast %cst_139 : f32 to vector<8x128xf32>
    %596 = arith.addf %595, %594 : vector<8x128xf32>
    %597 = arith.divf %595, %596 : vector<8x128xf32>
    %598 = vector.extract_strided_slice %553 {offsets = [0, 640], sizes = [8, 128], strides = [1, 1]} : vector<8x768xf32> to vector<8x128xf32>
    %599 = vector.extract_strided_slice %549 {offsets = [0, 640], sizes = [8, 128], strides = [1, 1]} : vector<8x768xf32> to vector<8x128xf32>
    %600 = arith.mulf %589, %599 : vector<8x128xf32>
    %601 = arith.addf %598, %600 : vector<8x128xf32>
    %602 = math.tanh %601 : vector<8x128xf32>
    %cst_140 = arith.constant 1.000000e+00 : f32
    %603 = vector.broadcast %cst_140 : f32 to vector<8x128xf32>
    %604 = arith.subf %603, %597 : vector<8x128xf32>
    %605 = arith.mulf %604, %602 : vector<8x128xf32>
    %606 = arith.mulf %597, %555 : vector<8x128xf32>
    %607 = arith.addf %605, %606 : vector<8x128xf32>
    %608 = arith.index_cast %c7_i32_128 : i32 to index
    %c0_141 = arith.constant 0 : index
    %c0_142 = arith.constant 0 : index
    %609 = vector.load %arg5[%608, %c0_141, %c0_142] : memref<8x8x256xf32, #tpu.memory_space<vmem>>, vector<1x8x128xf32>
    %610 = vector.shape_cast %609 : vector<1x8x128xf32> to vector<8x128xf32>
    %611 = vector.shape_cast %581 : vector<8x128xf32> to vector<1x8x128xf32>
    tpu.vector_store %arg5[%608, %c0_141, %c0_142], %611 {strides = array<i32>} : memref<8x8x256xf32, #tpu.memory_space<vmem>>, vector<1x8x128xf32>,
    %c7_i32_143 = arith.constant 7 : i32
    %612 = arith.subi %c7_i32_143, %c7_i32_128 : i32
    %613 = arith.index_cast %612 : i32 to index
    %c0_144 = arith.constant 0 : index
    %c128_145 = arith.constant 128 : index
    %614 = vector.load %arg5[%613, %c0_144, %c128_145] : memref<8x8x256xf32, #tpu.memory_space<vmem>>, vector<1x8x128xf32>
    %615 = vector.shape_cast %614 : vector<1x8x128xf32> to vector<8x128xf32>
    %616 = vector.shape_cast %607 : vector<8x128xf32> to vector<1x8x128xf32>
    tpu.vector_store %arg5[%613, %c0_144, %c128_145], %616 {strides = array<i32>} : memref<8x8x256xf32, #tpu.memory_space<vmem>>, vector<1x8x128xf32>,
    %617 = tpu.concatenate %581, %607 in 1 : vector<8x128xf32>, vector<8x128xf32> -> vector<8x256xf32>
    %c8_i32_146 = arith.constant 8 : i32
    %618 = vector.extract_strided_slice %617 {offsets = [0, 0], sizes = [8, 128], strides = [1, 1]} : vector<8x256xf32> to vector<8x128xf32>
    %c0_147 = arith.constant 0 : index
    %c0_148 = arith.constant 0 : index
    %c0_149 = arith.constant 0 : index
    %619 = vector.load %arg6[%c0_147, %c0_148, %c0_149] : memref<2x8x128xf32, #tpu.memory_space<vmem>>, vector<1x8x128xf32>
    %620 = vector.shape_cast %619 : vector<1x8x128xf32> to vector<8x128xf32>
    %621 = vector.shape_cast %618 : vector<8x128xf32> to vector<1x8x128xf32>
    tpu.vector_store %arg6[%c0_147, %c0_148, %c0_149], %621 {strides = array<i32>} : memref<2x8x128xf32, #tpu.memory_space<vmem>>, vector<1x8x128xf32>,
    %622 = vector.extract_strided_slice %617 {offsets = [0, 128], sizes = [8, 128], strides = [1, 1]} : vector<8x256xf32> to vector<8x128xf32>
    %c1 = arith.constant 1 : index
    %c0_150 = arith.constant 0 : index
    %c0_151 = arith.constant 0 : index
    %623 = vector.load %arg6[%c1, %c0_150, %c0_151] : memref<2x8x128xf32, #tpu.memory_space<vmem>>, vector<1x8x128xf32>
    %624 = vector.shape_cast %623 : vector<1x8x128xf32> to vector<8x128xf32>
    %625 = vector.shape_cast %622 : vector<8x128xf32> to vector<1x8x128xf32>
    tpu.vector_store %arg6[%c1, %c0_150, %c0_151], %625 {strides = array<i32>} : memref<2x8x128xf32, #tpu.memory_space<vmem>>, vector<1x8x128xf32>,
    return
  }
}

</mosaic_0001>

<bundles_post_ra>
// kernel: gru_encoder_forward.1
= control target key start
LH: loop header
LB: loop body
LE: loop exit
PB: predicated region body
PF: predicated region fallthrough
CT: control target
= control target key end

     0   :  { %v9954_v3 = vmov 0.0   ;;  %s9945_s1 = inlined_call_operand.vmem [shape: f32[128,768], index: 1, kind: input, shape index: {}]   ;;  %s9946_s0 = inlined_call_operand.vmem [shape: f32[64,128], index: 0, kind: input, shape index: {}]   ;;  %s9947_s2 = inlined_call_operand.vmem [shape: f32[256,768], index: 2, kind: input, shape index: {}]   ;;  %s9948_s3 = inlined_call_operand.vmem [shape: f32[1,768], index: 3, kind: input, shape index: {}]   ;;  %s9949_s4 = inlined_call_operand.vmem [shape: f32[1,768], index: 4, kind: input, shape index: {}]   ;;  %s9950_s5 = inlined_call_operand.vmem [shape: f32[8,8,256], index: 5, kind: output, shape index: {0}]   ;;  %s9951_s6 = inlined_call_operand.vmem [shape: f32[2,8,128], index: 6, kind: output, shape index: {1}]  }
   0x1   :  { %v121_v0 = vld [vmem:[%s9945_s1 + $0x2d8] sm:$0xff]  ;;  %v123_v1 = vld [vmem:[%s9945_s1 + $0x2e8] sm:$0xff]  ;;  %v120_v2 = vld [vmem:[%s9945_s1 + $0x2d0] sm:$0xff]  ;;  %335 = vmatprep.mubr.f32.mxu1 %v9954_v3  ;;  %222 = vmatprep.mubr.f32.mxu0 %v9954_v3 }
   0x2   :  { %158 = vmatprep.subr.mxu0 %v121_v0  ;;  %271 = vmatprep.subr.mxu1 %v123_v1  ;;  %v122_v4 = vld [vmem:[%s9945_s1 + $0x2e0] sm:$0xff]  ;;  %v115_v5 = vld [vmem:[%s9945_s1 + $0x2a8] sm:$0xff]  ;;  %v117_v6 = vld [vmem:[%s9945_s1 + $0x2b8] sm:$0xff] }
   0x3   :  { %159 = vmatpush1.msra.mxu0 %v120_v2  ;;  %272 = vmatpush1.msra.mxu1 %v122_v4  ;;  %v114_v7 = vld [vmem:[%s9945_s1 + $0x2a0] sm:$0xff]  ;;  %v116_v8 = vld [vmem:[%s9945_s1 + $0x2b0] sm:$0xff]  ;;  %v109_v9 = vld [vmem:[%s9945_s1 + $0x278] sm:$0xff] }
   0x4   :  { %160 = vmatprep.subr.mxu0 %v115_v5  ;;  %273 = vmatprep.subr.mxu1 %v117_v6  ;;  %v111_v10 = vld [vmem:[%s9945_s1 + $0x288] sm:$0xff]  ;;  %v108_v11 = vld [vmem:[%s9945_s1 + $0x270] sm:$0xff]  ;;  %v110_v12 = vld [vmem:[%s9945_s1 + $0x280] sm:$0xff] }
   0x5   :  { %161 = vmatpush1.msra.mxu0 %v114_v7  ;;  %274 = vmatpush1.msra.mxu1 %v116_v8  ;;  %v103_v13 = vld [vmem:[%s9945_s1 + $0x248] sm:$0xff]  ;;  %v105_v14 = vld [vmem:[%s9945_s1 + $0x258] sm:$0xff]  ;;  %v102_v15 = vld [vmem:[%s9945_s1 + $0x240] sm:$0xff] }
   0x6   :  { %162 = vmatprep.subr.mxu0 %v109_v9  ;;  %275 = vmatprep.subr.mxu1 %v111_v10  ;;  %v104_v16 = vld [vmem:[%s9945_s1 + $0x250] sm:$0xff]  ;;  %v97_v17 = vld [vmem:[%s9945_s1 + $0x218] sm:$0xff]  ;;  %v99_v18 = vld [vmem:[%s9945_s1 + $0x228] sm:$0xff] }
   0x7   :  { %163 = vmatpush1.msra.mxu0 %v108_v11  ;;  %276 = vmatpush1.msra.mxu1 %v110_v12  ;;  %v96_v19 = vld [vmem:[%s9945_s1 + $0x210] sm:$0xff]  ;;  %v98_v20 = vld [vmem:[%s9945_s1 + $0x220] sm:$0xff]  ;;  %v91_v21 = vld [vmem:[%s9945_s1 + $0x1e8] sm:$0xff] }
   0x8   :  { %164 = vmatprep.subr.mxu0 %v103_v13  ;;  %277 = vmatprep.subr.mxu1 %v105_v14  ;;  %v93_v22 = vld [vmem:[%s9945_s1 + $0x1f8] sm:$0xff]  ;;  %v90_v23 = vld [vmem:[%s9945_s1 + $0x1e0] sm:$0xff]  ;;  %v92_v24 = vld [vmem:[%s9945_s1 + $0x1f0] sm:$0xff] }
   0x9   :  { %165 = vmatpush1.msra.mxu0 %v102_v15  ;;  %278 = vmatpush1.msra.mxu1 %v104_v16  ;;  %v85_v25 = vld [vmem:[%s9945_s1 + $0x1b8] sm:$0xff]  ;;  %v87_v26 = vld [vmem:[%s9945_s1 + $0x1c8] sm:$0xff]  ;;  %v84_v27 = vld [vmem:[%s9945_s1 + $0x1b0] sm:$0xff] }
   0xa   :  { %166 = vmatprep.subr.mxu0 %v97_v17  ;;  %279 = vmatprep.subr.mxu1 %v99_v18  ;;  %v86_v28 = vld [vmem:[%s9945_s1 + $0x1c0] sm:$0xff]  ;;  %v79_v29 = vld [vmem:[%s9945_s1 + $0x188] sm:$0xff]  ;;  %v81_v30 = vld [vmem:[%s9945_s1 + $0x198] sm:$0xff] }
   0xb   :  { %167 = vmatpush1.msra.mxu0 %v96_v19  ;;  %280 = vmatpush1.msra.mxu1 %v98_v20  ;;  %v78_v31 = vld [vmem:[%s9945_s1 + $0x180] sm:$0xff]  ;;  %v80_v32 = vld [vmem:[%s9945_s1 + $0x190] sm:$0xff]  ;;  %v73_v33 = vld [vmem:[%s9945_s1 + $0x158] sm:$0xff] }
   0xc   :  { %168 = vmatprep.subr.mxu0 %v91_v21  ;;  %281 = vmatprep.subr.mxu1 %v93_v22  ;;  %v75_v34 = vld [vmem:[%s9945_s1 + $0x168] sm:$0xff]  ;;  %v72_v35 = vld [vmem:[%s9945_s1 + $0x150] sm:$0xff]  ;;  %v74_v36 = vld [vmem:[%s9945_s1 + $0x160] sm:$0xff] }
   0xd   :  { %169 = vmatpush1.msra.mxu0 %v90_v23  ;;  %282 = vmatpush1.msra.mxu1 %v92_v24  ;;  %v67_v37 = vld [vmem:[%s9945_s1 + $0x128] sm:$0xff]  ;;  %v69_v38 = vld [vmem:[%s9945_s1 + $0x138] sm:$0xff]  ;;  %v66_v39 = vld [vmem:[%s9945_s1 + $0x120] sm:$0xff] }
   0xe   :  { %170 = vmatprep.subr.mxu0 %v85_v25  ;;  %283 = vmatprep.subr.mxu1 %v87_v26  ;;  %v68_v40 = vld [vmem:[%s9945_s1 + $0x130] sm:$0xff]  ;;  %v61_v41 = vld [vmem:[%s9945_s1 + $0xf8] sm:$0xff]  ;;  %v63_v42 = vld [vmem:[%s9945_s1 + $0x108] sm:$0xff] }
   0xf   :  { %171 = vmatpush1.msra.mxu0 %v84_v27  ;;  %284 = vmatpush1.msra.mxu1 %v86_v28  ;;  %v60_v43 = vld [vmem:[%s9945_s1 + $0xf0] sm:$0xff]  ;;  %v62_v44 = vld [vmem:[%s9945_s1 + $0x100] sm:$0xff]  ;;  %v55_v45 = vld [vmem:[%s9945_s1 + $0xc8] sm:$0xff] }
  0x10   :  { %172 = vmatprep.subr.mxu0 %v79_v29  ;;  %285 = vmatprep.subr.mxu1 %v81_v30  ;;  %v57_v46 = vld [vmem:[%s9945_s1 + $0xd8] sm:$0xff]  ;;  %v54_v47 = vld [vmem:[%s9945_s1 + $0xc0] sm:$0xff]  ;;  %v56_v48 = vld [vmem:[%s9945_s1 + $0xd0] sm:$0xff] }
  0x11   :  { %173 = vmatpush1.msra.mxu0 %v78_v31  ;;  %286 = vmatpush1.msra.mxu1 %v80_v32  ;;  %v49_v49 = vld [vmem:[%s9945_s1 + $0x98] sm:$0xff]  ;;  %v51_v50 = vld [vmem:[%s9945_s1 + $0xa8] sm:$0xff]  ;;  %v48_v51 = vld [vmem:[%s9945_s1 + $0x90] sm:$0xff] }
  0x12   :  { %174 = vmatprep.subr.mxu0 %v73_v33  ;;  %287 = vmatprep.subr.mxu1 %v75_v34  ;;  %v50_v52 = vld [vmem:[%s9945_s1 + $0xa0] sm:$0xff]  ;;  %v43_v53 = vld [vmem:[%s9945_s1 + $0x68] sm:$0xff]  ;;  %v45_v54 = vld [vmem:[%s9945_s1 + $0x78] sm:$0xff] }
  0x13   :  { %175 = vmatpush1.msra.mxu0 %v72_v35  ;;  %288 = vmatpush1.msra.mxu1 %v74_v36  ;;  %v42_v55 = vld [vmem:[%s9945_s1 + $0x60] sm:$0xff]  ;;  %v44_v56 = vld [vmem:[%s9945_s1 + $0x70] sm:$0xff]  ;;  %v37_v57 = vld [vmem:[%s9945_s1 + $0x38] sm:$0xff] }
  0x14   :  { %176 = vmatprep.subr.mxu0 %v67_v37  ;;  %289 = vmatprep.subr.mxu1 %v69_v38  ;;  %v39_v58 = vld [vmem:[%s9945_s1 + $0x48] sm:$0xff]  ;;  %v36_v59 = vld [vmem:[%s9945_s1 + $0x30] sm:$0xff]  ;;  %v38_v60 = vld [vmem:[%s9945_s1 + $0x40] sm:$0xff] }
  0x15   :  { %177 = vmatpush1.msra.mxu0 %v66_v39  ;;  %290 = vmatpush1.msra.mxu1 %v68_v40  ;;  %v31_v61 = vld [vmem:[%s9945_s1 + $0x8] sm:$0xff]  ;;  %v33_v62 = vld [vmem:[%s9945_s1 + $0x18] sm:$0xff]  ;;  %v30_v63 = vld [vmem:[%s9945_s1] sm:$0xff] }
  0x16   :  { %178 = vmatprep.subr.mxu0 %v61_v41  ;;  %291 = vmatprep.subr.mxu1 %v63_v42  ;;  %v32_v0 = vld [vmem:[%s9945_s1 + $0x10] sm:$0xff]  ;;  %v3939_v1 = vld [vmem:[%s9946_s0] sm:$0xff]  ;;  %v125_v2 = vld [vmem:[%s9945_s1 + $0x2f8] sm:$0xff] }
  0x17   :  { %179 = vmatpush1.msra.mxu0 %v60_v43  ;;  %292 = vmatpush1.msra.mxu1 %v62_v44  ;;  %v3947_v4 = vld [vmem:[%s9947_s2 + $0x2d8] sm:$0xff]  ;;  %v124_v5 = vld [vmem:[%s9945_s1 + $0x2f0] sm:$0xff]  ;;  %v119_v7 = vld [vmem:[%s9945_s1 + $0x2c8] sm:$0xff] }
  0x18   :  { %180 = vmatprep.subr.mxu0 %v55_v45  ;;  %293 = vmatprep.subr.mxu1 %v57_v46  ;;  %v3955_v6 = vld [vmem:[%s9947_s2 + $0x2d0] sm:$0xff]  ;;  %v3964_v8 = vld [vmem:[%s9947_s2 + $0x2a8] sm:$0xff]  ;;  %v118_v9 = vld [vmem:[%s9945_s1 + $0x2c0] sm:$0xff] }
  0x19   :  { %181 = vmatpush1.msra.mxu0 %v54_v47  ;;  %294 = vmatpush1.msra.mxu1 %v56_v48  ;;  %v3974_v10 = vld [vmem:[%s9947_s2 + $0x2a0] sm:$0xff]  ;;  %v113_v11 = vld [vmem:[%s9945_s1 + $0x298] sm:$0xff]  ;;  %v3989_v13 = vld [vmem:[%s9946_s0 + $0x8] sm:$0xff] }
  0x1a   :  { %182 = vmatprep.subr.mxu0 %v49_v49  ;;  %295 = vmatprep.subr.mxu1 %v51_v50  ;;  %v3984_v12 = vld [vmem:[%s9947_s2 + $0x278] sm:$0xff]  ;;  %v112_v14 = vld [vmem:[%s9945_s1 + $0x290] sm:$0xff]  ;;  %v107_v16 = vld [vmem:[%s9945_s1 + $0x268] sm:$0xff] }
  0x1b   :  { %183 = vmatpush1.msra.mxu0 %v48_v51  ;;  %296 = vmatpush1.msra.mxu1 %v50_v52  ;;  %v3998_v15 = vld [vmem:[%s9947_s2 + $0x270] sm:$0xff]  ;;  %v4007_v17 = vld [vmem:[%s9947_s2 + $0x248] sm:$0xff]  ;;  %v106_v18 = vld [vmem:[%s9945_s1 + $0x260] sm:$0xff] }
  0x1c   :  { %184 = vmatprep.subr.mxu0 %v43_v53  ;;  %297 = vmatprep.subr.mxu1 %v45_v54  ;;  %v4017_v19 = vld [vmem:[%s9947_s2 + $0x240] sm:$0xff]  ;;  %v101_v20 = vld [vmem:[%s9945_s1 + $0x238] sm:$0xff]  ;;  %v4032_v22 = vld [vmem:[%s9946_s0 + $0x10] sm:$0xff] }
  0x1d   :  { %185 = vmatpush1.msra.mxu0 %v42_v55  ;;  %298 = vmatpush1.msra.mxu1 %v44_v56  ;;  %v4027_v21 = vld [vmem:[%s9947_s2 + $0x218] sm:$0xff]  ;;  %v100_v23 = vld [vmem:[%s9945_s1 + $0x230] sm:$0xff]  ;;  %v95_v25 = vld [vmem:[%s9945_s1 + $0x208] sm:$0xff] }
  0x1e   :  { %186 = vmatprep.subr.mxu0 %v37_v57  ;;  %299 = vmatprep.subr.mxu1 %v39_v58  ;;  %v4041_v24 = vld [vmem:[%s9947_s2 + $0x210] sm:$0xff]  ;;  %v4050_v26 = vld [vmem:[%s9947_s2 + $0x1e8] sm:$0xff]  ;;  %v94_v27 = vld [vmem:[%s9945_s1 + $0x200] sm:$0xff] }
  0x1f   :  { %187 = vmatpush1.msra.mxu0 %v36_v59  ;;  %300 = vmatpush1.msra.mxu1 %v38_v60  ;;  %v4060_v28 = vld [vmem:[%s9947_s2 + $0x1e0] sm:$0xff]  ;;  %v89_v29 = vld [vmem:[%s9945_s1 + $0x1d8] sm:$0xff]  ;;  %v88_v32 = vld [vmem:[%s9945_s1 + $0x1d0] sm:$0xff] }
  0x20   :  { %188 = vmatprep.subr.mxu0 %v31_v61  ;;  %301 = vmatprep.subr.mxu1 %v33_v62  ;;  %v4070_v30 = vld [vmem:[%s9947_s2 + $0x1b8] sm:$0xff]  ;;  %v4084_v33 = vld [vmem:[%s9947_s2 + $0x1b0] sm:$0xff]  ;;  %v83_v34 = vld [vmem:[%s9945_s1 + $0x1a8] sm:$0xff] }
  0x21   :  { %189 = vmatpush1.msra.mxu0 %v30_v63  ;;  %302 = vmatpush1.msra.mxu1 %v32_v0  ;;  %v4075_v31 = vld [vmem:[%s9946_s0 + $0x18] sm:$0xff]  ;;  %v4093_v35 = vld [vmem:[%s9947_s2 + $0x188] sm:$0xff]  ;;  %v82_v36 = vld [vmem:[%s9945_s1 + $0x1a0] sm:$0xff] }
  0x22   :  { %336 = vmatmul.mubr.f32.vlgmr.msra.gmra.mxu1 %v3939_v1  ;;  %384 = vmatprep.subr.mxu0 %v125_v2  ;;  %v4103_v37 = vld [vmem:[%s9947_s2 + $0x180] sm:$0xff]  ;;  %v77_v38 = vld [vmem:[%s9945_s1 + $0x178] sm:$0xff]  ;;  %v76_v41 = vld [vmem:[%s9945_s1 + $0x170] sm:$0xff] }
  0x23   :  { %769 = vmatprep.subr.mxu1 %v3947_v4  ;;  %223 = vmatmul.mubr.f32.vlgmr.msra.gmra.mxu0 %v3939_v1  ;;  %v4113_v39 = vld [vmem:[%s9947_s2 + $0x158] sm:$0xff]  ;;  %v4118_v40 = vld [vmem:[%s9946_s0 + $0x20] sm:$0xff]  ;;  %v4127_v42 = vld [vmem:[%s9947_s2 + $0x150] sm:$0xff] }
  0x24   :  { %385 = vmatpush1.msra.mxu0 %v124_v5  ;;  %770 = vmatpush1.msra.mxu1 %v3955_v6  ;;  %v71_v43 = vld [vmem:[%s9945_s1 + $0x148] sm:$0xff]  ;;  %v70_v45 = vld [vmem:[%s9945_s1 + $0x140] sm:$0xff]  ;;  %v65_v47 = vld [vmem:[%s9945_s1 + $0x118] sm:$0xff] }
  0x25   :  { %386 = vmatprep.subr.mxu0 %v119_v7  ;;  %771 = vmatprep.subr.mxu1 %v3964_v8  ;;  %v4136_v44 = vld [vmem:[%s9947_s2 + $0x128] sm:$0xff]  ;;  %v4146_v46 = vld [vmem:[%s9947_s2 + $0x120] sm:$0xff]  ;;  %v4156_v48 = vld [vmem:[%s9947_s2 + $0xf8] sm:$0xff] }
  0x26   :  { %387 = vmatpush1.msra.mxu0 %v118_v9  ;;  %772 = vmatpush1.msra.mxu1 %v3974_v10  ;;  %v4161_v49 = vld [vmem:[%s9946_s0 + $0x28] sm:$0xff]  ;;  %v64_v50 = vld [vmem:[%s9945_s1 + $0x110] sm:$0xff]  ;;  %v58_v54 = vld [vmem:[%s9945_s1 + $0xe0] sm:$0xff] }
  0x27   :  { %228 = vmatprep.mubr.f32.mxu0 %v9954_v3  ;;  %388 = vmatprep.subr.mxu0 %v113_v11  ;;  %v4170_v51 = vld [vmem:[%s9947_s2 + $0xf0] sm:$0xff]  ;;  %v59_v52 = vld [vmem:[%s9945_s1 + $0xe8] sm:$0xff]  ;;  %v4189_v55 = vld [vmem:[%s9947_s2 + $0xc0] sm:$0xff] }
  0x28   :  { %773 = vmatprep.subr.mxu1 %v3984_v12  ;;  %229 = vmatmul.mubr.f32.gmra.mxu0 %v3989_v13  ;;  %v4179_v53 = vld [vmem:[%s9947_s2 + $0xc8] sm:$0xff]  ;;  %v53_v56 = vld [vmem:[%s9945_s1 + $0xb8] sm:$0xff]  ;;  %v4204_v58 = vld [vmem:[%s9946_s0 + $0x30] sm:$0xff] }
  0x29   :  { %389 = vmatpush1.msra.mxu0 %v112_v14  ;;  %774 = vmatpush1.msra.mxu1 %v3998_v15  ;;  %v4199_v57 = vld [vmem:[%s9947_s2 + $0x98] sm:$0xff]  ;;  %v52_v59 = vld [vmem:[%s9945_s1 + $0xb0] sm:$0xff]  ;;  %v47_v61 = vld [vmem:[%s9945_s1 + $0x88] sm:$0xff] }
  0x2a   :  { %390 = vmatprep.subr.mxu0 %v107_v16  ;;  %775 = vmatprep.subr.mxu1 %v4007_v17  ;;  %v4213_v60 = vld [vmem:[%s9947_s2 + $0x90] sm:$0xff]  ;;  %v4222_v62 = vld [vmem:[%s9947_s2 + $0x68] sm:$0xff]  ;;  %v46_v63 = vld [vmem:[%s9945_s1 + $0x80] sm:$0xff] }
  0x2b   :  { %391 = vmatpush1.msra.mxu0 %v106_v18  ;;  %776 = vmatpush1.msra.mxu1 %v4017_v19  ;;  %v4232_v0 = vld [vmem:[%s9947_s2 + $0x60] sm:$0xff]  ;;  %v41_v2 = vld [vmem:[%s9945_s1 + $0x58] sm:$0xff]  ;;  %v40_v9 = vld [vmem:[%s9945_s1 + $0x50] sm:$0xff] }
  0x2c   :  { %234 = vmatprep.mubr.f32.mxu0 %v9954_v3  ;;  %392 = vmatprep.subr.mxu0 %v101_v20  ;;  %v4242_v5 = vld [vmem:[%s9947_s2 + $0x38] sm:$0xff]  ;;  %v4256_v11 = vld [vmem:[%s9947_s2 + $0x30] sm:$0xff]  ;;  %v35_v14 = vld [vmem:[%s9945_s1 + $0x28] sm:$0xff] }
  0x2d   :  { %777 = vmatprep.subr.mxu1 %v4027_v21  ;;  %235 = vmatmul.mubr.f32.gmra.mxu0 %v4032_v22  ;;  %v4247_v7 = vld [vmem:[%s9946_s0 + $0x38] sm:$0xff]  ;;  %v4265_v16 = vld [vmem:[%s9947_s2 + $0x8] sm:$0xff]  ;;  %v34_v18 = vld [vmem:[%s9945_s1 + $0x20] sm:$0xff] }
  0x2e   :  { %393 = vmatpush1.msra.mxu0 %v100_v23  ;;  %778 = vmatpush1.msra.mxu1 %v4041_v24  ;;  %v4275_v20 = vld [vmem:[%s9947_s2] sm:$0xff]  ;;  %v4281_v23 = vld [vmem:[%s9947_s2 + $0x5d8] sm:$0xff] }
  0x2f   :  { %394 = vmatprep.subr.mxu0 %v95_v25  ;;  %779 = vmatprep.subr.mxu1 %v4050_v26  ;;  %v4287_v25 = vld [vmem:[%s9947_s2 + $0x2e8] sm:$0xff] }
  0x30   :  { %395 = vmatpush1.msra.mxu0 %v94_v27  ;;  %780 = vmatpush1.msra.mxu1 %v4060_v28  ;;  %v4293_v27 = vld [vmem:[%s9947_s2 + $0x5d0] sm:$0xff] }
  0x31   :  { %240 = vmatprep.mubr.f32.mxu0 %v9954_v3  ;;  %396 = vmatprep.subr.mxu0 %v89_v29  ;;  %v4298_v29 = vld [vmem:[%s9947_s2 + $0x2e0] sm:$0xff] }
  0x32   :  { %781 = vmatprep.subr.mxu1 %v4070_v30  ;;  %241 = vmatmul.mubr.f32.gmra.mxu0 %v4075_v31 }
  0x33   :  { %397 = vmatpush1.msra.mxu0 %v88_v32  ;;  %782 = vmatpush1.msra.mxu1 %v4084_v33  ;;  %v4305_v32 = vld [vmem:[%s9947_s2 + $0x5a8] sm:$0xff] }
  0x34   :  { %398 = vmatprep.subr.mxu0 %v83_v34  ;;  %783 = vmatprep.subr.mxu1 %v4093_v35  ;;  %v4312_v34 = vld [vmem:[%s9947_s2 + $0x2b8] sm:$0xff] }
  0x35   :  { %399 = vmatpush1.msra.mxu0 %v82_v36  ;;  %784 = vmatpush1.msra.mxu1 %v4103_v37  ;;  %v4319_v36 = vld [vmem:[%s9947_s2 + $0x5a0] sm:$0xff] }
  0x36   :  { %246 = vmatprep.mubr.f32.mxu0 %v9954_v3  ;;  %400 = vmatprep.subr.mxu0 %v77_v38  ;;  %v4324_v38 = vld [vmem:[%s9947_s2 + $0x2b0] sm:$0xff] }
  0x37   :  { %785 = vmatprep.subr.mxu1 %v4113_v39  ;;  %247 = vmatmul.mubr.f32.gmra.mxu0 %v4118_v40 }
  0x38   :  { %401 = vmatpush1.msra.mxu0 %v76_v41  ;;  %786 = vmatpush1.msra.mxu1 %v4127_v42  ;;  %v4336_v41 = vld [vmem:[%s9947_s2 + $0x288] sm:$0xff] }
  0x39   :  { %402 = vmatprep.subr.mxu0 %v71_v43  ;;  %787 = vmatprep.subr.mxu1 %v4136_v44  ;;  %v4343_v43 = vld [vmem:[%s9947_s2 + $0x570] sm:$0xff] }
  0x3a   :  { %403 = vmatpush1.msra.mxu0 %v70_v45  ;;  %788 = vmatpush1.msra.mxu1 %v4146_v46  ;;  %v4348_v45 = vld [vmem:[%s9947_s2 + $0x280] sm:$0xff] }
  0x3b   :  { %252 = vmatprep.mubr.f32.mxu0 %v9954_v3  ;;  %404 = vmatprep.subr.mxu0 %v65_v47  ;;  %v4355_v47 = vld [vmem:[%s9947_s2 + $0x548] sm:$0xff] }
  0x3c   :  { %789 = vmatprep.subr.mxu1 %v4156_v48  ;;  %253 = vmatmul.mubr.f32.gmra.mxu0 %v4161_v49 }
  0x3d   :  { %405 = vmatpush1.msra.mxu0 %v64_v50  ;;  %790 = vmatpush1.msra.mxu1 %v4170_v51  ;;  %v4362_v50 = vld [vmem:[%s9947_s2 + $0x258] sm:$0xff] }
  0x3e   :  { %406 = vmatprep.subr.mxu0 %v59_v52  ;;  %791 = vmatprep.subr.mxu1 %v4179_v53  ;;  %v4369_v52 = vld [vmem:[%s9947_s2 + $0x540] sm:$0xff] }
  0x3f   :  { %407 = vmatpush1.msra.mxu0 %v58_v54  ;;  %792 = vmatpush1.msra.mxu1 %v4189_v55  ;;  %10426 = vst [vmem:[#allocation3_spill] sm:$0xff] %v4369_v52  ;;  %v4374_v54 = vld [vmem:[%s9947_s2 + $0x250] sm:$0xff] }
  0x40   :  { %258 = vmatprep.mubr.f32.mxu0 %v9954_v3  ;;  %408 = vmatprep.subr.mxu0 %v53_v56  ;;  %v4381_v56 = vld [vmem:[%s9947_s2 + $0x518] sm:$0xff] }
  0x41   :  { %793 = vmatprep.subr.mxu1 %v4199_v57  ;;  %259 = vmatmul.mubr.f32.gmra.mxu0 %v4204_v58  ;;  %10427 = vst [vmem:[#allocation4_spill] sm:$0xff] %v4381_v56 }
  0x42   :  { %409 = vmatpush1.msra.mxu0 %v52_v59  ;;  %794 = vmatpush1.msra.mxu1 %v4213_v60  ;;  %v4386_v59 = vld [vmem:[%s9947_s2 + $0x228] sm:$0xff] }
  0x43   :  { %410 = vmatprep.subr.mxu0 %v47_v61  ;;  %795 = vmatprep.subr.mxu1 %v4222_v62  ;;  %v4393_v61 = vld [vmem:[%s9947_s2 + $0x510] sm:$0xff] }
  0x44   :  { %411 = vmatpush1.msra.mxu0 %v46_v63  ;;  %796 = vmatpush1.msra.mxu1 %v4232_v0  ;;  %10428 = vst [vmem:[#allocation5_spill] sm:$0xff] %v4393_v61  ;;  %v4398_v63 = vld [vmem:[%s9947_s2 + $0x220] sm:$0xff] }
  0x45   :  { %264 = vmatprep.mubr.f32.mxu0 %v9954_v3  ;;  %412 = vmatprep.subr.mxu0 %v41_v2  ;;  %10429 = vst [vmem:[#allocation6_spill] sm:$0xff] %v4398_v63  ;;  %v4405_v2 = vld [vmem:[%s9947_s2 + $0x4e8] sm:$0xff] }
  0x46   :  { %797 = vmatprep.subr.mxu1 %v4242_v5  ;;  %265 = vmatmul.mubr.f32.gmra.mxu0 %v4247_v7  ;;  %10430 = vst [vmem:[#allocation7_spill] sm:$0xff] %v4405_v2 }
  0x47   :  { %413 = vmatpush1.msra.mxu0 %v40_v9  ;;  %798 = vmatpush1.msra.mxu1 %v4256_v11  ;;  %v4412_v9 = vld [vmem:[%s9947_s2 + $0x1f8] sm:$0xff] }
  0x48   :  { %414 = vmatprep.subr.mxu0 %v35_v14  ;;  %799 = vmatprep.subr.mxu1 %v4265_v16  ;;  %10431 = vst [vmem:[#allocation8_spill] sm:$0xff] %v4412_v9  ;;  %v4419_v14 = vld [vmem:[%s9947_s2 + $0x4e0] sm:$0xff] }
  0x49   :  { %415 = vmatpush1.msra.mxu0 %v34_v18  ;;  %800 = vmatpush1.msra.mxu1 %v4275_v20  ;;  %10432 = vst [vmem:[#allocation9_spill] sm:$0xff] %v4419_v14  ;;  %v4424_v18 = vld [vmem:[%s9947_s2 + $0x1f0] sm:$0xff] }
  0x4a   :  { %448 = vmatprep.mubr.f32.mxu0 %v9954_v3  ;;  %801 = vmatprep.subr.mxu1 %v4281_v23  ;;  %10433 = vst [vmem:[#allocation10_spill] sm:$0xff] %v4424_v18 }
  0x4b   :  { %840 = vmatprep.subr.mxu0 %v4287_v25  ;;  %449 = vmatmul.mubr.f32.vlgmr.msra.gmra.mxu0 %v3939_v1  ;;  %v4331_v1 = vld [vmem:[%s9947_s2 + $0x578] sm:$0xff] }
  0x4c   :  { %802 = vmatpush2.msra.mxu1 %v4293_v27  ;;  %841 = vmatpush1.msra.mxu0 %v4298_v29 }
  0x4d   :  { %341 = vmatprep.mubr.f32.mxu1 %v9954_v3  ;;  %803 = vmatprep.subr.mxu1 %v4305_v32 }
  0x4e   :  { %842 = vmatprep.subr.mxu0 %v4312_v34  ;;  %342 = vmatmul.mubr.f32.gmra.mxu1 %v3989_v13 }
  0x4f   :  { %804 = vmatpush2.msra.mxu1 %v4319_v36  ;;  %843 = vmatpush1.msra.mxu0 %v4324_v38 }
  0x50   :  { %805 = vmatprep.subr.mxu1 %v4331_v1  ;;  %844 = vmatprep.subr.mxu0 %v4336_v41 }
  0x51   :  { %806 = vmatpush2.msra.mxu1 %v4343_v43  ;;  %845 = vmatpush1.msra.mxu0 %v4348_v45 }
  0x52   :  { %347 = vmatprep.mubr.f32.mxu1 %v9954_v3  ;;  %807 = vmatprep.subr.mxu1 %v4355_v47 }
  0x53   :  { %846 = vmatprep.subr.mxu0 %v4362_v50  ;;  %348 = vmatmul.mubr.f32.gmra.mxu1 %v4032_v22 }
  0x54   :  { %808 = vmatpush2.msra.mxu1 %v4369_v52  ;;  %847 = vmatpush1.msra.mxu0 %v4374_v54  ;;  %v4462_v52 = vld [vmem:[%s9947_s2 + $0x198] sm:$0xff] }
  0x55   :  { %809 = vmatprep.subr.mxu1 %v4381_v56  ;;  %848 = vmatprep.subr.mxu0 %v4386_v59  ;;  %v4436_v56 = vld [vmem:[%s9947_s2 + $0x1c8] sm:$0xff]  ;;  %10439 = vst [vmem:[#allocation16_spill] sm:$0xff] %v4462_v52 }
  0x56   :  { %810 = vmatpush2.msra.mxu1 %v4393_v61  ;;  %849 = vmatpush1.msra.mxu0 %v4398_v63  ;;  %v4431_v61 = vld [vmem:[%s9947_s2 + $0x4b8] sm:$0xff]  ;;  %10435 = vst [vmem:[#allocation12_spill] sm:$0xff] %v4436_v56 }
  0x57   :  { %353 = vmatprep.mubr.f32.mxu1 %v9954_v3  ;;  %811 = vmatprep.subr.mxu1 %v4405_v2  ;;  %10434 = vst [vmem:[#allocation11_spill] sm:$0xff] %v4431_v61  ;;  %v4443_v3 = vld [vmem:[%s9947_s2 + $0x4b0] sm:$0xff]  ;;  %v4448_v2 = vld [vmem:[%s9947_s2 + $0x1c0] sm:$0xff]  ;;  %v4512_v63 = vld [vmem:[%s9947_s2 + $0x138] sm:$0xff] }
  0x58   :  { %850 = vmatprep.subr.mxu0 %v4412_v9  ;;  %354 = vmatmul.mubr.f32.gmra.mxu1 %v4075_v31  ;;  %10436 = vst [vmem:[#allocation13_spill] sm:$0xff] %v4443_v3  ;;  %10437 = vst [vmem:[#allocation14_spill] sm:$0xff] %v4448_v2  ;;  %v4455_v9 = vld [vmem:[%s9947_s2 + $0x488] sm:$0xff] }
  0x59   :  { %812 = vmatpush2.msra.mxu1 %v4419_v14  ;;  %851 = vmatpush1.msra.mxu0 %v4424_v18  ;;  %10438 = vst [vmem:[#allocation15_spill] sm:$0xff] %v4455_v9  ;;  %v4469_v14 = vld [vmem:[%s9947_s2 + $0x480] sm:$0xff]  ;;  %v4493_v18 = vld [vmem:[%s9947_s2 + $0x450] sm:$0xff]  ;;  %10448 = vst [vmem:[#allocation24_spill] sm:$0xff] %v4512_v63 }
  0x5a   :  { %813 = vmatprep.subr.mxu1 %v4431_v61  ;;  %852 = vmatprep.subr.mxu0 %v4436_v56  ;;  %10440 = vst [vmem:[#allocation17_spill] sm:$0xff] %v4469_v14  ;;  %v4474_v61 = vld [vmem:[%s9947_s2 + $0x190] sm:$0xff]  ;;  %v10442_v56 = vmov 0.0   ;;  %10445 = vst [vmem:[#allocation21_spill] sm:$0xff] %v4493_v18 }
  0x5b   :  { %814 = vmatpush2.msra.mxu1 %v4443_v3  ;;  %853 = vmatpush1.msra.mxu0 %v4448_v2  ;;  %10441 = vst [vmem:[#allocation18_spill] sm:$0xff] %v4474_v61  ;;  %v4481_v3 = vld [vmem:[%s9947_s2 + $0x458] sm:$0xff]  ;;  %v4486_v2 = vld [vmem:[%s9947_s2 + $0x168] sm:$0xff] }
  0x5c   :  { %359 = vmatprep.mubr.f32.mxu1 %v10442_v56  ;;  %815 = vmatprep.subr.mxu1 %v4455_v9  ;;  %10443 = vst [vmem:[#allocation19_spill] sm:$0xff] %v4481_v3  ;;  %10444 = vst [vmem:[#allocation20_spill] sm:$0xff] %v4486_v2  ;;  %v4498_v9 = vld [vmem:[%s9947_s2 + $0x160] sm:$0xff] }
  0x5d   :  { %854 = vmatprep.subr.mxu0 %v4462_v52  ;;  %360 = vmatmul.mubr.f32.gmra.mxu1 %v4118_v40  ;;  %10446 = vst [vmem:[#allocation22_spill] sm:$0xff] %v4498_v9  ;;  %v4505_v52 = vld [vmem:[%s9947_s2 + $0x428] sm:$0xff] }
  0x5e   :  { %816 = vmatpush2.msra.mxu1 %v4469_v14  ;;  %855 = vmatpush1.msra.mxu0 %v4474_v61  ;;  %10447 = vst [vmem:[#allocation23_spill] sm:$0xff] %v4505_v52  ;;  %v4519_v14 = vld [vmem:[%s9947_s2 + $0x420] sm:$0xff]  ;;  %v4562_v61 = vld [vmem:[%s9947_s2 + $0xd8] sm:$0xff] }
  0x5f   :  { %817 = vmatprep.subr.mxu1 %v4481_v3  ;;  %856 = vmatprep.subr.mxu0 %v4486_v2  ;;  %10449 = vst [vmem:[#allocation25_spill] sm:$0xff] %v4519_v14  ;;  %v4524_v3 = vld [vmem:[%s9947_s2 + $0x130] sm:$0xff]  ;;  %10456 = vst [vmem:[#allocation32_spill] sm:$0xff] %v4562_v61 }
  0x60   :  { %818 = vmatpush2.msra.mxu1 %v4493_v18  ;;  %857 = vmatpush1.msra.mxu0 %v4498_v9  ;;  %10450 = vst [vmem:[#allocation26_spill] sm:$0xff] %v4524_v3  ;;  %v4531_v18 = vld [vmem:[%s9947_s2 + $0x3f8] sm:$0xff]  ;;  %v4536_v9 = vld [vmem:[%s9947_s2 + $0x108] sm:$0xff]  ;;  %v4543_v2 = vld [vmem:[%s9947_s2 + $0x3f0] sm:$0xff] }
  0x61   :  { %365 = vmatprep.mubr.f32.mxu1 %v10442_v56  ;;  %819 = vmatprep.subr.mxu1 %v4505_v52  ;;  %10451 = vst [vmem:[#allocation27_spill] sm:$0xff] %v4531_v18  ;;  %10452 = vst [vmem:[#allocation28_spill] sm:$0xff] %v4536_v9  ;;  %v4548_v52 = vld [vmem:[%s9947_s2 + $0x100] sm:$0xff] }
  0x62   :  { %858 = vmatprep.subr.mxu0 %v4512_v63  ;;  %366 = vmatmul.mubr.f32.gmra.mxu1 %v4161_v49  ;;  %10453 = vst [vmem:[#allocation29_spill] sm:$0xff] %v4543_v2  ;;  %10454 = vst [vmem:[#allocation30_spill] sm:$0xff] %v4548_v52  ;;  %v4555_v63 = vld [vmem:[%s9947_s2 + $0x3c8] sm:$0xff] }
  0x63   :  { %820 = vmatpush2.msra.mxu1 %v4519_v14  ;;  %859 = vmatpush1.msra.mxu0 %v4524_v3  ;;  %10455 = vst [vmem:[#allocation31_spill] sm:$0xff] %v4555_v63  ;;  %v4569_v14 = vld [vmem:[%s9947_s2 + $0x3c0] sm:$0xff]  ;;  %v4612_v3 = vld [vmem:[%s9947_s2 + $0x78] sm:$0xff] }
  0x64   :  { %821 = vmatprep.subr.mxu1 %v4531_v18  ;;  %860 = vmatprep.subr.mxu0 %v4536_v9  ;;  %10457 = vst [vmem:[#allocation33_spill] sm:$0xff] %v4569_v14  ;;  %v4574_v18 = vld [vmem:[%s9947_s2 + $0xd0] sm:$0xff]  ;;  %10464 = vst [vmem:[#allocation40_spill] sm:$0xff] %v4612_v3 }
  0x65   :  { %822 = vmatpush2.msra.mxu1 %v4543_v2  ;;  %861 = vmatpush1.msra.mxu0 %v4548_v52  ;;  %10458 = vst [vmem:[#allocation34_spill] sm:$0xff] %v4574_v18  ;;  %v4581_v2 = vld [vmem:[%s9947_s2 + $0x398] sm:$0xff]  ;;  %v4586_v52 = vld [vmem:[%s9947_s2 + $0xa8] sm:$0xff]  ;;  %v4593_v9 = vld [vmem:[%s9947_s2 + $0x390] sm:$0xff] }
  0x66   :  { %371 = vmatprep.mubr.f32.mxu1 %v10442_v56  ;;  %823 = vmatprep.subr.mxu1 %v4555_v63  ;;  %10459 = vst [vmem:[#allocation35_spill] sm:$0xff] %v4581_v2  ;;  %10460 = vst [vmem:[#allocation36_spill] sm:$0xff] %v4586_v52  ;;  %v4598_v63 = vld [vmem:[%s9947_s2 + $0xa0] sm:$0xff] }
  0x67   :  { %862 = vmatprep.subr.mxu0 %v4562_v61  ;;  %372 = vmatmul.mubr.f32.gmra.mxu1 %v4204_v58  ;;  %10461 = vst [vmem:[#allocation37_spill] sm:$0xff] %v4593_v9  ;;  %10462 = vst [vmem:[#allocation38_spill] sm:$0xff] %v4598_v63  ;;  %v4605_v61 = vld [vmem:[%s9947_s2 + $0x368] sm:$0xff] }
  0x68   :  { %824 = vmatpush2.msra.mxu1 %v4569_v14  ;;  %863 = vmatpush1.msra.mxu0 %v4574_v18  ;;  %10463 = vst [vmem:[#allocation39_spill] sm:$0xff] %v4605_v61  ;;  %v4619_v14 = vld [vmem:[%s9947_s2 + $0x360] sm:$0xff]  ;;  %v4660_v18 = vld [vmem:[%s9947_s2 + $0x18] sm:$0xff] }
  0x69   :  { %825 = vmatprep.subr.mxu1 %v4581_v2  ;;  %864 = vmatprep.subr.mxu0 %v4586_v52  ;;  %10465 = vst [vmem:[#allocation41_spill] sm:$0xff] %v4619_v14  ;;  %v4624_v2 = vld [vmem:[%s9947_s2 + $0x70] sm:$0xff]  ;;  %10472 = vst [vmem:[#allocation48_spill] sm:$0xff] %v4660_v18 }
  0x6a   :  { %826 = vmatpush2.msra.mxu1 %v4593_v9  ;;  %865 = vmatpush1.msra.mxu0 %v4598_v63  ;;  %10466 = vst [vmem:[#allocation42_spill] sm:$0xff] %v4624_v2  ;;  %v4631_v9 = vld [vmem:[%s9947_s2 + $0x338] sm:$0xff]  ;;  %v4636_v63 = vld [vmem:[%s9947_s2 + $0x48] sm:$0xff]  ;;  %v4643_v52 = vld [vmem:[%s9947_s2 + $0x330] sm:$0xff] }
  0x6b   :  { %377 = vmatprep.mubr.f32.mxu1 %v10442_v56  ;;  %827 = vmatprep.subr.mxu1 %v4605_v61  ;;  %10467 = vst [vmem:[#allocation43_spill] sm:$0xff] %v4631_v9  ;;  %10468 = vst [vmem:[#allocation44_spill] sm:$0xff] %v4636_v63  ;;  %v4648_v61 = vld [vmem:[%s9947_s2 + $0x40] sm:$0xff] }
  0x6c   :  { %866 = vmatprep.subr.mxu0 %v4612_v3  ;;  %378 = vmatmul.mubr.f32.gmra.mxu1 %v4247_v7  ;;  %10469 = vst [vmem:[#allocation45_spill] sm:$0xff] %v4643_v52  ;;  %10470 = vst [vmem:[#allocation46_spill] sm:$0xff] %v4648_v61  ;;  %v4655_v3 = vld [vmem:[%s9947_s2 + $0x308] sm:$0xff] }
  0x6d   :  { %828 = vmatpush2.msra.mxu1 %v4619_v14  ;;  %867 = vmatpush1.msra.mxu0 %v4624_v2  ;;  %10471 = vst [vmem:[#allocation47_spill] sm:$0xff] %v4655_v3  ;;  %v4667_v14 = vld [vmem:[%s9947_s2 + $0x300] sm:$0xff]  ;;  %v4674_v2 = vld [vmem:[%s9947_s2 + $0x10] sm:$0xff] }
  0x6e   :  { %829 = vmatprep.subr.mxu1 %v4631_v9  ;;  %868 = vmatprep.subr.mxu0 %v4636_v63  ;;  %10473 = vst [vmem:[#allocation49_spill] sm:$0xff] %v4667_v14  ;;  %10474 = vst [vmem:[#allocation50_spill] sm:$0xff] %v4674_v2  ;;  %v4681_v9 = vld [vmem:[%s9947_s2 + $0x5e8] sm:$0xff] }
  0x6f   :  { %830 = vmatpush2.msra.mxu1 %v4643_v52  ;;  %869 = vmatpush1.msra.mxu0 %v4648_v61  ;;  %v4686_v52 = vld [vmem:[%s9947_s2 + $0x2f8] sm:$0xff]  ;;  %v10002_v61 = vmov 1.0   ;;  %v4710_v63 = vld [vmem:[%s9947_s2 + $0x2c8] sm:$0xff] }
  0x70   :  { %831 = vmatprep.subr.mxu1 %v4655_v3  ;;  %870 = vmatprep.subr.mxu0 %v4660_v18  ;;  %10475 = vst [vmem:[#allocation51_spill] sm:$0xff] %v4686_v52  ;;  %v4693_v3 = vld [vmem:[%s9947_s2 + $0x5e0] sm:$0xff]  ;;  %v4698_v18 = vld [vmem:[%s9947_s2 + $0x2f0] sm:$0xff]  ;;  %10479 = vst [vmem:[#allocation55_spill] sm:$0xff] %v4710_v63 }
  0x71   :  { %832 = vmatpush2.msra.mxu1 %v4667_v14  ;;  %833 = vmatprep.mubr.f32.mxu1 %v10002_v61  ;;  %10476 = vst [vmem:[#allocation52_spill] sm:$0xff] %v4693_v3  ;;  %10477 = vst [vmem:[#allocation53_spill] sm:$0xff] %v4698_v18  ;;  %v4705_v14 = vld [vmem:[%s9947_s2 + $0x5b8] sm:$0xff] }
  0x72   :  { %871 = vmatpush1.msra.mxu0 %v4674_v2  ;;  %834 = vmatmul.mubr.f32.vlgmr.msra.gmra.mxu1 %v10002_v61  ;;  %10478 = vst [vmem:[#allocation54_spill] sm:$0xff] %v4705_v14  ;;  %v4717_v2 = vld [vmem:[%s9947_s2 + $0x5b0] sm:$0xff]  ;;  %v4724_v61 = vld [vmem:[%s9947_s2 + $0x2c0] sm:$0xff] }
  0x73   :  { %872 = vmatprep.subr.mxu0 %v4681_v9  ;;  %911 = vmatprep.subr.mxu1 %v4686_v52  ;;  %10480 = vst [vmem:[#allocation56_spill] sm:$0xff] %v4717_v2  ;;  %10481 = vst [vmem:[#allocation57_spill] sm:$0xff] %v4724_v61  ;;  %v4731_v52 = vld [vmem:[%s9947_s2 + $0x588] sm:$0xff] }
  0x74   :  { %873 = vmatpush2.msra.mxu0 %v4693_v3  ;;  %912 = vmatpush1.msra.mxu1 %v4698_v18  ;;  %v4736_v3 = vld [vmem:[%s9947_s2 + $0x298] sm:$0xff]  ;;  %v4743_v18 = vld [vmem:[%s9947_s2 + $0x580] sm:$0xff] }
  0x75   :  { %874 = vmatprep.subr.mxu0 %v4705_v14  ;;  %913 = vmatprep.subr.mxu1 %v4710_v63  ;;  %10482 = vst [vmem:[#allocation58_spill] sm:$0xff] %v4736_v3  ;;  %10483 = vst [vmem:[#allocation59_spill] sm:$0xff] %v4743_v18  ;;  %v4748_v63 = vld [vmem:[%s9947_s2 + $0x290] sm:$0xff]  ;;  %v4755_v14 = vld [vmem:[%s9947_s2 + $0x558] sm:$0xff] }
  0x76   :  { %454 = vmatprep.mubr.f32.mxu0 %v10442_v56  ;;  %875 = vmatpush2.msra.mxu0 %v4717_v2  ;;  %10484 = vst [vmem:[#allocation60_spill] sm:$0xff] %v4748_v63  ;;  %10485 = vst [vmem:[#allocation61_spill] sm:$0xff] %v4755_v14  ;;  %v4760_v2 = vld [vmem:[%s9947_s2 + $0x268] sm:$0xff] }
  0x77   :  { %914 = vmatpush1.msra.mxu1 %v4724_v61  ;;  %455 = vmatmul.mubr.f32.gmra.mxu0 %v3989_v13  ;;  %10486 = vst [vmem:[#allocation62_spill] sm:$0xff] %v4760_v2  ;;  %v4767_v61 = vld [vmem:[%s9947_s2 + $0x550] sm:$0xff]  ;;  %v4774_v13 = vld [vmem:[%s9947_s2 + $0x260] sm:$0xff] }
  0x78   :  { %876 = vmatprep.subr.mxu0 %v4731_v52  ;;  %915 = vmatprep.subr.mxu1 %v4736_v3  ;;  %10487 = vst [vmem:[#allocation63_spill] sm:$0xff] %v4767_v61  ;;  %10488 = vst [vmem:[#allocation64_spill] sm:$0xff] %v4774_v13  ;;  %v4781_v3 = vld [vmem:[%s9947_s2 + $0x528] sm:$0xff] }
  0x79   :  { %877 = vmatpush2.msra.mxu0 %v4743_v18  ;;  %916 = vmatpush1.msra.mxu1 %v4748_v63  ;;  %v4786_v18 = vld [vmem:[%s9947_s2 + $0x238] sm:$0xff]  ;;  %v4793_v63 = vld [vmem:[%s9947_s2 + $0x520] sm:$0xff] }
  0x7a   :  { %878 = vmatprep.subr.mxu0 %v4755_v14  ;;  %917 = vmatprep.subr.mxu1 %v4760_v2  ;;  %10489 = vst [vmem:[#allocation65_spill] sm:$0xff] %v4786_v18  ;;  %10490 = vst [vmem:[#allocation66_spill] sm:$0xff] %v4793_v63  ;;  %v4798_v2 = vld [vmem:[%s9947_s2 + $0x230] sm:$0xff]  ;;  %v4805_v14 = vld [vmem:[%s9947_s2 + $0x4f8] sm:$0xff] }
  0x7b   :  { %460 = vmatprep.mubr.f32.mxu0 %v10442_v56  ;;  %879 = vmatpush2.msra.mxu0 %v4767_v61  ;;  %10491 = vst [vmem:[#allocation67_spill] sm:$0xff] %v4798_v2  ;;  %10492 = vst [vmem:[#allocation68_spill] sm:$0xff] %v4805_v14  ;;  %v4810_v61 = vld [vmem:[%s9947_s2 + $0x208] sm:$0xff] }
  0x7c   :  { %918 = vmatpush1.msra.mxu1 %v4774_v13  ;;  %461 = vmatmul.mubr.f32.gmra.mxu0 %v4032_v22  ;;  %10493 = vst [vmem:[#allocation69_spill] sm:$0xff] %v4810_v61  ;;  %v4817_v13 = vld [vmem:[%s9947_s2 + $0x4f0] sm:$0xff]  ;;  %v4824_v22 = vld [vmem:[%s9947_s2 + $0x200] sm:$0xff] }
  0x7d   :  { %880 = vmatprep.subr.mxu0 %v4781_v3  ;;  %919 = vmatprep.subr.mxu1 %v4786_v18  ;;  %10494 = vst [vmem:[#allocation70_spill] sm:$0xff] %v4817_v13  ;;  %10495 = vst [vmem:[#allocation71_spill] sm:$0xff] %v4824_v22  ;;  %v4831_v18 = vld [vmem:[%s9947_s2 + $0x4c8] sm:$0xff] }
  0x7e   :  { %881 = vmatpush2.msra.mxu0 %v4793_v63  ;;  %920 = vmatpush1.msra.mxu1 %v4798_v2  ;;  %v4836_v63 = vld [vmem:[%s9947_s2 + $0x1d8] sm:$0xff]  ;;  %v4843_v2 = vld [vmem:[%s9947_s2 + $0x4c0] sm:$0xff] }
  0x7f   :  { %882 = vmatprep.subr.mxu0 %v4805_v14  ;;  %921 = vmatprep.subr.mxu1 %v4810_v61  ;;  %10496 = vst [vmem:[#allocation72_spill] sm:$0xff] %v4836_v63  ;;  %10497 = vst [vmem:[#allocation73_spill] sm:$0xff] %v4843_v2  ;;  %v4848_v61 = vld [vmem:[%s9947_s2 + $0x1d0] sm:$0xff]  ;;  %v4855_v14 = vld [vmem:[%s9947_s2 + $0x498] sm:$0xff] }
  0x80   :  { %466 = vmatprep.mubr.f32.mxu0 %v10442_v56  ;;  %883 = vmatpush2.msra.mxu0 %v4817_v13  ;;  %10498 = vst [vmem:[#allocation74_spill] sm:$0xff] %v4848_v61  ;;  %10499 = vst [vmem:[#allocation75_spill] sm:$0xff] %v4855_v14  ;;  %v4860_v13 = vld [vmem:[%s9947_s2 + $0x1a8] sm:$0xff] }
  0x81   :  { %922 = vmatpush1.msra.mxu1 %v4824_v22  ;;  %467 = vmatmul.mubr.f32.gmra.mxu0 %v4075_v31  ;;  %10500 = vst [vmem:[#allocation76_spill] sm:$0xff] %v4860_v13  ;;  %v4867_v22 = vld [vmem:[%s9947_s2 + $0x490] sm:$0xff]  ;;  %v4874_v31 = vld [vmem:[%s9947_s2 + $0x1a0] sm:$0xff] }
  0x82   :  { %884 = vmatprep.subr.mxu0 %v4831_v18  ;;  %923 = vmatprep.subr.mxu1 %v4836_v63  ;;  %10501 = vst [vmem:[#allocation77_spill] sm:$0xff] %v4867_v22  ;;  %10502 = vst [vmem:[#allocation78_spill] sm:$0xff] %v4874_v31  ;;  %v4881_v63 = vld [vmem:[%s9947_s2 + $0x468] sm:$0xff] }
  0x83   :  { %885 = vmatpush2.msra.mxu0 %v4843_v2  ;;  %924 = vmatpush1.msra.mxu1 %v4848_v61  ;;  %v4886_v2 = vld [vmem:[%s9947_s2 + $0x178] sm:$0xff]  ;;  %v4893_v61 = vld [vmem:[%s9947_s2 + $0x460] sm:$0xff] }
  0x84   :  { %886 = vmatprep.subr.mxu0 %v4855_v14  ;;  %925 = vmatprep.subr.mxu1 %v4860_v13  ;;  %10503 = vst [vmem:[#allocation79_spill] sm:$0xff] %v4886_v2  ;;  %10504 = vst [vmem:[#allocation80_spill] sm:$0xff] %v4893_v61  ;;  %v4898_v13 = vld [vmem:[%s9947_s2 + $0x170] sm:$0xff]  ;;  %v4905_v14 = vld [vmem:[%s9947_s2 + $0x438] sm:$0xff] }
  0x85   :  { %472 = vmatprep.mubr.f32.mxu0 %v10442_v56  ;;  %887 = vmatpush2.msra.mxu0 %v4867_v22  ;;  %10505 = vst [vmem:[#allocation81_spill] sm:$0xff] %v4898_v13  ;;  %10506 = vst [vmem:[#allocation82_spill] sm:$0xff] %v4905_v14  ;;  %v4910_v22 = vld [vmem:[%s9947_s2 + $0x148] sm:$0xff] }
  0x86   :  { %926 = vmatpush1.msra.mxu1 %v4874_v31  ;;  %473 = vmatmul.mubr.f32.gmra.mxu0 %v4118_v40  ;;  %10507 = vst [vmem:[#allocation83_spill] sm:$0xff] %v4910_v22  ;;  %v4917_v31 = vld [vmem:[%s9947_s2 + $0x430] sm:$0xff]  ;;  %v4924_v40 = vld [vmem:[%s9947_s2 + $0x140] sm:$0xff] }
  0x87   :  { %888 = vmatprep.subr.mxu0 %v4881_v63  ;;  %927 = vmatprep.subr.mxu1 %v4886_v2  ;;  %10508 = vst [vmem:[#allocation84_spill] sm:$0xff] %v4917_v31  ;;  %10509 = vst [vmem:[#allocation85_spill] sm:$0xff] %v4924_v40  ;;  %v4931_v2 = vld [vmem:[%s9947_s2 + $0x408] sm:$0xff] }
  0x88   :  { %889 = vmatpush2.msra.mxu0 %v4893_v61  ;;  %928 = vmatpush1.msra.mxu1 %v4898_v13  ;;  %v4936_v61 = vld [vmem:[%s9947_s2 + $0x118] sm:$0xff]  ;;  %v4943_v13 = vld [vmem:[%s9947_s2 + $0x400] sm:$0xff] }
  0x89   :  { %890 = vmatprep.subr.mxu0 %v4905_v14  ;;  %929 = vmatprep.subr.mxu1 %v4910_v22  ;;  %10510 = vst [vmem:[#allocation86_spill] sm:$0xff] %v4936_v61  ;;  %10511 = vst [vmem:[#allocation87_spill] sm:$0xff] %v4943_v13  ;;  %v4948_v22 = vld [vmem:[%s9947_s2 + $0x110] sm:$0xff]  ;;  %v4955_v14 = vld [vmem:[%s9947_s2 + $0x3d8] sm:$0xff] }
  0x8a   :  { %478 = vmatprep.mubr.f32.mxu0 %v10442_v56  ;;  %891 = vmatpush2.msra.mxu0 %v4917_v31  ;;  %10512 = vst [vmem:[#allocation88_spill] sm:$0xff] %v4948_v22  ;;  %10513 = vst [vmem:[#allocation89_spill] sm:$0xff] %v4955_v14  ;;  %v4960_v31 = vld [vmem:[%s9947_s2 + $0xe8] sm:$0xff] }
  0x8b   :  { %930 = vmatpush1.msra.mxu1 %v4924_v40  ;;  %479 = vmatmul.mubr.f32.gmra.mxu0 %v4161_v49  ;;  %10514 = vst [vmem:[#allocation90_spill] sm:$0xff] %v4960_v31  ;;  %v4967_v40 = vld [vmem:[%s9947_s2 + $0x3d0] sm:$0xff]  ;;  %v4974_v49 = vld [vmem:[%s9947_s2 + $0xe0] sm:$0xff] }
  0x8c   :  { %892 = vmatprep.subr.mxu0 %v4931_v2  ;;  %931 = vmatprep.subr.mxu1 %v4936_v61  ;;  %10515 = vst [vmem:[#allocation91_spill] sm:$0xff] %v4967_v40  ;;  %10516 = vst [vmem:[#allocation92_spill] sm:$0xff] %v4974_v49  ;;  %v4981_v61 = vld [vmem:[%s9947_s2 + $0x3a8] sm:$0xff] }
  0x8d   :  { %893 = vmatpush2.msra.mxu0 %v4943_v13  ;;  %932 = vmatpush1.msra.mxu1 %v4948_v22  ;;  %v4986_v13 = vld [vmem:[%s9947_s2 + $0xb8] sm:$0xff]  ;;  %v4993_v22 = vld [vmem:[%s9947_s2 + $0x3a0] sm:$0xff] }
  0x8e   :  { %894 = vmatprep.subr.mxu0 %v4955_v14  ;;  %933 = vmatprep.subr.mxu1 %v4960_v31  ;;  %10517 = vst [vmem:[#allocation93_spill] sm:$0xff] %v4986_v13  ;;  %10518 = vst [vmem:[#allocation94_spill] sm:$0xff] %v4993_v22  ;;  %v4998_v31 = vld [vmem:[%s9947_s2 + $0xb0] sm:$0xff]  ;;  %v5005_v14 = vld [vmem:[%s9947_s2 + $0x378] sm:$0xff] }
  0x8f   :  { %484 = vmatprep.mubr.f32.mxu0 %v10442_v56  ;;  %895 = vmatpush2.msra.mxu0 %v4967_v40  ;;  %10519 = vst [vmem:[#allocation95_spill] sm:$0xff] %v4998_v31  ;;  %v5010_v40 = vld [vmem:[%s9947_s2 + $0x88] sm:$0xff] }
  0x90   :  { %934 = vmatpush1.msra.mxu1 %v4974_v49  ;;  %485 = vmatmul.mubr.f32.gmra.mxu0 %v4204_v58  ;;  %10520 = vst [vmem:[#allocation96_spill] sm:$0xff] %v5010_v40  ;;  %v5017_v49 = vld [vmem:[%s9947_s2 + $0x370] sm:$0xff]  ;;  %v5024_v58 = vld [vmem:[%s9947_s2 + $0x80] sm:$0xff] }
  0x91   :  { %896 = vmatprep.subr.mxu0 %v4981_v61  ;;  %935 = vmatprep.subr.mxu1 %v4986_v13  ;;  %10521 = vst [vmem:[#allocation97_spill] sm:$0xff] %v5017_v49  ;;  %10522 = vst [vmem:[#allocation98_spill] sm:$0xff] %v5024_v58  ;;  %v5031_v13 = vld [vmem:[%s9947_s2 + $0x348] sm:$0xff] }
  0x92   :  { %897 = vmatpush2.msra.mxu0 %v4993_v22  ;;  %936 = vmatpush1.msra.mxu1 %v4998_v31  ;;  %10523 = vst [vmem:[#allocation99_spill] sm:$0xff] %v5031_v13  ;;  %v5036_v22 = vld [vmem:[%s9947_s2 + $0x58] sm:$0xff]  ;;  %v5043_v31 = vld [vmem:[%s9947_s2 + $0x340] sm:$0xff] }
  0x93   :  { %898 = vmatprep.subr.mxu0 %v5005_v14  ;;  %937 = vmatprep.subr.mxu1 %v5010_v40  ;;  %10524 = vst [vmem:[#allocation100_spill] sm:$0xff] %v5036_v22  ;;  %v5048_v40 = vld [vmem:[%s9947_s2 + $0x50] sm:$0xff] }
  0x94   :  { %490 = vmatprep.mubr.f32.mxu0 %v10442_v56  ;;  %899 = vmatpush2.msra.mxu0 %v5017_v49  ;;  %10525 = vst [vmem:[#allocation101_spill] sm:$0xff] %v5048_v40  ;;  %v5055_v56 = vld [vmem:[%s9947_s2 + $0x318] sm:$0xff]  ;;  %v5060_v49 = vld [vmem:[%s9947_s2 + $0x28] sm:$0xff] }
  0x95   :  { %938 = vmatpush1.msra.mxu1 %v5024_v58  ;;  %491 = vmatmul.mubr.f32.gmra.mxu0 %v4247_v7  ;;  %10526 = vst [vmem:[#allocation102_spill] sm:$0xff] %v5060_v49  ;;  %v5067_v58 = vld [vmem:[%s9947_s2 + $0x310] sm:$0xff]  ;;  %v5074_v7 = vld [vmem:[%s9947_s2 + $0x20] sm:$0xff] }
  0x96   :  { %900 = vmatprep.subr.mxu0 %v5031_v13  ;;  %939 = vmatprep.subr.mxu1 %v5036_v22  ;;  %10527 = vst [vmem:[#allocation103_spill] sm:$0xff] %v5067_v58  ;;  %10528 = vst [vmem:[#allocation104_spill] sm:$0xff] %v5074_v7  ;;  %v5081_v22 = vld [vmem:[%s9947_s2 + $0x5f8] sm:$0xff]  ;;  %v10530_v13 = vmov 1.0  }
  0x97   :  { %901 = vmatpush2.msra.mxu0 %v5043_v31  ;;  %940 = vmatpush1.msra.mxu1 %v5048_v40  ;;  %10529 = vst [vmem:[#allocation105_spill] sm:$0xff] %v5081_v22  ;;  %v5088_v40 = vld [vmem:[%s9947_s2 + $0x5f0] sm:$0xff] }
  0x98   :  { %902 = vmatprep.subr.mxu0 %v5055_v56  ;;  %941 = vmatprep.subr.mxu1 %v5060_v49  ;;  %10531 = vst [vmem:[#allocation106_spill] sm:$0xff] %v5088_v40  ;;  %v5095_v49 = vld [vmem:[%s9947_s2 + $0x5c8] sm:$0xff] }
  0x99   :  { %903 = vmatpush2.msra.mxu0 %v5067_v58  ;;  %904 = vmatprep.mubr.f32.mxu0 %v10530_v13  ;;  %v5101_v58 = vld [vmem:[%s9947_s2 + $0x5c0] sm:$0xff] }
  0x9a   :  { %942 = vmatpush1.msra.mxu1 %v5074_v7  ;;  %905 = vmatmul.mubr.f32.vlgmr.msra.gmra.mxu0 %v10530_v13  ;;  %v5108_v7 = vld [vmem:[%s9947_s2 + $0x598] sm:$0xff] }
  0x9b   :  { %943 = vmatprep.subr.mxu1 %v5081_v22  ;;  %975 = vmatprep.mubr.f32.mxu1 %v10530_v13  ;;  %v5115_v22 = vld [vmem:[%s9947_s2 + $0x590] sm:$0xff] }
  0x9c   :  { %944 = vmatpush2.msra.mxu1 %v5088_v40  ;;  %1037 = vmatprep.subr.mxu0 %v3947_v4  ;;  %v5122_v40 = vld [vmem:[%s9947_s2 + $0x568] sm:$0xff]  ;;  %v5129_v4 = vld [vmem:[%s9947_s2 + $0x560] sm:$0xff] }
  0x9d   :  { %945 = vmatprep.subr.mxu1 %v5095_v49  ;;  %1038 = vmatpush1.msra.mxu0 %v3955_v6  ;;  %v5136_v6 = vld [vmem:[%s9947_s2 + $0x538] sm:$0xff] }
  0x9e   :  { %946 = vmatpush2.msra.mxu1 %v5101_v58  ;;  %1039 = vmatprep.subr.mxu0 %v3964_v8  ;;  %v5143_v8 = vld [vmem:[%s9947_s2 + $0x530] sm:$0xff] }
  0x9f   :  { %947 = vmatprep.subr.mxu1 %v5108_v7  ;;  %1040 = vmatpush1.msra.mxu0 %v3974_v10  ;;  %v5150_v10 = vld [vmem:[%s9947_s2 + $0x508] sm:$0xff] }
  0xa0   :  { %948 = vmatpush2.msra.mxu1 %v5115_v22  ;;  %1041 = vmatprep.subr.mxu0 %v3984_v12  ;;  %v5157_v12 = vld [vmem:[%s9947_s2 + $0x500] sm:$0xff] }
  0xa1   :  { %949 = vmatprep.subr.mxu1 %v5122_v40  ;;  %1042 = vmatpush1.msra.mxu0 %v3998_v15  ;;  %v5164_v15 = vld [vmem:[%s9947_s2 + $0x4d8] sm:$0xff] }
  0xa2   :  { %950 = vmatpush2.msra.mxu1 %v5129_v4  ;;  %1043 = vmatprep.subr.mxu0 %v4007_v17  ;;  %v5171_v17 = vld [vmem:[%s9947_s2 + $0x4d0] sm:$0xff] }
  0xa3   :  { %951 = vmatprep.subr.mxu1 %v5136_v6  ;;  %1044 = vmatpush1.msra.mxu0 %v4017_v19  ;;  %v5178_v19 = vld [vmem:[%s9947_s2 + $0x4a8] sm:$0xff] }
  0xa4   :  { %952 = vmatpush2.msra.mxu1 %v5143_v8  ;;  %1045 = vmatprep.subr.mxu0 %v4027_v21  ;;  %v5185_v21 = vld [vmem:[%s9947_s2 + $0x4a0] sm:$0xff] }
  0xa5   :  { %953 = vmatprep.subr.mxu1 %v5150_v10  ;;  %1046 = vmatpush1.msra.mxu0 %v4041_v24  ;;  %v5192_v24 = vld [vmem:[%s9947_s2 + $0x478] sm:$0xff] }
  0xa6   :  { %954 = vmatpush2.msra.mxu1 %v5157_v12  ;;  %1047 = vmatprep.subr.mxu0 %v4050_v26  ;;  %v5199_v26 = vld [vmem:[%s9947_s2 + $0x470] sm:$0xff] }
  0xa7   :  { %955 = vmatprep.subr.mxu1 %v5164_v15  ;;  %1048 = vmatpush1.msra.mxu0 %v4060_v28  ;;  %v5206_v28 = vld [vmem:[%s9947_s2 + $0x448] sm:$0xff] }
  0xa8   :  { %956 = vmatpush2.msra.mxu1 %v5171_v17  ;;  %1049 = vmatprep.subr.mxu0 %v4070_v30  ;;  %v5213_v30 = vld [vmem:[%s9947_s2 + $0x440] sm:$0xff] }
  0xa9   :  { %957 = vmatprep.subr.mxu1 %v5178_v19  ;;  %1050 = vmatpush1.msra.mxu0 %v4084_v33  ;;  %v5220_v33 = vld [vmem:[%s9947_s2 + $0x418] sm:$0xff] }
  0xaa   :  { %958 = vmatpush2.msra.mxu1 %v5185_v21  ;;  %1051 = vmatprep.subr.mxu0 %v4093_v35  ;;  %v5227_v35 = vld [vmem:[%s9947_s2 + $0x410] sm:$0xff] }
  0xab   :  { %959 = vmatprep.subr.mxu1 %v5192_v24  ;;  %1052 = vmatpush1.msra.mxu0 %v4103_v37  ;;  %v5234_v37 = vld [vmem:[%s9947_s2 + $0x3e8] sm:$0xff] }
  0xac   :  { %960 = vmatpush2.msra.mxu1 %v5199_v26  ;;  %1053 = vmatprep.subr.mxu0 %v4113_v39  ;;  %v5241_v39 = vld [vmem:[%s9947_s2 + $0x3e0] sm:$0xff] }
  0xad   :  { %961 = vmatprep.subr.mxu1 %v5206_v28  ;;  %1054 = vmatpush1.msra.mxu0 %v4127_v42  ;;  %v5248_v42 = vld [vmem:[%s9947_s2 + $0x3b8] sm:$0xff] }
  0xae   :  { %962 = vmatpush2.msra.mxu1 %v5213_v30  ;;  %1055 = vmatprep.subr.mxu0 %v4136_v44  ;;  %v5255_v44 = vld [vmem:[%s9947_s2 + $0x3b0] sm:$0xff] }
  0xaf   :  { %963 = vmatprep.subr.mxu1 %v5220_v33  ;;  %1056 = vmatpush1.msra.mxu0 %v4146_v46  ;;  %v5262_v46 = vld [vmem:[%s9947_s2 + $0x388] sm:$0xff] }
  0xb0   :  { %964 = vmatpush2.msra.mxu1 %v5227_v35  ;;  %1057 = vmatprep.subr.mxu0 %v4156_v48  ;;  %v5269_v48 = vld [vmem:[%s9947_s2 + $0x380] sm:$0xff] }
  0xb1   :  { %965 = vmatprep.subr.mxu1 %v5234_v37  ;;  %1058 = vmatpush1.msra.mxu0 %v4170_v51  ;;  %v5276_v51 = vld [vmem:[%s9947_s2 + $0x358] sm:$0xff] }
  0xb2   :  { %966 = vmatpush2.msra.mxu1 %v5241_v39  ;;  %1059 = vmatprep.subr.mxu0 %v4179_v53  ;;  %v5283_v53 = vld [vmem:[%s9947_s2 + $0x350] sm:$0xff] }
  0xb3   :  { %967 = vmatprep.subr.mxu1 %v5248_v42  ;;  %1060 = vmatpush1.msra.mxu0 %v4189_v55  ;;  %v5290_v55 = vld [vmem:[%s9947_s2 + $0x328] sm:$0xff] }
  0xb4   :  { %968 = vmatpush2.msra.mxu1 %v5255_v44  ;;  %1061 = vmatprep.subr.mxu0 %v4199_v57  ;;  %v5297_v57 = vld [vmem:[%s9947_s2 + $0x320] sm:$0xff] }
  0xb5   :  { %969 = vmatprep.subr.mxu1 %v5262_v46  ;;  %1062 = vmatpush1.msra.mxu0 %v4213_v60  ;;  %v10532_v60 = vld [vmem:[#allocation6_spill] sm:$0xff] }
  0xb6   :  { %970 = vmatpush2.msra.mxu1 %v5269_v48  ;;  %1063 = vmatprep.subr.mxu0 %v4222_v62  ;;  %v10533_v62 = vld [vmem:[#allocation3_spill] sm:$0xff] }
  0xb7   :  { %971 = vmatprep.subr.mxu1 %v5276_v51  ;;  %1064 = vmatpush1.msra.mxu0 %v4232_v0  ;;  %v10534_v0 = vld [vmem:[#allocation8_spill] sm:$0xff] }
  0xb8   :  { %972 = vmatpush2.msra.mxu1 %v5283_v53  ;;  %1065 = vmatprep.subr.mxu0 %v4242_v5  ;;  %v10535_v5 = vld [vmem:[#allocation4_spill] sm:$0xff] }
  0xb9   :  { %973 = vmatprep.subr.mxu1 %v5290_v55  ;;  %1066 = vmatpush1.msra.mxu0 %v4256_v11  ;;  %v10536_v11 = vld [vmem:[#allocation10_spill] sm:$0xff] }
  0xba   :  { %974 = vmatpush2.msra.mxu1 %v5297_v57  ;;  %1067 = vmatprep.subr.mxu0 %v4265_v16  ;;  %v10537_v16 = vld [vmem:[#allocation5_spill] sm:$0xff] }
  0xbb   :  { %976 = vmatmul.mubr.f32.vlgmr.msra.gmra.mxu1 %v10530_v13  ;;  %1108 = vmatprep.subr.mxu1 %v4287_v25  ;;  %v10540_v25 = vld [vmem:[#allocation14_spill] sm:$0xff]  ;;  %v10555_v13 = vld [vmem:[#allocation23_spill] sm:$0xff] }
  0xbc   :  { %1109 = vmatpush1.msra.mxu1 %v4298_v29  ;;  %1068 = vmatpush1.msra.mxu0 %v4275_v20  ;;  %v10538_v20 = vld [vmem:[#allocation12_spill] sm:$0xff] }
  0xbd   :  { %1110 = vmatprep.subr.mxu1 %v4312_v34  ;;  %1069 = vmatprep.subr.mxu0 %v4281_v23  ;;  %v10539_v23 = vld [vmem:[#allocation7_spill] sm:$0xff]  ;;  %v10542_v29 = vld [vmem:[#allocation16_spill] sm:$0xff]  ;;  %v10544_v34 = vld [vmem:[#allocation18_spill] sm:$0xff] }
  0xbe   :  { %1111 = vmatpush1.msra.mxu1 %v4324_v38  ;;  %1070 = vmatpush2.msra.mxu0 %v4293_v27  ;;  %v10541_v27 = vld [vmem:[#allocation9_spill] sm:$0xff]  ;;  %v10546_v38 = vld [vmem:[#allocation20_spill] sm:$0xff] }
  0xbf   :  { %1112 = vmatprep.subr.mxu1 %v4336_v41  ;;  %1071 = vmatprep.subr.mxu0 %v4305_v32  ;;  %v10543_v32 = vld [vmem:[#allocation11_spill] sm:$0xff]  ;;  %v10548_v41 = vld [vmem:[#allocation22_spill] sm:$0xff] }
  0xc0   :  { %1113 = vmatpush1.msra.mxu1 %v4348_v45  ;;  %1072 = vmatpush2.msra.mxu0 %v4319_v36  ;;  %v10545_v36 = vld [vmem:[#allocation13_spill] sm:$0xff]  ;;  %v10550_v45 = vld [vmem:[#allocation24_spill] sm:$0xff] }
  0xc1   :  { %1114 = vmatprep.subr.mxu1 %v4362_v50  ;;  %1073 = vmatprep.subr.mxu0 %v4331_v1  ;;  %v10547_v1 = vld [vmem:[#allocation15_spill] sm:$0xff]  ;;  %v10552_v50 = vld [vmem:[#allocation26_spill] sm:$0xff] }
  0xc2   :  { %1115 = vmatpush1.msra.mxu1 %v4374_v54  ;;  %1074 = vmatpush2.msra.mxu0 %v4343_v43  ;;  %v10549_v43 = vld [vmem:[#allocation17_spill] sm:$0xff] }
  0xc3   :  { %1116 = vmatprep.subr.mxu1 %v4386_v59  ;;  %1075 = vmatprep.subr.mxu0 %v4355_v47  ;;  %v10551_v47 = vld [vmem:[#allocation19_spill] sm:$0xff]  ;;  %v10553_v54 = vld [vmem:[#allocation21_spill] sm:$0xff]  ;;  %v10554_v59 = vld [vmem:[#allocation28_spill] sm:$0xff] }
  0xc4   :  { %1117 = vmatpush1.msra.mxu1 %v10532_v60  ;;  %1076 = vmatpush2.msra.mxu0 %v10533_v62  ;;  %v10556_v60 = vld [vmem:[#allocation30_spill] sm:$0xff]  ;;  %v10557_v62 = vld [vmem:[#allocation25_spill] sm:$0xff] }
  0xc5   :  { %1118 = vmatprep.subr.mxu1 %v10534_v0  ;;  %1077 = vmatprep.subr.mxu0 %v10535_v5  ;;  %v10558_v0 = vld [vmem:[#allocation32_spill] sm:$0xff]  ;;  %v10559_v5 = vld [vmem:[#allocation27_spill] sm:$0xff] }
  0xc6   :  { %1119 = vmatpush1.msra.mxu1 %v10536_v11  ;;  %1078 = vmatpush2.msra.mxu0 %v10537_v16  ;;  %v10560_v11 = vld [vmem:[#allocation34_spill] sm:$0xff]  ;;  %v10561_v16 = vld [vmem:[#allocation29_spill] sm:$0xff] }
  0xc7   :  { %1120 = vmatprep.subr.mxu1 %v10538_v20  ;;  %1079 = vmatprep.subr.mxu0 %v10539_v23  ;;  %v10562_v20 = vld [vmem:[#allocation36_spill] sm:$0xff]  ;;  %v10563_v23 = vld [vmem:[#allocation31_spill] sm:$0xff] }
  0xc8   :  { %1121 = vmatpush1.msra.mxu1 %v10540_v25  ;;  %1080 = vmatpush2.msra.mxu0 %v10541_v27  ;;  %v10564_v25 = vld [vmem:[#allocation38_spill] sm:$0xff]  ;;  %v10565_v27 = vld [vmem:[#allocation33_spill] sm:$0xff] }
  0xc9   :  { %1122 = vmatprep.subr.mxu1 %v10542_v29  ;;  %1081 = vmatprep.subr.mxu0 %v10543_v32  ;;  %v10566_v29 = vld [vmem:[#allocation40_spill] sm:$0xff]  ;;  %v10567_v32 = vld [vmem:[#allocation35_spill] sm:$0xff] }
  0xca   :  { %1123 = vmatpush1.msra.mxu1 %v10544_v34  ;;  %1082 = vmatpush2.msra.mxu0 %v10545_v36  ;;  %v10568_v34 = vld [vmem:[#allocation42_spill] sm:$0xff]  ;;  %v10569_v36 = vld [vmem:[#allocation37_spill] sm:$0xff] }
  0xcb   :  { %1124 = vmatprep.subr.mxu1 %v10546_v38  ;;  %1083 = vmatprep.subr.mxu0 %v10547_v1  ;;  %v10570_v38 = vld [vmem:[#allocation44_spill] sm:$0xff]  ;;  %v10571_v1 = vld [vmem:[#allocation39_spill] sm:$0xff] }
  0xcc   :  { %1125 = vmatpush1.msra.mxu1 %v10548_v41  ;;  %1084 = vmatpush2.msra.mxu0 %v10549_v43  ;;  %v10572_v41 = vld [vmem:[#allocation46_spill] sm:$0xff]  ;;  %v10573_v43 = vld [vmem:[#allocation41_spill] sm:$0xff] }
  0xcd   :  { %1126 = vmatprep.subr.mxu1 %v10550_v45  ;;  %1085 = vmatprep.subr.mxu0 %v10551_v47  ;;  %v10574_v45 = vld [vmem:[#allocation48_spill] sm:$0xff]  ;;  %v10575_v47 = vld [vmem:[#allocation43_spill] sm:$0xff] }
  0xce   :  { %1127 = vmatpush1.msra.mxu1 %v10552_v50  ;;  %1086 = vmatpush2.msra.mxu0 %v10553_v54  ;;  %v10576_v50 = vld [vmem:[#allocation50_spill] sm:$0xff]  ;;  %v10577_v54 = vld [vmem:[#allocation45_spill] sm:$0xff] }
  0xcf   :  { %1128 = vmatprep.subr.mxu1 %v10554_v59  ;;  %1087 = vmatprep.subr.mxu0 %v10555_v13  ;;  %v10578_v59 = vld [vmem:[#allocation47_spill] sm:$0xff]  ;;  %v10579_v13 = vld [vmem:[#allocation52_spill] sm:$0xff] }
  0xd0   :  { %1129 = vmatpush1.msra.mxu1 %v10556_v60  ;;  %1088 = vmatpush2.msra.mxu0 %v10557_v62  ;;  %v10580_v60 = vld [vmem:[#allocation49_spill] sm:$0xff]  ;;  %v128_v62 = vlaneseq }
  0xd1   :  { %1130 = vmatprep.subr.mxu1 %v10558_v0  ;;  %1089 = vmatprep.subr.mxu0 %v10559_v5  ;;  %v10581_v0 = vld [vmem:[#allocation54_spill] sm:$0xff]  ;;  %v10582_v5 = vld [vmem:[#allocation51_spill] sm:$0xff] }
  0xd2   :  { %1131 = vmatpush1.msra.mxu1 %v10560_v11  ;;  %1090 = vmatpush2.msra.mxu0 %v10561_v16  ;;  %v10583_v11 = vld [vmem:[#allocation56_spill] sm:$0xff]  ;;  %v10584_v16 = vld [vmem:[#allocation59_spill] sm:$0xff] }
  0xd3   :  { %1132 = vmatprep.subr.mxu1 %v10562_v20  ;;  %1091 = vmatprep.subr.mxu0 %v10563_v23  ;;  %v5379_v20 = vshrl.u32 %v128_v62, 7  ;;  %v10586_v23 = vld [vmem:[#allocation63_spill] sm:$0xff] }
  0xd4   :  { %1133 = vmatpush1.msra.mxu1 %v10564_v25  ;;  %1092 = vmatpush2.msra.mxu0 %v10565_v27 }
  0xd5   :  { %1134 = vmatprep.subr.mxu1 %v10566_v29  ;;  %1093 = vmatprep.subr.mxu0 %v10567_v32  ;;  %v10061_v25 = vsub.s32 0, %v5379_v20  ;;  %v10587_v29 = vld [vmem:[#allocation66_spill] sm:$0xff]  ;;  %v10060_v32 = vsub.s32 1, %v5379_v20 }
  0xd6   :  { %1135 = vmatpush1.msra.mxu1 %v10568_v34  ;;  %1094 = vmatpush2.msra.mxu0 %v10569_v36  ;;  %v5395_v36 = vld [vmem:[%s9948_s3] sm:$0x3f] }
  0xd7   :  { %1136 = vmatprep.subr.mxu1 %v10570_v38  ;;  %1095 = vmatprep.subr.mxu0 %v10571_v1  ;;  %v10589_v38 = vld [vmem:[#allocation70_spill] sm:$0xff]  ;;  %v5401_v1 = vrot.slane %v5395_v36, %v10061_v25 }
  0xd8   :  { %1137 = vmatpush1.msra.mxu1 %v10572_v41  ;;  %1096 = vmatpush2.msra.mxu0 %v10573_v43  ;;  %v10590_v41 = vld [vmem:[#allocation73_spill] sm:$0xff]  ;;  %v5408_v43 = vrot.slane %v5395_v36, %v10060_v32 }
  0xd9   :  { %1138 = vmatprep.subr.mxu1 %v10574_v45  ;;  %1097 = vmatprep.subr.mxu0 %v10575_v47  ;;  %v10591_v47 = vld [vmem:[#allocation75_spill] sm:$0xff] }
  0xda   :  { %1139 = vmatpush1.msra.mxu1 %v10576_v50  ;;  %1098 = vmatpush2.msra.mxu0 %v10577_v54  ;;  %v10592_v54 = vld [vmem:[#allocation77_spill] sm:$0xff] }
  0xdb   :  { %1140 = vmatprep.subr.mxu1 %v4681_v9  ;;  %1099 = vmatprep.subr.mxu0 %v10578_v59  ;;  %v10585_v9 = vld [vmem:[#allocation61_spill] sm:$0xff] }
  0xdc   :  { %1141 = vmatpush2.msra.mxu1 %v10579_v13  ;;  %1100 = vmatpush2.msra.mxu0 %v10580_v60  ;;  %v10594_v60 = vld [vmem:[#allocation82_spill] sm:$0xff] }
  0xdd   :  { %1142 = vmatprep.subr.mxu1 %v10581_v0  ;;  %1179 = vmatprep.subr.mxu0 %v10582_v5  ;;  %v10596_v0 = vld [vmem:[#allocation84_spill] sm:$0xff] }
  0xde   :  { %1143 = vmatpush2.msra.mxu1 %v10583_v11 }
  0xdf   :  { %1144 = vmatprep.subr.mxu1 %v4731_v52  ;;  %v10588_v52 = vld [vmem:[#allocation68_spill] sm:$0xff] }
  0xe0   :  { %1145 = vmatpush2.msra.mxu1 %v10584_v16  ;;  %v10598_v16 = vld [vmem:[#allocation87_spill] sm:$0xff] }
  0xe1   :  { %1146 = vmatprep.subr.mxu1 %v10585_v9  ;;  %v10599_v9 = vld [vmem:[#allocation89_spill] sm:$0xff] }
  0xe2   :  { %1147 = vmatpush2.msra.mxu1 %v10586_v23  ;;  %v10600_v23 = vld [vmem:[#allocation91_spill] sm:$0xff] }
  0xe3   :  { %v5384_v27 = vpop.f32.mrf.mxu0  ;;  %1148 = vmatprep.subr.mxu1 %v4781_v3 }
  0xe4   :  { %1149 = vmatpush2.msra.mxu1 %v10587_v29 }
  0xe5   :  { %v5389_v34 = vpop.f32.mrf.mxu0  ;;  %1150 = vmatprep.subr.mxu1 %v10588_v52 }
  0xe6   :  { %1151 = vmatpush2.msra.mxu1 %v10589_v38  ;;  %v10602_v38 = vld [vmem:[#allocation94_spill] sm:$0xff] }
  0xe7   :  { %1152 = vmatprep.subr.mxu1 %v4831_v18  ;;  %v10593_v18 = vld [vmem:[#allocation80_spill] sm:$0xff] }
  0xe8   :  { %v230_v3 = vpop.f32.mrf.mxu0  ;;  %1153 = vmatpush2.msra.mxu1 %v10590_v41 }
  0xe9   :  { %v5411_v45 = vadd.f32 %v230_v3, %v5401_v1  ;;  %1154 = vmatprep.subr.mxu1 %v10591_v47  ;;  %v10604_v3 = vld [vmem:[#allocation97_spill] sm:$0xff]  ;;  %v10605_v47 = vld [vmem:[#allocation99_spill] sm:$0xff] }
  0xea   :  { %v232_v50 = vpop.f32.mrf.mxu0  ;;  %1155 = vmatpush2.msra.mxu1 %v10592_v54 }
  0xeb   :  { %v5416_v59 = vadd.f32 %v232_v50, %v5408_v43  ;;  %1156 = vmatprep.subr.mxu1 %v4881_v63 }
  0xec   :  { %1157 = vmatpush2.msra.mxu1 %v10593_v18  ;;  %v10608_v18 = vld [vmem:[#allocation103_spill] sm:$0xff] }
  0xed   :  { %v236_v13 = vpop.f32.mrf.mxu0  ;;  %1158 = vmatprep.subr.mxu1 %v10594_v60 }
  0xee   :  { %v5422_v62 = vadd.f32 %v236_v13, %v5401_v1  ;;  %1159 = vmatpush2.msra.mxu1 %v10596_v0 }
  0xef   :  { %v238_v5 = vpop.f32.mrf.mxu0  ;;  %1160 = vmatprep.subr.mxu1 %v4931_v2 }
  0xf0   :  { %10595 = vst [vmem:[#allocation6_spill] sm:$0xff] %v5422_v62  ;;  %v5427_v11 = vadd.f32 %v238_v5, %v5408_v43  ;;  %1161 = vmatpush2.msra.mxu1 %v10598_v16 }
  0xf1   :  { %1162 = vmatprep.subr.mxu1 %v10599_v9 }
  0xf2   :  { %10597 = vst [vmem:[#allocation3_spill] sm:$0xff] %v5427_v11  ;;  %v242_v63 = vpop.f32.mrf.mxu0  ;;  %1163 = vmatpush2.msra.mxu1 %v10600_v23 }
  0xf3   :  { %v5433_v29 = vadd.f32 %v242_v63, %v5401_v1  ;;  %1164 = vmatprep.subr.mxu1 %v4981_v61 }
  0xf4   :  { %v244_v52 = vpop.f32.mrf.mxu0  ;;  %1165 = vmatpush2.msra.mxu1 %v10602_v38 }
  0xf5   :  { %10601 = vst [vmem:[#allocation8_spill] sm:$0xff] %v5433_v29  ;;  %v5438_v2 = vadd.f32 %v244_v52, %v5408_v43  ;;  %1166 = vmatprep.subr.mxu1 %v5005_v14  ;;  %v5455_v14 = vld [vmem:[%s9947_s2 + $0x2d8] sm:$0xff]  ;;  %v5473_v52 = vpop.f32.mrf.mxu1 }
  0xf6   :  { %1167 = vmatpush2.msra.mxu1 %v10604_v3 }
  0xf7   :  { %10603 = vst [vmem:[#allocation4_spill] sm:$0xff] %v5438_v2  ;;  %v248_v41 = vpop.f32.mrf.mxu0  ;;  %1168 = vmatprep.subr.mxu1 %v10605_v47 }
  0xf8   :  { %v5444_v50 = vadd.f32 %v248_v41, %v5401_v1  ;;  %1169 = vmatpush2.msra.mxu1 %v5043_v31  ;;  %v5478_v41 = vpop.f32.mrf.mxu1 }
  0xf9   :  { %v250_v54 = vpop.f32.mrf.mxu0  ;;  %1170 = vmatprep.subr.mxu1 %v5055_v56  ;;  %10615 = vst [vmem:[#allocation18_spill] sm:$0xff] %v5478_v41 }
  0xfa   :  { %10606 = vst [vmem:[#allocation10_spill] sm:$0xff] %v5444_v50  ;;  %v5449_v61 = vadd.f32 %v250_v54, %v5408_v43  ;;  %1171 = vmatpush2.msra.mxu1 %v10608_v18 }
  0xfb   :  { %1308 = vmatprep.subr.mxu1 %v5455_v14 }
  0xfc   :  { %10607 = vst [vmem:[#allocation5_spill] sm:$0xff] %v5449_v61  ;;  %v254_v13 = vpop.f32.mrf.mxu0  ;;  %v10632_v61 = vsub.s32 1, %v5379_v20 }
  0xfd   :  { %v5459_v60 = vadd.f32 %v254_v13, %v5401_v1 }
  0xfe   :  { %v256_v31 = vpop.f32.mrf.mxu0 }
  0xff   :  { %10609 = vst [vmem:[#allocation12_spill] sm:$0xff] %v5459_v60  ;;  %v5462_v0 = vadd.f32 %v256_v31, %v5408_v43 }
 0x101   :  { %10610 = vst [vmem:[#allocation7_spill] sm:$0xff] %v5462_v0  ;;  %v260_v56 = vpop.f32.mrf.mxu0 }
 0x102   :  { %v5465_v5 = vadd.f32 %v260_v56, %v5401_v1 }
 0x103   :  { %v262_v16 = vpop.f32.mrf.mxu0 }
 0x104   :  { %10611 = vst [vmem:[#allocation14_spill] sm:$0xff] %v5465_v5  ;;  %v5468_v9 = vadd.f32 %v262_v16, %v5408_v43 }
 0x106   :  { %10612 = vst [vmem:[#allocation9_spill] sm:$0xff] %v5468_v9  ;;  %v266_v63 = vpop.f32.mrf.mxu0  ;;  %v10627_v9 = vsub.s32 0, %v5379_v20 }
 0x107   :  { %v5471_v23 = vadd.f32 %v266_v63, %v5401_v1 }
 0x108   :  { %v268_v38 = vpop.f32.mrf.mxu0 }
 0x109   :  { %10613 = vst [vmem:[#allocation16_spill] sm:$0xff] %v5471_v23  ;;  %v5476_v3 = vadd.f32 %v268_v38, %v5408_v43  ;;  %v5509_v23 = vld [vmem:[%s9949_s4] sm:$0x3f] }
 0x10a   :  { %v5514_v5 = vrot.slane %v5509_v23, %v10627_v9  ;;  %v5528_v9 = vrot.slane %v5509_v23, %v10632_v61 }
 0x10b   :  { %10614 = vst [vmem:[#allocation11_spill] sm:$0xff] %v5476_v3 }
 0x10c   :  { %10628 = vst [vmem:[#allocation30_spill] sm:$0xff] %v5514_v5 }
 0x10e   :  { %v5480_v47 = vpop.f32.mrf.mxu1 }
 0x110   :  { %v5482_v54 = vpop.f32.mrf.mxu1 }
 0x111   :  { %10616 = vst [vmem:[#allocation13_spill] sm:$0xff] %v5482_v54 }
 0x113   :  { %v5484_v18 = vpop.f32.mrf.mxu1 }
 0x114   :  { %10617 = vst [vmem:[#allocation20_spill] sm:$0xff] %v5484_v18 }
 0x115   :  { %v5486_v13 = vpop.f32.mrf.mxu1 }
 0x116   :  { %10618 = vst [vmem:[#allocation15_spill] sm:$0xff] %v5486_v13 }
 0x118   :  { %v5488_v31 = vpop.f32.mrf.mxu1 }
 0x119   :  { %10619 = vst [vmem:[#allocation22_spill] sm:$0xff] %v5488_v31 }
 0x11a   :  { %v5490_v56 = vpop.f32.mrf.mxu1 }
 0x11b   :  { %10620 = vst [vmem:[#allocation17_spill] sm:$0xff] %v5490_v56 }
 0x11d   :  { %v5492_v16 = vpop.f32.mrf.mxu1 }
 0x11e   :  { %10621 = vst [vmem:[#allocation24_spill] sm:$0xff] %v5492_v16 }
 0x11f   :  { %v5494_v63 = vpop.f32.mrf.mxu1 }
 0x120   :  { %10622 = vst [vmem:[#allocation19_spill] sm:$0xff] %v5494_v63 }
 0x122   :  { %v5496_v38 = vpop.f32.mrf.mxu1 }
 0x123   :  { %10623 = vst [vmem:[#allocation26_spill] sm:$0xff] %v5496_v38  ;;  %v5516_v38 = vpop.f32.mrf.mxu0 }
 0x124   :  { %v5498_v32 = vpop.f32.mrf.mxu1  ;;  %10629 = vst [vmem:[#allocation25_spill] sm:$0xff] %v5516_v38 }
 0x125   :  { %10624 = vst [vmem:[#allocation21_spill] sm:$0xff] %v5498_v32 }
 0x127   :  { %v5500_v25 = vpop.f32.mrf.mxu1 }
 0x128   :  { %10625 = vst [vmem:[#allocation28_spill] sm:$0xff] %v5500_v25  ;;  %v225_v25 = vadd.f32 %v5384_v27, %v5401_v1 }
 0x129   :  { %v5502_v41 = vpop.f32.mrf.mxu1 }
 0x12c   :  { %v5504_v3 = vpop.f32.mrf.mxu1 }
 0x12d   :  { %10626 = vst [vmem:[#allocation23_spill] sm:$0xff] %v5504_v3  ;;  %v5521_v3 = vpop.f32.mrf.mxu0 }
 0x12e   :  { %v381_v54 = vpop.f32.mrf.mxu1  ;;  %10630 = vst [vmem:[#allocation32_spill] sm:$0xff] %v5521_v3 }
 0x132   :  { %v835_v13 = vpop.f32.mrf.mxu1 }
 0x133   :  { %v836_v0 = vadd.f32 %v835_v13, %v5514_v5 }
 0x134   :  { %v837_v38 = vpop.f32.mrf.mxu1 }
 0x135   :  { %v994_v60 = vadd.f32 %v836_v0, %v225_v25  ;;  %v838_v27 = vadd.f32 %v837_v38, %v5528_v9  ;;  %v227_v25 = vadd.f32 %v5389_v34, %v5408_v43  ;;  %v138_v43 = vsub.s32 2, %v5379_v20 }
 0x137   :  { %v2920_v16 = vmul.f32 -1.442695, %v994_v60  ;;  %v5523_v56 = vpop.f32.mrf.mxu0  ;;  %v1001_v60 = vadd.f32 %v838_v27, %v227_v25 }
 0x138   :  { %10631 = vst [vmem:[#allocation27_spill] sm:$0xff] %v5523_v56 }
 0x139   :  { %2969 = vpow2.f32 %v2920_v16  ;;  %v5530_v50 = vpop.f32.mrf.mxu0  ;;  %v2921_v16 = vmul.f32 -1.442695, %v1001_v60  ;;  %v142_v60 = vsub.s32 3, %v5379_v20 }
 0x13a   :  { %10633 = vst [vmem:[#allocation34_spill] sm:$0xff] %v5530_v50 }
 0x13b   :  { %2971 = vpow2.f32 %v2921_v16  ;;  %v5561_v16 = vrot.slane %v5395_v36, %v138_v43  ;;  %v5568_v2 = vrot.slane %v5395_v36, %v142_v60 }
 0x13c   :  { %v5532_v31 = vpop.f32.mrf.mxu0 }
 0x13d   :  { %10634 = vst [vmem:[#allocation29_spill] sm:$0xff] %v5532_v31 }
 0x13e   :  { %v5535_v1 = vpop.f32.mrf.mxu0 }
 0x13f   :  { %10635 = vst [vmem:[#allocation36_spill] sm:$0xff] %v5535_v1 }
 0x141   :  { %v5539_v0 = vpop.f32.mrf.mxu0 }
 0x142   :  { %10636 = vst [vmem:[#allocation31_spill] sm:$0xff] %v5539_v0  ;;  %v5558_v0 = vrot.slane %v5509_v23, %v138_v43 }
 0x143   :  { %v5541_v13 = vpop.f32.mrf.mxu0 }
 0x144   :  { %10637 = vst [vmem:[#allocation38_spill] sm:$0xff] %v5541_v13 }
 0x146   :  { %v2970_v61 = vpop.eup %2969  ;;  %v5543_v3 = vpop.f32.mrf.mxu0 }
 0x147   :  { %10638 = vst [vmem:[#allocation33_spill] sm:$0xff] %v5543_v3  ;;  %v998_v56 = vadd.f32 1.0, %v2970_v61  ;;  %v5564_v61 = vrot.slane %v5509_v23, %v142_v60 }
 0x148   :  { %v5545_v50 = vpop.f32.mrf.mxu0  ;;  %v2972_v25 = vpop.eup %2971 }
 0x149   :  { %10639 = vst [vmem:[#allocation40_spill] sm:$0xff] %v5545_v50  ;;  %2973 = vrcp.f32 %v998_v56  ;;  %v1005_v56 = vadd.f32 1.0, %v2972_v25  ;;  %10644 = vst [vmem:[#allocation39_spill] sm:$0xff] %v5564_v61  ;;  %v382_v25 = vadd.f32 %v381_v54, %v5568_v2 }
 0x14b   :  { %v5547_v31 = vpop.f32.mrf.mxu0  ;;  %2975 = vrcp.f32 %v1005_v56 }
 0x14c   :  { %10640 = vst [vmem:[#allocation35_spill] sm:$0xff] %v5547_v31 }
 0x14d   :  { %v5549_v38 = vpop.f32.mrf.mxu0 }
 0x14e   :  { %10641 = vst [vmem:[#allocation42_spill] sm:$0xff] %v5549_v38  ;;  %v338_v38 = vadd.f32 %v5473_v52, %v5561_v16 }
 0x150   :  { %v5551_v1 = vpop.f32.mrf.mxu0 }
 0x151   :  { %10642 = vst [vmem:[#allocation37_spill] sm:$0xff] %v5551_v1 }
 0x152   :  { %v5553_v34 = vpop.f32.mrf.mxu0 }
 0x153   :  { %10643 = vst [vmem:[#allocation44_spill] sm:$0xff] %v5553_v34 }
 0x155   :  { %v492_v27 = vpop.f32.mrf.mxu0 }
 0x156   :  { %v2974_v50 = vpop.eup %2973 }
 0x157   :  { %v494_v13 = vpop.f32.mrf.mxu0 }
 0x158   :  { %v2976_v62 = vpop.eup %2975 }
 0x15a   :  { %v906_v3 = vpop.f32.mrf.mxu0 }
 0x15b   :  { %v907_v63 = vadd.f32 %v906_v3, %v5558_v0  ;;  %v1011_v3 = vsub.f32 1.0, %v2976_v62 }
 0x15c   :  { %v908_v29 = vpop.f32.mrf.mxu0 }
 0x15d   :  { %v1008_v31 = vmul.f32 %v2974_v50, %v907_v63  ;;  %v909_v43 = vadd.f32 %v908_v29, %v5564_v61  ;;  %v146_v29 = vsub.s32 4, %v5379_v20 }
 0x15f   :  { %v1009_v18 = vadd.f32 %v1008_v31, %v338_v38  ;;  %v1014_v32 = vadd.f32 %v909_v43, %v382_v25  ;;  %v5582_v54 = vrot.slane %v5509_v23, %v146_v29  ;;  %v150_v38 = vsub.s32 5, %v5379_v20 }
 0x161   :  { %2977 = vtanh.f32 %v1009_v18  ;;  %v2922_v11 = vmul.f32 -1.442695, %v1014_v32  ;;  %v5585_v32 = vrot.slane %v5395_v36, %v146_v29 }
 0x163   :  { %2979 = vpow2.f32 %v2922_v11  ;;  %v493_v18 = vadd.f32 %v492_v27, %v5585_v32 }
 0x16e   :  { %v2978_v34 = vpop.eup %2977 }
 0x16f   :  { %v1012_v60 = vmul.f32 %v2978_v34, %v1011_v3  ;;  %v5591_v34 = vrot.slane %v5509_v23, %v150_v38  ;;  %v5595_v3 = vrot.slane %v5395_v36, %v150_v38  ;;  %v10645_v36 = vld [vmem:[#allocation53_spill] sm:$0xff]  ;;  %v5621_v38 = vld [vmem:[%s9947_s2 + $0x2a8] sm:$0xff] }
 0x170   :  { %v2980_v50 = vpop.eup %2979 }
 0x171   :  { %v5574_v1 = vadd.f32 %v2976_v62, %v1012_v60  ;;  %v1018_v52 = vadd.f32 1.0, %v2980_v50  ;;  %v495_v27 = vadd.f32 %v494_v13, %v5595_v3  ;;  %v10646_v13 = vld [vmem:[#allocation55_spill] sm:$0xff] }
 0x173   :  { %1034 = vst [vmem:[%s9950_s5] sm:$0xff] %v5574_v1  ;;  %2981 = vrcp.f32 %v1018_v52 }
 0x17b   :  { %v977_v11 = vpop.f32.mrf.mxu1 }
 0x17c   :  { %v978_v62 = vadd.f32 %v977_v11, %v5582_v54 }
 0x17d   :  { %v979_v56 = vpop.f32.mrf.mxu1 }
 0x17e   :  { %v1021_v31 = vadd.f32 %v978_v62, %v493_v18  ;;  %v980_v25 = vadd.f32 %v979_v56, %v5591_v34  ;;  %v10648_v56 = vld [vmem:[#allocation58_spill] sm:$0xff] }
 0x180   :  { %v2923_v63 = vmul.f32 -1.442695, %v1021_v31  ;;  %v2982_v43 = vpop.eup %2981  ;;  %v5614_v31 = vld [vmem:[%s9947_s2 + $0x2d0] sm:$0xff] }
 0x181   :  { %v1028_v60 = vmul.f32 %v2982_v43, %v980_v25  ;;  %v5628_v43 = vld [vmem:[%s9947_s2 + $0x2a0] sm:$0xff]  ;;  %v10649_v25 = vld [vmem:[#allocation60_spill] sm:$0xff] }
 0x182   :  { %2983 = vpow2.f32 %v2923_v63  ;;  %v10647_v63 = vld [vmem:[#allocation57_spill] sm:$0xff] }
 0x183   :  { %v1029_v52 = vadd.f32 %v1028_v60, %v495_v27  ;;  %v5635_v60 = vld [vmem:[%s9947_s2 + $0x278] sm:$0xff] }
 0x184   :  { %v10650_v27 = vld [vmem:[#allocation62_spill] sm:$0xff] }
 0x18f   :  { %v2984_v50 = vpop.eup %2983 }
 0x190   :  { %v1025_v29 = vadd.f32 1.0, %v2984_v50  ;;  %v5642_v50 = vld [vmem:[%s9947_s2 + $0x270] sm:$0xff] }
 0x192   :  { %2985 = vrcp.f32 %v1025_v29  ;;  %v10651_v29 = vld [vmem:[#allocation64_spill] sm:$0xff] }
 0x193   :  { %2987 = vtanh.f32 %v1029_v52  ;;  %v5649_v52 = vld [vmem:[%s9947_s2 + $0x248] sm:$0xff] }
 0x19f   :  { %v2986_v11 = vpop.eup %2985 }
 0x1a0   :  { %v1031_v20 = vsub.f32 1.0, %v2986_v11  ;;  %v2988_v18 = vpop.eup %2987 }
 0x1a2   :  { %v1032_v23 = vmul.f32 %v2988_v18, %v1031_v20  ;;  %v5656_v20 = vld [vmem:[%s9947_s2 + $0x240] sm:$0xff] }
 0x1a3   :  { %v10653_v18 = vld [vmem:[#allocation67_spill] sm:$0xff] }
 0x1a4   :  { %v5598_v62 = vadd.f32 %v2986_v11, %v1032_v23  ;;  %v10652_v11 = vld [vmem:[#allocation65_spill] sm:$0xff]  ;;  %v5663_v23 = vld [vmem:[%s9947_s2 + $0x218] sm:$0xff] }
 0x1a6   :  { %2924 = vst [vmem:[%s9950_s5 + $0x78] sm:$0xff] %v5598_v62  ;;  %1101 = vmatprep.mubr.f32.mxu0 %v5598_v62  ;;  %1172 = vmatprep.mubr.f32.mxu1 %v5598_v62 }
 0x1a7   :  { %1102 = vmatmul.mubr.f32.vlgmr.msra.gmra.mxu0 %v5574_v1  ;;  %1173 = vmatmul.mubr.f32.vlgmr.msra.gmra.mxu1 %v5574_v1 }
 0x1a8   :  { %1180 = vmatpush1.msra.mxu0 %v10645_v36  ;;  %1243 = vmatprep.mubr.f32.mxu0 %v5598_v62  ;;  %v10654_v36 = vld [vmem:[#allocation69_spill] sm:$0xff] }
 0x1a9   :  { %1181 = vmatprep.subr.mxu0 %v10646_v13  ;;  %1309 = vmatpush1.msra.mxu1 %v5614_v31  ;;  %v5670_v13 = vld [vmem:[%s9947_s2 + $0x210] sm:$0xff] }
 0x1aa   :  { %1182 = vmatpush1.msra.mxu0 %v10647_v63  ;;  %1310 = vmatprep.subr.mxu1 %v5621_v38  ;;  %v10655_v63 = vld [vmem:[#allocation71_spill] sm:$0xff] }
 0x1ab   :  { %1183 = vmatprep.subr.mxu0 %v10648_v56  ;;  %1311 = vmatpush1.msra.mxu1 %v5628_v43  ;;  %v5677_v56 = vld [vmem:[%s9947_s2 + $0x1e8] sm:$0xff] }
 0x1ac   :  { %1184 = vmatpush1.msra.mxu0 %v10649_v25  ;;  %1312 = vmatprep.subr.mxu1 %v5635_v60  ;;  %v10656_v25 = vld [vmem:[#allocation72_spill] sm:$0xff] }
 0x1ad   :  { %1185 = vmatprep.subr.mxu0 %v10650_v27  ;;  %1313 = vmatpush1.msra.mxu1 %v5642_v50  ;;  %v5684_v27 = vld [vmem:[%s9947_s2 + $0x1e0] sm:$0xff] }
 0x1ae   :  { %1186 = vmatpush1.msra.mxu0 %v10651_v29  ;;  %1314 = vmatprep.subr.mxu1 %v5649_v52  ;;  %v10657_v29 = vld [vmem:[#allocation74_spill] sm:$0xff] }
 0x1af   :  { %1187 = vmatprep.subr.mxu0 %v10652_v11  ;;  %1315 = vmatpush1.msra.mxu1 %v5656_v20  ;;  %v5691_v11 = vld [vmem:[%s9947_s2 + $0x1b8] sm:$0xff] }
 0x1b0   :  { %1188 = vmatpush1.msra.mxu0 %v10653_v18  ;;  %1316 = vmatprep.subr.mxu1 %v5663_v23  ;;  %10658 = vst [vmem:[#allocation46_spill] sm:$0xff] %v5691_v11  ;;  %v10659_v18 = vld [vmem:[#allocation76_spill] sm:$0xff] }
 0x1b1   :  { %1189 = vmatprep.subr.mxu0 %v10654_v36  ;;  %1317 = vmatpush1.msra.mxu1 %v5670_v13  ;;  %v5698_v36 = vld [vmem:[%s9947_s2 + $0x1b0] sm:$0xff] }
 0x1b2   :  { %1190 = vmatpush1.msra.mxu0 %v10655_v63  ;;  %1318 = vmatprep.subr.mxu1 %v5677_v56  ;;  %10660 = vst [vmem:[#allocation41_spill] sm:$0xff] %v5698_v36  ;;  %v10661_v63 = vld [vmem:[#allocation78_spill] sm:$0xff] }
 0x1b3   :  { %1191 = vmatprep.subr.mxu0 %v10656_v25  ;;  %1319 = vmatpush1.msra.mxu1 %v5684_v27  ;;  %v5705_v25 = vld [vmem:[%s9947_s2 + $0x188] sm:$0xff] }
 0x1b4   :  { %1192 = vmatpush1.msra.mxu0 %v10657_v29  ;;  %1320 = vmatprep.subr.mxu1 %v5691_v11  ;;  %10662 = vst [vmem:[#allocation48_spill] sm:$0xff] %v5705_v25  ;;  %v10663_v29 = vld [vmem:[#allocation79_spill] sm:$0xff]  ;;  %v10665_v11 = vld [vmem:[#allocation81_spill] sm:$0xff] }
 0x1b5   :  { %1193 = vmatprep.subr.mxu0 %v10659_v18  ;;  %1321 = vmatpush1.msra.mxu1 %v5698_v36  ;;  %v5712_v18 = vld [vmem:[%s9947_s2 + $0x180] sm:$0xff] }
 0x1b6   :  { %1194 = vmatpush1.msra.mxu0 %v10661_v63  ;;  %1322 = vmatprep.subr.mxu1 %v5705_v25  ;;  %10664 = vst [vmem:[#allocation43_spill] sm:$0xff] %v5712_v18  ;;  %v5719_v63 = vld [vmem:[%s9947_s2 + $0x158] sm:$0xff]  ;;  %v10667_v36 = vld [vmem:[#allocation83_spill] sm:$0xff]  ;;  %v10669_v25 = vld [vmem:[#allocation85_spill] sm:$0xff] }
 0x1b7   :  { %1195 = vmatprep.subr.mxu0 %v10663_v29  ;;  %1323 = vmatpush1.msra.mxu1 %v5712_v18  ;;  %10666 = vst [vmem:[#allocation50_spill] sm:$0xff] %v5719_v63  ;;  %v5726_v29 = vld [vmem:[%s9947_s2 + $0x150] sm:$0xff]  ;;  %v10671_v18 = vld [vmem:[#allocation86_spill] sm:$0xff] }
 0x1b8   :  { %1196 = vmatpush1.msra.mxu0 %v10665_v11  ;;  %1324 = vmatprep.subr.mxu1 %v5719_v63  ;;  %10668 = vst [vmem:[#allocation45_spill] sm:$0xff] %v5726_v29  ;;  %v5733_v11 = vld [vmem:[%s9947_s2 + $0x128] sm:$0xff] }
 0x1b9   :  { %1197 = vmatprep.subr.mxu0 %v10667_v36  ;;  %1325 = vmatpush1.msra.mxu1 %v5726_v29  ;;  %10670 = vst [vmem:[#allocation47_spill] sm:$0xff] %v5733_v11  ;;  %v5740_v36 = vld [vmem:[%s9947_s2 + $0x120] sm:$0xff]  ;;  %v10673_v63 = vld [vmem:[#allocation88_spill] sm:$0xff]  ;;  %v10675_v29 = vld [vmem:[#allocation90_spill] sm:$0xff] }
 0x1ba   :  { %1198 = vmatpush1.msra.mxu0 %v10669_v25  ;;  %1326 = vmatprep.subr.mxu1 %v5733_v11  ;;  %10672 = vst [vmem:[#allocation52_spill] sm:$0xff] %v5740_v36  ;;  %v5747_v25 = vld [vmem:[%s9947_s2 + $0xf8] sm:$0xff]  ;;  %v10677_v11 = vld [vmem:[#allocation92_spill] sm:$0xff] }
 0x1bb   :  { %1199 = vmatprep.subr.mxu0 %v10671_v18  ;;  %1327 = vmatpush1.msra.mxu1 %v5740_v36  ;;  %10674 = vst [vmem:[#allocation49_spill] sm:$0xff] %v5747_v25  ;;  %v5754_v18 = vld [vmem:[%s9947_s2 + $0xf0] sm:$0xff] }
 0x1bc   :  { %1200 = vmatpush1.msra.mxu0 %v10673_v63  ;;  %1328 = vmatprep.subr.mxu1 %v5747_v25  ;;  %10676 = vst [vmem:[#allocation54_spill] sm:$0xff] %v5754_v18  ;;  %v5761_v63 = vld [vmem:[%s9947_s2 + $0xc8] sm:$0xff]  ;;  %v10679_v36 = vld [vmem:[#allocation93_spill] sm:$0xff]  ;;  %v10681_v25 = vld [vmem:[#allocation95_spill] sm:$0xff] }
 0x1bd   :  { %1201 = vmatprep.subr.mxu0 %v10675_v29  ;;  %1329 = vmatpush1.msra.mxu1 %v5754_v18  ;;  %10678 = vst [vmem:[#allocation51_spill] sm:$0xff] %v5761_v63  ;;  %v5768_v29 = vld [vmem:[%s9947_s2 + $0xc0] sm:$0xff]  ;;  %v10683_v18 = vld [vmem:[#allocation96_spill] sm:$0xff] }
 0x1be   :  { %1202 = vmatpush1.msra.mxu0 %v10677_v11  ;;  %1330 = vmatprep.subr.mxu1 %v5761_v63  ;;  %10680 = vst [vmem:[#allocation56_spill] sm:$0xff] %v5768_v29  ;;  %v5775_v11 = vld [vmem:[%s9947_s2 + $0x98] sm:$0xff] }
 0x1bf   :  { %1203 = vmatprep.subr.mxu0 %v10679_v36  ;;  %1331 = vmatpush1.msra.mxu1 %v5768_v29  ;;  %10682 = vst [vmem:[#allocation59_spill] sm:$0xff] %v5775_v11  ;;  %v5782_v36 = vld [vmem:[%s9947_s2 + $0x90] sm:$0xff]  ;;  %v10685_v63 = vld [vmem:[#allocation98_spill] sm:$0xff]  ;;  %v10687_v29 = vld [vmem:[#allocation100_spill] sm:$0xff] }
 0x1c0   :  { %1204 = vmatpush1.msra.mxu0 %v10681_v25  ;;  %1332 = vmatprep.subr.mxu1 %v5775_v11  ;;  %10684 = vst [vmem:[#allocation61_spill] sm:$0xff] %v5782_v36  ;;  %v5789_v25 = vld [vmem:[%s9947_s2 + $0x68] sm:$0xff]  ;;  %v10689_v11 = vld [vmem:[#allocation101_spill] sm:$0xff] }
 0x1c1   :  { %1205 = vmatprep.subr.mxu0 %v10683_v18  ;;  %1333 = vmatpush1.msra.mxu1 %v5782_v36  ;;  %10686 = vst [vmem:[#allocation63_spill] sm:$0xff] %v5789_v25  ;;  %v5796_v18 = vld [vmem:[%s9947_s2 + $0x60] sm:$0xff]  ;;  %v10691_v36 = vld [vmem:[#allocation102_spill] sm:$0xff] }
 0x1c2   :  { %1206 = vmatpush1.msra.mxu0 %v10685_v63  ;;  %1334 = vmatprep.subr.mxu1 %v5789_v25  ;;  %10688 = vst [vmem:[#allocation66_spill] sm:$0xff] %v5796_v18  ;;  %v5803_v63 = vld [vmem:[%s9947_s2 + $0x38] sm:$0xff]  ;;  %v10692_v25 = vld [vmem:[#allocation104_spill] sm:$0xff] }
 0x1c3   :  { %1207 = vmatprep.subr.mxu0 %v10687_v29  ;;  %1335 = vmatpush1.msra.mxu1 %v5796_v18  ;;  %10690 = vst [vmem:[#allocation68_spill] sm:$0xff] %v5803_v63  ;;  %v5810_v29 = vld [vmem:[%s9947_s2 + $0x30] sm:$0xff] }
 0x1c4   :  { %1208 = vmatpush1.msra.mxu0 %v10689_v11  ;;  %1336 = vmatprep.subr.mxu1 %v5803_v63  ;;  %v5817_v11 = vld [vmem:[%s9947_s2 + $0x8] sm:$0xff]  ;;  %v10693_v18 = vld [vmem:[#allocation105_spill] sm:$0xff]  ;;  %v10694_v63 = vld [vmem:[#allocation106_spill] sm:$0xff] }
 0x1c5   :  { %1209 = vmatprep.subr.mxu0 %v10691_v36  ;;  %1337 = vmatpush1.msra.mxu1 %v5810_v29  ;;  %v5824_v36 = vld [vmem:[%s9947_s2] sm:$0xff] }
 0x1c6   :  { %1210 = vmatpush1.msra.mxu0 %v10692_v25  ;;  %1338 = vmatprep.subr.mxu1 %v5817_v11  ;;  %v5831_v25 = vld [vmem:[%s9947_s2 + $0x5d8] sm:$0xff] }
 0x1c7   :  { %1211 = vmatprep.subr.mxu0 %v10693_v18  ;;  %1339 = vmatpush1.msra.mxu1 %v5824_v36  ;;  %v5838_v18 = vld [vmem:[%s9947_s2 + $0x5d0] sm:$0xff] }
 0x1c8   :  { %1212 = vmatpush2.msra.mxu0 %v10694_v63  ;;  %1340 = vmatprep.subr.mxu1 %v5831_v25  ;;  %v5845_v63 = vld [vmem:[%s9947_s2 + $0x5a8] sm:$0xff] }
 0x1c9   :  { %1213 = vmatprep.subr.mxu0 %v5095_v49  ;;  %1341 = vmatpush2.msra.mxu1 %v5838_v18  ;;  %v5852_v49 = vld [vmem:[%s9947_s2 + $0x5a0] sm:$0xff] }
 0x1ca   :  { %1214 = vmatpush2.msra.mxu0 %v5101_v58  ;;  %1342 = vmatprep.subr.mxu1 %v5845_v63  ;;  %v5859_v58 = vld [vmem:[%s9947_s2 + $0x578] sm:$0xff] }
 0x1cb   :  { %1215 = vmatprep.subr.mxu0 %v5108_v7  ;;  %1343 = vmatpush2.msra.mxu1 %v5852_v49  ;;  %v5866_v7 = vld [vmem:[%s9947_s2 + $0x570] sm:$0xff] }
 0x1cc   :  { %1216 = vmatpush2.msra.mxu0 %v5115_v22  ;;  %1344 = vmatprep.subr.mxu1 %v5859_v58  ;;  %v5873_v22 = vld [vmem:[%s9947_s2 + $0x548] sm:$0xff] }
 0x1cd   :  { %1217 = vmatprep.subr.mxu0 %v5122_v40  ;;  %1345 = vmatpush2.msra.mxu1 %v5866_v7  ;;  %v5880_v40 = vld [vmem:[%s9947_s2 + $0x540] sm:$0xff] }
 0x1ce   :  { %1218 = vmatpush2.msra.mxu0 %v5129_v4  ;;  %1346 = vmatprep.subr.mxu1 %v5873_v22  ;;  %v5887_v4 = vld [vmem:[%s9947_s2 + $0x518] sm:$0xff] }
 0x1cf   :  { %1219 = vmatprep.subr.mxu0 %v5136_v6  ;;  %1347 = vmatpush2.msra.mxu1 %v5880_v40  ;;  %v5894_v6 = vld [vmem:[%s9947_s2 + $0x510] sm:$0xff] }
 0x1d0   :  { %1220 = vmatpush2.msra.mxu0 %v5143_v8  ;;  %1348 = vmatprep.subr.mxu1 %v5887_v4  ;;  %v5901_v8 = vld [vmem:[%s9947_s2 + $0x4e8] sm:$0xff] }
 0x1d1   :  { %1221 = vmatprep.subr.mxu0 %v5150_v10  ;;  %1349 = vmatpush2.msra.mxu1 %v5894_v6  ;;  %v5908_v10 = vld [vmem:[%s9947_s2 + $0x4e0] sm:$0xff] }
 0x1d2   :  { %1222 = vmatpush2.msra.mxu0 %v5157_v12  ;;  %1350 = vmatprep.subr.mxu1 %v5901_v8  ;;  %v5915_v12 = vld [vmem:[%s9947_s2 + $0x4b8] sm:$0xff] }
 0x1d3   :  { %1223 = vmatprep.subr.mxu0 %v5164_v15  ;;  %1351 = vmatpush2.msra.mxu1 %v5908_v10  ;;  %v5922_v15 = vld [vmem:[%s9947_s2 + $0x4b0] sm:$0xff] }
 0x1d4   :  { %1224 = vmatpush2.msra.mxu0 %v5171_v17  ;;  %1352 = vmatprep.subr.mxu1 %v5915_v12  ;;  %v5929_v17 = vld [vmem:[%s9947_s2 + $0x488] sm:$0xff] }
 0x1d5   :  { %1225 = vmatprep.subr.mxu0 %v5178_v19  ;;  %1353 = vmatpush2.msra.mxu1 %v5922_v15  ;;  %v5936_v19 = vld [vmem:[%s9947_s2 + $0x480] sm:$0xff] }
 0x1d6   :  { %1226 = vmatpush2.msra.mxu0 %v5185_v21  ;;  %1354 = vmatprep.subr.mxu1 %v5929_v17  ;;  %v5943_v21 = vld [vmem:[%s9947_s2 + $0x458] sm:$0xff] }
 0x1d7   :  { %1227 = vmatprep.subr.mxu0 %v5192_v24  ;;  %1355 = vmatpush2.msra.mxu1 %v5936_v19  ;;  %v5950_v24 = vld [vmem:[%s9947_s2 + $0x450] sm:$0xff] }
 0x1d8   :  { %1228 = vmatpush2.msra.mxu0 %v5199_v26  ;;  %1356 = vmatprep.subr.mxu1 %v5943_v21  ;;  %v5957_v26 = vld [vmem:[%s9947_s2 + $0x428] sm:$0xff] }
 0x1d9   :  { %1229 = vmatprep.subr.mxu0 %v5206_v28  ;;  %1357 = vmatpush2.msra.mxu1 %v5950_v24  ;;  %v5964_v28 = vld [vmem:[%s9947_s2 + $0x420] sm:$0xff] }
 0x1da   :  { %1230 = vmatpush2.msra.mxu0 %v5213_v30  ;;  %1358 = vmatprep.subr.mxu1 %v5957_v26  ;;  %v5971_v30 = vld [vmem:[%s9947_s2 + $0x3f8] sm:$0xff] }
 0x1db   :  { %1231 = vmatprep.subr.mxu0 %v5220_v33  ;;  %1359 = vmatpush2.msra.mxu1 %v5964_v28  ;;  %v5978_v33 = vld [vmem:[%s9947_s2 + $0x3f0] sm:$0xff] }
 0x1dc   :  { %1232 = vmatpush2.msra.mxu0 %v5227_v35  ;;  %1360 = vmatprep.subr.mxu1 %v5971_v30  ;;  %10695 = vst [vmem:[#allocation70_spill] sm:$0xff] %v5978_v33  ;;  %v5985_v35 = vld [vmem:[%s9947_s2 + $0x3c8] sm:$0xff] }
 0x1dd   :  { %1233 = vmatprep.subr.mxu0 %v5234_v37  ;;  %1361 = vmatpush2.msra.mxu1 %v5978_v33  ;;  %10696 = vst [vmem:[#allocation73_spill] sm:$0xff] %v5985_v35  ;;  %v5992_v37 = vld [vmem:[%s9947_s2 + $0x3c0] sm:$0xff] }
 0x1de   :  { %1234 = vmatpush2.msra.mxu0 %v5241_v39  ;;  %1362 = vmatprep.subr.mxu1 %v5985_v35  ;;  %10697 = vst [vmem:[#allocation75_spill] sm:$0xff] %v5992_v37  ;;  %v5999_v39 = vld [vmem:[%s9947_s2 + $0x398] sm:$0xff] }
 0x1df   :  { %1235 = vmatprep.subr.mxu0 %v5248_v42  ;;  %1363 = vmatpush2.msra.mxu1 %v5992_v37  ;;  %10698 = vst [vmem:[#allocation77_spill] sm:$0xff] %v5999_v39  ;;  %v6006_v42 = vld [vmem:[%s9947_s2 + $0x390] sm:$0xff] }
 0x1e0   :  { %1236 = vmatpush2.msra.mxu0 %v5255_v44  ;;  %1364 = vmatprep.subr.mxu1 %v5999_v39  ;;  %10699 = vst [vmem:[#allocation80_spill] sm:$0xff] %v6006_v42  ;;  %v6013_v44 = vld [vmem:[%s9947_s2 + $0x368] sm:$0xff] }
 0x1e1   :  { %1237 = vmatprep.subr.mxu0 %v5262_v46  ;;  %1365 = vmatpush2.msra.mxu1 %v6006_v42  ;;  %10700 = vst [vmem:[#allocation82_spill] sm:$0xff] %v6013_v44  ;;  %v6020_v46 = vld [vmem:[%s9947_s2 + $0x360] sm:$0xff] }
 0x1e2   :  { %1238 = vmatpush2.msra.mxu0 %v5269_v48  ;;  %1366 = vmatprep.subr.mxu1 %v6013_v44  ;;  %10701 = vst [vmem:[#allocation84_spill] sm:$0xff] %v6020_v46  ;;  %v6027_v48 = vld [vmem:[%s9947_s2 + $0x338] sm:$0xff] }
 0x1e3   :  { %1239 = vmatprep.subr.mxu0 %v5276_v51  ;;  %1367 = vmatpush2.msra.mxu1 %v6020_v46  ;;  %10702 = vst [vmem:[#allocation87_spill] sm:$0xff] %v6027_v48  ;;  %v6034_v51 = vld [vmem:[%s9947_s2 + $0x330] sm:$0xff] }
 0x1e4   :  { %1240 = vmatpush2.msra.mxu0 %v5283_v53  ;;  %1368 = vmatprep.subr.mxu1 %v6027_v48  ;;  %10703 = vst [vmem:[#allocation89_spill] sm:$0xff] %v6034_v51  ;;  %v6041_v53 = vld [vmem:[%s9947_s2 + $0x308] sm:$0xff] }
 0x1e5   :  { %1241 = vmatprep.subr.mxu0 %v5290_v55  ;;  %1369 = vmatpush2.msra.mxu1 %v6034_v51  ;;  %10704 = vst [vmem:[#allocation91_spill] sm:$0xff] %v6041_v53  ;;  %v6048_v55 = vld [vmem:[%s9947_s2 + $0x2e8] sm:$0xff]  ;;  %v6066_v51 = vld [vmem:[%s9947_s2 + $0x2b8] sm:$0xff] }
 0x1e6   :  { %1242 = vmatpush2.msra.mxu0 %v5297_v57  ;;  %1370 = vmatprep.subr.mxu1 %v6041_v53  ;;  %10705 = vst [vmem:[#allocation94_spill] sm:$0xff] %v6048_v55  ;;  %v6054_v57 = vld [vmem:[%s9947_s2 + $0x2e0] sm:$0xff]  ;;  %10708 = vst [vmem:[#allocation103_spill] sm:$0xff] %v6066_v51 }
 0x1e7   :  { %1244 = vmatmul.mubr.f32.vlgmr.msra.gmra.mxu0 %v5574_v1  ;;  %1379 = vmatprep.subr.mxu0 %v6048_v55  ;;  %10706 = vst [vmem:[#allocation97_spill] sm:$0xff] %v6054_v57  ;;  %v6060_v53 = vld [vmem:[%s9947_s2 + $0x300] sm:$0xff]  ;;  %v6072_v55 = vld [vmem:[%s9947_s2 + $0x2f8] sm:$0xff] }
 0x1e8   :  { %1380 = vmatpush1.msra.mxu0 %v6054_v57  ;;  %10707 = vst [vmem:[#allocation99_spill] sm:$0xff] %v6060_v53  ;;  %1371 = vmatpush2.msra.mxu1 %v6060_v53  ;;  %10709 = vst [vmem:[#allocation53_spill] sm:$0xff] %v6072_v55  ;;  %v6078_v57 = vld [vmem:[%s9947_s2 + $0x2b0] sm:$0xff]  ;;  %v6084_v53 = vld [vmem:[%s9947_s2 + $0x288] sm:$0xff] }
 0x1e9   :  { %1381 = vmatprep.subr.mxu0 %v6066_v51  ;;  %1450 = vmatprep.subr.mxu1 %v6072_v55  ;;  %10710 = vst [vmem:[#allocation55_spill] sm:$0xff] %v6078_v57  ;;  %10711 = vst [vmem:[#allocation57_spill] sm:$0xff] %v6084_v53  ;;  %v6090_v51 = vld [vmem:[%s9947_s2 + $0x280] sm:$0xff]  ;;  %v6096_v55 = vld [vmem:[%s9947_s2 + $0x258] sm:$0xff] }
 0x1ea   :  { %1382 = vmatpush1.msra.mxu0 %v6078_v57  ;;  %10712 = vst [vmem:[#allocation58_spill] sm:$0xff] %v6090_v51  ;;  %10713 = vst [vmem:[#allocation60_spill] sm:$0xff] %v6096_v55  ;;  %v6102_v57 = vld [vmem:[%s9947_s2 + $0x250] sm:$0xff] }
 0x1eb   :  { %1383 = vmatprep.subr.mxu0 %v6084_v53  ;;  %10714 = vst [vmem:[#allocation62_spill] sm:$0xff] %v6102_v57  ;;  %v6108_v53 = vld [vmem:[%s9947_s2 + $0x228] sm:$0xff] }
 0x1ec   :  { %1384 = vmatpush1.msra.mxu0 %v6090_v51  ;;  %10715 = vst [vmem:[#allocation64_spill] sm:$0xff] %v6108_v53  ;;  %v6114_v51 = vld [vmem:[%s9947_s2 + $0x220] sm:$0xff] }
 0x1ed   :  { %1385 = vmatprep.subr.mxu0 %v6096_v55  ;;  %10716 = vst [vmem:[#allocation65_spill] sm:$0xff] %v6114_v51  ;;  %v6120_v55 = vld [vmem:[%s9947_s2 + $0x1f8] sm:$0xff] }
 0x1ee   :  { %1386 = vmatpush1.msra.mxu0 %v6102_v57  ;;  %10717 = vst [vmem:[#allocation67_spill] sm:$0xff] %v6120_v55  ;;  %v6126_v57 = vld [vmem:[%s9947_s2 + $0x1f0] sm:$0xff] }
 0x1ef   :  { %1387 = vmatprep.subr.mxu0 %v6108_v53  ;;  %10718 = vst [vmem:[#allocation69_spill] sm:$0xff] %v6126_v57  ;;  %v6132_v53 = vld [vmem:[%s9947_s2 + $0x1c8] sm:$0xff] }
 0x1f0   :  { %1388 = vmatpush1.msra.mxu0 %v6114_v51  ;;  %10719 = vst [vmem:[#allocation71_spill] sm:$0xff] %v6132_v53  ;;  %v6138_v51 = vld [vmem:[%s9947_s2 + $0x1c0] sm:$0xff] }
 0x1f1   :  { %1389 = vmatprep.subr.mxu0 %v6120_v55  ;;  %10720 = vst [vmem:[#allocation72_spill] sm:$0xff] %v6138_v51  ;;  %v6144_v55 = vld [vmem:[%s9947_s2 + $0x198] sm:$0xff] }
 0x1f2   :  { %1390 = vmatpush1.msra.mxu0 %v6126_v57  ;;  %10721 = vst [vmem:[#allocation74_spill] sm:$0xff] %v6144_v55  ;;  %v6150_v57 = vld [vmem:[%s9947_s2 + $0x190] sm:$0xff] }
 0x1f3   :  { %1391 = vmatprep.subr.mxu0 %v6132_v53  ;;  %10722 = vst [vmem:[#allocation76_spill] sm:$0xff] %v6150_v57  ;;  %v6156_v53 = vld [vmem:[%s9947_s2 + $0x168] sm:$0xff] }
 0x1f4   :  { %1392 = vmatpush1.msra.mxu0 %v6138_v51  ;;  %10723 = vst [vmem:[#allocation78_spill] sm:$0xff] %v6156_v53  ;;  %v6162_v51 = vld [vmem:[%s9947_s2 + $0x160] sm:$0xff] }
 0x1f5   :  { %1393 = vmatprep.subr.mxu0 %v6144_v55  ;;  %10724 = vst [vmem:[#allocation79_spill] sm:$0xff] %v6162_v51  ;;  %v6168_v55 = vld [vmem:[%s9947_s2 + $0x138] sm:$0xff] }
 0x1f6   :  { %1394 = vmatpush1.msra.mxu0 %v6150_v57  ;;  %10725 = vst [vmem:[#allocation81_spill] sm:$0xff] %v6168_v55  ;;  %v6174_v57 = vld [vmem:[%s9947_s2 + $0x130] sm:$0xff] }
 0x1f7   :  { %1395 = vmatprep.subr.mxu0 %v6156_v53  ;;  %10726 = vst [vmem:[#allocation83_spill] sm:$0xff] %v6174_v57  ;;  %v6180_v53 = vld [vmem:[%s9947_s2 + $0x108] sm:$0xff] }
 0x1f8   :  { %1396 = vmatpush1.msra.mxu0 %v6162_v51  ;;  %10727 = vst [vmem:[#allocation85_spill] sm:$0xff] %v6180_v53  ;;  %v6186_v51 = vld [vmem:[%s9947_s2 + $0x100] sm:$0xff] }
 0x1f9   :  { %1397 = vmatprep.subr.mxu0 %v6168_v55  ;;  %10728 = vst [vmem:[#allocation86_spill] sm:$0xff] %v6186_v51  ;;  %v6192_v55 = vld [vmem:[%s9947_s2 + $0xd8] sm:$0xff] }
 0x1fa   :  { %1398 = vmatpush1.msra.mxu0 %v6174_v57  ;;  %10729 = vst [vmem:[#allocation88_spill] sm:$0xff] %v6192_v55  ;;  %v6198_v57 = vld [vmem:[%s9947_s2 + $0xd0] sm:$0xff] }
 0x1fb   :  { %1399 = vmatprep.subr.mxu0 %v6180_v53  ;;  %10730 = vst [vmem:[#allocation90_spill] sm:$0xff] %v6198_v57  ;;  %v6204_v53 = vld [vmem:[%s9947_s2 + $0xa8] sm:$0xff] }
 0x1fc   :  { %1400 = vmatpush1.msra.mxu0 %v6186_v51  ;;  %10731 = vst [vmem:[#allocation92_spill] sm:$0xff] %v6204_v53  ;;  %v6210_v51 = vld [vmem:[%s9947_s2 + $0xa0] sm:$0xff] }
 0x1fd   :  { %1401 = vmatprep.subr.mxu0 %v6192_v55  ;;  %10732 = vst [vmem:[#allocation93_spill] sm:$0xff] %v6210_v51  ;;  %v6216_v55 = vld [vmem:[%s9947_s2 + $0x78] sm:$0xff] }
 0x1fe   :  { %1402 = vmatpush1.msra.mxu0 %v6198_v57  ;;  %10733 = vst [vmem:[#allocation95_spill] sm:$0xff] %v6216_v55  ;;  %v6222_v57 = vld [vmem:[%s9947_s2 + $0x70] sm:$0xff] }
 0x1ff   :  { %1403 = vmatprep.subr.mxu0 %v6204_v53  ;;  %10734 = vst [vmem:[#allocation96_spill] sm:$0xff] %v6222_v57  ;;  %v6228_v53 = vld [vmem:[%s9947_s2 + $0x48] sm:$0xff] }
 0x200   :  { %1404 = vmatpush1.msra.mxu0 %v6210_v51  ;;  %10735 = vst [vmem:[#allocation98_spill] sm:$0xff] %v6228_v53  ;;  %v6234_v51 = vld [vmem:[%s9947_s2 + $0x40] sm:$0xff] }
 0x201   :  { %1405 = vmatprep.subr.mxu0 %v6216_v55  ;;  %10736 = vst [vmem:[#allocation100_spill] sm:$0xff] %v6234_v51  ;;  %v6240_v55 = vld [vmem:[%s9947_s2 + $0x18] sm:$0xff] }
 0x202   :  { %1406 = vmatpush1.msra.mxu0 %v6222_v57  ;;  %10737 = vst [vmem:[#allocation101_spill] sm:$0xff] %v6240_v55  ;;  %v6246_v57 = vld [vmem:[%s9947_s2 + $0x10] sm:$0xff] }
 0x203   :  { %1407 = vmatprep.subr.mxu0 %v6228_v53  ;;  %10738 = vst [vmem:[#allocation102_spill] sm:$0xff] %v6246_v57  ;;  %v6252_v53 = vld [vmem:[%s9947_s2 + $0x5e8] sm:$0xff] }
 0x204   :  { %1408 = vmatpush1.msra.mxu0 %v6234_v51  ;;  %10739 = vst [vmem:[#allocation104_spill] sm:$0xff] %v6252_v53  ;;  %v6258_v51 = vld [vmem:[%s9947_s2 + $0x5e0] sm:$0xff] }
 0x205   :  { %1409 = vmatprep.subr.mxu0 %v6240_v55  ;;  %10740 = vst [vmem:[#allocation105_spill] sm:$0xff] %v6258_v51  ;;  %v6264_v55 = vld [vmem:[%s9947_s2 + $0x5b8] sm:$0xff] }
 0x206   :  { %1410 = vmatpush1.msra.mxu0 %v6246_v57  ;;  %10741 = vst [vmem:[#allocation106_spill] sm:$0xff] %v6264_v55  ;;  %v6270_v57 = vld [vmem:[%s9947_s2 + $0x5b0] sm:$0xff] }
 0x207   :  { %1411 = vmatprep.subr.mxu0 %v6252_v53  ;;  %10742 = vst [vmem:[#allocation107_spill] sm:$0xff] %v6270_v57  ;;  %v6276_v53 = vld [vmem:[%s9947_s2 + $0x588] sm:$0xff] }
 0x208   :  { %1412 = vmatpush2.msra.mxu0 %v6258_v51  ;;  %10743 = vst [vmem:[#allocation108_spill] sm:$0xff] %v6276_v53  ;;  %v6282_v51 = vld [vmem:[%s9947_s2 + $0x580] sm:$0xff] }
 0x209   :  { %1413 = vmatprep.subr.mxu0 %v6264_v55  ;;  %10744 = vst [vmem:[#allocation109_spill] sm:$0xff] %v6282_v51  ;;  %v6288_v55 = vld [vmem:[%s9947_s2 + $0x558] sm:$0xff] }
 0x20a   :  { %1414 = vmatpush2.msra.mxu0 %v6270_v57  ;;  %10745 = vst [vmem:[#allocation110_spill] sm:$0xff] %v6288_v55  ;;  %v6294_v57 = vld [vmem:[%s9947_s2 + $0x550] sm:$0xff] }
 0x20b   :  { %1415 = vmatprep.subr.mxu0 %v6276_v53  ;;  %10746 = vst [vmem:[#allocation111_spill] sm:$0xff] %v6294_v57  ;;  %v6300_v53 = vld [vmem:[%s9947_s2 + $0x528] sm:$0xff] }
 0x20c   :  { %1416 = vmatpush2.msra.mxu0 %v6282_v51  ;;  %10747 = vst [vmem:[#allocation112_spill] sm:$0xff] %v6300_v53  ;;  %v6306_v51 = vld [vmem:[%s9947_s2 + $0x520] sm:$0xff] }
 0x20d   :  { %1417 = vmatprep.subr.mxu0 %v6288_v55  ;;  %10748 = vst [vmem:[#allocation113_spill] sm:$0xff] %v6306_v51  ;;  %v6312_v55 = vld [vmem:[%s9947_s2 + $0x4f8] sm:$0xff] }
 0x20e   :  { %1418 = vmatpush2.msra.mxu0 %v6294_v57  ;;  %10749 = vst [vmem:[#allocation114_spill] sm:$0xff] %v6312_v55  ;;  %v6318_v57 = vld [vmem:[%s9947_s2 + $0x4f0] sm:$0xff] }
 0x20f   :  { %1419 = vmatprep.subr.mxu0 %v6300_v53  ;;  %10750 = vst [vmem:[#allocation115_spill] sm:$0xff] %v6318_v57  ;;  %v6324_v53 = vld [vmem:[%s9947_s2 + $0x4c8] sm:$0xff] }
 0x210   :  { %1420 = vmatpush2.msra.mxu0 %v6306_v51  ;;  %10751 = vst [vmem:[#allocation116_spill] sm:$0xff] %v6324_v53  ;;  %v6330_v51 = vld [vmem:[%s9947_s2 + $0x4c0] sm:$0xff] }
 0x211   :  { %1421 = vmatprep.subr.mxu0 %v6312_v55  ;;  %10752 = vst [vmem:[#allocation117_spill] sm:$0xff] %v6330_v51  ;;  %v6336_v55 = vld [vmem:[%s9947_s2 + $0x498] sm:$0xff] }
 0x212   :  { %1422 = vmatpush2.msra.mxu0 %v6318_v57  ;;  %10753 = vst [vmem:[#allocation118_spill] sm:$0xff] %v6336_v55  ;;  %v6342_v57 = vld [vmem:[%s9947_s2 + $0x490] sm:$0xff] }
 0x213   :  { %1423 = vmatprep.subr.mxu0 %v6324_v53  ;;  %10754 = vst [vmem:[#allocation119_spill] sm:$0xff] %v6342_v57  ;;  %v6348_v53 = vld [vmem:[%s9947_s2 + $0x468] sm:$0xff] }
 0x214   :  { %1424 = vmatpush2.msra.mxu0 %v6330_v51  ;;  %10755 = vst [vmem:[#allocation120_spill] sm:$0xff] %v6348_v53  ;;  %v6354_v51 = vld [vmem:[%s9947_s2 + $0x460] sm:$0xff] }
 0x215   :  { %1425 = vmatprep.subr.mxu0 %v6336_v55  ;;  %10756 = vst [vmem:[#allocation121_spill] sm:$0xff] %v6354_v51  ;;  %v6360_v55 = vld [vmem:[%s9947_s2 + $0x438] sm:$0xff] }
 0x216   :  { %1426 = vmatpush2.msra.mxu0 %v6342_v57  ;;  %10757 = vst [vmem:[#allocation122_spill] sm:$0xff] %v6360_v55  ;;  %v6366_v57 = vld [vmem:[%s9947_s2 + $0x430] sm:$0xff] }
 0x217   :  { %1427 = vmatprep.subr.mxu0 %v6348_v53  ;;  %10758 = vst [vmem:[#allocation123_spill] sm:$0xff] %v6366_v57  ;;  %v6372_v53 = vld [vmem:[%s9947_s2 + $0x408] sm:$0xff] }
 0x218   :  { %1428 = vmatpush2.msra.mxu0 %v6354_v51  ;;  %10759 = vst [vmem:[#allocation124_spill] sm:$0xff] %v6372_v53  ;;  %v6378_v51 = vld [vmem:[%s9947_s2 + $0x400] sm:$0xff] }
 0x219   :  { %1429 = vmatprep.subr.mxu0 %v6360_v55  ;;  %10760 = vst [vmem:[#allocation125_spill] sm:$0xff] %v6378_v51  ;;  %v6384_v55 = vld [vmem:[%s9947_s2 + $0x3d8] sm:$0xff] }
 0x21a   :  { %1430 = vmatpush2.msra.mxu0 %v6366_v57  ;;  %10761 = vst [vmem:[#allocation126_spill] sm:$0xff] %v6384_v55  ;;  %v6390_v57 = vld [vmem:[%s9947_s2 + $0x3d0] sm:$0xff] }
 0x21b   :  { %1431 = vmatprep.subr.mxu0 %v6372_v53  ;;  %10762 = vst [vmem:[#allocation127_spill] sm:$0xff] %v6390_v57  ;;  %v6396_v53 = vld [vmem:[%s9947_s2 + $0x3a8] sm:$0xff] }
 0x21c   :  { %1432 = vmatpush2.msra.mxu0 %v6378_v51  ;;  %10763 = vst [vmem:[#allocation128_spill] sm:$0xff] %v6396_v53  ;;  %v6402_v51 = vld [vmem:[%s9947_s2 + $0x3a0] sm:$0xff] }
 0x21d   :  { %1433 = vmatprep.subr.mxu0 %v6384_v55  ;;  %10764 = vst [vmem:[#allocation129_spill] sm:$0xff] %v6402_v51  ;;  %v6408_v55 = vld [vmem:[%s9947_s2 + $0x378] sm:$0xff] }
 0x21e   :  { %1434 = vmatpush2.msra.mxu0 %v6390_v57  ;;  %10765 = vst [vmem:[#allocation130_spill] sm:$0xff] %v6408_v55  ;;  %v6414_v57 = vld [vmem:[%s9947_s2 + $0x370] sm:$0xff] }
 0x21f   :  { %1435 = vmatprep.subr.mxu0 %v6396_v53  ;;  %10766 = vst [vmem:[#allocation131_spill] sm:$0xff] %v6414_v57  ;;  %v6420_v53 = vld [vmem:[%s9947_s2 + $0x348] sm:$0xff] }
 0x220   :  { %1436 = vmatpush2.msra.mxu0 %v6402_v51  ;;  %10767 = vst [vmem:[#allocation132_spill] sm:$0xff] %v6420_v53  ;;  %v6426_v51 = vld [vmem:[%s9947_s2 + $0x340] sm:$0xff] }
 0x221   :  { %1437 = vmatprep.subr.mxu0 %v6408_v55  ;;  %10768 = vst [vmem:[#allocation133_spill] sm:$0xff] %v6426_v51  ;;  %v6432_v55 = vld [vmem:[%s9947_s2 + $0x318] sm:$0xff] }
 0x222   :  { %1438 = vmatpush2.msra.mxu0 %v6414_v57  ;;  %10769 = vst [vmem:[#allocation134_spill] sm:$0xff] %v6432_v55  ;;  %v6438_v57 = vld [vmem:[%s9947_s2 + $0x310] sm:$0xff] }
 0x223   :  { %1439 = vmatprep.subr.mxu0 %v6420_v53  ;;  %10770 = vst [vmem:[#allocation135_spill] sm:$0xff] %v6438_v57 }
 0x224   :  { %1440 = vmatpush2.msra.mxu0 %v6426_v51 }
 0x225   :  { %1441 = vmatprep.subr.mxu0 %v6432_v55 }
 0x226   :  { %1442 = vmatpush2.msra.mxu0 %v6438_v57 }
 0x227   :  { %1579 = vmatprep.subr.mxu0 %v5455_v14 }
 0x267   :  { %v1103_v53 = vpop.f32.mrf.mxu0  ;;  %v1174_v37 = vpop.f32.mrf.mxu1 }
 0x268   :  { %v1104_v48 = vadd.f32 %v1103_v53, %v5514_v5  ;;  %v376_v53 = vadd.f32 %v5502_v41, %v5568_v2 }
 0x269   :  { %v1105_v51 = vpop.f32.mrf.mxu0  ;;  %v1176_v33 = vpop.f32.mrf.mxu1 }
 0x26a   :  { %v1262_v46 = vadd.f32 %v1104_v48, %v5411_v45  ;;  %v1106_v42 = vadd.f32 %v1105_v51, %v5528_v9  ;;  %v1177_v14 = vadd.f32 %v1176_v33, %v5564_v61 }
 0x26c   :  { %v2925_v44 = vmul.f32 -1.442695, %v1262_v46  ;;  %v1269_v55 = vadd.f32 %v1106_v42, %v5416_v59  ;;  %v1283_v5 = vadd.f32 %v1177_v14, %v376_v53 }
 0x26e   :  { %2989 = vpow2.f32 %v2925_v44  ;;  %v2926_v39 = vmul.f32 -1.442695, %v1269_v55  ;;  %v2927_v46 = vmul.f32 -1.442695, %v1283_v5  ;;  %v1175_v44 = vadd.f32 %v1174_v37, %v5558_v0  ;;  %v10771_v37 = vld [vmem:[#allocation37_spill] sm:$0xff] }
 0x270   :  { %2991 = vpow2.f32 %v2926_v39  ;;  %v344_v39 = vadd.f32 %v5480_v47, %v5561_v16 }
 0x27b   :  { %v2990_v35 = vpop.eup %2989 }
 0x27c   :  { %v1266_v57 = vadd.f32 1.0, %v2990_v35 }
 0x27d   :  { %v2992_v45 = vpop.eup %2991 }
 0x27e   :  { %2993 = vrcp.f32 %v1266_v57  ;;  %v1273_v48 = vadd.f32 1.0, %v2992_v45  ;;  %v487_v45 = vadd.f32 %v10771_v37, %v5585_v32 }
 0x27f   :  { %2995 = vpow2.f32 %v2927_v46 }
 0x280   :  { %2997 = vrcp.f32 %v1273_v48 }
 0x28b   :  { %v2994_v59 = vpop.eup %2993 }
 0x28c   :  { %v1276_v42 = vmul.f32 %v2994_v59, %v1175_v44  ;;  %v2996_v51 = vpop.eup %2995 }
 0x28d   :  { %v2998_v33 = vpop.eup %2997  ;;  %v1287_v55 = vadd.f32 1.0, %v2996_v51 }
 0x28e   :  { %v1277_v35 = vadd.f32 %v1276_v42, %v344_v39  ;;  %v1279_v57 = vsub.f32 1.0, %v2998_v33  ;;  %v1281_v5 = vmul.f32 %v2998_v33, %v5574_v1  ;;  %v10772_v1 = vld [vmem:[#allocation44_spill] sm:$0xff] }
 0x28f   :  { %v489_v42 = vadd.f32 %v10772_v1, %v5595_v3  ;;  %v10775_v1 = vld [vmem:[#allocation48_spill] sm:$0xff] }
 0x290   :  { %2999 = vtanh.f32 %v1277_v35 }
 0x291   :  { %3001 = vrcp.f32 %v1287_v55 }
 0x29d   :  { %v3000_v41 = vpop.eup %2999 }
 0x29e   :  { %v1280_v14 = vmul.f32 %v3000_v41, %v1279_v57  ;;  %v3002_v39 = vpop.eup %3001 }
 0x2a0   :  { %v6453_v53 = vadd.f32 %v1281_v5, %v1280_v14 }
 0x2a2   :  { %2929 = vst [vmem:[%s9950_s5 + $0x10] sm:$0xff] %v6453_v53 }
 0x2a7   :  { %v1245_v47 = vpop.f32.mrf.mxu0 }
 0x2a8   :  { %v1246_v46 = vadd.f32 %v1245_v47, %v5582_v54 }
 0x2a9   :  { %v1247_v48 = vpop.f32.mrf.mxu0 }
 0x2aa   :  { %v1290_v44 = vadd.f32 %v1246_v46, %v487_v45  ;;  %v1248_v59 = vadd.f32 %v1247_v48, %v5591_v34  ;;  %v6479_v46 = vld [vmem:[%s9947_s2 + $0x2f0] sm:$0xff]  ;;  %v6493_v48 = vld [vmem:[%s9947_s2 + $0x2c0] sm:$0xff] }
 0x2ac   :  { %v2928_v35 = vmul.f32 -1.442695, %v1290_v44  ;;  %v1297_v51 = vmul.f32 %v3002_v39, %v1248_v59  ;;  %v6500_v44 = vld [vmem:[%s9947_s2 + $0x298] sm:$0xff]  ;;  %v10774_v39 = vld [vmem:[#allocation41_spill] sm:$0xff] }
 0x2ad   :  { %v10773_v59 = vld [vmem:[#allocation46_spill] sm:$0xff] }
 0x2ae   :  { %3003 = vpow2.f32 %v2928_v35  ;;  %v1298_v33 = vadd.f32 %v1297_v51, %v489_v42  ;;  %v6584_v42 = vld [vmem:[%s9947_s2 + $0x178] sm:$0xff]  ;;  %v10776_v35 = vld [vmem:[#allocation43_spill] sm:$0xff]  ;;  %v6591_v51 = vld [vmem:[%s9947_s2 + $0x170] sm:$0xff] }
 0x2bb   :  { %v3004_v55 = vpop.eup %3003 }
 0x2bc   :  { %v1294_v57 = vadd.f32 1.0, %v3004_v55  ;;  %v6598_v55 = vld [vmem:[%s9947_s2 + $0x148] sm:$0xff] }
 0x2be   :  { %3005 = vrcp.f32 %v1294_v57  ;;  %v10778_v57 = vld [vmem:[#allocation45_spill] sm:$0xff] }
 0x2bf   :  { %3007 = vtanh.f32 %v1298_v33  ;;  %v10777_v33 = vld [vmem:[#allocation50_spill] sm:$0xff] }
 0x2cb   :  { %v3006_v41 = vpop.eup %3005 }
 0x2cc   :  { %v1300_v14 = vsub.f32 1.0, %v3006_v41  ;;  %v3008_v5 = vpop.eup %3007  ;;  %v1302_v37 = vmul.f32 %v3006_v41, %v5598_v62  ;;  %v6486_v62 = vld [vmem:[%s9947_s2 + $0x2c8] sm:$0xff]  ;;  %v6605_v41 = vld [vmem:[%s9947_s2 + $0x140] sm:$0xff] }
 0x2ce   :  { %v1301_v47 = vmul.f32 %v3008_v5, %v1300_v14  ;;  %v10779_v14 = vld [vmem:[#allocation47_spill] sm:$0xff]  ;;  %v6612_v5 = vld [vmem:[%s9947_s2 + $0x118] sm:$0xff] }
 0x2d0   :  { %v6466_v45 = vadd.f32 %v1302_v37, %v1301_v47  ;;  %v10780_v47 = vld [vmem:[#allocation52_spill] sm:$0xff]  ;;  %v6619_v37 = vld [vmem:[%s9947_s2 + $0x110] sm:$0xff] }
 0x2d2   :  { %2930 = vst [vmem:[%s9950_s5 + $0x68] sm:$0xff] %v6466_v45  ;;  %1372 = vmatprep.mubr.f32.mxu1 %v6466_v45  ;;  %1443 = vmatprep.mubr.f32.mxu0 %v6466_v45 }
 0x2d3   :  { %1373 = vmatmul.mubr.f32.vlgmr.msra.gmra.mxu1 %v6453_v53  ;;  %1444 = vmatmul.mubr.f32.vlgmr.msra.gmra.mxu0 %v6453_v53 }
 0x2d4   :  { %1451 = vmatpush1.msra.mxu1 %v6479_v46  ;;  %1514 = vmatprep.mubr.f32.mxu1 %v6466_v45 }
 0x2d5   :  { %1452 = vmatprep.subr.mxu1 %v6486_v62  ;;  %1580 = vmatpush1.msra.mxu0 %v5614_v31  ;;  %v6507_v31 = vld [vmem:[%s9947_s2 + $0x290] sm:$0xff] }
 0x2d6   :  { %1453 = vmatpush1.msra.mxu1 %v6493_v48  ;;  %1581 = vmatprep.subr.mxu0 %v5621_v38  ;;  %v6514_v38 = vld [vmem:[%s9947_s2 + $0x268] sm:$0xff] }
 0x2d7   :  { %1454 = vmatprep.subr.mxu1 %v6500_v44  ;;  %1582 = vmatpush1.msra.mxu0 %v5628_v43  ;;  %v6521_v43 = vld [vmem:[%s9947_s2 + $0x260] sm:$0xff] }
 0x2d8   :  { %1455 = vmatpush1.msra.mxu1 %v6507_v31  ;;  %1583 = vmatprep.subr.mxu0 %v5635_v60  ;;  %v6528_v60 = vld [vmem:[%s9947_s2 + $0x238] sm:$0xff] }
 0x2d9   :  { %1456 = vmatprep.subr.mxu1 %v6514_v38  ;;  %1584 = vmatpush1.msra.mxu0 %v5642_v50  ;;  %v6535_v50 = vld [vmem:[%s9947_s2 + $0x230] sm:$0xff] }
 0x2da   :  { %1457 = vmatpush1.msra.mxu1 %v6521_v43  ;;  %1585 = vmatprep.subr.mxu0 %v5649_v52  ;;  %v6542_v52 = vld [vmem:[%s9947_s2 + $0x208] sm:$0xff] }
 0x2db   :  { %1458 = vmatprep.subr.mxu1 %v6528_v60  ;;  %1586 = vmatpush1.msra.mxu0 %v5656_v20  ;;  %v6549_v20 = vld [vmem:[%s9947_s2 + $0x200] sm:$0xff] }
 0x2dc   :  { %1459 = vmatpush1.msra.mxu1 %v6535_v50  ;;  %1587 = vmatprep.subr.mxu0 %v5663_v23  ;;  %v6556_v23 = vld [vmem:[%s9947_s2 + $0x1d8] sm:$0xff] }
 0x2dd   :  { %1460 = vmatprep.subr.mxu1 %v6542_v52  ;;  %1588 = vmatpush1.msra.mxu0 %v5670_v13  ;;  %v6563_v13 = vld [vmem:[%s9947_s2 + $0x1d0] sm:$0xff] }
 0x2de   :  { %1461 = vmatpush1.msra.mxu1 %v6549_v20  ;;  %1589 = vmatprep.subr.mxu0 %v5677_v56  ;;  %v6570_v56 = vld [vmem:[%s9947_s2 + $0x1a8] sm:$0xff] }
 0x2df   :  { %1462 = vmatprep.subr.mxu1 %v6556_v23  ;;  %1590 = vmatpush1.msra.mxu0 %v5684_v27  ;;  %v6577_v27 = vld [vmem:[%s9947_s2 + $0x1a0] sm:$0xff] }
 0x2e0   :  { %1463 = vmatpush1.msra.mxu1 %v6563_v13  ;;  %1591 = vmatprep.subr.mxu0 %v10773_v59  ;;  %v10781_v59 = vld [vmem:[#allocation49_spill] sm:$0xff] }
 0x2e1   :  { %1464 = vmatprep.subr.mxu1 %v6570_v56  ;;  %1592 = vmatpush1.msra.mxu0 %v10774_v39  ;;  %v6626_v39 = vld [vmem:[%s9947_s2 + $0xe8] sm:$0xff] }
 0x2e2   :  { %1465 = vmatpush1.msra.mxu1 %v6577_v27  ;;  %1593 = vmatprep.subr.mxu0 %v10775_v1  ;;  %v10782_v1 = vld [vmem:[#allocation54_spill] sm:$0xff] }
 0x2e3   :  { %1466 = vmatprep.subr.mxu1 %v6584_v42  ;;  %1594 = vmatpush1.msra.mxu0 %v10776_v35  ;;  %v6633_v35 = vld [vmem:[%s9947_s2 + $0xe0] sm:$0xff] }
 0x2e4   :  { %1467 = vmatpush1.msra.mxu1 %v6591_v51  ;;  %1595 = vmatprep.subr.mxu0 %v10777_v33  ;;  %v10783_v33 = vld [vmem:[#allocation51_spill] sm:$0xff] }
 0x2e5   :  { %1468 = vmatprep.subr.mxu1 %v6598_v55  ;;  %1596 = vmatpush1.msra.mxu0 %v10778_v57  ;;  %v6640_v57 = vld [vmem:[%s9947_s2 + $0xb8] sm:$0xff] }
 0x2e6   :  { %1469 = vmatpush1.msra.mxu1 %v6605_v41  ;;  %1597 = vmatprep.subr.mxu0 %v10779_v14  ;;  %10784 = vst [vmem:[#allocation37_spill] sm:$0xff] %v6640_v57  ;;  %v10785_v14 = vld [vmem:[#allocation56_spill] sm:$0xff] }
 0x2e7   :  { %1470 = vmatprep.subr.mxu1 %v6612_v5  ;;  %1598 = vmatpush1.msra.mxu0 %v10780_v47  ;;  %v6647_v47 = vld [vmem:[%s9947_s2 + $0xb0] sm:$0xff] }
 0x2e8   :  { %1471 = vmatpush1.msra.mxu1 %v6619_v37  ;;  %1599 = vmatprep.subr.mxu0 %v10781_v59  ;;  %10786 = vst [vmem:[#allocation44_spill] sm:$0xff] %v6647_v47  ;;  %v10787_v59 = vld [vmem:[#allocation59_spill] sm:$0xff] }
 0x2e9   :  { %1472 = vmatprep.subr.mxu1 %v6626_v39  ;;  %1600 = vmatpush1.msra.mxu0 %v10782_v1  ;;  %v6654_v1 = vld [vmem:[%s9947_s2 + $0x88] sm:$0xff] }
 0x2ea   :  { %1473 = vmatpush1.msra.mxu1 %v6633_v35  ;;  %1601 = vmatprep.subr.mxu0 %v10783_v33  ;;  %10788 = vst [vmem:[#allocation46_spill] sm:$0xff] %v6654_v1  ;;  %v10789_v33 = vld [vmem:[#allocation61_spill] sm:$0xff] }
 0x2eb   :  { %1474 = vmatprep.subr.mxu1 %v6640_v57  ;;  %1602 = vmatpush1.msra.mxu0 %v10785_v14  ;;  %v6661_v14 = vld [vmem:[%s9947_s2 + $0x80] sm:$0xff] }
 0x2ec   :  { %1475 = vmatpush1.msra.mxu1 %v6647_v47  ;;  %1603 = vmatprep.subr.mxu0 %v10787_v59  ;;  %v10790_v57 = vld [vmem:[#allocation63_spill] sm:$0xff]  ;;  %v6668_v59 = vld [vmem:[%s9947_s2 + $0x58] sm:$0xff] }
 0x2ed   :  { %1476 = vmatprep.subr.mxu1 %v6654_v1  ;;  %1604 = vmatpush1.msra.mxu0 %v10789_v33  ;;  %v10791_v47 = vld [vmem:[#allocation66_spill] sm:$0xff]  ;;  %v6675_v33 = vld [vmem:[%s9947_s2 + $0x50] sm:$0xff]  ;;  %v10792_v1 = vld [vmem:[#allocation68_spill] sm:$0xff] }
 0x2ee   :  { %1477 = vmatpush1.msra.mxu1 %v6661_v14  ;;  %1605 = vmatprep.subr.mxu0 %v10790_v57  ;;  %v6682_v57 = vld [vmem:[%s9947_s2 + $0x28] sm:$0xff] }
 0x2ef   :  { %1478 = vmatprep.subr.mxu1 %v6668_v59  ;;  %1606 = vmatpush1.msra.mxu0 %v10791_v47  ;;  %v6689_v47 = vld [vmem:[%s9947_s2 + $0x20] sm:$0xff] }
 0x2f0   :  { %1479 = vmatpush1.msra.mxu1 %v6675_v33  ;;  %1607 = vmatprep.subr.mxu0 %v10792_v1  ;;  %v6696_v1 = vld [vmem:[%s9947_s2 + $0x5f8] sm:$0xff] }
 0x2f1   :  { %1480 = vmatprep.subr.mxu1 %v6682_v57  ;;  %1608 = vmatpush1.msra.mxu0 %v5810_v29  ;;  %v6703_v29 = vld [vmem:[%s9947_s2 + $0x5f0] sm:$0xff] }
 0x2f2   :  { %1481 = vmatpush1.msra.mxu1 %v6689_v47  ;;  %1609 = vmatprep.subr.mxu0 %v5817_v11  ;;  %v6710_v11 = vld [vmem:[%s9947_s2 + $0x5c8] sm:$0xff] }
 0x2f3   :  { %1482 = vmatprep.subr.mxu1 %v6696_v1  ;;  %1610 = vmatpush1.msra.mxu0 %v5824_v36  ;;  %v6717_v36 = vld [vmem:[%s9947_s2 + $0x5c0] sm:$0xff] }
 0x2f4   :  { %1483 = vmatpush2.msra.mxu1 %v6703_v29  ;;  %1611 = vmatprep.subr.mxu0 %v5831_v25  ;;  %v6724_v25 = vld [vmem:[%s9947_s2 + $0x598] sm:$0xff] }
 0x2f5   :  { %1484 = vmatprep.subr.mxu1 %v6710_v11  ;;  %1612 = vmatpush2.msra.mxu0 %v5838_v18  ;;  %v6731_v18 = vld [vmem:[%s9947_s2 + $0x590] sm:$0xff] }
 0x2f6   :  { %1485 = vmatpush2.msra.mxu1 %v6717_v36  ;;  %1613 = vmatprep.subr.mxu0 %v5845_v63  ;;  %v6738_v63 = vld [vmem:[%s9947_s2 + $0x568] sm:$0xff] }
 0x2f7   :  { %1486 = vmatprep.subr.mxu1 %v6724_v25  ;;  %1614 = vmatpush2.msra.mxu0 %v5852_v49  ;;  %v6745_v49 = vld [vmem:[%s9947_s2 + $0x560] sm:$0xff] }
 0x2f8   :  { %1487 = vmatpush2.msra.mxu1 %v6731_v18  ;;  %1615 = vmatprep.subr.mxu0 %v5859_v58  ;;  %v6752_v58 = vld [vmem:[%s9947_s2 + $0x538] sm:$0xff] }
 0x2f9   :  { %1488 = vmatprep.subr.mxu1 %v6738_v63  ;;  %1616 = vmatpush2.msra.mxu0 %v5866_v7  ;;  %10793 = vst [vmem:[#allocation41_spill] sm:$0xff] %v6752_v58  ;;  %v6759_v7 = vld [vmem:[%s9947_s2 + $0x530] sm:$0xff] }
 0x2fa   :  { %1489 = vmatpush2.msra.mxu1 %v6745_v49  ;;  %1617 = vmatprep.subr.mxu0 %v5873_v22  ;;  %10794 = vst [vmem:[#allocation48_spill] sm:$0xff] %v6759_v7  ;;  %v6766_v22 = vld [vmem:[%s9947_s2 + $0x508] sm:$0xff] }
 0x2fb   :  { %1490 = vmatprep.subr.mxu1 %v6752_v58  ;;  %1618 = vmatpush2.msra.mxu0 %v5880_v40  ;;  %10795 = vst [vmem:[#allocation43_spill] sm:$0xff] %v6766_v22  ;;  %v6773_v40 = vld [vmem:[%s9947_s2 + $0x500] sm:$0xff] }
 0x2fc   :  { %1491 = vmatpush2.msra.mxu1 %v6759_v7  ;;  %1619 = vmatprep.subr.mxu0 %v5887_v4  ;;  %10796 = vst [vmem:[#allocation50_spill] sm:$0xff] %v6773_v40  ;;  %v6780_v4 = vld [vmem:[%s9947_s2 + $0x4d8] sm:$0xff] }
 0x2fd   :  { %1492 = vmatprep.subr.mxu1 %v6766_v22  ;;  %1620 = vmatpush2.msra.mxu0 %v5894_v6  ;;  %10797 = vst [vmem:[#allocation45_spill] sm:$0xff] %v6780_v4  ;;  %v6787_v6 = vld [vmem:[%s9947_s2 + $0x4d0] sm:$0xff] }
 0x2fe   :  { %1493 = vmatpush2.msra.mxu1 %v6773_v40  ;;  %1621 = vmatprep.subr.mxu0 %v5901_v8  ;;  %10798 = vst [vmem:[#allocation47_spill] sm:$0xff] %v6787_v6  ;;  %v6794_v8 = vld [vmem:[%s9947_s2 + $0x4a8] sm:$0xff] }
 0x2ff   :  { %1494 = vmatprep.subr.mxu1 %v6780_v4  ;;  %1622 = vmatpush2.msra.mxu0 %v5908_v10  ;;  %10799 = vst [vmem:[#allocation52_spill] sm:$0xff] %v6794_v8  ;;  %v6801_v10 = vld [vmem:[%s9947_s2 + $0x4a0] sm:$0xff] }
 0x300   :  { %1495 = vmatpush2.msra.mxu1 %v6787_v6  ;;  %1623 = vmatprep.subr.mxu0 %v5915_v12  ;;  %10800 = vst [vmem:[#allocation49_spill] sm:$0xff] %v6801_v10  ;;  %v6808_v12 = vld [vmem:[%s9947_s2 + $0x478] sm:$0xff] }
 0x301   :  { %1496 = vmatprep.subr.mxu1 %v6794_v8  ;;  %1624 = vmatpush2.msra.mxu0 %v5922_v15  ;;  %10801 = vst [vmem:[#allocation54_spill] sm:$0xff] %v6808_v12  ;;  %v6815_v15 = vld [vmem:[%s9947_s2 + $0x470] sm:$0xff]  ;;  %v10837_v8 = vld [vmem:[#allocation64_spill] sm:$0xff] }
 0x302   :  { %1497 = vmatpush2.msra.mxu1 %v6801_v10  ;;  %1625 = vmatprep.subr.mxu0 %v5929_v17  ;;  %10802 = vst [vmem:[#allocation51_spill] sm:$0xff] %v6815_v15  ;;  %v6822_v17 = vld [vmem:[%s9947_s2 + $0x448] sm:$0xff]  ;;  %v10834_v10 = vld [vmem:[#allocation58_spill] sm:$0xff] }
 0x303   :  { %1498 = vmatprep.subr.mxu1 %v6808_v12  ;;  %1626 = vmatpush2.msra.mxu0 %v5936_v19  ;;  %10803 = vst [vmem:[#allocation56_spill] sm:$0xff] %v6822_v17  ;;  %v6829_v19 = vld [vmem:[%s9947_s2 + $0x440] sm:$0xff]  ;;  %v10833_v12 = vld [vmem:[#allocation57_spill] sm:$0xff] }
 0x304   :  { %1499 = vmatpush2.msra.mxu1 %v6815_v15  ;;  %1627 = vmatprep.subr.mxu0 %v5943_v21  ;;  %10804 = vst [vmem:[#allocation59_spill] sm:$0xff] %v6829_v19  ;;  %v6836_v21 = vld [vmem:[%s9947_s2 + $0x418] sm:$0xff]  ;;  %v10832_v15 = vld [vmem:[#allocation55_spill] sm:$0xff] }
 0x305   :  { %1500 = vmatprep.subr.mxu1 %v6822_v17  ;;  %1628 = vmatpush2.msra.mxu0 %v5950_v24  ;;  %10805 = vst [vmem:[#allocation61_spill] sm:$0xff] %v6836_v21  ;;  %v6843_v24 = vld [vmem:[%s9947_s2 + $0x410] sm:$0xff]  ;;  %v10829_v17 = vld [vmem:[#allocation99_spill] sm:$0xff] }
 0x306   :  { %1501 = vmatpush2.msra.mxu1 %v6829_v19  ;;  %1629 = vmatprep.subr.mxu0 %v5957_v26  ;;  %10806 = vst [vmem:[#allocation63_spill] sm:$0xff] %v6843_v24  ;;  %v6850_v26 = vld [vmem:[%s9947_s2 + $0x3e8] sm:$0xff]  ;;  %v10808_v19 = vld [vmem:[#allocation70_spill] sm:$0xff] }
 0x307   :  { %1502 = vmatprep.subr.mxu1 %v6836_v21  ;;  %1630 = vmatpush2.msra.mxu0 %v5964_v28  ;;  %10807 = vst [vmem:[#allocation66_spill] sm:$0xff] %v6850_v26  ;;  %v6857_v28 = vld [vmem:[%s9947_s2 + $0x3e0] sm:$0xff]  ;;  %v10810_v21 = vld [vmem:[#allocation73_spill] sm:$0xff] }
 0x308   :  { %1503 = vmatpush2.msra.mxu1 %v6843_v24  ;;  %1631 = vmatprep.subr.mxu0 %v5971_v30  ;;  %10809 = vst [vmem:[#allocation68_spill] sm:$0xff] %v6857_v28  ;;  %v6864_v30 = vld [vmem:[%s9947_s2 + $0x3b8] sm:$0xff]  ;;  %v10812_v24 = vld [vmem:[#allocation75_spill] sm:$0xff] }
 0x309   :  { %1504 = vmatprep.subr.mxu1 %v6850_v26  ;;  %1632 = vmatpush2.msra.mxu0 %v10808_v19  ;;  %10811 = vst [vmem:[#allocation70_spill] sm:$0xff] %v6864_v30  ;;  %v6871_v19 = vld [vmem:[%s9947_s2 + $0x3b0] sm:$0xff] }
 0x30a   :  { %1505 = vmatpush2.msra.mxu1 %v6857_v28  ;;  %1633 = vmatprep.subr.mxu0 %v10810_v21  ;;  %10813 = vst [vmem:[#allocation73_spill] sm:$0xff] %v6871_v19  ;;  %v10814_v26 = vld [vmem:[#allocation77_spill] sm:$0xff]  ;;  %v6878_v21 = vld [vmem:[%s9947_s2 + $0x388] sm:$0xff] }
 0x30b   :  { %1506 = vmatprep.subr.mxu1 %v6864_v30  ;;  %1634 = vmatpush2.msra.mxu0 %v10812_v24  ;;  %10815 = vst [vmem:[#allocation75_spill] sm:$0xff] %v6878_v21  ;;  %v10816_v28 = vld [vmem:[#allocation80_spill] sm:$0xff]  ;;  %v6885_v24 = vld [vmem:[%s9947_s2 + $0x380] sm:$0xff]  ;;  %v10818_v30 = vld [vmem:[#allocation82_spill] sm:$0xff] }
 0x30c   :  { %1507 = vmatpush2.msra.mxu1 %v6871_v19  ;;  %1635 = vmatprep.subr.mxu0 %v10814_v26  ;;  %10817 = vst [vmem:[#allocation77_spill] sm:$0xff] %v6885_v24  ;;  %v6892_v26 = vld [vmem:[%s9947_s2 + $0x358] sm:$0xff]  ;;  %v10820_v19 = vld [vmem:[#allocation84_spill] sm:$0xff] }
 0x30d   :  { %1508 = vmatprep.subr.mxu1 %v6878_v21  ;;  %1636 = vmatpush2.msra.mxu0 %v10816_v28  ;;  %10819 = vst [vmem:[#allocation80_spill] sm:$0xff] %v6892_v26  ;;  %v6899_v28 = vld [vmem:[%s9947_s2 + $0x350] sm:$0xff]  ;;  %v10822_v21 = vld [vmem:[#allocation87_spill] sm:$0xff] }
 0x30e   :  { %1509 = vmatpush2.msra.mxu1 %v6885_v24  ;;  %1637 = vmatprep.subr.mxu0 %v10818_v30  ;;  %10821 = vst [vmem:[#allocation82_spill] sm:$0xff] %v6899_v28  ;;  %v6906_v30 = vld [vmem:[%s9947_s2 + $0x328] sm:$0xff]  ;;  %v10824_v24 = vld [vmem:[#allocation89_spill] sm:$0xff] }
 0x30f   :  { %1510 = vmatprep.subr.mxu1 %v6892_v26  ;;  %1638 = vmatpush2.msra.mxu0 %v10820_v19  ;;  %10823 = vst [vmem:[#allocation84_spill] sm:$0xff] %v6906_v30  ;;  %v6913_v19 = vld [vmem:[%s9947_s2 + $0x320] sm:$0xff] }
 0x310   :  { %1511 = vmatpush2.msra.mxu1 %v6899_v28  ;;  %1639 = vmatprep.subr.mxu0 %v10822_v21  ;;  %10825 = vst [vmem:[#allocation87_spill] sm:$0xff] %v6913_v19  ;;  %v10826_v26 = vld [vmem:[#allocation91_spill] sm:$0xff]  ;;  %v10827_v21 = vld [vmem:[#allocation94_spill] sm:$0xff]  ;;  %v10828_v28 = vld [vmem:[#allocation97_spill] sm:$0xff] }
 0x311   :  { %1512 = vmatprep.subr.mxu1 %v6906_v30  ;;  %1640 = vmatpush2.msra.mxu0 %v10824_v24  ;;  %v10830_v30 = vld [vmem:[#allocation103_spill] sm:$0xff]  ;;  %v10831_v24 = vld [vmem:[#allocation53_spill] sm:$0xff] }
 0x312   :  { %1513 = vmatpush2.msra.mxu1 %v6913_v19  ;;  %1641 = vmatprep.subr.mxu0 %v10826_v26  ;;  %v10835_v19 = vld [vmem:[#allocation60_spill] sm:$0xff]  ;;  %v10836_v26 = vld [vmem:[#allocation62_spill] sm:$0xff] }
 0x313   :  { %1515 = vmatmul.mubr.f32.vlgmr.msra.gmra.mxu1 %v6453_v53  ;;  %1650 = vmatprep.subr.mxu1 %v10827_v21  ;;  %v10838_v21 = vld [vmem:[#allocation65_spill] sm:$0xff] }
 0x314   :  { %1651 = vmatpush1.msra.mxu1 %v10828_v28  ;;  %1642 = vmatpush2.msra.mxu0 %v10829_v17  ;;  %v10839_v28 = vld [vmem:[#allocation67_spill] sm:$0xff]  ;;  %v10840_v17 = vld [vmem:[#allocation69_spill] sm:$0xff] }
 0x315   :  { %1652 = vmatprep.subr.mxu1 %v10830_v30  ;;  %1721 = vmatprep.subr.mxu0 %v10831_v24  ;;  %v10841_v30 = vld [vmem:[#allocation71_spill] sm:$0xff]  ;;  %v10842_v24 = vld [vmem:[#allocation72_spill] sm:$0xff] }
 0x316   :  { %1653 = vmatpush1.msra.mxu1 %v10832_v15  ;;  %v10843_v15 = vld [vmem:[#allocation74_spill] sm:$0xff] }
 0x317   :  { %1654 = vmatprep.subr.mxu1 %v10833_v12  ;;  %v10844_v12 = vld [vmem:[#allocation76_spill] sm:$0xff] }
 0x318   :  { %1655 = vmatpush1.msra.mxu1 %v10834_v10  ;;  %v10845_v10 = vld [vmem:[#allocation78_spill] sm:$0xff] }
 0x319   :  { %1656 = vmatprep.subr.mxu1 %v10835_v19  ;;  %v10846_v19 = vld [vmem:[#allocation79_spill] sm:$0xff] }
 0x31a   :  { %1657 = vmatpush1.msra.mxu1 %v10836_v26  ;;  %v10847_v26 = vld [vmem:[#allocation81_spill] sm:$0xff] }
 0x31b   :  { %1658 = vmatprep.subr.mxu1 %v10837_v8  ;;  %v10848_v8 = vld [vmem:[#allocation83_spill] sm:$0xff] }
 0x31c   :  { %1659 = vmatpush1.msra.mxu1 %v10838_v21  ;;  %v10849_v21 = vld [vmem:[#allocation85_spill] sm:$0xff] }
 0x31d   :  { %1660 = vmatprep.subr.mxu1 %v10839_v28  ;;  %v10850_v28 = vld [vmem:[#allocation86_spill] sm:$0xff] }
 0x31e   :  { %1661 = vmatpush1.msra.mxu1 %v10840_v17  ;;  %v10851_v17 = vld [vmem:[#allocation88_spill] sm:$0xff] }
 0x31f   :  { %1662 = vmatprep.subr.mxu1 %v10841_v30  ;;  %v10852_v30 = vld [vmem:[#allocation90_spill] sm:$0xff] }
 0x320   :  { %1663 = vmatpush1.msra.mxu1 %v10842_v24  ;;  %v10853_v24 = vld [vmem:[#allocation92_spill] sm:$0xff] }
 0x321   :  { %1664 = vmatprep.subr.mxu1 %v10843_v15  ;;  %v10854_v15 = vld [vmem:[#allocation93_spill] sm:$0xff] }
 0x322   :  { %1665 = vmatpush1.msra.mxu1 %v10844_v12  ;;  %v10855_v12 = vld [vmem:[#allocation95_spill] sm:$0xff] }
 0x323   :  { %1666 = vmatprep.subr.mxu1 %v10845_v10  ;;  %v10856_v10 = vld [vmem:[#allocation96_spill] sm:$0xff] }
 0x324   :  { %1667 = vmatpush1.msra.mxu1 %v10846_v19  ;;  %v10857_v19 = vld [vmem:[#allocation98_spill] sm:$0xff] }
 0x325   :  { %1668 = vmatprep.subr.mxu1 %v10847_v26  ;;  %v10858_v26 = vld [vmem:[#allocation100_spill] sm:$0xff] }
 0x326   :  { %1669 = vmatpush1.msra.mxu1 %v10848_v8  ;;  %v10859_v8 = vld [vmem:[#allocation101_spill] sm:$0xff] }
 0x327   :  { %1670 = vmatprep.subr.mxu1 %v10849_v21  ;;  %v10860_v21 = vld [vmem:[#allocation102_spill] sm:$0xff] }
 0x328   :  { %1671 = vmatpush1.msra.mxu1 %v10850_v28  ;;  %v10861_v28 = vld [vmem:[#allocation104_spill] sm:$0xff] }
 0x329   :  { %1672 = vmatprep.subr.mxu1 %v10851_v17  ;;  %v10862_v17 = vld [vmem:[#allocation105_spill] sm:$0xff] }
 0x32a   :  { %1673 = vmatpush1.msra.mxu1 %v10852_v30  ;;  %v10863_v30 = vld [vmem:[#allocation106_spill] sm:$0xff] }
 0x32b   :  { %1674 = vmatprep.subr.mxu1 %v10853_v24  ;;  %v10864_v24 = vld [vmem:[#allocation107_spill] sm:$0xff] }
 0x32c   :  { %1675 = vmatpush1.msra.mxu1 %v10854_v15  ;;  %v10865_v15 = vld [vmem:[#allocation108_spill] sm:$0xff] }
 0x32d   :  { %1676 = vmatprep.subr.mxu1 %v10855_v12  ;;  %v10866_v12 = vld [vmem:[#allocation109_spill] sm:$0xff] }
 0x32e   :  { %1677 = vmatpush1.msra.mxu1 %v10856_v10  ;;  %v10867_v10 = vld [vmem:[#allocation110_spill] sm:$0xff] }
 0x32f   :  { %1678 = vmatprep.subr.mxu1 %v10857_v19  ;;  %v10868_v19 = vld [vmem:[#allocation111_spill] sm:$0xff] }
 0x330   :  { %1679 = vmatpush1.msra.mxu1 %v10858_v26  ;;  %v10869_v26 = vld [vmem:[#allocation112_spill] sm:$0xff] }
 0x331   :  { %1680 = vmatprep.subr.mxu1 %v10859_v8  ;;  %v10870_v8 = vld [vmem:[#allocation113_spill] sm:$0xff] }
 0x332   :  { %1681 = vmatpush1.msra.mxu1 %v10860_v21  ;;  %v10871_v21 = vld [vmem:[#allocation114_spill] sm:$0xff] }
 0x333   :  { %1682 = vmatprep.subr.mxu1 %v10861_v28  ;;  %v10872_v28 = vld [vmem:[#allocation115_spill] sm:$0xff] }
 0x334   :  { %1683 = vmatpush2.msra.mxu1 %v10862_v17  ;;  %v10873_v17 = vld [vmem:[#allocation116_spill] sm:$0xff] }
 0x335   :  { %1684 = vmatprep.subr.mxu1 %v10863_v30  ;;  %v10874_v30 = vld [vmem:[#allocation117_spill] sm:$0xff] }
 0x336   :  { %1685 = vmatpush2.msra.mxu1 %v10864_v24  ;;  %v10875_v24 = vld [vmem:[#allocation118_spill] sm:$0xff] }
 0x337   :  { %1686 = vmatprep.subr.mxu1 %v10865_v15  ;;  %v10876_v15 = vld [vmem:[#allocation119_spill] sm:$0xff] }
 0x338   :  { %1687 = vmatpush2.msra.mxu1 %v10866_v12  ;;  %v10877_v12 = vld [vmem:[#allocation120_spill] sm:$0xff] }
 0x339   :  { %1688 = vmatprep.subr.mxu1 %v10867_v10  ;;  %v10878_v10 = vld [vmem:[#allocation121_spill] sm:$0xff] }
 0x33a   :  { %1689 = vmatpush2.msra.mxu1 %v10868_v19  ;;  %v10879_v19 = vld [vmem:[#allocation122_spill] sm:$0xff] }
 0x33b   :  { %1690 = vmatprep.subr.mxu1 %v10869_v26  ;;  %v10880_v26 = vld [vmem:[#allocation123_spill] sm:$0xff] }
 0x33c   :  { %1691 = vmatpush2.msra.mxu1 %v10870_v8  ;;  %v10881_v8 = vld [vmem:[#allocation124_spill] sm:$0xff] }
 0x33d   :  { %1692 = vmatprep.subr.mxu1 %v10871_v21  ;;  %v10882_v21 = vld [vmem:[#allocation125_spill] sm:$0xff] }
 0x33e   :  { %1693 = vmatpush2.msra.mxu1 %v10872_v28  ;;  %v10883_v28 = vld [vmem:[#allocation126_spill] sm:$0xff] }
 0x33f   :  { %1694 = vmatprep.subr.mxu1 %v10873_v17  ;;  %v10884_v17 = vld [vmem:[#allocation127_spill] sm:$0xff] }
 0x340   :  { %1695 = vmatpush2.msra.mxu1 %v10874_v30  ;;  %v10885_v30 = vld [vmem:[#allocation128_spill] sm:$0xff] }
 0x341   :  { %1696 = vmatprep.subr.mxu1 %v10875_v24  ;;  %v10886_v24 = vld [vmem:[#allocation129_spill] sm:$0xff] }
 0x342   :  { %1697 = vmatpush2.msra.mxu1 %v10876_v15  ;;  %v10887_v15 = vld [vmem:[#allocation130_spill] sm:$0xff] }
 0x343   :  { %1698 = vmatprep.subr.mxu1 %v10877_v12  ;;  %v10888_v12 = vld [vmem:[#allocation131_spill] sm:$0xff] }
 0x344   :  { %1699 = vmatpush2.msra.mxu1 %v10878_v10  ;;  %v10889_v10 = vld [vmem:[#allocation132_spill] sm:$0xff] }
 0x345   :  { %1700 = vmatprep.subr.mxu1 %v10879_v19  ;;  %v10890_v19 = vld [vmem:[#allocation133_spill] sm:$0xff] }
 0x346   :  { %1701 = vmatpush2.msra.mxu1 %v10880_v26  ;;  %v10891_v26 = vld [vmem:[#allocation134_spill] sm:$0xff] }
 0x347   :  { %1702 = vmatprep.subr.mxu1 %v10881_v8  ;;  %v10892_v8 = vld [vmem:[#allocation135_spill] sm:$0xff] }
 0x348   :  { %1703 = vmatpush2.msra.mxu1 %v10882_v21  ;;  %v6987_v21 = vld [vmem:[%s9947_s2 + $0x2d8] sm:$0xff] }
 0x349   :  { %1704 = vmatprep.subr.mxu1 %v10883_v28  ;;  %10893 = vst [vmem:[#allocation89_spill] sm:$0xff] %v6987_v21 }
 0x34a   :  { %1705 = vmatpush2.msra.mxu1 %v10884_v17  ;;  %v10894_v17 = vld [vmem:[#allocation30_spill] sm:$0xff] }
 0x34b   :  { %1706 = vmatprep.subr.mxu1 %v10885_v30 }
 0x34c   :  { %1707 = vmatpush2.msra.mxu1 %v10886_v24 }
 0x34d   :  { %1708 = vmatprep.subr.mxu1 %v10887_v15  ;;  %v10895_v15 = vld [vmem:[#allocation6_spill] sm:$0xff] }
 0x34e   :  { %1709 = vmatpush2.msra.mxu1 %v10888_v12 }
 0x34f   :  { %1710 = vmatprep.subr.mxu1 %v10889_v10 }
 0x350   :  { %1711 = vmatpush2.msra.mxu1 %v10890_v19 }
 0x351   :  { %1712 = vmatprep.subr.mxu1 %v10891_v26  ;;  %v10896_v26 = vld [vmem:[#allocation3_spill] sm:$0xff] }
 0x352   :  { %1713 = vmatpush2.msra.mxu1 %v10892_v8 }
 0x353   :  { %1850 = vmatprep.subr.mxu1 %v6987_v21 }
 0x393   :  { %v1374_v28 = vpop.f32.mrf.mxu1  ;;  %v1445_v4 = vpop.f32.mrf.mxu0 }
 0x394   :  { %v1375_v30 = vadd.f32 %v1374_v28, %v10894_v17  ;;  %v10897_v28 = vld [vmem:[#allocation21_spill] sm:$0xff] }
 0x395   :  { %v1376_v24 = vpop.f32.mrf.mxu1  ;;  %v1447_v22 = vpop.f32.mrf.mxu0  ;;  %v370_v17 = vadd.f32 %v10897_v28, %v5568_v2 }
 0x396   :  { %v1533_v12 = vadd.f32 %v1375_v30, %v10895_v15  ;;  %v1377_v19 = vadd.f32 %v1376_v24, %v5528_v9  ;;  %v1448_v21 = vadd.f32 %v1447_v22, %v5564_v61  ;;  %v1446_v24 = vadd.f32 %v1445_v4, %v5558_v0 }
 0x398   :  { %v2931_v10 = vmul.f32 -1.442695, %v1533_v12  ;;  %v1540_v6 = vadd.f32 %v1377_v19, %v10896_v26  ;;  %v1554_v58 = vadd.f32 %v1448_v21, %v370_v17 }
 0x39a   :  { %3009 = vpow2.f32 %v2931_v10  ;;  %v2932_v8 = vmul.f32 -1.442695, %v1540_v6  ;;  %v2933_v15 = vmul.f32 -1.442695, %v1554_v58  ;;  %v10898_v6 = vld [vmem:[#allocation20_spill] sm:$0xff] }
 0x39b   :  { %v350_v19 = vadd.f32 %v10898_v6, %v5561_v16 }
 0x39c   :  { %3011 = vpow2.f32 %v2932_v8 }
 0x3a7   :  { %v3010_v40 = vpop.eup %3009 }
 0x3a8   :  { %v1537_v7 = vadd.f32 1.0, %v3010_v40 }
 0x3a9   :  { %v3012_v30 = vpop.eup %3011 }
 0x3aa   :  { %3013 = vrcp.f32 %v1537_v7  ;;  %v1544_v12 = vadd.f32 1.0, %v3012_v30  ;;  %v10899_v30 = vld [vmem:[#allocation35_spill] sm:$0xff] }
 0x3ab   :  { %3015 = vpow2.f32 %v2933_v15  ;;  %v481_v15 = vadd.f32 %v10899_v30, %v5585_v32 }
 0x3ac   :  { %3017 = vrcp.f32 %v1544_v12 }
 0x3b7   :  { %v3014_v10 = vpop.eup %3013 }
 0x3b8   :  { %v1547_v26 = vmul.f32 %v3014_v10, %v1446_v24  ;;  %v3016_v7 = vpop.eup %3015 }
 0x3b9   :  { %v3018_v22 = vpop.eup %3017  ;;  %v1558_v8 = vadd.f32 1.0, %v3016_v7 }
 0x3ba   :  { %v1548_v40 = vadd.f32 %v1547_v26, %v350_v19  ;;  %v1550_v61 = vsub.f32 1.0, %v3018_v22  ;;  %v1552_v58 = vmul.f32 %v3018_v22, %v6453_v53  ;;  %v10900_v53 = vld [vmem:[#allocation42_spill] sm:$0xff] }
 0x3bb   :  { %v483_v19 = vadd.f32 %v10900_v53, %v5595_v3  ;;  %v7212_v53 = vld [vmem:[%s9947_s2 + $0x60] sm:$0xff] }
 0x3bc   :  { %3019 = vtanh.f32 %v1548_v40 }
 0x3bd   :  { %3021 = vrcp.f32 %v1558_v8 }
 0x3c9   :  { %v3020_v28 = vpop.eup %3019 }
 0x3ca   :  { %v1551_v21 = vmul.f32 %v3020_v28, %v1550_v61  ;;  %v3022_v61 = vpop.eup %3021 }
 0x3cc   :  { %v7001_v17 = vadd.f32 %v1552_v58, %v1551_v21 }
 0x3ce   :  { %2935 = vst [vmem:[%s9950_s5 + $0x20] sm:$0xff] %v7001_v17 }
 0x3d3   :  { %v1516_v4 = vpop.f32.mrf.mxu1 }
 0x3d4   :  { %v1517_v12 = vadd.f32 %v1516_v4, %v5582_v54 }
 0x3d5   :  { %v1518_v24 = vpop.f32.mrf.mxu1 }
 0x3d6   :  { %v1561_v10 = vadd.f32 %v1517_v12, %v481_v15  ;;  %v1519_v6 = vadd.f32 %v1518_v24, %v5591_v34  ;;  %v7037_v12 = vld [vmem:[%s9947_s2 + $0x2a8] sm:$0xff] }
 0x3d7   :  { %v10902_v24 = vld [vmem:[#allocation44_spill] sm:$0xff] }
 0x3d8   :  { %v2934_v26 = vmul.f32 -1.442695, %v1561_v10  ;;  %v1568_v40 = vmul.f32 %v3022_v61, %v1519_v6  ;;  %v10903_v10 = vld [vmem:[#allocation46_spill] sm:$0xff]  ;;  %v7198_v6 = vld [vmem:[%s9947_s2 + $0x90] sm:$0xff]  ;;  %v7205_v61 = vld [vmem:[%s9947_s2 + $0x68] sm:$0xff] }
 0x3da   :  { %3023 = vpow2.f32 %v2934_v26  ;;  %v1569_v7 = vadd.f32 %v1568_v40, %v483_v19  ;;  %v10906_v19 = vld [vmem:[#allocation41_spill] sm:$0xff]  ;;  %v10908_v26 = vld [vmem:[#allocation48_spill] sm:$0xff]  ;;  %v10910_v40 = vld [vmem:[#allocation43_spill] sm:$0xff] }
 0x3e7   :  { %v3024_v22 = vpop.eup %3023 }
 0x3e8   :  { %v1565_v8 = vadd.f32 1.0, %v3024_v22  ;;  %v10912_v22 = vld [vmem:[#allocation50_spill] sm:$0xff] }
 0x3ea   :  { %3025 = vrcp.f32 %v1565_v8  ;;  %v7317_v8 = vld [vmem:[%s9947_s2 + $0x4e8] sm:$0xff] }
 0x3eb   :  { %3027 = vtanh.f32 %v1569_v7  ;;  %v7310_v7 = vld [vmem:[%s9947_s2 + $0x510] sm:$0xff]  ;;  %10913 = vst [vmem:[#allocation53_spill] sm:$0xff] %v7317_v8 }
 0x3ec   :  { %10911 = vst [vmem:[#allocation103_spill] sm:$0xff] %v7310_v7 }
 0x3f7   :  { %v3026_v28 = vpop.eup %3025 }
 0x3f8   :  { %v1571_v21 = vsub.f32 1.0, %v3026_v28  ;;  %v3028_v58 = vpop.eup %3027  ;;  %v1573_v30 = vmul.f32 %v3026_v28, %v6466_v45  ;;  %v7030_v45 = vld [vmem:[%s9947_s2 + $0x2d0] sm:$0xff] }
 0x3f9   :  { %v10914_v28 = vld [vmem:[#allocation45_spill] sm:$0xff] }
 0x3fa   :  { %v1572_v4 = vmul.f32 %v3028_v58, %v1571_v21  ;;  %v7324_v21 = vld [vmem:[%s9947_s2 + $0x4e0] sm:$0xff] }
 0x3fb   :  { %10915 = vst [vmem:[#allocation55_spill] sm:$0xff] %v7324_v21  ;;  %v10916_v58 = vld [vmem:[#allocation47_spill] sm:$0xff] }
 0x3fc   :  { %v7014_v15 = vadd.f32 %v1573_v30, %v1572_v4  ;;  %v7331_v4 = vld [vmem:[%s9947_s2 + $0x4b8] sm:$0xff]  ;;  %v10918_v30 = vld [vmem:[#allocation52_spill] sm:$0xff] }
 0x3fd   :  { %10917 = vst [vmem:[#allocation57_spill] sm:$0xff] %v7331_v4 }
 0x3fe   :  { %2936 = vst [vmem:[%s9950_s5 + $0x58] sm:$0xff] %v7014_v15  ;;  %1643 = vmatprep.mubr.f32.mxu0 %v7014_v15  ;;  %1714 = vmatprep.mubr.f32.mxu1 %v7014_v15 }
 0x3ff   :  { %1644 = vmatmul.mubr.f32.vlgmr.msra.gmra.mxu0 %v7001_v17  ;;  %1715 = vmatmul.mubr.f32.vlgmr.msra.gmra.mxu1 %v7001_v17 }
 0x400   :  { %1722 = vmatpush1.msra.mxu0 %v6479_v46  ;;  %1785 = vmatprep.mubr.f32.mxu0 %v7014_v15  ;;  %v7044_v46 = vld [vmem:[%s9947_s2 + $0x2a0] sm:$0xff] }
 0x401   :  { %1723 = vmatprep.subr.mxu0 %v6486_v62  ;;  %1851 = vmatpush1.msra.mxu1 %v7030_v45  ;;  %v7051_v62 = vld [vmem:[%s9947_s2 + $0x278] sm:$0xff] }
 0x402   :  { %1724 = vmatpush1.msra.mxu0 %v6493_v48  ;;  %1852 = vmatprep.subr.mxu1 %v7037_v12  ;;  %v7058_v48 = vld [vmem:[%s9947_s2 + $0x270] sm:$0xff] }
 0x403   :  { %1725 = vmatprep.subr.mxu0 %v6500_v44  ;;  %1853 = vmatpush1.msra.mxu1 %v7044_v46  ;;  %v7065_v44 = vld [vmem:[%s9947_s2 + $0x248] sm:$0xff] }
 0x404   :  { %1726 = vmatpush1.msra.mxu0 %v6507_v31  ;;  %1854 = vmatprep.subr.mxu1 %v7051_v62  ;;  %v7072_v31 = vld [vmem:[%s9947_s2 + $0x240] sm:$0xff] }
 0x405   :  { %1727 = vmatprep.subr.mxu0 %v6514_v38  ;;  %1855 = vmatpush1.msra.mxu1 %v7058_v48  ;;  %v7079_v38 = vld [vmem:[%s9947_s2 + $0x218] sm:$0xff] }
 0x406   :  { %1728 = vmatpush1.msra.mxu0 %v6521_v43  ;;  %1856 = vmatprep.subr.mxu1 %v7065_v44  ;;  %v7086_v43 = vld [vmem:[%s9947_s2 + $0x210] sm:$0xff] }
 0x407   :  { %1729 = vmatprep.subr.mxu0 %v6528_v60  ;;  %1857 = vmatpush1.msra.mxu1 %v7072_v31  ;;  %v7093_v60 = vld [vmem:[%s9947_s2 + $0x1e8] sm:$0xff] }
 0x408   :  { %1730 = vmatpush1.msra.mxu0 %v6535_v50  ;;  %1858 = vmatprep.subr.mxu1 %v7079_v38  ;;  %v7100_v50 = vld [vmem:[%s9947_s2 + $0x1e0] sm:$0xff] }
 0x409   :  { %1731 = vmatprep.subr.mxu0 %v6542_v52  ;;  %1859 = vmatpush1.msra.mxu1 %v7086_v43  ;;  %v7107_v52 = vld [vmem:[%s9947_s2 + $0x1b8] sm:$0xff] }
 0x40a   :  { %1732 = vmatpush1.msra.mxu0 %v6549_v20  ;;  %1860 = vmatprep.subr.mxu1 %v7093_v60  ;;  %v7114_v20 = vld [vmem:[%s9947_s2 + $0x1b0] sm:$0xff] }
 0x40b   :  { %1733 = vmatprep.subr.mxu0 %v6556_v23  ;;  %1861 = vmatpush1.msra.mxu1 %v7100_v50  ;;  %v7121_v23 = vld [vmem:[%s9947_s2 + $0x188] sm:$0xff] }
 0x40c   :  { %1734 = vmatpush1.msra.mxu0 %v6563_v13  ;;  %1862 = vmatprep.subr.mxu1 %v7107_v52  ;;  %v7128_v13 = vld [vmem:[%s9947_s2 + $0x180] sm:$0xff] }
 0x40d   :  { %1735 = vmatprep.subr.mxu0 %v6570_v56  ;;  %1863 = vmatpush1.msra.mxu1 %v7114_v20  ;;  %v7135_v56 = vld [vmem:[%s9947_s2 + $0x158] sm:$0xff] }
 0x40e   :  { %1736 = vmatpush1.msra.mxu0 %v6577_v27  ;;  %1864 = vmatprep.subr.mxu1 %v7121_v23  ;;  %v7142_v27 = vld [vmem:[%s9947_s2 + $0x150] sm:$0xff] }
 0x40f   :  { %1737 = vmatprep.subr.mxu0 %v6584_v42  ;;  %1865 = vmatpush1.msra.mxu1 %v7128_v13  ;;  %v7149_v42 = vld [vmem:[%s9947_s2 + $0x128] sm:$0xff] }
 0x410   :  { %1738 = vmatpush1.msra.mxu0 %v6591_v51  ;;  %1866 = vmatprep.subr.mxu1 %v7135_v56  ;;  %v7156_v51 = vld [vmem:[%s9947_s2 + $0x120] sm:$0xff] }
 0x411   :  { %1739 = vmatprep.subr.mxu0 %v6598_v55  ;;  %1867 = vmatpush1.msra.mxu1 %v7142_v27  ;;  %v7163_v55 = vld [vmem:[%s9947_s2 + $0xf8] sm:$0xff] }
 0x412   :  { %1740 = vmatpush1.msra.mxu0 %v6605_v41  ;;  %1868 = vmatprep.subr.mxu1 %v7149_v42  ;;  %v7170_v41 = vld [vmem:[%s9947_s2 + $0xf0] sm:$0xff] }
 0x413   :  { %1741 = vmatprep.subr.mxu0 %v6612_v5  ;;  %1869 = vmatpush1.msra.mxu1 %v7156_v51  ;;  %v7177_v5 = vld [vmem:[%s9947_s2 + $0xc8] sm:$0xff] }
 0x414   :  { %1742 = vmatpush1.msra.mxu0 %v6619_v37  ;;  %1870 = vmatprep.subr.mxu1 %v7163_v55  ;;  %v10901_v37 = vld [vmem:[#allocation37_spill] sm:$0xff] }
 0x415   :  { %1743 = vmatprep.subr.mxu0 %v6626_v39  ;;  %1871 = vmatpush1.msra.mxu1 %v7170_v41  ;;  %v7184_v39 = vld [vmem:[%s9947_s2 + $0xc0] sm:$0xff] }
 0x416   :  { %1744 = vmatpush1.msra.mxu0 %v6633_v35  ;;  %1872 = vmatprep.subr.mxu1 %v7177_v5  ;;  %v7191_v35 = vld [vmem:[%s9947_s2 + $0x98] sm:$0xff] }
 0x417   :  { %1745 = vmatprep.subr.mxu0 %v10901_v37  ;;  %1873 = vmatpush1.msra.mxu1 %v7184_v39  ;;  %v7338_v37 = vld [vmem:[%s9947_s2 + $0x4b0] sm:$0xff] }
 0x418   :  { %1746 = vmatpush1.msra.mxu0 %v10902_v24  ;;  %1874 = vmatprep.subr.mxu1 %v7191_v35  ;;  %10919 = vst [vmem:[#allocation58_spill] sm:$0xff] %v7338_v37  ;;  %v10920_v24 = vld [vmem:[#allocation49_spill] sm:$0xff] }
 0x419   :  { %1747 = vmatprep.subr.mxu0 %v10903_v10  ;;  %1875 = vmatpush1.msra.mxu1 %v7198_v6  ;;  %v7345_v10 = vld [vmem:[%s9947_s2 + $0x488] sm:$0xff] }
 0x41a   :  { %1748 = vmatpush1.msra.mxu0 %v6661_v14  ;;  %1876 = vmatprep.subr.mxu1 %v7205_v61  ;;  %v7219_v14 = vld [vmem:[%s9947_s2 + $0x38] sm:$0xff]  ;;  %10921 = vst [vmem:[#allocation60_spill] sm:$0xff] %v7345_v10 }
 0x41b   :  { %1749 = vmatprep.subr.mxu0 %v6668_v59  ;;  %1877 = vmatpush1.msra.mxu1 %v7212_v53  ;;  %v7226_v59 = vld [vmem:[%s9947_s2 + $0x30] sm:$0xff] }
 0x41c   :  { %1750 = vmatpush1.msra.mxu0 %v6675_v33  ;;  %1878 = vmatprep.subr.mxu1 %v7219_v14  ;;  %v7233_v33 = vld [vmem:[%s9947_s2 + $0x8] sm:$0xff] }
 0x41d   :  { %1751 = vmatprep.subr.mxu0 %v6682_v57  ;;  %1879 = vmatpush1.msra.mxu1 %v7226_v59  ;;  %v7240_v57 = vld [vmem:[%s9947_s2] sm:$0xff] }
 0x41e   :  { %1752 = vmatpush1.msra.mxu0 %v6689_v47  ;;  %1880 = vmatprep.subr.mxu1 %v7233_v33  ;;  %v7247_v47 = vld [vmem:[%s9947_s2 + $0x5d8] sm:$0xff] }
 0x41f   :  { %1753 = vmatprep.subr.mxu0 %v6696_v1  ;;  %1881 = vmatpush1.msra.mxu1 %v7240_v57  ;;  %v7254_v1 = vld [vmem:[%s9947_s2 + $0x5d0] sm:$0xff] }
 0x420   :  { %1754 = vmatpush2.msra.mxu0 %v6703_v29  ;;  %1882 = vmatprep.subr.mxu1 %v7247_v47  ;;  %v7261_v29 = vld [vmem:[%s9947_s2 + $0x5a8] sm:$0xff] }
 0x421   :  { %1755 = vmatprep.subr.mxu0 %v6710_v11  ;;  %1883 = vmatpush2.msra.mxu1 %v7254_v1  ;;  %v7268_v11 = vld [vmem:[%s9947_s2 + $0x5a0] sm:$0xff] }
 0x422   :  { %1756 = vmatpush2.msra.mxu0 %v6717_v36  ;;  %1884 = vmatprep.subr.mxu1 %v7261_v29  ;;  %v7275_v36 = vld [vmem:[%s9947_s2 + $0x578] sm:$0xff] }
 0x423   :  { %1757 = vmatprep.subr.mxu0 %v6724_v25  ;;  %1885 = vmatpush2.msra.mxu1 %v7268_v11  ;;  %v7282_v25 = vld [vmem:[%s9947_s2 + $0x570] sm:$0xff] }
 0x424   :  { %1758 = vmatpush2.msra.mxu0 %v6731_v18  ;;  %1886 = vmatprep.subr.mxu1 %v7275_v36  ;;  %10904 = vst [vmem:[#allocation91_spill] sm:$0xff] %v7282_v25  ;;  %v7289_v18 = vld [vmem:[%s9947_s2 + $0x548] sm:$0xff] }
 0x425   :  { %1759 = vmatprep.subr.mxu0 %v6738_v63  ;;  %1887 = vmatpush2.msra.mxu1 %v7282_v25  ;;  %10905 = vst [vmem:[#allocation94_spill] sm:$0xff] %v7289_v18  ;;  %v7296_v63 = vld [vmem:[%s9947_s2 + $0x540] sm:$0xff] }
 0x426   :  { %1760 = vmatpush2.msra.mxu0 %v6745_v49  ;;  %1888 = vmatprep.subr.mxu1 %v7289_v18  ;;  %10907 = vst [vmem:[#allocation97_spill] sm:$0xff] %v7296_v63  ;;  %v7303_v49 = vld [vmem:[%s9947_s2 + $0x518] sm:$0xff] }
 0x427   :  { %1761 = vmatprep.subr.mxu0 %v10906_v19  ;;  %1889 = vmatpush2.msra.mxu1 %v7296_v63  ;;  %10909 = vst [vmem:[#allocation99_spill] sm:$0xff] %v7303_v49  ;;  %v10922_v19 = vld [vmem:[#allocation54_spill] sm:$0xff] }
 0x428   :  { %1762 = vmatpush2.msra.mxu0 %v10908_v26  ;;  %1890 = vmatprep.subr.mxu1 %v7303_v49  ;;  %v7352_v26 = vld [vmem:[%s9947_s2 + $0x480] sm:$0xff] }
 0x429   :  { %1763 = vmatprep.subr.mxu0 %v10910_v40  ;;  %1891 = vmatpush2.msra.mxu1 %v7310_v7  ;;  %10923 = vst [vmem:[#allocation62_spill] sm:$0xff] %v7352_v26  ;;  %v10924_v40 = vld [vmem:[#allocation51_spill] sm:$0xff] }
 0x42a   :  { %1764 = vmatpush2.msra.mxu0 %v10912_v22  ;;  %1892 = vmatprep.subr.mxu1 %v7317_v8  ;;  %v7359_v22 = vld [vmem:[%s9947_s2 + $0x458] sm:$0xff] }
 0x42b   :  { %1765 = vmatprep.subr.mxu0 %v10914_v28  ;;  %1893 = vmatpush2.msra.mxu1 %v7324_v21  ;;  %10925 = vst [vmem:[#allocation64_spill] sm:$0xff] %v7359_v22  ;;  %v10926_v28 = vld [vmem:[#allocation56_spill] sm:$0xff] }
 0x42c   :  { %1766 = vmatpush2.msra.mxu0 %v10916_v58  ;;  %1894 = vmatprep.subr.mxu1 %v7331_v4  ;;  %v7366_v58 = vld [vmem:[%s9947_s2 + $0x450] sm:$0xff] }
 0x42d   :  { %1767 = vmatprep.subr.mxu0 %v10918_v30  ;;  %1895 = vmatpush2.msra.mxu1 %v7338_v37  ;;  %10927 = vst [vmem:[#allocation65_spill] sm:$0xff] %v7366_v58  ;;  %v10928_v30 = vld [vmem:[#allocation59_spill] sm:$0xff] }
 0x42e   :  { %1768 = vmatpush2.msra.mxu0 %v10920_v24  ;;  %1896 = vmatprep.subr.mxu1 %v7345_v10  ;;  %v7373_v24 = vld [vmem:[%s9947_s2 + $0x428] sm:$0xff] }
 0x42f   :  { %1769 = vmatprep.subr.mxu0 %v10922_v19  ;;  %1897 = vmatpush2.msra.mxu1 %v7352_v26  ;;  %10929 = vst [vmem:[#allocation67_spill] sm:$0xff] %v7373_v24  ;;  %v10930_v19 = vld [vmem:[#allocation61_spill] sm:$0xff]  ;;  %v11022_v26 = vld [vmem:[#allocation8_spill] sm:$0xff] }
 0x430   :  { %1770 = vmatpush2.msra.mxu0 %v10924_v40  ;;  %1898 = vmatprep.subr.mxu1 %v7359_v22  ;;  %v7380_v40 = vld [vmem:[%s9947_s2 + $0x420] sm:$0xff] }
 0x431   :  { %1771 = vmatprep.subr.mxu0 %v10926_v28  ;;  %1899 = vmatpush2.msra.mxu1 %v7366_v58  ;;  %10931 = vst [vmem:[#allocation69_spill] sm:$0xff] %v7380_v40  ;;  %v10932_v28 = vld [vmem:[#allocation63_spill] sm:$0xff]  ;;  %v10934_v58 = vld [vmem:[#allocation66_spill] sm:$0xff] }
 0x432   :  { %1772 = vmatpush2.msra.mxu0 %v10928_v30  ;;  %1900 = vmatprep.subr.mxu1 %v7373_v24  ;;  %v7387_v30 = vld [vmem:[%s9947_s2 + $0x3f8] sm:$0xff]  ;;  %v10936_v24 = vld [vmem:[#allocation68_spill] sm:$0xff] }
 0x433   :  { %1773 = vmatprep.subr.mxu0 %v10930_v19  ;;  %1901 = vmatpush2.msra.mxu1 %v7380_v40  ;;  %10933 = vst [vmem:[#allocation71_spill] sm:$0xff] %v7387_v30  ;;  %v7394_v19 = vld [vmem:[%s9947_s2 + $0x3f0] sm:$0xff]  ;;  %v10938_v40 = vld [vmem:[#allocation70_spill] sm:$0xff] }
 0x434   :  { %1774 = vmatpush2.msra.mxu0 %v10932_v28  ;;  %1902 = vmatprep.subr.mxu1 %v7387_v30  ;;  %10935 = vst [vmem:[#allocation72_spill] sm:$0xff] %v7394_v19  ;;  %v7401_v28 = vld [vmem:[%s9947_s2 + $0x3c8] sm:$0xff]  ;;  %v10940_v30 = vld [vmem:[#allocation73_spill] sm:$0xff] }
 0x435   :  { %1775 = vmatprep.subr.mxu0 %v10934_v58  ;;  %1903 = vmatpush2.msra.mxu1 %v7394_v19  ;;  %10937 = vst [vmem:[#allocation74_spill] sm:$0xff] %v7401_v28  ;;  %v7408_v58 = vld [vmem:[%s9947_s2 + $0x3c0] sm:$0xff] }
 0x436   :  { %1776 = vmatpush2.msra.mxu0 %v10936_v24  ;;  %1904 = vmatprep.subr.mxu1 %v7401_v28  ;;  %10939 = vst [vmem:[#allocation76_spill] sm:$0xff] %v7408_v58  ;;  %v7415_v24 = vld [vmem:[%s9947_s2 + $0x398] sm:$0xff]  ;;  %v10942_v19 = vld [vmem:[#allocation75_spill] sm:$0xff]  ;;  %v10944_v28 = vld [vmem:[#allocation77_spill] sm:$0xff] }
 0x437   :  { %1777 = vmatprep.subr.mxu0 %v10938_v40  ;;  %1905 = vmatpush2.msra.mxu1 %v7408_v58  ;;  %10941 = vst [vmem:[#allocation78_spill] sm:$0xff] %v7415_v24  ;;  %v7422_v40 = vld [vmem:[%s9947_s2 + $0x390] sm:$0xff]  ;;  %v10946_v58 = vld [vmem:[#allocation80_spill] sm:$0xff] }
 0x438   :  { %1778 = vmatpush2.msra.mxu0 %v10940_v30  ;;  %1906 = vmatprep.subr.mxu1 %v7415_v24  ;;  %10943 = vst [vmem:[#allocation79_spill] sm:$0xff] %v7422_v40  ;;  %v7429_v30 = vld [vmem:[%s9947_s2 + $0x368] sm:$0xff]  ;;  %v10948_v24 = vld [vmem:[#allocation82_spill] sm:$0xff] }
 0x439   :  { %1779 = vmatprep.subr.mxu0 %v10942_v19  ;;  %1907 = vmatpush2.msra.mxu1 %v7422_v40  ;;  %10945 = vst [vmem:[#allocation81_spill] sm:$0xff] %v7429_v30  ;;  %v7436_v19 = vld [vmem:[%s9947_s2 + $0x360] sm:$0xff]  ;;  %v10950_v40 = vld [vmem:[#allocation84_spill] sm:$0xff] }
 0x43a   :  { %1780 = vmatpush2.msra.mxu0 %v10944_v28  ;;  %1908 = vmatprep.subr.mxu1 %v7429_v30  ;;  %10947 = vst [vmem:[#allocation83_spill] sm:$0xff] %v7436_v19  ;;  %v7443_v28 = vld [vmem:[%s9947_s2 + $0x338] sm:$0xff]  ;;  %v10952_v30 = vld [vmem:[#allocation87_spill] sm:$0xff] }
 0x43b   :  { %1781 = vmatprep.subr.mxu0 %v10946_v58  ;;  %1909 = vmatpush2.msra.mxu1 %v7436_v19  ;;  %10949 = vst [vmem:[#allocation85_spill] sm:$0xff] %v7443_v28  ;;  %v7450_v58 = vld [vmem:[%s9947_s2 + $0x330] sm:$0xff]  ;;  %v11021_v19 = vld [vmem:[#allocation30_spill] sm:$0xff] }
 0x43c   :  { %1782 = vmatpush2.msra.mxu0 %v10948_v24  ;;  %1910 = vmatprep.subr.mxu1 %v7443_v28  ;;  %10951 = vst [vmem:[#allocation86_spill] sm:$0xff] %v7450_v58  ;;  %v7457_v24 = vld [vmem:[%s9947_s2 + $0x308] sm:$0xff] }
 0x43d   :  { %1783 = vmatprep.subr.mxu0 %v10950_v40  ;;  %1911 = vmatpush2.msra.mxu1 %v7450_v58  ;;  %10953 = vst [vmem:[#allocation88_spill] sm:$0xff] %v7457_v24  ;;  %v7464_v40 = vld [vmem:[%s9947_s2 + $0x2e8] sm:$0xff]  ;;  %v7482_v58 = vld [vmem:[%s9947_s2 + $0x2b8] sm:$0xff] }
 0x43e   :  { %1784 = vmatpush2.msra.mxu0 %v10952_v30  ;;  %1912 = vmatprep.subr.mxu1 %v7457_v24  ;;  %10954 = vst [vmem:[#allocation90_spill] sm:$0xff] %v7464_v40  ;;  %v7470_v30 = vld [vmem:[%s9947_s2 + $0x2e0] sm:$0xff]  ;;  %10957 = vst [vmem:[#allocation95_spill] sm:$0xff] %v7482_v58 }
 0x43f   :  { %1786 = vmatmul.mubr.f32.vlgmr.msra.gmra.mxu0 %v7001_v17  ;;  %1921 = vmatprep.subr.mxu0 %v7464_v40  ;;  %10955 = vst [vmem:[#allocation92_spill] sm:$0xff] %v7470_v30  ;;  %v7476_v24 = vld [vmem:[%s9947_s2 + $0x300] sm:$0xff]  ;;  %v7488_v40 = vld [vmem:[%s9947_s2 + $0x2f8] sm:$0xff] }
 0x440   :  { %1922 = vmatpush1.msra.mxu0 %v7470_v30  ;;  %10956 = vst [vmem:[#allocation93_spill] sm:$0xff] %v7476_v24  ;;  %1913 = vmatpush2.msra.mxu1 %v7476_v24  ;;  %10958 = vst [vmem:[#allocation96_spill] sm:$0xff] %v7488_v40  ;;  %v7494_v30 = vld [vmem:[%s9947_s2 + $0x2b0] sm:$0xff]  ;;  %v7500_v24 = vld [vmem:[%s9947_s2 + $0x288] sm:$0xff] }
 0x441   :  { %1923 = vmatprep.subr.mxu0 %v7482_v58  ;;  %1992 = vmatprep.subr.mxu1 %v7488_v40  ;;  %10959 = vst [vmem:[#allocation98_spill] sm:$0xff] %v7494_v30  ;;  %10960 = vst [vmem:[#allocation100_spill] sm:$0xff] %v7500_v24  ;;  %v7506_v58 = vld [vmem:[%s9947_s2 + $0x280] sm:$0xff]  ;;  %v7512_v40 = vld [vmem:[%s9947_s2 + $0x258] sm:$0xff] }
 0x442   :  { %1924 = vmatpush1.msra.mxu0 %v7494_v30  ;;  %10961 = vst [vmem:[#allocation101_spill] sm:$0xff] %v7506_v58  ;;  %10962 = vst [vmem:[#allocation102_spill] sm:$0xff] %v7512_v40  ;;  %v7518_v30 = vld [vmem:[%s9947_s2 + $0x250] sm:$0xff] }
 0x443   :  { %1925 = vmatprep.subr.mxu0 %v7500_v24  ;;  %10963 = vst [vmem:[#allocation104_spill] sm:$0xff] %v7518_v30  ;;  %v7524_v24 = vld [vmem:[%s9947_s2 + $0x228] sm:$0xff] }
 0x444   :  { %1926 = vmatpush1.msra.mxu0 %v7506_v58  ;;  %10964 = vst [vmem:[#allocation105_spill] sm:$0xff] %v7524_v24  ;;  %v7530_v58 = vld [vmem:[%s9947_s2 + $0x220] sm:$0xff] }
 0x445   :  { %1927 = vmatprep.subr.mxu0 %v7512_v40  ;;  %10965 = vst [vmem:[#allocation106_spill] sm:$0xff] %v7530_v58  ;;  %v7536_v40 = vld [vmem:[%s9947_s2 + $0x1f8] sm:$0xff] }
 0x446   :  { %1928 = vmatpush1.msra.mxu0 %v7518_v30  ;;  %10966 = vst [vmem:[#allocation107_spill] sm:$0xff] %v7536_v40  ;;  %v7542_v30 = vld [vmem:[%s9947_s2 + $0x1f0] sm:$0xff] }
 0x447   :  { %1929 = vmatprep.subr.mxu0 %v7524_v24  ;;  %10967 = vst [vmem:[#allocation108_spill] sm:$0xff] %v7542_v30  ;;  %v7548_v24 = vld [vmem:[%s9947_s2 + $0x1c8] sm:$0xff] }
 0x448   :  { %1930 = vmatpush1.msra.mxu0 %v7530_v58  ;;  %10968 = vst [vmem:[#allocation109_spill] sm:$0xff] %v7548_v24  ;;  %v7554_v58 = vld [vmem:[%s9947_s2 + $0x1c0] sm:$0xff] }
 0x449   :  { %1931 = vmatprep.subr.mxu0 %v7536_v40  ;;  %10969 = vst [vmem:[#allocation110_spill] sm:$0xff] %v7554_v58  ;;  %v7560_v40 = vld [vmem:[%s9947_s2 + $0x198] sm:$0xff] }
 0x44a   :  { %1932 = vmatpush1.msra.mxu0 %v7542_v30  ;;  %10970 = vst [vmem:[#allocation111_spill] sm:$0xff] %v7560_v40  ;;  %v7566_v30 = vld [vmem:[%s9947_s2 + $0x190] sm:$0xff] }
 0x44b   :  { %1933 = vmatprep.subr.mxu0 %v7548_v24  ;;  %10971 = vst [vmem:[#allocation112_spill] sm:$0xff] %v7566_v30  ;;  %v7572_v24 = vld [vmem:[%s9947_s2 + $0x168] sm:$0xff] }
 0x44c   :  { %1934 = vmatpush1.msra.mxu0 %v7554_v58  ;;  %10972 = vst [vmem:[#allocation113_spill] sm:$0xff] %v7572_v24  ;;  %v7578_v58 = vld [vmem:[%s9947_s2 + $0x160] sm:$0xff] }
 0x44d   :  { %1935 = vmatprep.subr.mxu0 %v7560_v40  ;;  %10973 = vst [vmem:[#allocation114_spill] sm:$0xff] %v7578_v58  ;;  %v7584_v40 = vld [vmem:[%s9947_s2 + $0x138] sm:$0xff] }
 0x44e   :  { %1936 = vmatpush1.msra.mxu0 %v7566_v30  ;;  %10974 = vst [vmem:[#allocation115_spill] sm:$0xff] %v7584_v40  ;;  %v7590_v30 = vld [vmem:[%s9947_s2 + $0x130] sm:$0xff] }
 0x44f   :  { %1937 = vmatprep.subr.mxu0 %v7572_v24  ;;  %10975 = vst [vmem:[#allocation116_spill] sm:$0xff] %v7590_v30  ;;  %v7596_v24 = vld [vmem:[%s9947_s2 + $0x108] sm:$0xff] }
 0x450   :  { %1938 = vmatpush1.msra.mxu0 %v7578_v58  ;;  %10976 = vst [vmem:[#allocation117_spill] sm:$0xff] %v7596_v24  ;;  %v7602_v58 = vld [vmem:[%s9947_s2 + $0x100] sm:$0xff] }
 0x451   :  { %1939 = vmatprep.subr.mxu0 %v7584_v40  ;;  %10977 = vst [vmem:[#allocation118_spill] sm:$0xff] %v7602_v58  ;;  %v7608_v40 = vld [vmem:[%s9947_s2 + $0xd8] sm:$0xff] }
 0x452   :  { %1940 = vmatpush1.msra.mxu0 %v7590_v30  ;;  %10978 = vst [vmem:[#allocation119_spill] sm:$0xff] %v7608_v40  ;;  %v7614_v30 = vld [vmem:[%s9947_s2 + $0xd0] sm:$0xff] }
 0x453   :  { %1941 = vmatprep.subr.mxu0 %v7596_v24  ;;  %10979 = vst [vmem:[#allocation120_spill] sm:$0xff] %v7614_v30  ;;  %v7620_v24 = vld [vmem:[%s9947_s2 + $0xa8] sm:$0xff] }
 0x454   :  { %1942 = vmatpush1.msra.mxu0 %v7602_v58  ;;  %10980 = vst [vmem:[#allocation121_spill] sm:$0xff] %v7620_v24  ;;  %v7626_v58 = vld [vmem:[%s9947_s2 + $0xa0] sm:$0xff] }
 0x455   :  { %1943 = vmatprep.subr.mxu0 %v7608_v40  ;;  %10981 = vst [vmem:[#allocation122_spill] sm:$0xff] %v7626_v58  ;;  %v7632_v40 = vld [vmem:[%s9947_s2 + $0x78] sm:$0xff] }
 0x456   :  { %1944 = vmatpush1.msra.mxu0 %v7614_v30  ;;  %10982 = vst [vmem:[#allocation123_spill] sm:$0xff] %v7632_v40  ;;  %v7638_v30 = vld [vmem:[%s9947_s2 + $0x70] sm:$0xff] }
 0x457   :  { %1945 = vmatprep.subr.mxu0 %v7620_v24  ;;  %10983 = vst [vmem:[#allocation124_spill] sm:$0xff] %v7638_v30  ;;  %v7644_v24 = vld [vmem:[%s9947_s2 + $0x48] sm:$0xff] }
 0x458   :  { %1946 = vmatpush1.msra.mxu0 %v7626_v58  ;;  %10984 = vst [vmem:[#allocation125_spill] sm:$0xff] %v7644_v24  ;;  %v7650_v58 = vld [vmem:[%s9947_s2 + $0x40] sm:$0xff] }
 0x459   :  { %1947 = vmatprep.subr.mxu0 %v7632_v40  ;;  %10985 = vst [vmem:[#allocation126_spill] sm:$0xff] %v7650_v58  ;;  %v7656_v40 = vld [vmem:[%s9947_s2 + $0x18] sm:$0xff] }
 0x45a   :  { %1948 = vmatpush1.msra.mxu0 %v7638_v30  ;;  %10986 = vst [vmem:[#allocation127_spill] sm:$0xff] %v7656_v40  ;;  %v7662_v30 = vld [vmem:[%s9947_s2 + $0x10] sm:$0xff] }
 0x45b   :  { %1949 = vmatprep.subr.mxu0 %v7644_v24  ;;  %10987 = vst [vmem:[#allocation128_spill] sm:$0xff] %v7662_v30  ;;  %v7668_v24 = vld [vmem:[%s9947_s2 + $0x5e8] sm:$0xff] }
 0x45c   :  { %1950 = vmatpush1.msra.mxu0 %v7650_v58  ;;  %10988 = vst [vmem:[#allocation129_spill] sm:$0xff] %v7668_v24  ;;  %v7674_v58 = vld [vmem:[%s9947_s2 + $0x5e0] sm:$0xff] }
 0x45d   :  { %1951 = vmatprep.subr.mxu0 %v7656_v40  ;;  %10989 = vst [vmem:[#allocation130_spill] sm:$0xff] %v7674_v58  ;;  %v7680_v40 = vld [vmem:[%s9947_s2 + $0x5b8] sm:$0xff] }
 0x45e   :  { %1952 = vmatpush1.msra.mxu0 %v7662_v30  ;;  %10990 = vst [vmem:[#allocation131_spill] sm:$0xff] %v7680_v40  ;;  %v7686_v30 = vld [vmem:[%s9947_s2 + $0x5b0] sm:$0xff] }
 0x45f   :  { %1953 = vmatprep.subr.mxu0 %v7668_v24  ;;  %10991 = vst [vmem:[#allocation132_spill] sm:$0xff] %v7686_v30  ;;  %v7692_v24 = vld [vmem:[%s9947_s2 + $0x588] sm:$0xff] }
 0x460   :  { %1954 = vmatpush2.msra.mxu0 %v7674_v58  ;;  %10992 = vst [vmem:[#allocation133_spill] sm:$0xff] %v7692_v24  ;;  %v7698_v58 = vld [vmem:[%s9947_s2 + $0x580] sm:$0xff] }
 0x461   :  { %1955 = vmatprep.subr.mxu0 %v7680_v40  ;;  %10993 = vst [vmem:[#allocation134_spill] sm:$0xff] %v7698_v58  ;;  %v7704_v40 = vld [vmem:[%s9947_s2 + $0x558] sm:$0xff] }
 0x462   :  { %1956 = vmatpush2.msra.mxu0 %v7686_v30  ;;  %10994 = vst [vmem:[#allocation135_spill] sm:$0xff] %v7704_v40  ;;  %v7710_v30 = vld [vmem:[%s9947_s2 + $0x550] sm:$0xff] }
 0x463   :  { %1957 = vmatprep.subr.mxu0 %v7692_v24  ;;  %10995 = vst [vmem:[#allocation6_spill] sm:$0xff] %v7710_v30  ;;  %v7716_v24 = vld [vmem:[%s9947_s2 + $0x528] sm:$0xff] }
 0x464   :  { %1958 = vmatpush2.msra.mxu0 %v7698_v58  ;;  %10996 = vst [vmem:[#allocation3_spill] sm:$0xff] %v7716_v24  ;;  %v7722_v58 = vld [vmem:[%s9947_s2 + $0x520] sm:$0xff] }
 0x465   :  { %1959 = vmatprep.subr.mxu0 %v7704_v40  ;;  %10997 = vst [vmem:[#allocation21_spill] sm:$0xff] %v7722_v58  ;;  %v7728_v40 = vld [vmem:[%s9947_s2 + $0x4f8] sm:$0xff] }
 0x466   :  { %1960 = vmatpush2.msra.mxu0 %v7710_v30  ;;  %10998 = vst [vmem:[#allocation20_spill] sm:$0xff] %v7728_v40  ;;  %v7734_v30 = vld [vmem:[%s9947_s2 + $0x4f0] sm:$0xff] }
 0x467   :  { %1961 = vmatprep.subr.mxu0 %v7716_v24  ;;  %10999 = vst [vmem:[#allocation35_spill] sm:$0xff] %v7734_v30  ;;  %v7740_v24 = vld [vmem:[%s9947_s2 + $0x4c8] sm:$0xff] }
 0x468   :  { %1962 = vmatpush2.msra.mxu0 %v7722_v58  ;;  %11000 = vst [vmem:[#allocation42_spill] sm:$0xff] %v7740_v24  ;;  %v7746_v58 = vld [vmem:[%s9947_s2 + $0x4c0] sm:$0xff] }
 0x469   :  { %1963 = vmatprep.subr.mxu0 %v7728_v40  ;;  %11001 = vst [vmem:[#allocation37_spill] sm:$0xff] %v7746_v58  ;;  %v7752_v40 = vld [vmem:[%s9947_s2 + $0x498] sm:$0xff] }
 0x46a   :  { %1964 = vmatpush2.msra.mxu0 %v7734_v30  ;;  %11002 = vst [vmem:[#allocation44_spill] sm:$0xff] %v7752_v40  ;;  %v7758_v30 = vld [vmem:[%s9947_s2 + $0x490] sm:$0xff] }
 0x46b   :  { %1965 = vmatprep.subr.mxu0 %v7740_v24  ;;  %11003 = vst [vmem:[#allocation46_spill] sm:$0xff] %v7758_v30  ;;  %v7764_v24 = vld [vmem:[%s9947_s2 + $0x468] sm:$0xff] }
 0x46c   :  { %1966 = vmatpush2.msra.mxu0 %v7746_v58  ;;  %11004 = vst [vmem:[#allocation41_spill] sm:$0xff] %v7764_v24  ;;  %v7770_v58 = vld [vmem:[%s9947_s2 + $0x460] sm:$0xff] }
 0x46d   :  { %1967 = vmatprep.subr.mxu0 %v7752_v40  ;;  %11005 = vst [vmem:[#allocation48_spill] sm:$0xff] %v7770_v58  ;;  %v7776_v40 = vld [vmem:[%s9947_s2 + $0x438] sm:$0xff] }
 0x46e   :  { %1968 = vmatpush2.msra.mxu0 %v7758_v30  ;;  %11006 = vst [vmem:[#allocation43_spill] sm:$0xff] %v7776_v40  ;;  %v7782_v30 = vld [vmem:[%s9947_s2 + $0x430] sm:$0xff] }
 0x46f   :  { %1969 = vmatprep.subr.mxu0 %v7764_v24  ;;  %11007 = vst [vmem:[#allocation50_spill] sm:$0xff] %v7782_v30  ;;  %v7788_v24 = vld [vmem:[%s9947_s2 + $0x408] sm:$0xff] }
 0x470   :  { %1970 = vmatpush2.msra.mxu0 %v7770_v58  ;;  %11008 = vst [vmem:[#allocation45_spill] sm:$0xff] %v7788_v24  ;;  %v7794_v58 = vld [vmem:[%s9947_s2 + $0x400] sm:$0xff] }
 0x471   :  { %1971 = vmatprep.subr.mxu0 %v7776_v40  ;;  %11009 = vst [vmem:[#allocation47_spill] sm:$0xff] %v7794_v58  ;;  %v7800_v40 = vld [vmem:[%s9947_s2 + $0x3d8] sm:$0xff] }
 0x472   :  { %1972 = vmatpush2.msra.mxu0 %v7782_v30  ;;  %11010 = vst [vmem:[#allocation52_spill] sm:$0xff] %v7800_v40  ;;  %v7806_v30 = vld [vmem:[%s9947_s2 + $0x3d0] sm:$0xff] }
 0x473   :  { %1973 = vmatprep.subr.mxu0 %v7788_v24  ;;  %11011 = vst [vmem:[#allocation49_spill] sm:$0xff] %v7806_v30  ;;  %v7812_v24 = vld [vmem:[%s9947_s2 + $0x3a8] sm:$0xff] }
 0x474   :  { %1974 = vmatpush2.msra.mxu0 %v7794_v58  ;;  %11012 = vst [vmem:[#allocation54_spill] sm:$0xff] %v7812_v24  ;;  %v7818_v58 = vld [vmem:[%s9947_s2 + $0x3a0] sm:$0xff] }
 0x475   :  { %1975 = vmatprep.subr.mxu0 %v7800_v40  ;;  %11013 = vst [vmem:[#allocation51_spill] sm:$0xff] %v7818_v58  ;;  %v7824_v40 = vld [vmem:[%s9947_s2 + $0x378] sm:$0xff] }
 0x476   :  { %1976 = vmatpush2.msra.mxu0 %v7806_v30  ;;  %11014 = vst [vmem:[#allocation56_spill] sm:$0xff] %v7824_v40  ;;  %v7830_v30 = vld [vmem:[%s9947_s2 + $0x370] sm:$0xff] }
 0x477   :  { %1977 = vmatprep.subr.mxu0 %v7812_v24  ;;  %11015 = vst [vmem:[#allocation59_spill] sm:$0xff] %v7830_v30  ;;  %v7836_v24 = vld [vmem:[%s9947_s2 + $0x348] sm:$0xff] }
 0x478   :  { %1978 = vmatpush2.msra.mxu0 %v7818_v58  ;;  %11016 = vst [vmem:[#allocation61_spill] sm:$0xff] %v7836_v24  ;;  %v7842_v58 = vld [vmem:[%s9947_s2 + $0x340] sm:$0xff] }
 0x479   :  { %1979 = vmatprep.subr.mxu0 %v7824_v40  ;;  %11017 = vst [vmem:[#allocation63_spill] sm:$0xff] %v7842_v58  ;;  %v7848_v40 = vld [vmem:[%s9947_s2 + $0x318] sm:$0xff] }
 0x47a   :  { %1980 = vmatpush2.msra.mxu0 %v7830_v30  ;;  %11018 = vst [vmem:[#allocation66_spill] sm:$0xff] %v7848_v40  ;;  %v7854_v30 = vld [vmem:[%s9947_s2 + $0x310] sm:$0xff] }
 0x47b   :  { %1981 = vmatprep.subr.mxu0 %v7836_v24  ;;  %11019 = vst [vmem:[#allocation68_spill] sm:$0xff] %v7854_v30  ;;  %v11020_v24 = vld [vmem:[#allocation89_spill] sm:$0xff] }
 0x47c   :  { %1982 = vmatpush2.msra.mxu0 %v7842_v58 }
 0x47d   :  { %1983 = vmatprep.subr.mxu0 %v7848_v40  ;;  %v11023_v40 = vld [vmem:[#allocation4_spill] sm:$0xff] }
 0x47e   :  { %1984 = vmatpush2.msra.mxu0 %v7854_v30 }
 0x47f   :  { %2113 = vmatprep.subr.mxu0 %v11020_v24  ;;  %v11024_v24 = vld [vmem:[#allocation39_spill] sm:$0xff] }
 0x4bf   :  { %v1645_v28 = vpop.f32.mrf.mxu0  ;;  %v1716_v7 = vpop.f32.mrf.mxu1 }
 0x4c0   :  { %v1646_v22 = vadd.f32 %v1645_v28, %v11021_v19  ;;  %v11025_v28 = vld [vmem:[#allocation19_spill] sm:$0xff] }
 0x4c1   :  { %v1647_v58 = vpop.f32.mrf.mxu0  ;;  %v1718_v63 = vpop.f32.mrf.mxu1  ;;  %v364_v19 = vadd.f32 %v11025_v28, %v5568_v2 }
 0x4c2   :  { %v1804_v10 = vadd.f32 %v1646_v22, %v11022_v26  ;;  %v1648_v4 = vadd.f32 %v1647_v58, %v5528_v9  ;;  %v1719_v18 = vadd.f32 %v1718_v63, %v11024_v24 }
 0x4c4   :  { %v2937_v37 = vmul.f32 -1.442695, %v1804_v10  ;;  %v1811_v21 = vadd.f32 %v1648_v4, %v11023_v40  ;;  %v1825_v25 = vadd.f32 %v1719_v18, %v364_v19 }
 0x4c6   :  { %3029 = vpow2.f32 %v2937_v37  ;;  %v2938_v8 = vmul.f32 -1.442695, %v1811_v21  ;;  %v2939_v10 = vmul.f32 -1.442695, %v1825_v25  ;;  %v1717_v37 = vadd.f32 %v1716_v7, %v5558_v0  ;;  %v11026_v21 = vld [vmem:[#allocation22_spill] sm:$0xff] }
 0x4c8   :  { %3031 = vpow2.f32 %v2938_v8  ;;  %v356_v8 = vadd.f32 %v11026_v21, %v5561_v16 }
 0x4d3   :  { %v3030_v49 = vpop.eup %3029 }
 0x4d4   :  { %v1808_v30 = vadd.f32 1.0, %v3030_v49 }
 0x4d5   :  { %v3032_v26 = vpop.eup %3031 }
 0x4d6   :  { %3033 = vrcp.f32 %v1808_v30  ;;  %v1815_v22 = vadd.f32 1.0, %v3032_v26  ;;  %v11027_v26 = vld [vmem:[#allocation33_spill] sm:$0xff] }
 0x4d7   :  { %3035 = vpow2.f32 %v2939_v10  ;;  %v475_v10 = vadd.f32 %v11027_v26, %v5585_v32 }
 0x4d8   :  { %3037 = vrcp.f32 %v1815_v22 }
 0x4e3   :  { %v3034_v4 = vpop.eup %3033 }
 0x4e4   :  { %v1818_v58 = vmul.f32 %v3034_v4, %v1717_v37  ;;  %v3036_v40 = vpop.eup %3035 }
 0x4e5   :  { %v3038_v63 = vpop.eup %3037  ;;  %v1829_v30 = vadd.f32 1.0, %v3036_v40 }
 0x4e6   :  { %v1819_v49 = vadd.f32 %v1818_v58, %v356_v8  ;;  %v1821_v24 = vsub.f32 1.0, %v3038_v63  ;;  %v1823_v25 = vmul.f32 %v3038_v63, %v7001_v17  ;;  %v11028_v17 = vld [vmem:[#allocation40_spill] sm:$0xff] }
 0x4e7   :  { %v477_v8 = vadd.f32 %v11028_v17, %v5595_v3  ;;  %v11035_v17 = vld [vmem:[#allocation97_spill] sm:$0xff] }
 0x4e8   :  { %3039 = vtanh.f32 %v1819_v49 }
 0x4e9   :  { %3041 = vrcp.f32 %v1829_v30 }
 0x4f5   :  { %v3040_v28 = vpop.eup %3039 }
 0x4f6   :  { %v1822_v18 = vmul.f32 %v3040_v28, %v1821_v24  ;;  %v3042_v24 = vpop.eup %3041 }
 0x4f8   :  { %v7869_v19 = vadd.f32 %v1823_v25, %v1822_v18 }
 0x4fa   :  { %2941 = vst [vmem:[%s9950_s5 + $0x30] sm:$0xff] %v7869_v19 }
 0x4ff   :  { %v1787_v7 = vpop.f32.mrf.mxu0 }
 0x500   :  { %v1788_v22 = vadd.f32 %v1787_v7, %v5582_v54 }
 0x501   :  { %v1789_v37 = vpop.f32.mrf.mxu0 }
 0x502   :  { %v1832_v4 = vadd.f32 %v1788_v22, %v475_v10  ;;  %v1790_v21 = vadd.f32 %v1789_v37, %v5591_v34  ;;  %v7895_v22 = vld [vmem:[%s9947_s2 + $0x2f0] sm:$0xff]  ;;  %v7909_v37 = vld [vmem:[%s9947_s2 + $0x2c0] sm:$0xff] }
 0x504   :  { %v2940_v58 = vmul.f32 -1.442695, %v1832_v4  ;;  %v1839_v49 = vmul.f32 %v3042_v24, %v1790_v21  ;;  %v7916_v4 = vld [vmem:[%s9947_s2 + $0x298] sm:$0xff]  ;;  %v11031_v21 = vld [vmem:[#allocation91_spill] sm:$0xff] }
 0x505   :  { %v11033_v24 = vld [vmem:[#allocation94_spill] sm:$0xff] }
 0x506   :  { %3043 = vpow2.f32 %v2940_v58  ;;  %v1840_v40 = vadd.f32 %v1839_v49, %v477_v8  ;;  %v8175_v8 = vld [vmem:[%s9947_s2 + $0x530] sm:$0xff]  ;;  %v11037_v58 = vld [vmem:[#allocation99_spill] sm:$0xff]  ;;  %v8182_v49 = vld [vmem:[%s9947_s2 + $0x508] sm:$0xff] }
 0x507   :  { %11036 = vst [vmem:[#allocation80_spill] sm:$0xff] %v8175_v8  ;;  %11038 = vst [vmem:[#allocation82_spill] sm:$0xff] %v8182_v49 }
 0x513   :  { %v3044_v63 = vpop.eup %3043 }
 0x514   :  { %v1836_v30 = vadd.f32 1.0, %v3044_v63  ;;  %v8189_v63 = vld [vmem:[%s9947_s2 + $0x500] sm:$0xff] }
 0x515   :  { %11040 = vst [vmem:[#allocation84_spill] sm:$0xff] %v8189_v63 }
 0x516   :  { %3045 = vrcp.f32 %v1836_v30  ;;  %v11041_v30 = vld [vmem:[#allocation53_spill] sm:$0xff] }
 0x517   :  { %3047 = vtanh.f32 %v1840_v40  ;;  %v11039_v40 = vld [vmem:[#allocation103_spill] sm:$0xff] }
 0x523   :  { %v3046_v28 = vpop.eup %3045 }
 0x524   :  { %v1842_v18 = vsub.f32 1.0, %v3046_v28  ;;  %v3048_v25 = vpop.eup %3047  ;;  %v1844_v26 = vmul.f32 %v3046_v28, %v7014_v15  ;;  %v7902_v15 = vld [vmem:[%s9947_s2 + $0x2c8] sm:$0xff]  ;;  %v8196_v28 = vld [vmem:[%s9947_s2 + $0x4d8] sm:$0xff] }
 0x525   :  { %11042 = vst [vmem:[#allocation87_spill] sm:$0xff] %v8196_v28 }
 0x526   :  { %v1843_v7 = vmul.f32 %v3048_v25, %v1842_v18  ;;  %v11043_v18 = vld [vmem:[#allocation55_spill] sm:$0xff]  ;;  %v8203_v25 = vld [vmem:[%s9947_s2 + $0x4d0] sm:$0xff] }
 0x527   :  { %11044 = vst [vmem:[#allocation89_spill] sm:$0xff] %v8203_v25 }
 0x528   :  { %v7882_v10 = vadd.f32 %v1844_v26, %v1843_v7  ;;  %v11045_v7 = vld [vmem:[#allocation57_spill] sm:$0xff]  ;;  %v8210_v26 = vld [vmem:[%s9947_s2 + $0x4a8] sm:$0xff] }
 0x529   :  { %11046 = vst [vmem:[#allocation8_spill] sm:$0xff] %v8210_v26 }
 0x52a   :  { %2942 = vst [vmem:[%s9950_s5 + $0x48] sm:$0xff] %v7882_v10  ;;  %1914 = vmatprep.mubr.f32.mxu1 %v7882_v10  ;;  %1985 = vmatprep.mubr.f32.mxu0 %v7882_v10 }
 0x52b   :  { %1915 = vmatmul.mubr.f32.vlgmr.msra.gmra.mxu1 %v7869_v19  ;;  %1986 = vmatmul.mubr.f32.vlgmr.msra.gmra.mxu0 %v7869_v19 }
 0x52c   :  { %1993 = vmatpush1.msra.mxu1 %v7895_v22  ;;  %2056 = vmatprep.mubr.f32.mxu1 %v7882_v10 }
 0x52d   :  { %1994 = vmatprep.subr.mxu1 %v7902_v15  ;;  %2114 = vmatpush1.msra.mxu0 %v7030_v45  ;;  %v7923_v45 = vld [vmem:[%s9947_s2 + $0x290] sm:$0xff] }
 0x52e   :  { %1995 = vmatpush1.msra.mxu1 %v7909_v37  ;;  %2115 = vmatprep.subr.mxu0 %v7037_v12  ;;  %v7930_v12 = vld [vmem:[%s9947_s2 + $0x268] sm:$0xff] }
 0x52f   :  { %1996 = vmatprep.subr.mxu1 %v7916_v4  ;;  %2116 = vmatpush1.msra.mxu0 %v7044_v46  ;;  %v7937_v46 = vld [vmem:[%s9947_s2 + $0x260] sm:$0xff] }
 0x530   :  { %1997 = vmatpush1.msra.mxu1 %v7923_v45  ;;  %2117 = vmatprep.subr.mxu0 %v7051_v62  ;;  %v7944_v62 = vld [vmem:[%s9947_s2 + $0x238] sm:$0xff] }
 0x531   :  { %1998 = vmatprep.subr.mxu1 %v7930_v12  ;;  %2118 = vmatpush1.msra.mxu0 %v7058_v48  ;;  %v7951_v48 = vld [vmem:[%s9947_s2 + $0x230] sm:$0xff] }
 0x532   :  { %1999 = vmatpush1.msra.mxu1 %v7937_v46  ;;  %2119 = vmatprep.subr.mxu0 %v7065_v44  ;;  %v7958_v44 = vld [vmem:[%s9947_s2 + $0x208] sm:$0xff] }
 0x533   :  { %2000 = vmatprep.subr.mxu1 %v7944_v62  ;;  %2120 = vmatpush1.msra.mxu0 %v7072_v31  ;;  %v7965_v31 = vld [vmem:[%s9947_s2 + $0x200] sm:$0xff] }
 0x534   :  { %2001 = vmatpush1.msra.mxu1 %v7951_v48  ;;  %2121 = vmatprep.subr.mxu0 %v7079_v38  ;;  %v7972_v38 = vld [vmem:[%s9947_s2 + $0x1d8] sm:$0xff] }
 0x535   :  { %2002 = vmatprep.subr.mxu1 %v7958_v44  ;;  %2122 = vmatpush1.msra.mxu0 %v7086_v43  ;;  %v7979_v43 = vld [vmem:[%s9947_s2 + $0x1d0] sm:$0xff] }
 0x536   :  { %2003 = vmatpush1.msra.mxu1 %v7965_v31  ;;  %2123 = vmatprep.subr.mxu0 %v7093_v60  ;;  %v7986_v60 = vld [vmem:[%s9947_s2 + $0x1a8] sm:$0xff] }
 0x537   :  { %2004 = vmatprep.subr.mxu1 %v7972_v38  ;;  %2124 = vmatpush1.msra.mxu0 %v7100_v50  ;;  %v7993_v50 = vld [vmem:[%s9947_s2 + $0x1a0] sm:$0xff] }
 0x538   :  { %2005 = vmatpush1.msra.mxu1 %v7979_v43  ;;  %2125 = vmatprep.subr.mxu0 %v7107_v52  ;;  %v8000_v52 = vld [vmem:[%s9947_s2 + $0x178] sm:$0xff] }
 0x539   :  { %2006 = vmatprep.subr.mxu1 %v7986_v60  ;;  %2126 = vmatpush1.msra.mxu0 %v7114_v20  ;;  %v8007_v20 = vld [vmem:[%s9947_s2 + $0x170] sm:$0xff] }
 0x53a   :  { %2007 = vmatpush1.msra.mxu1 %v7993_v50  ;;  %2127 = vmatprep.subr.mxu0 %v7121_v23  ;;  %v8014_v23 = vld [vmem:[%s9947_s2 + $0x148] sm:$0xff] }
 0x53b   :  { %2008 = vmatprep.subr.mxu1 %v8000_v52  ;;  %2128 = vmatpush1.msra.mxu0 %v7128_v13  ;;  %v8021_v13 = vld [vmem:[%s9947_s2 + $0x140] sm:$0xff] }
 0x53c   :  { %2009 = vmatpush1.msra.mxu1 %v8007_v20  ;;  %2129 = vmatprep.subr.mxu0 %v7135_v56  ;;  %v8028_v56 = vld [vmem:[%s9947_s2 + $0x118] sm:$0xff] }
 0x53d   :  { %2010 = vmatprep.subr.mxu1 %v8014_v23  ;;  %2130 = vmatpush1.msra.mxu0 %v7142_v27  ;;  %v8035_v27 = vld [vmem:[%s9947_s2 + $0x110] sm:$0xff] }
 0x53e   :  { %2011 = vmatpush1.msra.mxu1 %v8021_v13  ;;  %2131 = vmatprep.subr.mxu0 %v7149_v42  ;;  %v8042_v42 = vld [vmem:[%s9947_s2 + $0xe8] sm:$0xff] }
 0x53f   :  { %2012 = vmatprep.subr.mxu1 %v8028_v56  ;;  %2132 = vmatpush1.msra.mxu0 %v7156_v51  ;;  %v8049_v51 = vld [vmem:[%s9947_s2 + $0xe0] sm:$0xff] }
 0x540   :  { %2013 = vmatpush1.msra.mxu1 %v8035_v27  ;;  %2133 = vmatprep.subr.mxu0 %v7163_v55  ;;  %v8056_v55 = vld [vmem:[%s9947_s2 + $0xb8] sm:$0xff] }
 0x541   :  { %2014 = vmatprep.subr.mxu1 %v8042_v42  ;;  %2134 = vmatpush1.msra.mxu0 %v7170_v41  ;;  %v8063_v41 = vld [vmem:[%s9947_s2 + $0xb0] sm:$0xff] }
 0x542   :  { %2015 = vmatpush1.msra.mxu1 %v8049_v51  ;;  %2135 = vmatprep.subr.mxu0 %v7177_v5  ;;  %v8070_v5 = vld [vmem:[%s9947_s2 + $0x88] sm:$0xff] }
 0x543   :  { %2016 = vmatprep.subr.mxu1 %v8056_v55  ;;  %2136 = vmatpush1.msra.mxu0 %v7184_v39  ;;  %v8077_v39 = vld [vmem:[%s9947_s2 + $0x80] sm:$0xff] }
 0x544   :  { %2017 = vmatpush1.msra.mxu1 %v8063_v41  ;;  %2137 = vmatprep.subr.mxu0 %v7191_v35  ;;  %v8084_v35 = vld [vmem:[%s9947_s2 + $0x58] sm:$0xff] }
 0x545   :  { %2018 = vmatprep.subr.mxu1 %v8070_v5  ;;  %2138 = vmatpush1.msra.mxu0 %v7198_v6  ;;  %v8091_v6 = vld [vmem:[%s9947_s2 + $0x50] sm:$0xff] }
 0x546   :  { %2019 = vmatpush1.msra.mxu1 %v8077_v39  ;;  %2139 = vmatprep.subr.mxu0 %v7205_v61  ;;  %v8098_v61 = vld [vmem:[%s9947_s2 + $0x28] sm:$0xff] }
 0x547   :  { %2020 = vmatprep.subr.mxu1 %v8084_v35  ;;  %2140 = vmatpush1.msra.mxu0 %v7212_v53  ;;  %v8105_v53 = vld [vmem:[%s9947_s2 + $0x20] sm:$0xff] }
 0x548   :  { %2021 = vmatpush1.msra.mxu1 %v8091_v6  ;;  %2141 = vmatprep.subr.mxu0 %v7219_v14  ;;  %v8112_v14 = vld [vmem:[%s9947_s2 + $0x5f8] sm:$0xff] }
 0x549   :  { %2022 = vmatprep.subr.mxu1 %v8098_v61  ;;  %2142 = vmatpush1.msra.mxu0 %v7226_v59  ;;  %v8119_v59 = vld [vmem:[%s9947_s2 + $0x5f0] sm:$0xff] }
 0x54a   :  { %2023 = vmatpush1.msra.mxu1 %v8105_v53  ;;  %2143 = vmatprep.subr.mxu0 %v7233_v33  ;;  %v8126_v33 = vld [vmem:[%s9947_s2 + $0x5c8] sm:$0xff] }
 0x54b   :  { %2024 = vmatprep.subr.mxu1 %v8112_v14  ;;  %2144 = vmatpush1.msra.mxu0 %v7240_v57  ;;  %v8133_v57 = vld [vmem:[%s9947_s2 + $0x5c0] sm:$0xff] }
 0x54c   :  { %2025 = vmatpush2.msra.mxu1 %v8119_v59  ;;  %2145 = vmatprep.subr.mxu0 %v7247_v47  ;;  %v8140_v47 = vld [vmem:[%s9947_s2 + $0x598] sm:$0xff] }
 0x54d   :  { %2026 = vmatprep.subr.mxu1 %v8126_v33  ;;  %2146 = vmatpush2.msra.mxu0 %v7254_v1  ;;  %v8147_v1 = vld [vmem:[%s9947_s2 + $0x590] sm:$0xff] }
 0x54e   :  { %2027 = vmatpush2.msra.mxu1 %v8133_v57  ;;  %2147 = vmatprep.subr.mxu0 %v7261_v29  ;;  %11029 = vst [vmem:[#allocation70_spill] sm:$0xff] %v8147_v1  ;;  %v8154_v29 = vld [vmem:[%s9947_s2 + $0x568] sm:$0xff] }
 0x54f   :  { %2028 = vmatprep.subr.mxu1 %v8140_v47  ;;  %2148 = vmatpush2.msra.mxu0 %v7268_v11  ;;  %11030 = vst [vmem:[#allocation73_spill] sm:$0xff] %v8154_v29  ;;  %v8161_v11 = vld [vmem:[%s9947_s2 + $0x560] sm:$0xff] }
 0x550   :  { %2029 = vmatpush2.msra.mxu1 %v8147_v1  ;;  %2149 = vmatprep.subr.mxu0 %v7275_v36  ;;  %11032 = vst [vmem:[#allocation75_spill] sm:$0xff] %v8161_v11  ;;  %v8168_v36 = vld [vmem:[%s9947_s2 + $0x538] sm:$0xff] }
 0x551   :  { %2030 = vmatprep.subr.mxu1 %v8154_v29  ;;  %2150 = vmatpush2.msra.mxu0 %v11031_v21  ;;  %11034 = vst [vmem:[#allocation77_spill] sm:$0xff] %v8168_v36  ;;  %v11047_v21 = vld [vmem:[#allocation58_spill] sm:$0xff] }
 0x552   :  { %2031 = vmatpush2.msra.mxu1 %v8161_v11  ;;  %2151 = vmatprep.subr.mxu0 %v11033_v24  ;;  %v8217_v24 = vld [vmem:[%s9947_s2 + $0x4a0] sm:$0xff] }
 0x553   :  { %2032 = vmatprep.subr.mxu1 %v8168_v36  ;;  %2152 = vmatpush2.msra.mxu0 %v11035_v17  ;;  %11048 = vst [vmem:[#allocation4_spill] sm:$0xff] %v8217_v24  ;;  %v11049_v17 = vld [vmem:[#allocation60_spill] sm:$0xff] }
 0x554   :  { %2033 = vmatpush2.msra.mxu1 %v8175_v8  ;;  %2153 = vmatprep.subr.mxu0 %v11037_v58  ;;  %v8224_v58 = vld [vmem:[%s9947_s2 + $0x478] sm:$0xff] }
 0x555   :  { %2034 = vmatprep.subr.mxu1 %v8182_v49  ;;  %2154 = vmatpush2.msra.mxu0 %v11039_v40  ;;  %11050 = vst [vmem:[#allocation19_spill] sm:$0xff] %v8224_v58  ;;  %v11051_v40 = vld [vmem:[#allocation62_spill] sm:$0xff] }
 0x556   :  { %2035 = vmatpush2.msra.mxu1 %v8189_v63  ;;  %2155 = vmatprep.subr.mxu0 %v11041_v30  ;;  %v8231_v30 = vld [vmem:[%s9947_s2 + $0x470] sm:$0xff] }
 0x557   :  { %2036 = vmatprep.subr.mxu1 %v8196_v28  ;;  %2156 = vmatpush2.msra.mxu0 %v11043_v18  ;;  %11052 = vst [vmem:[#allocation22_spill] sm:$0xff] %v8231_v30  ;;  %v11053_v18 = vld [vmem:[#allocation64_spill] sm:$0xff]  ;;  %v11092_v28 = vld [vmem:[#allocation105_spill] sm:$0xff] }
 0x558   :  { %2037 = vmatpush2.msra.mxu1 %v8203_v25  ;;  %2157 = vmatprep.subr.mxu0 %v11045_v7  ;;  %v8238_v7 = vld [vmem:[%s9947_s2 + $0x448] sm:$0xff]  ;;  %v11089_v25 = vld [vmem:[#allocation101_spill] sm:$0xff] }
 0x559   :  { %2038 = vmatprep.subr.mxu1 %v8210_v26  ;;  %2158 = vmatpush2.msra.mxu0 %v11047_v21  ;;  %11054 = vst [vmem:[#allocation33_spill] sm:$0xff] %v8238_v7  ;;  %v11055_v21 = vld [vmem:[#allocation65_spill] sm:$0xff]  ;;  %v11088_v26 = vld [vmem:[#allocation100_spill] sm:$0xff] }
 0x55a   :  { %2039 = vmatpush2.msra.mxu1 %v8217_v24  ;;  %2159 = vmatprep.subr.mxu0 %v11049_v17  ;;  %v8245_v17 = vld [vmem:[%s9947_s2 + $0x440] sm:$0xff]  ;;  %v11087_v24 = vld [vmem:[#allocation98_spill] sm:$0xff] }
 0x55b   :  { %2040 = vmatprep.subr.mxu1 %v8224_v58  ;;  %2160 = vmatpush2.msra.mxu0 %v11051_v40  ;;  %11056 = vst [vmem:[#allocation40_spill] sm:$0xff] %v8245_v17  ;;  %v11057_v40 = vld [vmem:[#allocation67_spill] sm:$0xff]  ;;  %v11084_v58 = vld [vmem:[#allocation93_spill] sm:$0xff] }
 0x55c   :  { %2041 = vmatpush2.msra.mxu1 %v8231_v30  ;;  %2161 = vmatprep.subr.mxu0 %v11053_v18  ;;  %v8252_v18 = vld [vmem:[%s9947_s2 + $0x418] sm:$0xff]  ;;  %v11059_v30 = vld [vmem:[#allocation69_spill] sm:$0xff] }
 0x55d   :  { %2042 = vmatprep.subr.mxu1 %v8238_v7  ;;  %2162 = vmatpush2.msra.mxu0 %v11055_v21  ;;  %11058 = vst [vmem:[#allocation91_spill] sm:$0xff] %v8252_v18  ;;  %v8259_v21 = vld [vmem:[%s9947_s2 + $0x410] sm:$0xff]  ;;  %v11061_v7 = vld [vmem:[#allocation71_spill] sm:$0xff] }
 0x55e   :  { %2043 = vmatpush2.msra.mxu1 %v8245_v17  ;;  %2163 = vmatprep.subr.mxu0 %v11057_v40  ;;  %11060 = vst [vmem:[#allocation94_spill] sm:$0xff] %v8259_v21  ;;  %v8266_v40 = vld [vmem:[%s9947_s2 + $0x3e8] sm:$0xff] }
 0x55f   :  { %2044 = vmatprep.subr.mxu1 %v8252_v18  ;;  %2164 = vmatpush2.msra.mxu0 %v11059_v30  ;;  %11062 = vst [vmem:[#allocation97_spill] sm:$0xff] %v8266_v40  ;;  %v11063_v17 = vld [vmem:[#allocation72_spill] sm:$0xff]  ;;  %v8273_v30 = vld [vmem:[%s9947_s2 + $0x3e0] sm:$0xff]  ;;  %v11065_v18 = vld [vmem:[#allocation74_spill] sm:$0xff] }
 0x560   :  { %2045 = vmatpush2.msra.mxu1 %v8259_v21  ;;  %2165 = vmatprep.subr.mxu0 %v11061_v7  ;;  %11064 = vst [vmem:[#allocation99_spill] sm:$0xff] %v8273_v30  ;;  %v8280_v7 = vld [vmem:[%s9947_s2 + $0x3b8] sm:$0xff]  ;;  %v11067_v21 = vld [vmem:[#allocation76_spill] sm:$0xff] }
 0x561   :  { %2046 = vmatprep.subr.mxu1 %v8266_v40  ;;  %2166 = vmatpush2.msra.mxu0 %v11063_v17  ;;  %11066 = vst [vmem:[#allocation103_spill] sm:$0xff] %v8280_v7  ;;  %v8287_v17 = vld [vmem:[%s9947_s2 + $0x3b0] sm:$0xff]  ;;  %v11069_v40 = vld [vmem:[#allocation78_spill] sm:$0xff] }
 0x562   :  { %2047 = vmatpush2.msra.mxu1 %v8273_v30  ;;  %2167 = vmatprep.subr.mxu0 %v11065_v18  ;;  %11068 = vst [vmem:[#allocation53_spill] sm:$0xff] %v8287_v17  ;;  %v8294_v18 = vld [vmem:[%s9947_s2 + $0x388] sm:$0xff]  ;;  %v11071_v30 = vld [vmem:[#allocation79_spill] sm:$0xff] }
 0x563   :  { %2048 = vmatprep.subr.mxu1 %v8280_v7  ;;  %2168 = vmatpush2.msra.mxu0 %v11067_v21  ;;  %11070 = vst [vmem:[#allocation55_spill] sm:$0xff] %v8294_v18  ;;  %v8301_v21 = vld [vmem:[%s9947_s2 + $0x380] sm:$0xff]  ;;  %v11073_v7 = vld [vmem:[#allocation81_spill] sm:$0xff] }
 0x564   :  { %2049 = vmatpush2.msra.mxu1 %v8287_v17  ;;  %2169 = vmatprep.subr.mxu0 %v11069_v40  ;;  %11072 = vst [vmem:[#allocation57_spill] sm:$0xff] %v8301_v21  ;;  %v8308_v40 = vld [vmem:[%s9947_s2 + $0x358] sm:$0xff]  ;;  %v11075_v17 = vld [vmem:[#allocation83_spill] sm:$0xff] }
 0x565   :  { %2050 = vmatprep.subr.mxu1 %v8294_v18  ;;  %2170 = vmatpush2.msra.mxu0 %v11071_v30  ;;  %11074 = vst [vmem:[#allocation58_spill] sm:$0xff] %v8308_v40  ;;  %v8315_v30 = vld [vmem:[%s9947_s2 + $0x350] sm:$0xff] }
 0x566   :  { %2051 = vmatpush2.msra.mxu1 %v8301_v21  ;;  %2171 = vmatprep.subr.mxu0 %v11073_v7  ;;  %11076 = vst [vmem:[#allocation60_spill] sm:$0xff] %v8315_v30  ;;  %v11077_v18 = vld [vmem:[#allocation85_spill] sm:$0xff]  ;;  %v8322_v7 = vld [vmem:[%s9947_s2 + $0x328] sm:$0xff]  ;;  %v11079_v21 = vld [vmem:[#allocation86_spill] sm:$0xff] }
 0x567   :  { %2052 = vmatprep.subr.mxu1 %v8308_v40  ;;  %2172 = vmatpush2.msra.mxu0 %v11075_v17  ;;  %11078 = vst [vmem:[#allocation62_spill] sm:$0xff] %v8322_v7  ;;  %v8329_v17 = vld [vmem:[%s9947_s2 + $0x320] sm:$0xff]  ;;  %v11081_v40 = vld [vmem:[#allocation88_spill] sm:$0xff] }
 0x568   :  { %2053 = vmatpush2.msra.mxu1 %v8315_v30  ;;  %2173 = vmatprep.subr.mxu0 %v11077_v18  ;;  %11080 = vst [vmem:[#allocation64_spill] sm:$0xff] %v8329_v17  ;;  %v11082_v18 = vld [vmem:[#allocation90_spill] sm:$0xff]  ;;  %v11083_v30 = vld [vmem:[#allocation92_spill] sm:$0xff] }
 0x569   :  { %2054 = vmatprep.subr.mxu1 %v8322_v7  ;;  %2174 = vmatpush2.msra.mxu0 %v11079_v21  ;;  %v11085_v7 = vld [vmem:[#allocation95_spill] sm:$0xff]  ;;  %v11086_v21 = vld [vmem:[#allocation96_spill] sm:$0xff] }
 0x56a   :  { %2055 = vmatpush2.msra.mxu1 %v8329_v17  ;;  %2175 = vmatprep.subr.mxu0 %v11081_v40  ;;  %v11090_v17 = vld [vmem:[#allocation102_spill] sm:$0xff]  ;;  %v11091_v40 = vld [vmem:[#allocation104_spill] sm:$0xff] }
 0x56b   :  { %2057 = vmatmul.mubr.f32.vlgmr.msra.gmra.mxu1 %v7869_v19  ;;  %2184 = vmatprep.subr.mxu1 %v11082_v18  ;;  %v11093_v18 = vld [vmem:[#allocation106_spill] sm:$0xff] }
 0x56c   :  { %2185 = vmatpush1.msra.mxu1 %v11083_v30  ;;  %2176 = vmatpush2.msra.mxu0 %v11084_v58  ;;  %v11094_v30 = vld [vmem:[#allocation107_spill] sm:$0xff]  ;;  %v11095_v58 = vld [vmem:[#allocation108_spill] sm:$0xff] }
 0x56d   :  { %2186 = vmatprep.subr.mxu1 %v11085_v7  ;;  %2255 = vmatprep.subr.mxu0 %v11086_v21  ;;  %v11096_v7 = vld [vmem:[#allocation109_spill] sm:$0xff]  ;;  %v11097_v21 = vld [vmem:[#allocation110_spill] sm:$0xff] }
 0x56e   :  { %2187 = vmatpush1.msra.mxu1 %v11087_v24  ;;  %v11098_v24 = vld [vmem:[#allocation111_spill] sm:$0xff] }
 0x56f   :  { %2188 = vmatprep.subr.mxu1 %v11088_v26  ;;  %v11099_v26 = vld [vmem:[#allocation112_spill] sm:$0xff] }
 0x570   :  { %2189 = vmatpush1.msra.mxu1 %v11089_v25  ;;  %v11100_v25 = vld [vmem:[#allocation113_spill] sm:$0xff] }
 0x571   :  { %2190 = vmatprep.subr.mxu1 %v11090_v17  ;;  %v11101_v17 = vld [vmem:[#allocation114_spill] sm:$0xff] }
 0x572   :  { %2191 = vmatpush1.msra.mxu1 %v11091_v40  ;;  %v11102_v40 = vld [vmem:[#allocation115_spill] sm:$0xff] }
 0x573   :  { %2192 = vmatprep.subr.mxu1 %v11092_v28  ;;  %v11103_v28 = vld [vmem:[#allocation116_spill] sm:$0xff] }
 0x574   :  { %2193 = vmatpush1.msra.mxu1 %v11093_v18  ;;  %v11104_v18 = vld [vmem:[#allocation117_spill] sm:$0xff] }
 0x575   :  { %2194 = vmatprep.subr.mxu1 %v11094_v30  ;;  %v11105_v30 = vld [vmem:[#allocation118_spill] sm:$0xff] }
 0x576   :  { %2195 = vmatpush1.msra.mxu1 %v11095_v58  ;;  %v11106_v58 = vld [vmem:[#allocation119_spill] sm:$0xff] }
 0x577   :  { %2196 = vmatprep.subr.mxu1 %v11096_v7  ;;  %v11107_v7 = vld [vmem:[#allocation120_spill] sm:$0xff] }
 0x578   :  { %2197 = vmatpush1.msra.mxu1 %v11097_v21  ;;  %v11108_v21 = vld [vmem:[#allocation121_spill] sm:$0xff] }
 0x579   :  { %2198 = vmatprep.subr.mxu1 %v11098_v24  ;;  %v11109_v24 = vld [vmem:[#allocation122_spill] sm:$0xff] }
 0x57a   :  { %2199 = vmatpush1.msra.mxu1 %v11099_v26  ;;  %v11110_v26 = vld [vmem:[#allocation123_spill] sm:$0xff] }
 0x57b   :  { %2200 = vmatprep.subr.mxu1 %v11100_v25  ;;  %v11111_v25 = vld [vmem:[#allocation124_spill] sm:$0xff] }
 0x57c   :  { %2201 = vmatpush1.msra.mxu1 %v11101_v17  ;;  %v11112_v17 = vld [vmem:[#allocation125_spill] sm:$0xff] }
 0x57d   :  { %2202 = vmatprep.subr.mxu1 %v11102_v40  ;;  %v11113_v40 = vld [vmem:[#allocation126_spill] sm:$0xff] }
 0x57e   :  { %2203 = vmatpush1.msra.mxu1 %v11103_v28  ;;  %v11114_v28 = vld [vmem:[#allocation127_spill] sm:$0xff] }
 0x57f   :  { %2204 = vmatprep.subr.mxu1 %v11104_v18  ;;  %v11115_v18 = vld [vmem:[#allocation128_spill] sm:$0xff] }
 0x580   :  { %2205 = vmatpush1.msra.mxu1 %v11105_v30  ;;  %v11116_v30 = vld [vmem:[#allocation129_spill] sm:$0xff] }
 0x581   :  { %2206 = vmatprep.subr.mxu1 %v11106_v58  ;;  %v11117_v58 = vld [vmem:[#allocation130_spill] sm:$0xff] }
 0x582   :  { %2207 = vmatpush1.msra.mxu1 %v11107_v7  ;;  %v11118_v7 = vld [vmem:[#allocation131_spill] sm:$0xff] }
 0x583   :  { %2208 = vmatprep.subr.mxu1 %v11108_v21  ;;  %v11119_v21 = vld [vmem:[#allocation132_spill] sm:$0xff] }
 0x584   :  { %2209 = vmatpush1.msra.mxu1 %v11109_v24  ;;  %v11120_v24 = vld [vmem:[#allocation133_spill] sm:$0xff] }
 0x585   :  { %2210 = vmatprep.subr.mxu1 %v11110_v26  ;;  %v11121_v26 = vld [vmem:[#allocation134_spill] sm:$0xff] }
 0x586   :  { %2211 = vmatpush1.msra.mxu1 %v11111_v25  ;;  %v11122_v25 = vld [vmem:[#allocation135_spill] sm:$0xff] }
 0x587   :  { %2212 = vmatprep.subr.mxu1 %v11112_v17  ;;  %v11123_v17 = vld [vmem:[#allocation6_spill] sm:$0xff] }
 0x588   :  { %2213 = vmatpush1.msra.mxu1 %v11113_v40  ;;  %v11124_v40 = vld [vmem:[#allocation3_spill] sm:$0xff] }
 0x589   :  { %2214 = vmatprep.subr.mxu1 %v11114_v28  ;;  %v11125_v28 = vld [vmem:[#allocation21_spill] sm:$0xff] }
 0x58a   :  { %2215 = vmatpush1.msra.mxu1 %v11115_v18  ;;  %v11126_v18 = vld [vmem:[#allocation20_spill] sm:$0xff] }
 0x58b   :  { %2216 = vmatprep.subr.mxu1 %v11116_v30  ;;  %v11127_v30 = vld [vmem:[#allocation35_spill] sm:$0xff] }
 0x58c   :  { %2217 = vmatpush2.msra.mxu1 %v11117_v58  ;;  %v11128_v58 = vld [vmem:[#allocation42_spill] sm:$0xff] }
 0x58d   :  { %2218 = vmatprep.subr.mxu1 %v11118_v7  ;;  %v11129_v7 = vld [vmem:[#allocation37_spill] sm:$0xff] }
 0x58e   :  { %2219 = vmatpush2.msra.mxu1 %v11119_v21  ;;  %v11130_v21 = vld [vmem:[#allocation44_spill] sm:$0xff] }
 0x58f   :  { %2220 = vmatprep.subr.mxu1 %v11120_v24  ;;  %v11131_v24 = vld [vmem:[#allocation46_spill] sm:$0xff] }
 0x590   :  { %2221 = vmatpush2.msra.mxu1 %v11121_v26  ;;  %v11132_v26 = vld [vmem:[#allocation41_spill] sm:$0xff] }
 0x591   :  { %2222 = vmatprep.subr.mxu1 %v11122_v25  ;;  %v11133_v25 = vld [vmem:[#allocation48_spill] sm:$0xff] }
 0x592   :  { %2223 = vmatpush2.msra.mxu1 %v11123_v17  ;;  %v11134_v17 = vld [vmem:[#allocation43_spill] sm:$0xff] }
 0x593   :  { %2224 = vmatprep.subr.mxu1 %v11124_v40  ;;  %v11135_v40 = vld [vmem:[#allocation50_spill] sm:$0xff] }
 0x594   :  { %2225 = vmatpush2.msra.mxu1 %v11125_v28  ;;  %v11136_v28 = vld [vmem:[#allocation45_spill] sm:$0xff] }
 0x595   :  { %2226 = vmatprep.subr.mxu1 %v11126_v18  ;;  %v11137_v18 = vld [vmem:[#allocation47_spill] sm:$0xff] }
 0x596   :  { %2227 = vmatpush2.msra.mxu1 %v11127_v30  ;;  %v11138_v30 = vld [vmem:[#allocation52_spill] sm:$0xff] }
 0x597   :  { %2228 = vmatprep.subr.mxu1 %v11128_v58  ;;  %v11139_v58 = vld [vmem:[#allocation49_spill] sm:$0xff] }
 0x598   :  { %2229 = vmatpush2.msra.mxu1 %v11129_v7  ;;  %v11140_v7 = vld [vmem:[#allocation54_spill] sm:$0xff] }
 0x599   :  { %2230 = vmatprep.subr.mxu1 %v11130_v21  ;;  %v11141_v21 = vld [vmem:[#allocation51_spill] sm:$0xff] }
 0x59a   :  { %2231 = vmatpush2.msra.mxu1 %v11131_v24  ;;  %v11142_v24 = vld [vmem:[#allocation56_spill] sm:$0xff] }
 0x59b   :  { %2232 = vmatprep.subr.mxu1 %v11132_v26  ;;  %v11143_v26 = vld [vmem:[#allocation59_spill] sm:$0xff] }
 0x59c   :  { %2233 = vmatpush2.msra.mxu1 %v11133_v25  ;;  %v11144_v25 = vld [vmem:[#allocation61_spill] sm:$0xff] }
 0x59d   :  { %2234 = vmatprep.subr.mxu1 %v11134_v17  ;;  %v11145_v17 = vld [vmem:[#allocation63_spill] sm:$0xff] }
 0x59e   :  { %2235 = vmatpush2.msra.mxu1 %v11135_v40  ;;  %v11146_v40 = vld [vmem:[#allocation66_spill] sm:$0xff] }
 0x59f   :  { %2236 = vmatprep.subr.mxu1 %v11136_v28  ;;  %v11147_v28 = vld [vmem:[#allocation68_spill] sm:$0xff] }
 0x5a0   :  { %2237 = vmatpush2.msra.mxu1 %v11137_v18  ;;  %v8403_v18 = vld [vmem:[%s9947_s2 + $0x2d8] sm:$0xff] }
 0x5a1   :  { %2238 = vmatprep.subr.mxu1 %v11138_v30  ;;  %11148 = vst [vmem:[#allocation65_spill] sm:$0xff] %v8403_v18 }
 0x5a2   :  { %2239 = vmatpush2.msra.mxu1 %v11139_v58  ;;  %v11149_v58 = vld [vmem:[#allocation30_spill] sm:$0xff] }
 0x5a3   :  { %2240 = vmatprep.subr.mxu1 %v11140_v7 }
 0x5a4   :  { %2241 = vmatpush2.msra.mxu1 %v11141_v21 }
 0x5a5   :  { %2242 = vmatprep.subr.mxu1 %v11142_v24  ;;  %v11150_v24 = vld [vmem:[#allocation10_spill] sm:$0xff] }
 0x5a6   :  { %2243 = vmatpush2.msra.mxu1 %v11143_v26 }
 0x5a7   :  { %2244 = vmatprep.subr.mxu1 %v11144_v25 }
 0x5a8   :  { %2245 = vmatpush2.msra.mxu1 %v11145_v17 }
 0x5a9   :  { %2246 = vmatprep.subr.mxu1 %v11146_v40  ;;  %v11151_v40 = vld [vmem:[#allocation5_spill] sm:$0xff] }
 0x5aa   :  { %2247 = vmatpush2.msra.mxu1 %v11147_v28 }
 0x5ab   :  { %2376 = vmatprep.subr.mxu1 %v8403_v18  ;;  %v11152_v18 = vld [vmem:[#allocation39_spill] sm:$0xff] }
 0x5eb   :  { %v1916_v30 = vpop.f32.mrf.mxu1  ;;  %v1987_v49 = vpop.f32.mrf.mxu0 }
 0x5ec   :  { %v1917_v7 = vadd.f32 %v1916_v30, %v11149_v58  ;;  %v11153_v30 = vld [vmem:[#allocation17_spill] sm:$0xff] }
 0x5ed   :  { %v1918_v21 = vpop.f32.mrf.mxu1  ;;  %v1989_v36 = vpop.f32.mrf.mxu0  ;;  %v358_v58 = vadd.f32 %v11153_v30, %v5568_v2 }
 0x5ee   :  { %v2069_v26 = vadd.f32 %v1917_v7, %v11150_v24  ;;  %v1919_v17 = vadd.f32 %v1918_v21, %v5528_v9  ;;  %v1990_v29 = vadd.f32 %v1989_v36, %v11152_v18  ;;  %v1988_v21 = vadd.f32 %v1987_v49, %v5558_v0 }
 0x5f0   :  { %v2943_v25 = vmul.f32 -1.442695, %v2069_v26  ;;  %v2076_v63 = vadd.f32 %v1919_v17, %v11151_v40  ;;  %v2090_v1 = vadd.f32 %v1990_v29, %v358_v58 }
 0x5f2   :  { %3049 = vpow2.f32 %v2943_v25  ;;  %v2944_v28 = vmul.f32 -1.442695, %v2076_v63  ;;  %v2945_v24 = vmul.f32 -1.442695, %v2090_v1  ;;  %v11154_v63 = vld [vmem:[#allocation24_spill] sm:$0xff] }
 0x5f3   :  { %v362_v17 = vadd.f32 %v11154_v63, %v5561_v16 }
 0x5f4   :  { %3051 = vpow2.f32 %v2944_v28 }
 0x5ff   :  { %v3050_v8 = vpop.eup %3049 }
 0x600   :  { %v2073_v11 = vadd.f32 1.0, %v3050_v8 }
 0x601   :  { %v3052_v7 = vpop.eup %3051 }
 0x602   :  { %3053 = vrcp.f32 %v2073_v11  ;;  %v2080_v26 = vadd.f32 1.0, %v3052_v7  ;;  %v11155_v7 = vld [vmem:[#allocation31_spill] sm:$0xff] }
 0x603   :  { %3055 = vpow2.f32 %v2945_v24  ;;  %v469_v24 = vadd.f32 %v11155_v7, %v5585_v32 }
 0x604   :  { %3057 = vrcp.f32 %v2080_v26 }
 0x60f   :  { %v3054_v25 = vpop.eup %3053 }
 0x610   :  { %v2083_v40 = vmul.f32 %v3054_v25, %v1988_v21  ;;  %v3056_v11 = vpop.eup %3055 }
 0x611   :  { %v3058_v36 = vpop.eup %3057  ;;  %v2094_v28 = vadd.f32 1.0, %v3056_v11 }
 0x612   :  { %v2084_v8 = vadd.f32 %v2083_v40, %v362_v17  ;;  %v2086_v18 = vsub.f32 1.0, %v3058_v36  ;;  %v2088_v1 = vmul.f32 %v3058_v36, %v7869_v19  ;;  %v11156_v19 = vld [vmem:[#allocation38_spill] sm:$0xff] }
 0x613   :  { %v471_v17 = vadd.f32 %v11156_v19, %v5595_v3  ;;  %v8712_v19 = vld [vmem:[%s9947_s2 + $0x540] sm:$0xff] }
 0x614   :  { %3059 = vtanh.f32 %v2084_v8  ;;  %11163 = vst [vmem:[#allocation71_spill] sm:$0xff] %v8712_v19 }
 0x615   :  { %3061 = vrcp.f32 %v2094_v28 }
 0x621   :  { %v3060_v30 = vpop.eup %3059 }
 0x622   :  { %v2087_v29 = vmul.f32 %v3060_v30, %v2086_v18  ;;  %v3062_v18 = vpop.eup %3061 }
 0x624   :  { %v8417_v58 = vadd.f32 %v2088_v1, %v2087_v29 }
 0x626   :  { %2947 = vst [vmem:[%s9950_s5 + $0x40] sm:$0xff] %v8417_v58 }
 0x62b   :  { %v2058_v49 = vpop.f32.mrf.mxu1 }
 0x62c   :  { %v2059_v26 = vadd.f32 %v2058_v49, %v5582_v54 }
 0x62d   :  { %v2060_v21 = vpop.f32.mrf.mxu1 }
 0x62e   :  { %v2097_v25 = vadd.f32 %v2059_v26, %v469_v24  ;;  %v2061_v63 = vadd.f32 %v2060_v21, %v5591_v34  ;;  %v8453_v26 = vld [vmem:[%s9947_s2 + $0x2a8] sm:$0xff]  ;;  %v11158_v21 = vld [vmem:[#allocation73_spill] sm:$0xff] }
 0x630   :  { %v2946_v40 = vmul.f32 -1.442695, %v2097_v25  ;;  %v2104_v8 = vmul.f32 %v3062_v18, %v2061_v63  ;;  %v11160_v25 = vld [vmem:[#allocation75_spill] sm:$0xff]  ;;  %v8705_v63 = vld [vmem:[%s9947_s2 + $0x548] sm:$0xff]  ;;  %v11162_v18 = vld [vmem:[#allocation77_spill] sm:$0xff] }
 0x631   :  { %11161 = vst [vmem:[#allocation69_spill] sm:$0xff] %v8705_v63 }
 0x632   :  { %3063 = vpow2.f32 %v2946_v40  ;;  %v2105_v11 = vadd.f32 %v2104_v8, %v471_v17  ;;  %v11164_v17 = vld [vmem:[#allocation80_spill] sm:$0xff]  ;;  %v8719_v40 = vld [vmem:[%s9947_s2 + $0x518] sm:$0xff] }
 0x633   :  { %11165 = vst [vmem:[#allocation72_spill] sm:$0xff] %v8719_v40  ;;  %v11166_v8 = vld [vmem:[#allocation82_spill] sm:$0xff] }
 0x63f   :  { %v3064_v36 = vpop.eup %3063 }
 0x640   :  { %v2101_v28 = vadd.f32 1.0, %v3064_v36  ;;  %v11168_v36 = vld [vmem:[#allocation84_spill] sm:$0xff] }
 0x642   :  { %3065 = vrcp.f32 %v2101_v28  ;;  %v8733_v28 = vld [vmem:[%s9947_s2 + $0x4e8] sm:$0xff] }
 0x643   :  { %3067 = vtanh.f32 %v2105_v11  ;;  %v8726_v11 = vld [vmem:[%s9947_s2 + $0x510] sm:$0xff]  ;;  %11169 = vst [vmem:[#allocation76_spill] sm:$0xff] %v8733_v28 }
 0x644   :  { %11167 = vst [vmem:[#allocation74_spill] sm:$0xff] %v8726_v11 }
 0x64f   :  { %v3066_v30 = vpop.eup %3065 }
 0x650   :  { %v2107_v29 = vsub.f32 1.0, %v3066_v30  ;;  %v3068_v1 = vpop.eup %3067  ;;  %v2109_v7 = vmul.f32 %v3066_v30, %v7882_v10  ;;  %v8446_v10 = vld [vmem:[%s9947_s2 + $0x2d0] sm:$0xff]  ;;  %v11170_v30 = vld [vmem:[#allocation87_spill] sm:$0xff] }
 0x652   :  { %v2108_v49 = vmul.f32 %v3068_v1, %v2107_v29  ;;  %v8740_v29 = vld [vmem:[%s9947_s2 + $0x4e0] sm:$0xff]  ;;  %v11172_v1 = vld [vmem:[#allocation89_spill] sm:$0xff] }
 0x653   :  { %11171 = vst [vmem:[#allocation78_spill] sm:$0xff] %v8740_v29 }
 0x654   :  { %v8430_v24 = vadd.f32 %v2109_v7, %v2108_v49  ;;  %v8747_v49 = vld [vmem:[%s9947_s2 + $0x4b8] sm:$0xff]  ;;  %v11174_v7 = vld [vmem:[#allocation8_spill] sm:$0xff] }
 0x655   :  { %11173 = vst [vmem:[#allocation79_spill] sm:$0xff] %v8747_v49 }
 0x656   :  { %2948 = vst [vmem:[%s9950_s5 + $0x38] sm:$0xff] %v8430_v24  ;;  %2177 = vmatprep.mubr.f32.mxu0 %v8430_v24  ;;  %2248 = vmatprep.mubr.f32.mxu1 %v8430_v24 }
 0x657   :  { %2178 = vmatmul.mubr.f32.vlgmr.msra.gmra.mxu0 %v8417_v58  ;;  %2249 = vmatmul.mubr.f32.vlgmr.msra.gmra.mxu1 %v8417_v58 }
 0x658   :  { %2256 = vmatpush1.msra.mxu0 %v7895_v22  ;;  %2319 = vmatprep.mubr.f32.mxu0 %v8430_v24  ;;  %v8460_v22 = vld [vmem:[%s9947_s2 + $0x2a0] sm:$0xff] }
 0x659   :  { %2257 = vmatprep.subr.mxu0 %v7902_v15  ;;  %2377 = vmatpush1.msra.mxu1 %v8446_v10  ;;  %v8467_v15 = vld [vmem:[%s9947_s2 + $0x278] sm:$0xff] }
 0x65a   :  { %2258 = vmatpush1.msra.mxu0 %v7909_v37  ;;  %2378 = vmatprep.subr.mxu1 %v8453_v26  ;;  %v8474_v37 = vld [vmem:[%s9947_s2 + $0x270] sm:$0xff] }
 0x65b   :  { %2259 = vmatprep.subr.mxu0 %v7916_v4  ;;  %2379 = vmatpush1.msra.mxu1 %v8460_v22  ;;  %v8481_v4 = vld [vmem:[%s9947_s2 + $0x248] sm:$0xff] }
 0x65c   :  { %2260 = vmatpush1.msra.mxu0 %v7923_v45  ;;  %2380 = vmatprep.subr.mxu1 %v8467_v15  ;;  %v8488_v45 = vld [vmem:[%s9947_s2 + $0x240] sm:$0xff] }
 0x65d   :  { %2261 = vmatprep.subr.mxu0 %v7930_v12  ;;  %2381 = vmatpush1.msra.mxu1 %v8474_v37  ;;  %v8495_v12 = vld [vmem:[%s9947_s2 + $0x218] sm:$0xff] }
 0x65e   :  { %2262 = vmatpush1.msra.mxu0 %v7937_v46  ;;  %2382 = vmatprep.subr.mxu1 %v8481_v4  ;;  %v8502_v46 = vld [vmem:[%s9947_s2 + $0x210] sm:$0xff] }
 0x65f   :  { %2263 = vmatprep.subr.mxu0 %v7944_v62  ;;  %2383 = vmatpush1.msra.mxu1 %v8488_v45  ;;  %v8509_v62 = vld [vmem:[%s9947_s2 + $0x1e8] sm:$0xff] }
 0x660   :  { %2264 = vmatpush1.msra.mxu0 %v7951_v48  ;;  %2384 = vmatprep.subr.mxu1 %v8495_v12  ;;  %v8516_v48 = vld [vmem:[%s9947_s2 + $0x1e0] sm:$0xff] }
 0x661   :  { %2265 = vmatprep.subr.mxu0 %v7958_v44  ;;  %2385 = vmatpush1.msra.mxu1 %v8502_v46  ;;  %v8523_v44 = vld [vmem:[%s9947_s2 + $0x1b8] sm:$0xff] }
 0x662   :  { %2266 = vmatpush1.msra.mxu0 %v7965_v31  ;;  %2386 = vmatprep.subr.mxu1 %v8509_v62  ;;  %v8530_v31 = vld [vmem:[%s9947_s2 + $0x1b0] sm:$0xff] }
 0x663   :  { %2267 = vmatprep.subr.mxu0 %v7972_v38  ;;  %2387 = vmatpush1.msra.mxu1 %v8516_v48  ;;  %v8537_v38 = vld [vmem:[%s9947_s2 + $0x188] sm:$0xff] }
 0x664   :  { %2268 = vmatpush1.msra.mxu0 %v7979_v43  ;;  %2388 = vmatprep.subr.mxu1 %v8523_v44  ;;  %v8544_v43 = vld [vmem:[%s9947_s2 + $0x180] sm:$0xff] }
 0x665   :  { %2269 = vmatprep.subr.mxu0 %v7986_v60  ;;  %2389 = vmatpush1.msra.mxu1 %v8530_v31  ;;  %v8551_v60 = vld [vmem:[%s9947_s2 + $0x158] sm:$0xff] }
 0x666   :  { %2270 = vmatpush1.msra.mxu0 %v7993_v50  ;;  %2390 = vmatprep.subr.mxu1 %v8537_v38  ;;  %v8558_v50 = vld [vmem:[%s9947_s2 + $0x150] sm:$0xff] }
 0x667   :  { %2271 = vmatprep.subr.mxu0 %v8000_v52  ;;  %2391 = vmatpush1.msra.mxu1 %v8544_v43  ;;  %v8565_v52 = vld [vmem:[%s9947_s2 + $0x128] sm:$0xff] }
 0x668   :  { %2272 = vmatpush1.msra.mxu0 %v8007_v20  ;;  %2392 = vmatprep.subr.mxu1 %v8551_v60  ;;  %v8572_v20 = vld [vmem:[%s9947_s2 + $0x120] sm:$0xff] }
 0x669   :  { %2273 = vmatprep.subr.mxu0 %v8014_v23  ;;  %2393 = vmatpush1.msra.mxu1 %v8558_v50  ;;  %v8579_v23 = vld [vmem:[%s9947_s2 + $0xf8] sm:$0xff] }
 0x66a   :  { %2274 = vmatpush1.msra.mxu0 %v8021_v13  ;;  %2394 = vmatprep.subr.mxu1 %v8565_v52  ;;  %v8586_v13 = vld [vmem:[%s9947_s2 + $0xf0] sm:$0xff] }
 0x66b   :  { %2275 = vmatprep.subr.mxu0 %v8028_v56  ;;  %2395 = vmatpush1.msra.mxu1 %v8572_v20  ;;  %v8593_v56 = vld [vmem:[%s9947_s2 + $0xc8] sm:$0xff] }
 0x66c   :  { %2276 = vmatpush1.msra.mxu0 %v8035_v27  ;;  %2396 = vmatprep.subr.mxu1 %v8579_v23  ;;  %v8600_v27 = vld [vmem:[%s9947_s2 + $0xc0] sm:$0xff] }
 0x66d   :  { %2277 = vmatprep.subr.mxu0 %v8042_v42  ;;  %2397 = vmatpush1.msra.mxu1 %v8586_v13  ;;  %v8607_v42 = vld [vmem:[%s9947_s2 + $0x98] sm:$0xff] }
 0x66e   :  { %2278 = vmatpush1.msra.mxu0 %v8049_v51  ;;  %2398 = vmatprep.subr.mxu1 %v8593_v56  ;;  %v8614_v51 = vld [vmem:[%s9947_s2 + $0x90] sm:$0xff] }
 0x66f   :  { %2279 = vmatprep.subr.mxu0 %v8056_v55  ;;  %2399 = vmatpush1.msra.mxu1 %v8600_v27  ;;  %v8621_v55 = vld [vmem:[%s9947_s2 + $0x68] sm:$0xff] }
 0x670   :  { %2280 = vmatpush1.msra.mxu0 %v8063_v41  ;;  %2400 = vmatprep.subr.mxu1 %v8607_v42  ;;  %v8628_v41 = vld [vmem:[%s9947_s2 + $0x60] sm:$0xff] }
 0x671   :  { %2281 = vmatprep.subr.mxu0 %v8070_v5  ;;  %2401 = vmatpush1.msra.mxu1 %v8614_v51  ;;  %v8635_v5 = vld [vmem:[%s9947_s2 + $0x38] sm:$0xff] }
 0x672   :  { %2282 = vmatpush1.msra.mxu0 %v8077_v39  ;;  %2402 = vmatprep.subr.mxu1 %v8621_v55  ;;  %v8642_v39 = vld [vmem:[%s9947_s2 + $0x30] sm:$0xff] }
 0x673   :  { %2283 = vmatprep.subr.mxu0 %v8084_v35  ;;  %2403 = vmatpush1.msra.mxu1 %v8628_v41  ;;  %v8649_v35 = vld [vmem:[%s9947_s2 + $0x8] sm:$0xff] }
 0x674   :  { %2284 = vmatpush1.msra.mxu0 %v8091_v6  ;;  %2404 = vmatprep.subr.mxu1 %v8635_v5  ;;  %v8656_v6 = vld [vmem:[%s9947_s2] sm:$0xff] }
 0x675   :  { %2285 = vmatprep.subr.mxu0 %v8098_v61  ;;  %2405 = vmatpush1.msra.mxu1 %v8642_v39  ;;  %v8663_v61 = vld [vmem:[%s9947_s2 + $0x5d8] sm:$0xff] }
 0x676   :  { %2286 = vmatpush1.msra.mxu0 %v8105_v53  ;;  %2406 = vmatprep.subr.mxu1 %v8649_v35  ;;  %v8670_v53 = vld [vmem:[%s9947_s2 + $0x5d0] sm:$0xff] }
 0x677   :  { %2287 = vmatprep.subr.mxu0 %v8112_v14  ;;  %2407 = vmatpush1.msra.mxu1 %v8656_v6  ;;  %v8677_v14 = vld [vmem:[%s9947_s2 + $0x5a8] sm:$0xff] }
 0x678   :  { %2288 = vmatpush2.msra.mxu0 %v8119_v59  ;;  %2408 = vmatprep.subr.mxu1 %v8663_v61  ;;  %v8684_v59 = vld [vmem:[%s9947_s2 + $0x5a0] sm:$0xff] }
 0x679   :  { %2289 = vmatprep.subr.mxu0 %v8126_v33  ;;  %2409 = vmatpush2.msra.mxu1 %v8670_v53  ;;  %v11157_v33 = vld [vmem:[#allocation70_spill] sm:$0xff] }
 0x67a   :  { %2290 = vmatpush2.msra.mxu0 %v8133_v57  ;;  %2410 = vmatprep.subr.mxu1 %v8677_v14  ;;  %v8691_v57 = vld [vmem:[%s9947_s2 + $0x578] sm:$0xff] }
 0x67b   :  { %2291 = vmatprep.subr.mxu0 %v8140_v47  ;;  %2411 = vmatpush2.msra.mxu1 %v8684_v59  ;;  %v8698_v47 = vld [vmem:[%s9947_s2 + $0x570] sm:$0xff] }
 0x67c   :  { %2292 = vmatpush2.msra.mxu0 %v11157_v33  ;;  %2412 = vmatprep.subr.mxu1 %v8691_v57  ;;  %11159 = vst [vmem:[#allocation67_spill] sm:$0xff] %v8698_v47  ;;  %v8754_v33 = vld [vmem:[%s9947_s2 + $0x4b0] sm:$0xff] }
 0x67d   :  { %2293 = vmatprep.subr.mxu0 %v11158_v21  ;;  %2413 = vmatpush2.msra.mxu1 %v8698_v47  ;;  %11175 = vst [vmem:[#allocation81_spill] sm:$0xff] %v8754_v33  ;;  %v11176_v21 = vld [vmem:[#allocation4_spill] sm:$0xff] }
 0x67e   :  { %2294 = vmatpush2.msra.mxu0 %v11160_v25  ;;  %2414 = vmatprep.subr.mxu1 %v8705_v63  ;;  %v8761_v25 = vld [vmem:[%s9947_s2 + $0x488] sm:$0xff] }
 0x67f   :  { %2295 = vmatprep.subr.mxu0 %v11162_v18  ;;  %2415 = vmatpush2.msra.mxu1 %v8712_v19  ;;  %11177 = vst [vmem:[#allocation83_spill] sm:$0xff] %v8761_v25  ;;  %v11178_v18 = vld [vmem:[#allocation19_spill] sm:$0xff] }
 0x680   :  { %2296 = vmatpush2.msra.mxu0 %v11164_v17  ;;  %2416 = vmatprep.subr.mxu1 %v8719_v40  ;;  %v8768_v17 = vld [vmem:[%s9947_s2 + $0x480] sm:$0xff] }
 0x681   :  { %2297 = vmatprep.subr.mxu0 %v11166_v8  ;;  %2417 = vmatpush2.msra.mxu1 %v8726_v11  ;;  %11179 = vst [vmem:[#allocation85_spill] sm:$0xff] %v8768_v17  ;;  %v11180_v8 = vld [vmem:[#allocation22_spill] sm:$0xff] }
 0x682   :  { %2298 = vmatpush2.msra.mxu0 %v11168_v36  ;;  %2418 = vmatprep.subr.mxu1 %v8733_v28  ;;  %v8775_v36 = vld [vmem:[%s9947_s2 + $0x458] sm:$0xff] }
 0x683   :  { %2299 = vmatprep.subr.mxu0 %v11170_v30  ;;  %2419 = vmatpush2.msra.mxu1 %v8740_v29  ;;  %11181 = vst [vmem:[#allocation86_spill] sm:$0xff] %v8775_v36  ;;  %v11182_v30 = vld [vmem:[#allocation33_spill] sm:$0xff] }
 0x684   :  { %2300 = vmatpush2.msra.mxu0 %v11172_v1  ;;  %2420 = vmatprep.subr.mxu1 %v8747_v49  ;;  %v8782_v1 = vld [vmem:[%s9947_s2 + $0x450] sm:$0xff] }
 0x685   :  { %2301 = vmatprep.subr.mxu0 %v11174_v7  ;;  %2421 = vmatpush2.msra.mxu1 %v8754_v33  ;;  %11183 = vst [vmem:[#allocation88_spill] sm:$0xff] %v8782_v1  ;;  %v11184_v7 = vld [vmem:[#allocation40_spill] sm:$0xff] }
 0x686   :  { %2302 = vmatpush2.msra.mxu0 %v11176_v21  ;;  %2422 = vmatprep.subr.mxu1 %v8761_v25  ;;  %v8789_v21 = vld [vmem:[%s9947_s2 + $0x428] sm:$0xff] }
 0x687   :  { %2303 = vmatprep.subr.mxu0 %v11178_v18  ;;  %2423 = vmatpush2.msra.mxu1 %v8768_v17  ;;  %11185 = vst [vmem:[#allocation90_spill] sm:$0xff] %v8789_v21  ;;  %v11186_v18 = vld [vmem:[#allocation91_spill] sm:$0xff]  ;;  %v11278_v17 = vld [vmem:[#allocation12_spill] sm:$0xff] }
 0x688   :  { %2304 = vmatpush2.msra.mxu0 %v11180_v8  ;;  %2424 = vmatprep.subr.mxu1 %v8775_v36  ;;  %v8796_v8 = vld [vmem:[%s9947_s2 + $0x420] sm:$0xff] }
 0x689   :  { %2305 = vmatprep.subr.mxu0 %v11182_v30  ;;  %2425 = vmatpush2.msra.mxu1 %v8782_v1  ;;  %11187 = vst [vmem:[#allocation92_spill] sm:$0xff] %v8796_v8  ;;  %v11188_v30 = vld [vmem:[#allocation94_spill] sm:$0xff]  ;;  %v11190_v1 = vld [vmem:[#allocation97_spill] sm:$0xff] }
 0x68a   :  { %2306 = vmatpush2.msra.mxu0 %v11184_v7  ;;  %2426 = vmatprep.subr.mxu1 %v8789_v21  ;;  %v8803_v7 = vld [vmem:[%s9947_s2 + $0x3f8] sm:$0xff]  ;;  %v11192_v21 = vld [vmem:[#allocation99_spill] sm:$0xff] }
 0x68b   :  { %2307 = vmatprep.subr.mxu0 %v11186_v18  ;;  %2427 = vmatpush2.msra.mxu1 %v8796_v8  ;;  %11189 = vst [vmem:[#allocation93_spill] sm:$0xff] %v8803_v7  ;;  %v8810_v18 = vld [vmem:[%s9947_s2 + $0x3f0] sm:$0xff]  ;;  %v11194_v8 = vld [vmem:[#allocation103_spill] sm:$0xff] }
 0x68c   :  { %2308 = vmatpush2.msra.mxu0 %v11188_v30  ;;  %2428 = vmatprep.subr.mxu1 %v8803_v7  ;;  %11191 = vst [vmem:[#allocation95_spill] sm:$0xff] %v8810_v18  ;;  %v8817_v30 = vld [vmem:[%s9947_s2 + $0x3c8] sm:$0xff]  ;;  %v11196_v7 = vld [vmem:[#allocation53_spill] sm:$0xff] }
 0x68d   :  { %2309 = vmatprep.subr.mxu0 %v11190_v1  ;;  %2429 = vmatpush2.msra.mxu1 %v8810_v18  ;;  %11193 = vst [vmem:[#allocation96_spill] sm:$0xff] %v8817_v30  ;;  %v8824_v1 = vld [vmem:[%s9947_s2 + $0x3c0] sm:$0xff] }
 0x68e   :  { %2310 = vmatpush2.msra.mxu0 %v11192_v21  ;;  %2430 = vmatprep.subr.mxu1 %v8817_v30  ;;  %11195 = vst [vmem:[#allocation98_spill] sm:$0xff] %v8824_v1  ;;  %v8831_v21 = vld [vmem:[%s9947_s2 + $0x398] sm:$0xff]  ;;  %v11198_v18 = vld [vmem:[#allocation55_spill] sm:$0xff]  ;;  %v11200_v30 = vld [vmem:[#allocation57_spill] sm:$0xff] }
 0x68f   :  { %2311 = vmatprep.subr.mxu0 %v11194_v8  ;;  %2431 = vmatpush2.msra.mxu1 %v8824_v1  ;;  %11197 = vst [vmem:[#allocation100_spill] sm:$0xff] %v8831_v21  ;;  %v8838_v8 = vld [vmem:[%s9947_s2 + $0x390] sm:$0xff]  ;;  %v11202_v1 = vld [vmem:[#allocation58_spill] sm:$0xff] }
 0x690   :  { %2312 = vmatpush2.msra.mxu0 %v11196_v7  ;;  %2432 = vmatprep.subr.mxu1 %v8831_v21  ;;  %11199 = vst [vmem:[#allocation101_spill] sm:$0xff] %v8838_v8  ;;  %v8845_v7 = vld [vmem:[%s9947_s2 + $0x368] sm:$0xff] }
 0x691   :  { %2313 = vmatprep.subr.mxu0 %v11198_v18  ;;  %2433 = vmatpush2.msra.mxu1 %v8838_v8  ;;  %11201 = vst [vmem:[#allocation102_spill] sm:$0xff] %v8845_v7  ;;  %v8852_v18 = vld [vmem:[%s9947_s2 + $0x360] sm:$0xff]  ;;  %v11204_v21 = vld [vmem:[#allocation60_spill] sm:$0xff]  ;;  %v11206_v8 = vld [vmem:[#allocation62_spill] sm:$0xff] }
 0x692   :  { %2314 = vmatpush2.msra.mxu0 %v11200_v30  ;;  %2434 = vmatprep.subr.mxu1 %v8845_v7  ;;  %11203 = vst [vmem:[#allocation104_spill] sm:$0xff] %v8852_v18  ;;  %v8859_v30 = vld [vmem:[%s9947_s2 + $0x338] sm:$0xff]  ;;  %v11208_v7 = vld [vmem:[#allocation64_spill] sm:$0xff] }
 0x693   :  { %2315 = vmatprep.subr.mxu0 %v11202_v1  ;;  %2435 = vmatpush2.msra.mxu1 %v8852_v18  ;;  %11205 = vst [vmem:[#allocation105_spill] sm:$0xff] %v8859_v30  ;;  %v8866_v1 = vld [vmem:[%s9947_s2 + $0x330] sm:$0xff]  ;;  %v11277_v18 = vld [vmem:[#allocation30_spill] sm:$0xff] }
 0x694   :  { %2316 = vmatpush2.msra.mxu0 %v11204_v21  ;;  %2436 = vmatprep.subr.mxu1 %v8859_v30  ;;  %11207 = vst [vmem:[#allocation106_spill] sm:$0xff] %v8866_v1  ;;  %v8873_v21 = vld [vmem:[%s9947_s2 + $0x308] sm:$0xff] }
 0x695   :  { %2317 = vmatprep.subr.mxu0 %v11206_v8  ;;  %2437 = vmatpush2.msra.mxu1 %v8866_v1  ;;  %11209 = vst [vmem:[#allocation107_spill] sm:$0xff] %v8873_v21  ;;  %v8880_v8 = vld [vmem:[%s9947_s2 + $0x2e8] sm:$0xff]  ;;  %v8898_v1 = vld [vmem:[%s9947_s2 + $0x2b8] sm:$0xff] }
 0x696   :  { %2318 = vmatpush2.msra.mxu0 %v11208_v7  ;;  %2438 = vmatprep.subr.mxu1 %v8873_v21  ;;  %11210 = vst [vmem:[#allocation108_spill] sm:$0xff] %v8880_v8  ;;  %v8886_v7 = vld [vmem:[%s9947_s2 + $0x2e0] sm:$0xff]  ;;  %11213 = vst [vmem:[#allocation111_spill] sm:$0xff] %v8898_v1 }
 0x697   :  { %2320 = vmatmul.mubr.f32.vlgmr.msra.gmra.mxu0 %v8417_v58  ;;  %2447 = vmatprep.subr.mxu0 %v8880_v8  ;;  %11211 = vst [vmem:[#allocation109_spill] sm:$0xff] %v8886_v7  ;;  %v8892_v21 = vld [vmem:[%s9947_s2 + $0x300] sm:$0xff]  ;;  %v8904_v8 = vld [vmem:[%s9947_s2 + $0x2f8] sm:$0xff] }
 0x698   :  { %2448 = vmatpush1.msra.mxu0 %v8886_v7  ;;  %11212 = vst [vmem:[#allocation110_spill] sm:$0xff] %v8892_v21  ;;  %2439 = vmatpush2.msra.mxu1 %v8892_v21  ;;  %11214 = vst [vmem:[#allocation112_spill] sm:$0xff] %v8904_v8  ;;  %v8910_v7 = vld [vmem:[%s9947_s2 + $0x2b0] sm:$0xff]  ;;  %v8916_v21 = vld [vmem:[%s9947_s2 + $0x288] sm:$0xff] }
 0x699   :  { %2449 = vmatprep.subr.mxu0 %v8898_v1  ;;  %2518 = vmatprep.subr.mxu1 %v8904_v8  ;;  %11215 = vst [vmem:[#allocation113_spill] sm:$0xff] %v8910_v7  ;;  %11216 = vst [vmem:[#allocation114_spill] sm:$0xff] %v8916_v21  ;;  %v8922_v1 = vld [vmem:[%s9947_s2 + $0x280] sm:$0xff]  ;;  %v8928_v8 = vld [vmem:[%s9947_s2 + $0x258] sm:$0xff] }
 0x69a   :  { %2450 = vmatpush1.msra.mxu0 %v8910_v7  ;;  %11217 = vst [vmem:[#allocation115_spill] sm:$0xff] %v8922_v1  ;;  %11218 = vst [vmem:[#allocation116_spill] sm:$0xff] %v8928_v8  ;;  %v8934_v7 = vld [vmem:[%s9947_s2 + $0x250] sm:$0xff] }
 0x69b   :  { %2451 = vmatprep.subr.mxu0 %v8916_v21  ;;  %11219 = vst [vmem:[#allocation117_spill] sm:$0xff] %v8934_v7  ;;  %v8940_v21 = vld [vmem:[%s9947_s2 + $0x228] sm:$0xff] }
 0x69c   :  { %2452 = vmatpush1.msra.mxu0 %v8922_v1  ;;  %11220 = vst [vmem:[#allocation118_spill] sm:$0xff] %v8940_v21  ;;  %v8946_v1 = vld [vmem:[%s9947_s2 + $0x220] sm:$0xff] }
 0x69d   :  { %2453 = vmatprep.subr.mxu0 %v8928_v8  ;;  %11221 = vst [vmem:[#allocation119_spill] sm:$0xff] %v8946_v1  ;;  %v8952_v8 = vld [vmem:[%s9947_s2 + $0x1f8] sm:$0xff] }
 0x69e   :  { %2454 = vmatpush1.msra.mxu0 %v8934_v7  ;;  %11222 = vst [vmem:[#allocation120_spill] sm:$0xff] %v8952_v8  ;;  %v8958_v7 = vld [vmem:[%s9947_s2 + $0x1f0] sm:$0xff] }
 0x69f   :  { %2455 = vmatprep.subr.mxu0 %v8940_v21  ;;  %11223 = vst [vmem:[#allocation121_spill] sm:$0xff] %v8958_v7  ;;  %v8964_v21 = vld [vmem:[%s9947_s2 + $0x1c8] sm:$0xff] }
 0x6a0   :  { %2456 = vmatpush1.msra.mxu0 %v8946_v1  ;;  %11224 = vst [vmem:[#allocation122_spill] sm:$0xff] %v8964_v21  ;;  %v8970_v1 = vld [vmem:[%s9947_s2 + $0x1c0] sm:$0xff] }
 0x6a1   :  { %2457 = vmatprep.subr.mxu0 %v8952_v8  ;;  %11225 = vst [vmem:[#allocation123_spill] sm:$0xff] %v8970_v1  ;;  %v8976_v8 = vld [vmem:[%s9947_s2 + $0x198] sm:$0xff] }
 0x6a2   :  { %2458 = vmatpush1.msra.mxu0 %v8958_v7  ;;  %11226 = vst [vmem:[#allocation124_spill] sm:$0xff] %v8976_v8  ;;  %v8982_v7 = vld [vmem:[%s9947_s2 + $0x190] sm:$0xff] }
 0x6a3   :  { %2459 = vmatprep.subr.mxu0 %v8964_v21  ;;  %11227 = vst [vmem:[#allocation125_spill] sm:$0xff] %v8982_v7  ;;  %v8988_v21 = vld [vmem:[%s9947_s2 + $0x168] sm:$0xff] }
 0x6a4   :  { %2460 = vmatpush1.msra.mxu0 %v8970_v1  ;;  %11228 = vst [vmem:[#allocation126_spill] sm:$0xff] %v8988_v21  ;;  %v8994_v1 = vld [vmem:[%s9947_s2 + $0x160] sm:$0xff] }
 0x6a5   :  { %2461 = vmatprep.subr.mxu0 %v8976_v8  ;;  %11229 = vst [vmem:[#allocation127_spill] sm:$0xff] %v8994_v1  ;;  %v9000_v8 = vld [vmem:[%s9947_s2 + $0x138] sm:$0xff] }
 0x6a6   :  { %2462 = vmatpush1.msra.mxu0 %v8982_v7  ;;  %11230 = vst [vmem:[#allocation128_spill] sm:$0xff] %v9000_v8  ;;  %v9006_v7 = vld [vmem:[%s9947_s2 + $0x130] sm:$0xff] }
 0x6a7   :  { %2463 = vmatprep.subr.mxu0 %v8988_v21  ;;  %11231 = vst [vmem:[#allocation129_spill] sm:$0xff] %v9006_v7  ;;  %v9012_v21 = vld [vmem:[%s9947_s2 + $0x108] sm:$0xff] }
 0x6a8   :  { %2464 = vmatpush1.msra.mxu0 %v8994_v1  ;;  %11232 = vst [vmem:[#allocation130_spill] sm:$0xff] %v9012_v21  ;;  %v9018_v1 = vld [vmem:[%s9947_s2 + $0x100] sm:$0xff] }
 0x6a9   :  { %2465 = vmatprep.subr.mxu0 %v9000_v8  ;;  %11233 = vst [vmem:[#allocation131_spill] sm:$0xff] %v9018_v1  ;;  %v9024_v8 = vld [vmem:[%s9947_s2 + $0xd8] sm:$0xff] }
 0x6aa   :  { %2466 = vmatpush1.msra.mxu0 %v9006_v7  ;;  %11234 = vst [vmem:[#allocation132_spill] sm:$0xff] %v9024_v8  ;;  %v9030_v7 = vld [vmem:[%s9947_s2 + $0xd0] sm:$0xff] }
 0x6ab   :  { %2467 = vmatprep.subr.mxu0 %v9012_v21  ;;  %11235 = vst [vmem:[#allocation133_spill] sm:$0xff] %v9030_v7  ;;  %v9036_v21 = vld [vmem:[%s9947_s2 + $0xa8] sm:$0xff] }
 0x6ac   :  { %2468 = vmatpush1.msra.mxu0 %v9018_v1  ;;  %11236 = vst [vmem:[#allocation134_spill] sm:$0xff] %v9036_v21  ;;  %v9042_v1 = vld [vmem:[%s9947_s2 + $0xa0] sm:$0xff] }
 0x6ad   :  { %2469 = vmatprep.subr.mxu0 %v9024_v8  ;;  %11237 = vst [vmem:[#allocation135_spill] sm:$0xff] %v9042_v1  ;;  %v9048_v8 = vld [vmem:[%s9947_s2 + $0x78] sm:$0xff] }
 0x6ae   :  { %2470 = vmatpush1.msra.mxu0 %v9030_v7  ;;  %11238 = vst [vmem:[#allocation6_spill] sm:$0xff] %v9048_v8  ;;  %v9054_v7 = vld [vmem:[%s9947_s2 + $0x70] sm:$0xff] }
 0x6af   :  { %2471 = vmatprep.subr.mxu0 %v9036_v21  ;;  %11239 = vst [vmem:[#allocation3_spill] sm:$0xff] %v9054_v7  ;;  %v9060_v21 = vld [vmem:[%s9947_s2 + $0x48] sm:$0xff] }
 0x6b0   :  { %2472 = vmatpush1.msra.mxu0 %v9042_v1  ;;  %11240 = vst [vmem:[#allocation21_spill] sm:$0xff] %v9060_v21  ;;  %v9066_v1 = vld [vmem:[%s9947_s2 + $0x40] sm:$0xff] }
 0x6b1   :  { %2473 = vmatprep.subr.mxu0 %v9048_v8  ;;  %11241 = vst [vmem:[#allocation20_spill] sm:$0xff] %v9066_v1  ;;  %v9072_v8 = vld [vmem:[%s9947_s2 + $0x18] sm:$0xff] }
 0x6b2   :  { %2474 = vmatpush1.msra.mxu0 %v9054_v7  ;;  %11242 = vst [vmem:[#allocation35_spill] sm:$0xff] %v9072_v8  ;;  %v9078_v7 = vld [vmem:[%s9947_s2 + $0x10] sm:$0xff] }
 0x6b3   :  { %2475 = vmatprep.subr.mxu0 %v9060_v21  ;;  %11243 = vst [vmem:[#allocation42_spill] sm:$0xff] %v9078_v7  ;;  %v9084_v21 = vld [vmem:[%s9947_s2 + $0x5e8] sm:$0xff] }
 0x6b4   :  { %2476 = vmatpush1.msra.mxu0 %v9066_v1  ;;  %11244 = vst [vmem:[#allocation37_spill] sm:$0xff] %v9084_v21  ;;  %v9090_v1 = vld [vmem:[%s9947_s2 + $0x5e0] sm:$0xff] }
 0x6b5   :  { %2477 = vmatprep.subr.mxu0 %v9072_v8  ;;  %11245 = vst [vmem:[#allocation44_spill] sm:$0xff] %v9090_v1  ;;  %v9096_v8 = vld [vmem:[%s9947_s2 + $0x5b8] sm:$0xff] }
 0x6b6   :  { %2478 = vmatpush1.msra.mxu0 %v9078_v7  ;;  %11246 = vst [vmem:[#allocation46_spill] sm:$0xff] %v9096_v8  ;;  %v9102_v7 = vld [vmem:[%s9947_s2 + $0x5b0] sm:$0xff] }
 0x6b7   :  { %2479 = vmatprep.subr.mxu0 %v9084_v21  ;;  %11247 = vst [vmem:[#allocation41_spill] sm:$0xff] %v9102_v7  ;;  %v9108_v21 = vld [vmem:[%s9947_s2 + $0x588] sm:$0xff] }
 0x6b8   :  { %2480 = vmatpush2.msra.mxu0 %v9090_v1  ;;  %11248 = vst [vmem:[#allocation48_spill] sm:$0xff] %v9108_v21  ;;  %v9114_v1 = vld [vmem:[%s9947_s2 + $0x580] sm:$0xff] }
 0x6b9   :  { %2481 = vmatprep.subr.mxu0 %v9096_v8  ;;  %11249 = vst [vmem:[#allocation43_spill] sm:$0xff] %v9114_v1  ;;  %v9120_v8 = vld [vmem:[%s9947_s2 + $0x558] sm:$0xff] }
 0x6ba   :  { %2482 = vmatpush2.msra.mxu0 %v9102_v7  ;;  %11250 = vst [vmem:[#allocation50_spill] sm:$0xff] %v9120_v8  ;;  %v9126_v7 = vld [vmem:[%s9947_s2 + $0x550] sm:$0xff] }
 0x6bb   :  { %2483 = vmatprep.subr.mxu0 %v9108_v21  ;;  %11251 = vst [vmem:[#allocation45_spill] sm:$0xff] %v9126_v7  ;;  %v9132_v21 = vld [vmem:[%s9947_s2 + $0x528] sm:$0xff] }
 0x6bc   :  { %2484 = vmatpush2.msra.mxu0 %v9114_v1  ;;  %11252 = vst [vmem:[#allocation47_spill] sm:$0xff] %v9132_v21  ;;  %v9138_v1 = vld [vmem:[%s9947_s2 + $0x520] sm:$0xff] }
 0x6bd   :  { %2485 = vmatprep.subr.mxu0 %v9120_v8  ;;  %11253 = vst [vmem:[#allocation52_spill] sm:$0xff] %v9138_v1  ;;  %v9144_v8 = vld [vmem:[%s9947_s2 + $0x4f8] sm:$0xff] }
 0x6be   :  { %2486 = vmatpush2.msra.mxu0 %v9126_v7  ;;  %11254 = vst [vmem:[#allocation49_spill] sm:$0xff] %v9144_v8  ;;  %v9150_v7 = vld [vmem:[%s9947_s2 + $0x4f0] sm:$0xff] }
 0x6bf   :  { %2487 = vmatprep.subr.mxu0 %v9132_v21  ;;  %11255 = vst [vmem:[#allocation54_spill] sm:$0xff] %v9150_v7  ;;  %v9156_v21 = vld [vmem:[%s9947_s2 + $0x4c8] sm:$0xff] }
 0x6c0   :  { %2488 = vmatpush2.msra.mxu0 %v9138_v1  ;;  %11256 = vst [vmem:[#allocation51_spill] sm:$0xff] %v9156_v21  ;;  %v9162_v1 = vld [vmem:[%s9947_s2 + $0x4c0] sm:$0xff] }
 0x6c1   :  { %2489 = vmatprep.subr.mxu0 %v9144_v8  ;;  %11257 = vst [vmem:[#allocation56_spill] sm:$0xff] %v9162_v1  ;;  %v9168_v8 = vld [vmem:[%s9947_s2 + $0x498] sm:$0xff] }
 0x6c2   :  { %2490 = vmatpush2.msra.mxu0 %v9150_v7  ;;  %11258 = vst [vmem:[#allocation59_spill] sm:$0xff] %v9168_v8  ;;  %v9174_v7 = vld [vmem:[%s9947_s2 + $0x490] sm:$0xff] }
 0x6c3   :  { %2491 = vmatprep.subr.mxu0 %v9156_v21  ;;  %11259 = vst [vmem:[#allocation61_spill] sm:$0xff] %v9174_v7  ;;  %v9180_v21 = vld [vmem:[%s9947_s2 + $0x468] sm:$0xff] }
 0x6c4   :  { %2492 = vmatpush2.msra.mxu0 %v9162_v1  ;;  %11260 = vst [vmem:[#allocation63_spill] sm:$0xff] %v9180_v21  ;;  %v9186_v1 = vld [vmem:[%s9947_s2 + $0x460] sm:$0xff] }
 0x6c5   :  { %2493 = vmatprep.subr.mxu0 %v9168_v8  ;;  %11261 = vst [vmem:[#allocation66_spill] sm:$0xff] %v9186_v1  ;;  %v9192_v8 = vld [vmem:[%s9947_s2 + $0x438] sm:$0xff] }
 0x6c6   :  { %2494 = vmatpush2.msra.mxu0 %v9174_v7  ;;  %11262 = vst [vmem:[#allocation68_spill] sm:$0xff] %v9192_v8  ;;  %v9198_v7 = vld [vmem:[%s9947_s2 + $0x430] sm:$0xff] }
 0x6c7   :  { %2495 = vmatprep.subr.mxu0 %v9180_v21  ;;  %11263 = vst [vmem:[#allocation10_spill] sm:$0xff] %v9198_v7  ;;  %v9204_v21 = vld [vmem:[%s9947_s2 + $0x408] sm:$0xff] }
 0x6c8   :  { %2496 = vmatpush2.msra.mxu0 %v9186_v1  ;;  %11264 = vst [vmem:[#allocation5_spill] sm:$0xff] %v9204_v21  ;;  %v9210_v1 = vld [vmem:[%s9947_s2 + $0x400] sm:$0xff] }
 0x6c9   :  { %2497 = vmatprep.subr.mxu0 %v9192_v8  ;;  %11265 = vst [vmem:[#allocation17_spill] sm:$0xff] %v9210_v1  ;;  %v9216_v8 = vld [vmem:[%s9947_s2 + $0x3d8] sm:$0xff] }
 0x6ca   :  { %2498 = vmatpush2.msra.mxu0 %v9198_v7  ;;  %11266 = vst [vmem:[#allocation24_spill] sm:$0xff] %v9216_v8  ;;  %v9222_v7 = vld [vmem:[%s9947_s2 + $0x3d0] sm:$0xff] }
 0x6cb   :  { %2499 = vmatprep.subr.mxu0 %v9204_v21  ;;  %11267 = vst [vmem:[#allocation31_spill] sm:$0xff] %v9222_v7  ;;  %v9228_v21 = vld [vmem:[%s9947_s2 + $0x3a8] sm:$0xff] }
 0x6cc   :  { %2500 = vmatpush2.msra.mxu0 %v9210_v1  ;;  %11268 = vst [vmem:[#allocation38_spill] sm:$0xff] %v9228_v21  ;;  %v9234_v1 = vld [vmem:[%s9947_s2 + $0x3a0] sm:$0xff] }
 0x6cd   :  { %2501 = vmatprep.subr.mxu0 %v9216_v8  ;;  %11269 = vst [vmem:[#allocation70_spill] sm:$0xff] %v9234_v1  ;;  %v9240_v8 = vld [vmem:[%s9947_s2 + $0x378] sm:$0xff] }
 0x6ce   :  { %2502 = vmatpush2.msra.mxu0 %v9222_v7  ;;  %11270 = vst [vmem:[#allocation73_spill] sm:$0xff] %v9240_v8  ;;  %v9246_v7 = vld [vmem:[%s9947_s2 + $0x370] sm:$0xff] }
 0x6cf   :  { %2503 = vmatprep.subr.mxu0 %v9228_v21  ;;  %11271 = vst [vmem:[#allocation75_spill] sm:$0xff] %v9246_v7  ;;  %v9252_v21 = vld [vmem:[%s9947_s2 + $0x348] sm:$0xff] }
 0x6d0   :  { %2504 = vmatpush2.msra.mxu0 %v9234_v1  ;;  %11272 = vst [vmem:[#allocation77_spill] sm:$0xff] %v9252_v21  ;;  %v9258_v1 = vld [vmem:[%s9947_s2 + $0x340] sm:$0xff] }
 0x6d1   :  { %2505 = vmatprep.subr.mxu0 %v9240_v8  ;;  %11273 = vst [vmem:[#allocation80_spill] sm:$0xff] %v9258_v1  ;;  %v9264_v8 = vld [vmem:[%s9947_s2 + $0x318] sm:$0xff] }
 0x6d2   :  { %2506 = vmatpush2.msra.mxu0 %v9246_v7  ;;  %11274 = vst [vmem:[#allocation82_spill] sm:$0xff] %v9264_v8  ;;  %v9270_v7 = vld [vmem:[%s9947_s2 + $0x310] sm:$0xff] }
 0x6d3   :  { %2507 = vmatprep.subr.mxu0 %v9252_v21  ;;  %11275 = vst [vmem:[#allocation84_spill] sm:$0xff] %v9270_v7  ;;  %v11276_v21 = vld [vmem:[#allocation65_spill] sm:$0xff] }
 0x6d4   :  { %2508 = vmatpush2.msra.mxu0 %v9258_v1 }
 0x6d5   :  { %2509 = vmatprep.subr.mxu0 %v9264_v8  ;;  %v11279_v8 = vld [vmem:[#allocation7_spill] sm:$0xff] }
 0x6d6   :  { %2510 = vmatpush2.msra.mxu0 %v9270_v7 }
 0x6d7   :  { %2639 = vmatprep.subr.mxu0 %v11276_v21  ;;  %v11280_v21 = vld [vmem:[#allocation39_spill] sm:$0xff] }
 0x717   :  { %v2179_v30 = vpop.f32.mrf.mxu0  ;;  %v2250_v11 = vpop.f32.mrf.mxu1 }
 0x718   :  { %v2180_v36 = vadd.f32 %v2179_v30, %v11277_v18  ;;  %v11281_v30 = vld [vmem:[#allocation15_spill] sm:$0xff] }
 0x719   :  { %v2181_v1 = vpop.f32.mrf.mxu0  ;;  %v2252_v19 = vpop.f32.mrf.mxu1  ;;  %v352_v18 = vadd.f32 %v11281_v30, %v5568_v2 }
 0x71a   :  { %v2332_v25 = vadd.f32 %v2180_v36, %v11278_v17  ;;  %v2182_v49 = vadd.f32 %v2181_v1, %v5528_v9  ;;  %v2253_v63 = vadd.f32 %v2252_v19, %v11280_v21 }
 0x71c   :  { %v2949_v33 = vmul.f32 -1.442695, %v2332_v25  ;;  %v2339_v29 = vadd.f32 %v2182_v49, %v11279_v8  ;;  %v2353_v47 = vadd.f32 %v2253_v63, %v352_v18 }
 0x71e   :  { %3069 = vpow2.f32 %v2949_v33  ;;  %v2950_v28 = vmul.f32 -1.442695, %v2339_v29  ;;  %v2951_v25 = vmul.f32 -1.442695, %v2353_v47  ;;  %v2251_v33 = vadd.f32 %v2250_v11, %v5558_v0  ;;  %v11282_v29 = vld [vmem:[#allocation26_spill] sm:$0xff] }
 0x720   :  { %3071 = vpow2.f32 %v2950_v28  ;;  %v368_v28 = vadd.f32 %v11282_v29, %v5561_v16 }
 0x72b   :  { %v3070_v40 = vpop.eup %3069 }
 0x72c   :  { %v2336_v7 = vadd.f32 1.0, %v3070_v40 }
 0x72d   :  { %v3072_v17 = vpop.eup %3071 }
 0x72e   :  { %3073 = vrcp.f32 %v2336_v7  ;;  %v2343_v36 = vadd.f32 1.0, %v3072_v17  ;;  %v11283_v17 = vld [vmem:[#allocation29_spill] sm:$0xff] }
 0x72f   :  { %3075 = vpow2.f32 %v2951_v25  ;;  %v463_v25 = vadd.f32 %v11283_v17, %v5585_v32 }
 0x730   :  { %3077 = vrcp.f32 %v2343_v36 }
 0x73b   :  { %v3074_v49 = vpop.eup %3073 }
 0x73c   :  { %v2346_v1 = vmul.f32 %v3074_v49, %v2251_v33  ;;  %v3076_v8 = vpop.eup %3075 }
 0x73d   :  { %v3078_v19 = vpop.eup %3077  ;;  %v2357_v7 = vadd.f32 1.0, %v3076_v8 }
 0x73e   :  { %v2347_v40 = vadd.f32 %v2346_v1, %v368_v28  ;;  %v2349_v21 = vsub.f32 1.0, %v3078_v19  ;;  %v2351_v47 = vmul.f32 %v3078_v19, %v8417_v58  ;;  %v11284_v58 = vld [vmem:[#allocation36_spill] sm:$0xff] }
 0x73f   :  { %v465_v28 = vadd.f32 %v11284_v58, %v5595_v3  ;;  %v11291_v58 = vld [vmem:[#allocation71_spill] sm:$0xff] }
 0x740   :  { %3079 = vtanh.f32 %v2347_v40 }
 0x741   :  { %3081 = vrcp.f32 %v2357_v7 }
 0x74d   :  { %v3080_v30 = vpop.eup %3079 }
 0x74e   :  { %v2350_v63 = vmul.f32 %v3080_v30, %v2349_v21  ;;  %v3082_v21 = vpop.eup %3081 }
 0x750   :  { %v9285_v18 = vadd.f32 %v2351_v47, %v2350_v63 }
 0x752   :  { %2953 = vst [vmem:[%s9950_s5 + $0x50] sm:$0xff] %v9285_v18 }
 0x757   :  { %v2321_v11 = vpop.f32.mrf.mxu0 }
 0x758   :  { %v2322_v36 = vadd.f32 %v2321_v11, %v5582_v54 }
 0x759   :  { %v2323_v33 = vpop.f32.mrf.mxu0 }
 0x75a   :  { %v2360_v49 = vadd.f32 %v2322_v36, %v463_v25  ;;  %v2324_v29 = vadd.f32 %v2323_v33, %v5591_v34  ;;  %v9311_v36 = vld [vmem:[%s9947_s2 + $0x2f0] sm:$0xff]  ;;  %v9325_v33 = vld [vmem:[%s9947_s2 + $0x2c0] sm:$0xff] }
 0x75c   :  { %v2952_v1 = vmul.f32 -1.442695, %v2360_v49  ;;  %v2367_v40 = vmul.f32 %v3082_v21, %v2324_v29  ;;  %v9332_v49 = vld [vmem:[%s9947_s2 + $0x298] sm:$0xff]  ;;  %v11287_v29 = vld [vmem:[#allocation67_spill] sm:$0xff]  ;;  %v11289_v21 = vld [vmem:[#allocation69_spill] sm:$0xff] }
 0x75e   :  { %3083 = vpow2.f32 %v2952_v1  ;;  %v2368_v8 = vadd.f32 %v2367_v40, %v465_v28  ;;  %v9591_v28 = vld [vmem:[%s9947_s2 + $0x530] sm:$0xff]  ;;  %v11293_v1 = vld [vmem:[#allocation72_spill] sm:$0xff] }
 0x75f   :  { %11292 = vst [vmem:[#allocation19_spill] sm:$0xff] %v9591_v28  ;;  %v9598_v40 = vld [vmem:[%s9947_s2 + $0x508] sm:$0xff] }
 0x760   :  { %11294 = vst [vmem:[#allocation22_spill] sm:$0xff] %v9598_v40 }
 0x76b   :  { %v3084_v19 = vpop.eup %3083 }
 0x76c   :  { %v2364_v7 = vadd.f32 1.0, %v3084_v19  ;;  %v9605_v19 = vld [vmem:[%s9947_s2 + $0x500] sm:$0xff] }
 0x76d   :  { %11296 = vst [vmem:[#allocation33_spill] sm:$0xff] %v9605_v19 }
 0x76e   :  { %3085 = vrcp.f32 %v2364_v7  ;;  %v11297_v7 = vld [vmem:[#allocation76_spill] sm:$0xff] }
 0x76f   :  { %3087 = vtanh.f32 %v2368_v8  ;;  %v11295_v8 = vld [vmem:[#allocation74_spill] sm:$0xff] }
 0x77b   :  { %v3086_v30 = vpop.eup %3085 }
 0x77c   :  { %v2370_v63 = vsub.f32 1.0, %v3086_v30  ;;  %v3088_v47 = vpop.eup %3087  ;;  %v2372_v17 = vmul.f32 %v3086_v30, %v8430_v24  ;;  %v9318_v24 = vld [vmem:[%s9947_s2 + $0x2c8] sm:$0xff]  ;;  %v9612_v30 = vld [vmem:[%s9947_s2 + $0x4d8] sm:$0xff] }
 0x77d   :  { %11298 = vst [vmem:[#allocation40_spill] sm:$0xff] %v9612_v30 }
 0x77e   :  { %v2371_v11 = vmul.f32 %v3088_v47, %v2370_v63  ;;  %v11299_v63 = vld [vmem:[#allocation78_spill] sm:$0xff]  ;;  %v9619_v47 = vld [vmem:[%s9947_s2 + $0x4d0] sm:$0xff] }
 0x77f   :  { %11300 = vst [vmem:[#allocation91_spill] sm:$0xff] %v9619_v47 }
 0x780   :  { %v9298_v25 = vadd.f32 %v2372_v17, %v2371_v11  ;;  %v11301_v11 = vld [vmem:[#allocation79_spill] sm:$0xff]  ;;  %v9626_v17 = vld [vmem:[%s9947_s2 + $0x4a8] sm:$0xff] }
 0x781   :  { %11302 = vst [vmem:[#allocation94_spill] sm:$0xff] %v9626_v17 }
 0x782   :  { %2954 = vst [vmem:[%s9950_s5 + $0x28] sm:$0xff] %v9298_v25  ;;  %2440 = vmatprep.mubr.f32.mxu1 %v9298_v25  ;;  %2511 = vmatprep.mubr.f32.mxu0 %v9298_v25 }
 0x783   :  { %2441 = vmatmul.mubr.f32.vlgmr.msra.gmra.mxu1 %v9285_v18  ;;  %2512 = vmatmul.mubr.f32.vlgmr.msra.gmra.mxu0 %v9285_v18 }
 0x784   :  { %2519 = vmatpush1.msra.mxu1 %v9311_v36  ;;  %2582 = vmatprep.mubr.f32.mxu1 %v9298_v25 }
 0x785   :  { %2520 = vmatprep.subr.mxu1 %v9318_v24  ;;  %2640 = vmatpush1.msra.mxu0 %v8446_v10  ;;  %v9339_v10 = vld [vmem:[%s9947_s2 + $0x290] sm:$0xff] }
 0x786   :  { %2521 = vmatpush1.msra.mxu1 %v9325_v33  ;;  %2641 = vmatprep.subr.mxu0 %v8453_v26  ;;  %v9346_v26 = vld [vmem:[%s9947_s2 + $0x268] sm:$0xff] }
 0x787   :  { %2522 = vmatprep.subr.mxu1 %v9332_v49  ;;  %2642 = vmatpush1.msra.mxu0 %v8460_v22  ;;  %v9353_v22 = vld [vmem:[%s9947_s2 + $0x260] sm:$0xff] }
 0x788   :  { %2523 = vmatpush1.msra.mxu1 %v9339_v10  ;;  %2643 = vmatprep.subr.mxu0 %v8467_v15  ;;  %v9360_v15 = vld [vmem:[%s9947_s2 + $0x238] sm:$0xff] }
 0x789   :  { %2524 = vmatprep.subr.mxu1 %v9346_v26  ;;  %2644 = vmatpush1.msra.mxu0 %v8474_v37  ;;  %v9367_v37 = vld [vmem:[%s9947_s2 + $0x230] sm:$0xff] }
 0x78a   :  { %2525 = vmatpush1.msra.mxu1 %v9353_v22  ;;  %2645 = vmatprep.subr.mxu0 %v8481_v4  ;;  %v9374_v4 = vld [vmem:[%s9947_s2 + $0x208] sm:$0xff] }
 0x78b   :  { %2526 = vmatprep.subr.mxu1 %v9360_v15  ;;  %2646 = vmatpush1.msra.mxu0 %v8488_v45  ;;  %v9381_v45 = vld [vmem:[%s9947_s2 + $0x200] sm:$0xff] }
 0x78c   :  { %2527 = vmatpush1.msra.mxu1 %v9367_v37  ;;  %2647 = vmatprep.subr.mxu0 %v8495_v12  ;;  %v9388_v12 = vld [vmem:[%s9947_s2 + $0x1d8] sm:$0xff] }
 0x78d   :  { %2528 = vmatprep.subr.mxu1 %v9374_v4  ;;  %2648 = vmatpush1.msra.mxu0 %v8502_v46  ;;  %v9395_v46 = vld [vmem:[%s9947_s2 + $0x1d0] sm:$0xff] }
 0x78e   :  { %2529 = vmatpush1.msra.mxu1 %v9381_v45  ;;  %2649 = vmatprep.subr.mxu0 %v8509_v62  ;;  %v9402_v62 = vld [vmem:[%s9947_s2 + $0x1a8] sm:$0xff] }
 0x78f   :  { %2530 = vmatprep.subr.mxu1 %v9388_v12  ;;  %2650 = vmatpush1.msra.mxu0 %v8516_v48  ;;  %v9409_v48 = vld [vmem:[%s9947_s2 + $0x1a0] sm:$0xff] }
 0x790   :  { %2531 = vmatpush1.msra.mxu1 %v9395_v46  ;;  %2651 = vmatprep.subr.mxu0 %v8523_v44  ;;  %v9416_v44 = vld [vmem:[%s9947_s2 + $0x178] sm:$0xff] }
 0x791   :  { %2532 = vmatprep.subr.mxu1 %v9402_v62  ;;  %2652 = vmatpush1.msra.mxu0 %v8530_v31  ;;  %v9423_v31 = vld [vmem:[%s9947_s2 + $0x170] sm:$0xff] }
 0x792   :  { %2533 = vmatpush1.msra.mxu1 %v9409_v48  ;;  %2653 = vmatprep.subr.mxu0 %v8537_v38  ;;  %v9430_v38 = vld [vmem:[%s9947_s2 + $0x148] sm:$0xff] }
 0x793   :  { %2534 = vmatprep.subr.mxu1 %v9416_v44  ;;  %2654 = vmatpush1.msra.mxu0 %v8544_v43  ;;  %v9437_v43 = vld [vmem:[%s9947_s2 + $0x140] sm:$0xff] }
 0x794   :  { %2535 = vmatpush1.msra.mxu1 %v9423_v31  ;;  %2655 = vmatprep.subr.mxu0 %v8551_v60  ;;  %v9444_v60 = vld [vmem:[%s9947_s2 + $0x118] sm:$0xff] }
 0x795   :  { %2536 = vmatprep.subr.mxu1 %v9430_v38  ;;  %2656 = vmatpush1.msra.mxu0 %v8558_v50  ;;  %v9451_v50 = vld [vmem:[%s9947_s2 + $0x110] sm:$0xff] }
 0x796   :  { %2537 = vmatpush1.msra.mxu1 %v9437_v43  ;;  %2657 = vmatprep.subr.mxu0 %v8565_v52  ;;  %v9458_v52 = vld [vmem:[%s9947_s2 + $0xe8] sm:$0xff] }
 0x797   :  { %2538 = vmatprep.subr.mxu1 %v9444_v60  ;;  %2658 = vmatpush1.msra.mxu0 %v8572_v20  ;;  %v9465_v20 = vld [vmem:[%s9947_s2 + $0xe0] sm:$0xff] }
 0x798   :  { %2539 = vmatpush1.msra.mxu1 %v9451_v50  ;;  %2659 = vmatprep.subr.mxu0 %v8579_v23  ;;  %v9472_v23 = vld [vmem:[%s9947_s2 + $0xb8] sm:$0xff] }
 0x799   :  { %2540 = vmatprep.subr.mxu1 %v9458_v52  ;;  %2660 = vmatpush1.msra.mxu0 %v8586_v13  ;;  %v9479_v13 = vld [vmem:[%s9947_s2 + $0xb0] sm:$0xff] }
 0x79a   :  { %2541 = vmatpush1.msra.mxu1 %v9465_v20  ;;  %2661 = vmatprep.subr.mxu0 %v8593_v56  ;;  %v9486_v56 = vld [vmem:[%s9947_s2 + $0x88] sm:$0xff] }
 0x79b   :  { %2542 = vmatprep.subr.mxu1 %v9472_v23  ;;  %2662 = vmatpush1.msra.mxu0 %v8600_v27  ;;  %v9493_v27 = vld [vmem:[%s9947_s2 + $0x80] sm:$0xff] }
 0x79c   :  { %2543 = vmatpush1.msra.mxu1 %v9479_v13  ;;  %2663 = vmatprep.subr.mxu0 %v8607_v42  ;;  %v9500_v42 = vld [vmem:[%s9947_s2 + $0x58] sm:$0xff] }
 0x79d   :  { %2544 = vmatprep.subr.mxu1 %v9486_v56  ;;  %2664 = vmatpush1.msra.mxu0 %v8614_v51  ;;  %v9507_v51 = vld [vmem:[%s9947_s2 + $0x50] sm:$0xff] }
 0x79e   :  { %2545 = vmatpush1.msra.mxu1 %v9493_v27  ;;  %2665 = vmatprep.subr.mxu0 %v8621_v55  ;;  %v9514_v55 = vld [vmem:[%s9947_s2 + $0x28] sm:$0xff] }
 0x79f   :  { %2546 = vmatprep.subr.mxu1 %v9500_v42  ;;  %2666 = vmatpush1.msra.mxu0 %v8628_v41  ;;  %v9521_v41 = vld [vmem:[%s9947_s2 + $0x20] sm:$0xff] }
 0x7a0   :  { %2547 = vmatpush1.msra.mxu1 %v9507_v51  ;;  %2667 = vmatprep.subr.mxu0 %v8635_v5  ;;  %v9528_v5 = vld [vmem:[%s9947_s2 + $0x5f8] sm:$0xff] }
 0x7a1   :  { %2548 = vmatprep.subr.mxu1 %v9514_v55  ;;  %2668 = vmatpush1.msra.mxu0 %v8642_v39  ;;  %v9535_v39 = vld [vmem:[%s9947_s2 + $0x5f0] sm:$0xff] }
 0x7a2   :  { %2549 = vmatpush1.msra.mxu1 %v9521_v41  ;;  %2669 = vmatprep.subr.mxu0 %v8649_v35  ;;  %v9542_v35 = vld [vmem:[%s9947_s2 + $0x5c8] sm:$0xff] }
 0x7a3   :  { %2550 = vmatprep.subr.mxu1 %v9528_v5  ;;  %2670 = vmatpush1.msra.mxu0 %v8656_v6  ;;  %v9549_v6 = vld [vmem:[%s9947_s2 + $0x5c0] sm:$0xff] }
 0x7a4   :  { %2551 = vmatpush2.msra.mxu1 %v9535_v39  ;;  %2671 = vmatprep.subr.mxu0 %v8663_v61  ;;  %v9556_v61 = vld [vmem:[%s9947_s2 + $0x598] sm:$0xff] }
 0x7a5   :  { %2552 = vmatprep.subr.mxu1 %v9542_v35  ;;  %2672 = vmatpush2.msra.mxu0 %v8670_v53  ;;  %v9563_v53 = vld [vmem:[%s9947_s2 + $0x590] sm:$0xff] }
 0x7a6   :  { %2553 = vmatpush2.msra.mxu1 %v9549_v6  ;;  %2673 = vmatprep.subr.mxu0 %v8677_v14  ;;  %11285 = vst [vmem:[#allocation87_spill] sm:$0xff] %v9563_v53  ;;  %v9570_v14 = vld [vmem:[%s9947_s2 + $0x568] sm:$0xff] }
 0x7a7   :  { %2554 = vmatprep.subr.mxu1 %v9556_v61  ;;  %2674 = vmatpush2.msra.mxu0 %v8684_v59  ;;  %11286 = vst [vmem:[#allocation89_spill] sm:$0xff] %v9570_v14  ;;  %v9577_v59 = vld [vmem:[%s9947_s2 + $0x560] sm:$0xff] }
 0x7a8   :  { %2555 = vmatpush2.msra.mxu1 %v9563_v53  ;;  %2675 = vmatprep.subr.mxu0 %v8691_v57  ;;  %11288 = vst [vmem:[#allocation8_spill] sm:$0xff] %v9577_v59  ;;  %v9584_v57 = vld [vmem:[%s9947_s2 + $0x538] sm:$0xff] }
 0x7a9   :  { %2556 = vmatprep.subr.mxu1 %v9570_v14  ;;  %2676 = vmatpush2.msra.mxu0 %v11287_v29  ;;  %11290 = vst [vmem:[#allocation4_spill] sm:$0xff] %v9584_v57  ;;  %v11303_v29 = vld [vmem:[#allocation81_spill] sm:$0xff] }
 0x7aa   :  { %2557 = vmatpush2.msra.mxu1 %v9577_v59  ;;  %2677 = vmatprep.subr.mxu0 %v11289_v21  ;;  %v9633_v21 = vld [vmem:[%s9947_s2 + $0x4a0] sm:$0xff] }
 0x7ab   :  { %2558 = vmatprep.subr.mxu1 %v9584_v57  ;;  %2678 = vmatpush2.msra.mxu0 %v11291_v58  ;;  %11304 = vst [vmem:[#allocation97_spill] sm:$0xff] %v9633_v21  ;;  %v11305_v58 = vld [vmem:[#allocation83_spill] sm:$0xff] }
 0x7ac   :  { %2559 = vmatpush2.msra.mxu1 %v9591_v28  ;;  %2679 = vmatprep.subr.mxu0 %v11293_v1  ;;  %v9640_v1 = vld [vmem:[%s9947_s2 + $0x478] sm:$0xff] }
 0x7ad   :  { %2560 = vmatprep.subr.mxu1 %v9598_v40  ;;  %2680 = vmatpush2.msra.mxu0 %v11295_v8  ;;  %11306 = vst [vmem:[#allocation99_spill] sm:$0xff] %v9640_v1  ;;  %v11307_v8 = vld [vmem:[#allocation85_spill] sm:$0xff]  ;;  %v11405_v40 = vld [vmem:[#allocation14_spill] sm:$0xff] }
 0x7ae   :  { %2561 = vmatpush2.msra.mxu1 %v9605_v19  ;;  %2681 = vmatprep.subr.mxu0 %v11297_v7  ;;  %v9647_v7 = vld [vmem:[%s9947_s2 + $0x470] sm:$0xff] }
 0x7af   :  { %2562 = vmatprep.subr.mxu1 %v9612_v30  ;;  %2682 = vmatpush2.msra.mxu0 %v11299_v63  ;;  %11308 = vst [vmem:[#allocation103_spill] sm:$0xff] %v9647_v7  ;;  %v11309_v63 = vld [vmem:[#allocation86_spill] sm:$0xff] }
 0x7b0   :  { %2563 = vmatpush2.msra.mxu1 %v9619_v47  ;;  %2683 = vmatprep.subr.mxu0 %v11301_v11  ;;  %v9654_v11 = vld [vmem:[%s9947_s2 + $0x448] sm:$0xff]  ;;  %v11345_v47 = vld [vmem:[#allocation115_spill] sm:$0xff]  ;;  %v11348_v30 = vld [vmem:[#allocation118_spill] sm:$0xff] }
 0x7b1   :  { %2564 = vmatprep.subr.mxu1 %v9626_v17  ;;  %2684 = vmatpush2.msra.mxu0 %v11303_v29  ;;  %11310 = vst [vmem:[#allocation53_spill] sm:$0xff] %v9654_v11  ;;  %v11311_v29 = vld [vmem:[#allocation88_spill] sm:$0xff]  ;;  %v11344_v17 = vld [vmem:[#allocation114_spill] sm:$0xff] }
 0x7b2   :  { %2565 = vmatpush2.msra.mxu1 %v9633_v21  ;;  %2685 = vmatprep.subr.mxu0 %v11305_v58  ;;  %v9661_v58 = vld [vmem:[%s9947_s2 + $0x440] sm:$0xff]  ;;  %v11343_v21 = vld [vmem:[#allocation113_spill] sm:$0xff] }
 0x7b3   :  { %2566 = vmatprep.subr.mxu1 %v9640_v1  ;;  %2686 = vmatpush2.msra.mxu0 %v11307_v8  ;;  %11312 = vst [vmem:[#allocation55_spill] sm:$0xff] %v9661_v58  ;;  %v11313_v8 = vld [vmem:[#allocation90_spill] sm:$0xff] }
 0x7b4   :  { %2567 = vmatpush2.msra.mxu1 %v9647_v7  ;;  %2687 = vmatprep.subr.mxu0 %v11309_v63  ;;  %v9668_v63 = vld [vmem:[%s9947_s2 + $0x418] sm:$0xff]  ;;  %v11315_v7 = vld [vmem:[#allocation92_spill] sm:$0xff] }
 0x7b5   :  { %2568 = vmatprep.subr.mxu1 %v9654_v11  ;;  %2688 = vmatpush2.msra.mxu0 %v11311_v29  ;;  %11314 = vst [vmem:[#allocation57_spill] sm:$0xff] %v9668_v63  ;;  %v9675_v29 = vld [vmem:[%s9947_s2 + $0x410] sm:$0xff]  ;;  %v11340_v1 = vld [vmem:[#allocation110_spill] sm:$0xff] }
 0x7b6   :  { %2569 = vmatpush2.msra.mxu1 %v9661_v58  ;;  %2689 = vmatprep.subr.mxu0 %v11313_v8  ;;  %11316 = vst [vmem:[#allocation58_spill] sm:$0xff] %v9675_v29  ;;  %v11317_v11 = vld [vmem:[#allocation93_spill] sm:$0xff]  ;;  %v9682_v8 = vld [vmem:[%s9947_s2 + $0x3e8] sm:$0xff]  ;;  %v11319_v58 = vld [vmem:[#allocation95_spill] sm:$0xff] }
 0x7b7   :  { %2570 = vmatprep.subr.mxu1 %v9668_v63  ;;  %2690 = vmatpush2.msra.mxu0 %v11315_v7  ;;  %11318 = vst [vmem:[#allocation60_spill] sm:$0xff] %v9682_v8  ;;  %v9689_v7 = vld [vmem:[%s9947_s2 + $0x3e0] sm:$0xff]  ;;  %v11321_v63 = vld [vmem:[#allocation96_spill] sm:$0xff] }
 0x7b8   :  { %2571 = vmatpush2.msra.mxu1 %v9675_v29  ;;  %2691 = vmatprep.subr.mxu0 %v11317_v11  ;;  %11320 = vst [vmem:[#allocation62_spill] sm:$0xff] %v9689_v7  ;;  %v9696_v11 = vld [vmem:[%s9947_s2 + $0x3b8] sm:$0xff] }
 0x7b9   :  { %2572 = vmatprep.subr.mxu1 %v9682_v8  ;;  %2692 = vmatpush2.msra.mxu0 %v11319_v58  ;;  %11322 = vst [vmem:[#allocation64_spill] sm:$0xff] %v9696_v11  ;;  %v11323_v29 = vld [vmem:[#allocation98_spill] sm:$0xff]  ;;  %v9703_v58 = vld [vmem:[%s9947_s2 + $0x3b0] sm:$0xff]  ;;  %v11325_v8 = vld [vmem:[#allocation100_spill] sm:$0xff] }
 0x7ba   :  { %2573 = vmatpush2.msra.mxu1 %v9689_v7  ;;  %2693 = vmatprep.subr.mxu0 %v11321_v63  ;;  %11324 = vst [vmem:[#allocation65_spill] sm:$0xff] %v9703_v58  ;;  %v9710_v63 = vld [vmem:[%s9947_s2 + $0x388] sm:$0xff]  ;;  %v11327_v7 = vld [vmem:[#allocation101_spill] sm:$0xff] }
 0x7bb   :  { %2574 = vmatprep.subr.mxu1 %v9696_v11  ;;  %2694 = vmatpush2.msra.mxu0 %v11323_v29  ;;  %11326 = vst [vmem:[#allocation12_spill] sm:$0xff] %v9710_v63  ;;  %v9717_v29 = vld [vmem:[%s9947_s2 + $0x380] sm:$0xff]  ;;  %v11329_v11 = vld [vmem:[#allocation102_spill] sm:$0xff] }
 0x7bc   :  { %2575 = vmatpush2.msra.mxu1 %v9703_v58  ;;  %2695 = vmatprep.subr.mxu0 %v11325_v8  ;;  %11328 = vst [vmem:[#allocation7_spill] sm:$0xff] %v9717_v29  ;;  %v9724_v8 = vld [vmem:[%s9947_s2 + $0x358] sm:$0xff]  ;;  %v11331_v58 = vld [vmem:[#allocation104_spill] sm:$0xff] }
 0x7bd   :  { %2576 = vmatprep.subr.mxu1 %v9710_v63  ;;  %2696 = vmatpush2.msra.mxu0 %v11327_v7  ;;  %11330 = vst [vmem:[#allocation15_spill] sm:$0xff] %v9724_v8  ;;  %v9731_v7 = vld [vmem:[%s9947_s2 + $0x350] sm:$0xff] }
 0x7be   :  { %2577 = vmatpush2.msra.mxu1 %v9717_v29  ;;  %2697 = vmatprep.subr.mxu0 %v11329_v11  ;;  %11332 = vst [vmem:[#allocation26_spill] sm:$0xff] %v9731_v7  ;;  %v11333_v63 = vld [vmem:[#allocation105_spill] sm:$0xff]  ;;  %v9738_v11 = vld [vmem:[%s9947_s2 + $0x328] sm:$0xff]  ;;  %v11335_v29 = vld [vmem:[#allocation106_spill] sm:$0xff] }
 0x7bf   :  { %2578 = vmatprep.subr.mxu1 %v9724_v8  ;;  %2698 = vmatpush2.msra.mxu0 %v11331_v58  ;;  %11334 = vst [vmem:[#allocation29_spill] sm:$0xff] %v9738_v11  ;;  %v9745_v58 = vld [vmem:[%s9947_s2 + $0x320] sm:$0xff] }
 0x7c0   :  { %2579 = vmatpush2.msra.mxu1 %v9731_v7  ;;  %2699 = vmatprep.subr.mxu0 %v11333_v63  ;;  %11336 = vst [vmem:[#allocation36_spill] sm:$0xff] %v9745_v58  ;;  %v11337_v8 = vld [vmem:[#allocation107_spill] sm:$0xff]  ;;  %v11338_v63 = vld [vmem:[#allocation108_spill] sm:$0xff]  ;;  %v11339_v7 = vld [vmem:[#allocation109_spill] sm:$0xff] }
 0x7c1   :  { %2580 = vmatprep.subr.mxu1 %v9738_v11  ;;  %2700 = vmatpush2.msra.mxu0 %v11335_v29  ;;  %v11341_v11 = vld [vmem:[#allocation111_spill] sm:$0xff]  ;;  %v11342_v29 = vld [vmem:[#allocation112_spill] sm:$0xff] }
 0x7c2   :  { %2581 = vmatpush2.msra.mxu1 %v9745_v58  ;;  %2701 = vmatprep.subr.mxu0 %v11337_v8  ;;  %v11346_v58 = vld [vmem:[#allocation116_spill] sm:$0xff]  ;;  %v11347_v8 = vld [vmem:[#allocation117_spill] sm:$0xff] }
 0x7c3   :  { %2583 = vmatmul.mubr.f32.vlgmr.msra.gmra.mxu1 %v9285_v18  ;;  %2710 = vmatprep.subr.mxu1 %v11338_v63  ;;  %v11349_v63 = vld [vmem:[#allocation119_spill] sm:$0xff] }
 0x7c4   :  { %2711 = vmatpush1.msra.mxu1 %v11339_v7  ;;  %2702 = vmatpush2.msra.mxu0 %v11340_v1  ;;  %v11350_v7 = vld [vmem:[#allocation120_spill] sm:$0xff]  ;;  %v11351_v1 = vld [vmem:[#allocation121_spill] sm:$0xff] }
 0x7c5   :  { %2712 = vmatprep.subr.mxu1 %v11341_v11  ;;  %2781 = vmatprep.subr.mxu0 %v11342_v29  ;;  %v11352_v11 = vld [vmem:[#allocation122_spill] sm:$0xff]  ;;  %v11353_v29 = vld [vmem:[#allocation123_spill] sm:$0xff] }
 0x7c6   :  { %2713 = vmatpush1.msra.mxu1 %v11343_v21  ;;  %v11354_v21 = vld [vmem:[#allocation124_spill] sm:$0xff] }
 0x7c7   :  { %2714 = vmatprep.subr.mxu1 %v11344_v17  ;;  %v11355_v17 = vld [vmem:[#allocation125_spill] sm:$0xff] }
 0x7c8   :  { %2715 = vmatpush1.msra.mxu1 %v11345_v47  ;;  %v11356_v47 = vld [vmem:[#allocation126_spill] sm:$0xff] }
 0x7c9   :  { %2716 = vmatprep.subr.mxu1 %v11346_v58  ;;  %v11357_v58 = vld [vmem:[#allocation127_spill] sm:$0xff] }
 0x7ca   :  { %2717 = vmatpush1.msra.mxu1 %v11347_v8  ;;  %v11358_v8 = vld [vmem:[#allocation128_spill] sm:$0xff] }
 0x7cb   :  { %2718 = vmatprep.subr.mxu1 %v11348_v30  ;;  %v11359_v30 = vld [vmem:[#allocation129_spill] sm:$0xff] }
 0x7cc   :  { %2719 = vmatpush1.msra.mxu1 %v11349_v63  ;;  %v11360_v63 = vld [vmem:[#allocation130_spill] sm:$0xff] }
 0x7cd   :  { %2720 = vmatprep.subr.mxu1 %v11350_v7  ;;  %v11361_v7 = vld [vmem:[#allocation131_spill] sm:$0xff] }
 0x7ce   :  { %2721 = vmatpush1.msra.mxu1 %v11351_v1  ;;  %v11362_v1 = vld [vmem:[#allocation132_spill] sm:$0xff] }
 0x7cf   :  { %2722 = vmatprep.subr.mxu1 %v11352_v11  ;;  %v11363_v11 = vld [vmem:[#allocation133_spill] sm:$0xff] }
 0x7d0   :  { %2723 = vmatpush1.msra.mxu1 %v11353_v29  ;;  %v11364_v29 = vld [vmem:[#allocation134_spill] sm:$0xff] }
 0x7d1   :  { %2724 = vmatprep.subr.mxu1 %v11354_v21  ;;  %v11365_v21 = vld [vmem:[#allocation135_spill] sm:$0xff] }
 0x7d2   :  { %2725 = vmatpush1.msra.mxu1 %v11355_v17  ;;  %v11366_v17 = vld [vmem:[#allocation6_spill] sm:$0xff] }
 0x7d3   :  { %2726 = vmatprep.subr.mxu1 %v11356_v47  ;;  %v11367_v47 = vld [vmem:[#allocation3_spill] sm:$0xff] }
 0x7d4   :  { %2727 = vmatpush1.msra.mxu1 %v11357_v58  ;;  %v11368_v58 = vld [vmem:[#allocation21_spill] sm:$0xff] }
 0x7d5   :  { %2728 = vmatprep.subr.mxu1 %v11358_v8  ;;  %v11369_v8 = vld [vmem:[#allocation20_spill] sm:$0xff] }
 0x7d6   :  { %2729 = vmatpush1.msra.mxu1 %v11359_v30  ;;  %v11370_v30 = vld [vmem:[#allocation35_spill] sm:$0xff] }
 0x7d7   :  { %2730 = vmatprep.subr.mxu1 %v11360_v63  ;;  %v11371_v63 = vld [vmem:[#allocation42_spill] sm:$0xff] }
 0x7d8   :  { %2731 = vmatpush1.msra.mxu1 %v11361_v7  ;;  %v11372_v7 = vld [vmem:[#allocation37_spill] sm:$0xff] }
 0x7d9   :  { %2732 = vmatprep.subr.mxu1 %v11362_v1  ;;  %v11373_v1 = vld [vmem:[#allocation44_spill] sm:$0xff] }
 0x7da   :  { %2733 = vmatpush1.msra.mxu1 %v11363_v11  ;;  %v11374_v11 = vld [vmem:[#allocation46_spill] sm:$0xff] }
 0x7db   :  { %2734 = vmatprep.subr.mxu1 %v11364_v29  ;;  %v11375_v29 = vld [vmem:[#allocation41_spill] sm:$0xff] }
 0x7dc   :  { %2735 = vmatpush1.msra.mxu1 %v11365_v21  ;;  %v11376_v21 = vld [vmem:[#allocation48_spill] sm:$0xff] }
 0x7dd   :  { %2736 = vmatprep.subr.mxu1 %v11366_v17  ;;  %v11377_v17 = vld [vmem:[#allocation43_spill] sm:$0xff] }
 0x7de   :  { %2737 = vmatpush1.msra.mxu1 %v11367_v47  ;;  %v11378_v47 = vld [vmem:[#allocation50_spill] sm:$0xff] }
 0x7df   :  { %2738 = vmatprep.subr.mxu1 %v11368_v58  ;;  %v11379_v58 = vld [vmem:[#allocation45_spill] sm:$0xff] }
 0x7e0   :  { %2739 = vmatpush1.msra.mxu1 %v11369_v8  ;;  %v11380_v8 = vld [vmem:[#allocation47_spill] sm:$0xff] }
 0x7e1   :  { %2740 = vmatprep.subr.mxu1 %v11370_v30  ;;  %v11381_v30 = vld [vmem:[#allocation52_spill] sm:$0xff] }
 0x7e2   :  { %2741 = vmatpush1.msra.mxu1 %v11371_v63  ;;  %v11382_v63 = vld [vmem:[#allocation49_spill] sm:$0xff] }
 0x7e3   :  { %2742 = vmatprep.subr.mxu1 %v11372_v7  ;;  %v11383_v7 = vld [vmem:[#allocation54_spill] sm:$0xff] }
 0x7e4   :  { %2743 = vmatpush2.msra.mxu1 %v11373_v1  ;;  %v11384_v1 = vld [vmem:[#allocation51_spill] sm:$0xff] }
 0x7e5   :  { %2744 = vmatprep.subr.mxu1 %v11374_v11  ;;  %v11385_v11 = vld [vmem:[#allocation56_spill] sm:$0xff] }
 0x7e6   :  { %2745 = vmatpush2.msra.mxu1 %v11375_v29  ;;  %v11386_v29 = vld [vmem:[#allocation59_spill] sm:$0xff] }
 0x7e7   :  { %2746 = vmatprep.subr.mxu1 %v11376_v21  ;;  %v11387_v21 = vld [vmem:[#allocation61_spill] sm:$0xff] }
 0x7e8   :  { %2747 = vmatpush2.msra.mxu1 %v11377_v17  ;;  %v11388_v17 = vld [vmem:[#allocation63_spill] sm:$0xff] }
 0x7e9   :  { %2748 = vmatprep.subr.mxu1 %v11378_v47  ;;  %v11389_v47 = vld [vmem:[#allocation66_spill] sm:$0xff] }
 0x7ea   :  { %2749 = vmatpush2.msra.mxu1 %v11379_v58  ;;  %v11390_v58 = vld [vmem:[#allocation68_spill] sm:$0xff] }
 0x7eb   :  { %2750 = vmatprep.subr.mxu1 %v11380_v8  ;;  %v11391_v8 = vld [vmem:[#allocation10_spill] sm:$0xff] }
 0x7ec   :  { %2751 = vmatpush2.msra.mxu1 %v11381_v30  ;;  %v11392_v30 = vld [vmem:[#allocation5_spill] sm:$0xff] }
 0x7ed   :  { %2752 = vmatprep.subr.mxu1 %v11382_v63  ;;  %v11393_v63 = vld [vmem:[#allocation17_spill] sm:$0xff] }
 0x7ee   :  { %2753 = vmatpush2.msra.mxu1 %v11383_v7  ;;  %v11394_v7 = vld [vmem:[#allocation24_spill] sm:$0xff] }
 0x7ef   :  { %2754 = vmatprep.subr.mxu1 %v11384_v1  ;;  %v11395_v1 = vld [vmem:[#allocation31_spill] sm:$0xff] }
 0x7f0   :  { %2755 = vmatpush2.msra.mxu1 %v11385_v11  ;;  %v11396_v11 = vld [vmem:[#allocation38_spill] sm:$0xff] }
 0x7f1   :  { %2756 = vmatprep.subr.mxu1 %v11386_v29  ;;  %v11397_v29 = vld [vmem:[#allocation70_spill] sm:$0xff] }
 0x7f2   :  { %2757 = vmatpush2.msra.mxu1 %v11387_v21  ;;  %v11398_v21 = vld [vmem:[#allocation73_spill] sm:$0xff] }
 0x7f3   :  { %2758 = vmatprep.subr.mxu1 %v11388_v17  ;;  %v11399_v17 = vld [vmem:[#allocation75_spill] sm:$0xff] }
 0x7f4   :  { %2759 = vmatpush2.msra.mxu1 %v11389_v47  ;;  %v11400_v47 = vld [vmem:[#allocation77_spill] sm:$0xff] }
 0x7f5   :  { %2760 = vmatprep.subr.mxu1 %v11390_v58  ;;  %v11401_v58 = vld [vmem:[#allocation80_spill] sm:$0xff] }
 0x7f6   :  { %2761 = vmatpush2.msra.mxu1 %v11391_v8  ;;  %v11402_v8 = vld [vmem:[#allocation82_spill] sm:$0xff] }
 0x7f7   :  { %2762 = vmatprep.subr.mxu1 %v11392_v30  ;;  %v11403_v30 = vld [vmem:[#allocation84_spill] sm:$0xff] }
 0x7f8   :  { %2763 = vmatpush2.msra.mxu1 %v11393_v63 }
 0x7f9   :  { %2764 = vmatprep.subr.mxu1 %v11394_v7  ;;  %v11404_v7 = vld [vmem:[#allocation30_spill] sm:$0xff] }
 0x7fa   :  { %2765 = vmatpush2.msra.mxu1 %v11395_v1 }
 0x7fb   :  { %2766 = vmatprep.subr.mxu1 %v11396_v11 }
 0x7fc   :  { %2767 = vmatpush2.msra.mxu1 %v11397_v29 }
 0x7fd   :  { %2768 = vmatprep.subr.mxu1 %v11398_v21  ;;  %v11406_v21 = vld [vmem:[#allocation9_spill] sm:$0xff] }
 0x7fe   :  { %2769 = vmatpush2.msra.mxu1 %v11399_v17 }
 0x7ff   :  { %2770 = vmatprep.subr.mxu1 %v11400_v47 }
 0x800   :  { %2771 = vmatpush2.msra.mxu1 %v11401_v58 }
 0x801   :  { %2772 = vmatprep.subr.mxu1 %v11402_v8 }
 0x802   :  { %2773 = vmatpush2.msra.mxu1 %v11403_v30  ;;  %v11407_v30 = vld [vmem:[#allocation39_spill] sm:$0xff] }
 0x843   :  { %v2442_v63 = vpop.f32.mrf.mxu1  ;;  %v2513_v47 = vpop.f32.mrf.mxu0 }
 0x844   :  { %v2443_v19 = vadd.f32 %v2442_v63, %v11404_v7  ;;  %v11408_v63 = vld [vmem:[#allocation13_spill] sm:$0xff] }
 0x845   :  { %v2444_v1 = vpop.f32.mrf.mxu1  ;;  %v2515_v59 = vpop.f32.mrf.mxu0  ;;  %v346_v7 = vadd.f32 %v11408_v63, %v5568_v2 }
 0x846   :  { %v2595_v11 = vadd.f32 %v2443_v19, %v11405_v40  ;;  %v2445_v29 = vadd.f32 %v2444_v1, %v5528_v9  ;;  %v2516_v14 = vadd.f32 %v2515_v59, %v11407_v30 }
 0x848   :  { %v2955_v28 = vmul.f32 -1.442695, %v2595_v11  ;;  %v2602_v17 = vadd.f32 %v2445_v29, %v11406_v21  ;;  %v2616_v53 = vadd.f32 %v2516_v14, %v346_v7  ;;  %v11409_v29 = vld [vmem:[#allocation28_spill] sm:$0xff] }
 0x84a   :  { %3089 = vpow2.f32 %v2955_v28  ;;  %v2956_v57 = vmul.f32 -1.442695, %v2602_v17  ;;  %v2957_v19 = vmul.f32 -1.442695, %v2616_v53  ;;  %v2514_v28 = vadd.f32 %v2513_v47, %v5558_v0 }
 0x84c   :  { %3091 = vpow2.f32 %v2956_v57  ;;  %v374_v57 = vadd.f32 %v11409_v29, %v5561_v16 }
 0x857   :  { %v3090_v58 = vpop.eup %3089 }
 0x858   :  { %v2599_v8 = vadd.f32 1.0, %v3090_v58 }
 0x859   :  { %v3092_v40 = vpop.eup %3091 }
 0x85a   :  { %3093 = vrcp.f32 %v2599_v8  ;;  %v2606_v11 = vadd.f32 1.0, %v3092_v40  ;;  %v11410_v40 = vld [vmem:[#allocation27_spill] sm:$0xff] }
 0x85b   :  { %3095 = vpow2.f32 %v2957_v19  ;;  %v457_v19 = vadd.f32 %v11410_v40, %v5585_v32 }
 0x85c   :  { %3097 = vrcp.f32 %v2606_v11 }
 0x867   :  { %v3094_v1 = vpop.eup %3093 }
 0x868   :  { %v2609_v21 = vmul.f32 %v3094_v1, %v2514_v28  ;;  %v3096_v58 = vpop.eup %3095 }
 0x869   :  { %v3098_v59 = vpop.eup %3097  ;;  %v2620_v8 = vadd.f32 1.0, %v3096_v58 }
 0x86a   :  { %v2610_v17 = vadd.f32 %v2609_v21, %v374_v57  ;;  %v2612_v30 = vsub.f32 1.0, %v3098_v59  ;;  %v2614_v53 = vmul.f32 %v3098_v59, %v9285_v18  ;;  %v11411_v18 = vld [vmem:[#allocation34_spill] sm:$0xff] }
 0x86b   :  { %v459_v57 = vadd.f32 %v11411_v18, %v5595_v3  ;;  %v11442_v18 = vld [vmem:[#allocation39_spill] sm:$0xff] }
 0x86c   :  { %3099 = vtanh.f32 %v2610_v17 }
 0x86d   :  { %3101 = vrcp.f32 %v2620_v8 }
 0x879   :  { %v3100_v63 = vpop.eup %3099 }
 0x87a   :  { %v2613_v14 = vmul.f32 %v3100_v63, %v2612_v30  ;;  %v3102_v30 = vpop.eup %3101 }
 0x87c   :  { %v9827_v7 = vadd.f32 %v2614_v53, %v2613_v14 }
 0x87e   :  { %2959 = vst [vmem:[%s9950_s5 + $0x60] sm:$0xff] %v9827_v7 }
 0x883   :  { %v2584_v47 = vpop.f32.mrf.mxu1 }
 0x884   :  { %v2585_v11 = vadd.f32 %v2584_v47, %v5582_v54 }
 0x885   :  { %v2586_v28 = vpop.f32.mrf.mxu1 }
 0x886   :  { %v2623_v1 = vadd.f32 %v2585_v11, %v457_v19  ;;  %v2587_v29 = vadd.f32 %v2586_v28, %v5591_v34 }
 0x888   :  { %v2958_v21 = vmul.f32 -1.442695, %v2623_v1  ;;  %v2630_v17 = vmul.f32 %v3102_v30, %v2587_v29 }
 0x88a   :  { %3103 = vpow2.f32 %v2958_v21  ;;  %v2631_v58 = vadd.f32 %v2630_v17, %v459_v57  ;;  %v11443_v21 = vld [vmem:[#allocation18_spill] sm:$0xff] }
 0x88b   :  { %v340_v17 = vadd.f32 %v11443_v21, %v5568_v2 }
 0x897   :  { %v3104_v59 = vpop.eup %3103 }
 0x898   :  { %v2627_v8 = vadd.f32 1.0, %v3104_v59 }
 0x89a   :  { %3105 = vrcp.f32 %v2627_v8 }
 0x89b   :  { %3107 = vtanh.f32 %v2631_v58 }
 0x8a7   :  { %v3106_v63 = vpop.eup %3105 }
 0x8a8   :  { %v2633_v14 = vsub.f32 1.0, %v3106_v63  ;;  %v3108_v53 = vpop.eup %3107  ;;  %v2635_v40 = vmul.f32 %v3106_v63, %v9298_v25  ;;  %v11412_v25 = vld [vmem:[#allocation87_spill] sm:$0xff] }
 0x8aa   :  { %v2634_v47 = vmul.f32 %v3108_v53, %v2633_v14  ;;  %v11444_v53 = vld [vmem:[#allocation23_spill] sm:$0xff] }
 0x8ac   :  { %v9840_v19 = vadd.f32 %v2635_v40, %v2634_v47  ;;  %v380_v47 = vadd.f32 %v11444_v53, %v5561_v16  ;;  %v11445_v16 = vld [vmem:[#allocation25_spill] sm:$0xff] }
 0x8ae   :  { %2960 = vst [vmem:[%s9950_s5 + $0x18] sm:$0xff] %v9840_v19  ;;  %2703 = vmatprep.mubr.f32.mxu0 %v9840_v19  ;;  %2774 = vmatprep.mubr.f32.mxu1 %v9840_v19 }
 0x8af   :  { %2704 = vmatmul.mubr.f32.vlgmr.msra.gmra.mxu0 %v9827_v7  ;;  %2775 = vmatmul.mubr.f32.vlgmr.msra.gmra.mxu1 %v9827_v7 }
 0x8b0   :  { %2782 = vmatpush1.msra.mxu0 %v9311_v36  ;;  %2845 = vmatprep.mubr.f32.mxu0 %v9840_v19  ;;  %v11413_v36 = vld [vmem:[#allocation89_spill] sm:$0xff] }
 0x8b1   :  { %2783 = vmatprep.subr.mxu0 %v9318_v24  ;;  %v11414_v24 = vld [vmem:[#allocation8_spill] sm:$0xff] }
 0x8b2   :  { %2784 = vmatpush1.msra.mxu0 %v9325_v33  ;;  %v11415_v33 = vld [vmem:[#allocation4_spill] sm:$0xff] }
 0x8b3   :  { %2785 = vmatprep.subr.mxu0 %v9332_v49  ;;  %v11416_v49 = vld [vmem:[#allocation19_spill] sm:$0xff] }
 0x8b4   :  { %2786 = vmatpush1.msra.mxu0 %v9339_v10  ;;  %v11417_v10 = vld [vmem:[#allocation22_spill] sm:$0xff] }
 0x8b5   :  { %2787 = vmatprep.subr.mxu0 %v9346_v26  ;;  %v11418_v26 = vld [vmem:[#allocation33_spill] sm:$0xff] }
 0x8b6   :  { %2788 = vmatpush1.msra.mxu0 %v9353_v22  ;;  %v11419_v22 = vld [vmem:[#allocation40_spill] sm:$0xff] }
 0x8b7   :  { %2789 = vmatprep.subr.mxu0 %v9360_v15  ;;  %v11420_v15 = vld [vmem:[#allocation91_spill] sm:$0xff] }
 0x8b8   :  { %2790 = vmatpush1.msra.mxu0 %v9367_v37  ;;  %v11421_v37 = vld [vmem:[#allocation94_spill] sm:$0xff] }
 0x8b9   :  { %2791 = vmatprep.subr.mxu0 %v9374_v4  ;;  %v11422_v4 = vld [vmem:[#allocation97_spill] sm:$0xff] }
 0x8ba   :  { %2792 = vmatpush1.msra.mxu0 %v9381_v45  ;;  %v11423_v45 = vld [vmem:[#allocation99_spill] sm:$0xff] }
 0x8bb   :  { %2793 = vmatprep.subr.mxu0 %v9388_v12  ;;  %v11424_v12 = vld [vmem:[#allocation103_spill] sm:$0xff] }
 0x8bc   :  { %2794 = vmatpush1.msra.mxu0 %v9395_v46  ;;  %v11425_v46 = vld [vmem:[#allocation53_spill] sm:$0xff] }
 0x8bd   :  { %2795 = vmatprep.subr.mxu0 %v9402_v62  ;;  %v11426_v62 = vld [vmem:[#allocation55_spill] sm:$0xff] }
 0x8be   :  { %2796 = vmatpush1.msra.mxu0 %v9409_v48  ;;  %v11427_v48 = vld [vmem:[#allocation57_spill] sm:$0xff] }
 0x8bf   :  { %2797 = vmatprep.subr.mxu0 %v9416_v44  ;;  %v11428_v44 = vld [vmem:[#allocation58_spill] sm:$0xff] }
 0x8c0   :  { %2798 = vmatpush1.msra.mxu0 %v9423_v31  ;;  %v11429_v31 = vld [vmem:[#allocation60_spill] sm:$0xff] }
 0x8c1   :  { %2799 = vmatprep.subr.mxu0 %v9430_v38  ;;  %v11430_v38 = vld [vmem:[#allocation62_spill] sm:$0xff] }
 0x8c2   :  { %2800 = vmatpush1.msra.mxu0 %v9437_v43  ;;  %v11431_v43 = vld [vmem:[#allocation64_spill] sm:$0xff] }
 0x8c3   :  { %2801 = vmatprep.subr.mxu0 %v9444_v60  ;;  %v11432_v60 = vld [vmem:[#allocation65_spill] sm:$0xff] }
 0x8c4   :  { %2802 = vmatpush1.msra.mxu0 %v9451_v50  ;;  %v11433_v50 = vld [vmem:[#allocation12_spill] sm:$0xff] }
 0x8c5   :  { %2803 = vmatprep.subr.mxu0 %v9458_v52  ;;  %v11434_v52 = vld [vmem:[#allocation7_spill] sm:$0xff] }
 0x8c6   :  { %2804 = vmatpush1.msra.mxu0 %v9465_v20  ;;  %v11435_v20 = vld [vmem:[#allocation15_spill] sm:$0xff] }
 0x8c7   :  { %2805 = vmatprep.subr.mxu0 %v9472_v23  ;;  %v11436_v23 = vld [vmem:[#allocation26_spill] sm:$0xff] }
 0x8c8   :  { %2806 = vmatpush1.msra.mxu0 %v9479_v13  ;;  %v11437_v13 = vld [vmem:[#allocation29_spill] sm:$0xff] }
 0x8c9   :  { %2807 = vmatprep.subr.mxu0 %v9486_v56  ;;  %v11438_v56 = vld [vmem:[#allocation36_spill] sm:$0xff] }
 0x8ca   :  { %2808 = vmatpush1.msra.mxu0 %v9493_v27 }
 0x8cb   :  { %2809 = vmatprep.subr.mxu0 %v9500_v42  ;;  %v11439_v42 = vld [vmem:[#allocation30_spill] sm:$0xff] }
 0x8cc   :  { %2810 = vmatpush1.msra.mxu0 %v9507_v51 }
 0x8cd   :  { %2811 = vmatprep.subr.mxu0 %v9514_v55 }
 0x8ce   :  { %2812 = vmatpush1.msra.mxu0 %v9521_v41  ;;  %v11440_v41 = vld [vmem:[#allocation16_spill] sm:$0xff] }
 0x8cf   :  { %2813 = vmatprep.subr.mxu0 %v9528_v5 }
 0x8d0   :  { %2814 = vmatpush2.msra.mxu0 %v9535_v39 }
 0x8d1   :  { %2815 = vmatprep.subr.mxu0 %v9542_v35 }
 0x8d2   :  { %2816 = vmatpush2.msra.mxu0 %v9549_v6  ;;  %v11441_v6 = vld [vmem:[#allocation11_spill] sm:$0xff] }
 0x8d3   :  { %2817 = vmatprep.subr.mxu0 %v9556_v61 }
 0x8d4   :  { %2818 = vmatpush2.msra.mxu0 %v11412_v25 }
 0x8d5   :  { %2819 = vmatprep.subr.mxu0 %v11413_v36 }
 0x8d6   :  { %2820 = vmatpush2.msra.mxu0 %v11414_v24 }
 0x8d7   :  { %2821 = vmatprep.subr.mxu0 %v11415_v33 }
 0x8d8   :  { %2822 = vmatpush2.msra.mxu0 %v11416_v49 }
 0x8d9   :  { %2823 = vmatprep.subr.mxu0 %v11417_v10 }
 0x8da   :  { %2824 = vmatpush2.msra.mxu0 %v11418_v26 }
 0x8db   :  { %2825 = vmatprep.subr.mxu0 %v11419_v22 }
 0x8dc   :  { %2826 = vmatpush2.msra.mxu0 %v11420_v15  ;;  %v451_v15 = vadd.f32 %v11445_v16, %v5585_v32 }
 0x8dd   :  { %2827 = vmatprep.subr.mxu0 %v11421_v37 }
 0x8de   :  { %2828 = vmatpush2.msra.mxu0 %v11422_v4 }
 0x8df   :  { %2829 = vmatprep.subr.mxu0 %v11423_v45 }
 0x8e0   :  { %2830 = vmatpush2.msra.mxu0 %v11424_v12 }
 0x8e1   :  { %2831 = vmatprep.subr.mxu0 %v11425_v46  ;;  %v11446_v46 = vld [vmem:[#allocation32_spill] sm:$0xff] }
 0x8e2   :  { %2832 = vmatpush2.msra.mxu0 %v11426_v62  ;;  %v453_v62 = vadd.f32 %v11446_v46, %v5595_v3 }
 0x8e3   :  { %2833 = vmatprep.subr.mxu0 %v11427_v48 }
 0x8e4   :  { %2834 = vmatpush2.msra.mxu0 %v11428_v44 }
 0x8e5   :  { %2835 = vmatprep.subr.mxu0 %v11429_v31 }
 0x8e6   :  { %2836 = vmatpush2.msra.mxu0 %v11430_v38 }
 0x8e7   :  { %2837 = vmatprep.subr.mxu0 %v11431_v43 }
 0x8e8   :  { %2838 = vmatpush2.msra.mxu0 %v11432_v60 }
 0x8e9   :  { %2839 = vmatprep.subr.mxu0 %v11433_v50 }
 0x8ea   :  { %2840 = vmatpush2.msra.mxu0 %v11434_v52 }
 0x8eb   :  { %2841 = vmatprep.subr.mxu0 %v11435_v20 }
 0x8ec   :  { %2842 = vmatpush2.msra.mxu0 %v11436_v23 }
 0x8ed   :  { %2843 = vmatprep.subr.mxu0 %v11437_v13 }
 0x8ee   :  { %2844 = vmatpush2.msra.mxu0 %v11438_v56 }
 0x8ef   :  { %2846 = vmatmul.mubr.f32.vlgmr.msra.gmra.mxu0 %v9827_v7 }
 0x96f   :  { %v2705_v27 = vpop.f32.mrf.mxu0  ;;  %v2776_v28 = vpop.f32.mrf.mxu1 }
 0x970   :  { %v2706_v51 = vadd.f32 %v2705_v27, %v11439_v42 }
 0x971   :  { %v2707_v55 = vpop.f32.mrf.mxu0  ;;  %v2778_v29 = vpop.f32.mrf.mxu1 }
 0x972   :  { %v2858_v5 = vadd.f32 %v2706_v51, %v11440_v41  ;;  %v2708_v35 = vadd.f32 %v2707_v55, %v5528_v9  ;;  %v2779_v57 = vadd.f32 %v2778_v29, %v11442_v18  ;;  %v2777_v9 = vadd.f32 %v2776_v28, %v5558_v0 }
 0x974   :  { %v2961_v39 = vmul.f32 -1.442695, %v2858_v5  ;;  %v2865_v61 = vadd.f32 %v2708_v35, %v11441_v6  ;;  %v2879_v58 = vadd.f32 %v2779_v57, %v340_v17 }
 0x976   :  { %3109 = vpow2.f32 %v2961_v39  ;;  %v2962_v11 = vmul.f32 -1.442695, %v2865_v61  ;;  %v2963_v8 = vmul.f32 -1.442695, %v2879_v58 }
 0x978   :  { %3111 = vpow2.f32 %v2962_v11 }
 0x983   :  { %v3110_v1 = vpop.eup %3109 }
 0x984   :  { %v2862_v30 = vadd.f32 1.0, %v3110_v1 }
 0x985   :  { %v3112_v59 = vpop.eup %3111 }
 0x986   :  { %3113 = vrcp.f32 %v2862_v30  ;;  %v2869_v63 = vadd.f32 1.0, %v3112_v59 }
 0x987   :  { %3115 = vpow2.f32 %v2963_v8 }
 0x988   :  { %3117 = vrcp.f32 %v2869_v63 }
 0x993   :  { %v3114_v14 = vpop.eup %3113 }
 0x994   :  { %v2872_v40 = vmul.f32 %v3114_v14, %v2777_v9  ;;  %v3116_v36 = vpop.eup %3115 }
 0x995   :  { %v3118_v24 = vpop.eup %3117  ;;  %v2883_v33 = vadd.f32 1.0, %v3116_v36 }
 0x996   :  { %v2873_v25 = vadd.f32 %v2872_v40, %v380_v47  ;;  %v2875_v49 = vsub.f32 1.0, %v3118_v24  ;;  %v2877_v26 = vmul.f32 %v3118_v24, %v9827_v7 }
 0x998   :  { %3119 = vtanh.f32 %v2873_v25 }
 0x999   :  { %3121 = vrcp.f32 %v2883_v33 }
 0x9a5   :  { %v3120_v2 = vpop.eup %3119 }
 0x9a6   :  { %v2876_v10 = vmul.f32 %v3120_v2, %v2875_v49  ;;  %v3122_v12 = vpop.eup %3121 }
 0x9a8   :  { %v2878_v22 = vadd.f32 %v2877_v26, %v2876_v10 }
 0x9aa   :  { %2965 = vst [vmem:[%s9950_s5 + $0x70] sm:$0xff] %v2878_v22  ;;  %2902 = vst [vmem:[%s9951_s6] sm:$0xff] %v2878_v22 }
 0x9af   :  { %v2847_v0 = vpop.f32.mrf.mxu0 }
 0x9b0   :  { %v2848_v37 = vadd.f32 %v2847_v0, %v5582_v54 }
 0x9b1   :  { %v2849_v4 = vpop.f32.mrf.mxu0 }
 0x9b2   :  { %v2886_v45 = vadd.f32 %v2848_v37, %v451_v15  ;;  %v2850_v7 = vadd.f32 %v2849_v4, %v5591_v34 }
 0x9b4   :  { %v2964_v48 = vmul.f32 -1.442695, %v2886_v45  ;;  %v2893_v44 = vmul.f32 %v3122_v12, %v2850_v7 }
 0x9b6   :  { %3123 = vpow2.f32 %v2964_v48  ;;  %v2894_v31 = vadd.f32 %v2893_v44, %v453_v62 }
 0x9c3   :  { %v3124_v38 = vpop.eup %3123 }
 0x9c4   :  { %v2890_v43 = vadd.f32 1.0, %v3124_v38 }
 0x9c6   :  { %3125 = vrcp.f32 %v2890_v43 }
 0x9c7   :  { %3127 = vtanh.f32 %v2894_v31 }
 0x9d3   :  { %v3126_v60 = vpop.eup %3125 }
 0x9d4   :  { %v2896_v32 = vsub.f32 1.0, %v3126_v60  ;;  %v3128_v50 = vpop.eup %3127  ;;  %v2898_v54 = vmul.f32 %v3126_v60, %v9840_v19 }
 0x9d6   :  { %v2897_v52 = vmul.f32 %v3128_v50, %v2896_v32 }
 0x9d8   :  { %v2899_v20 = vadd.f32 %v2898_v54, %v2897_v52 }
 0x9da   :  { %2901 = vst [vmem:[%s9950_s5 + $0x8] sm:$0xff] %v2899_v20  ;;  %2966 = vst [vmem:[%s9951_s6 + $0x8] sm:$0xff] %v2899_v20 }

</bundles_post_ra>
